<compile_context>
chip_gen: v7x
topology: tpu7x:2x2x1
jax: 0.10.0
libtpu: 0.0.40
codegen_flags: <defaults>
</compile_context>

<pallas_src>
import functools

import jax
import jax.numpy as jnp
import numpy as np
from jax.experimental import pallas as pl
from jax.experimental.pallas import tpu as pltpu

EPS = 1e-5


def _round_up(x, m):
    return (x + m - 1) // m * m


# -----------------------------------------------------------------------------
# Fully fused kernel: the whole network for one sample, VMEM resident.
# -----------------------------------------------------------------------------
def _fused_cnn_kernel(*refs, depth, width, stride, dims, s_sizes, eps):
    # refs layout:
    #   refs[0]                       : x       (1, Cin0, S0)
    #   refs[1+5l .. 1+5l+4]          : layer l w (9, Cout, Cin), b/g/beta (Cout, 1),
    #                                            mask (1, S_{l+1})
    #   refs[1 + 5*depth]             : fc_w^T  (num_classes, width)
    #   refs[2 + 5*depth]             : fc_b    (num_classes, 1)
    #   refs[3 + 5*depth]             : output  (1, num_classes, 1)
    x_ref = refs[0]
    layer_refs = refs[1:1 + 5 * depth]
    fcw_ref = refs[1 + 5 * depth]
    fcb_ref = refs[2 + 5 * depth]
    o_ref = refs[3 + 5 * depth]

    x = x_ref[0]                                     # (Cin0, S0) f32, lane-dense
    maskf = None

    for l in range(depth):
        w_ref, b_ref, g_ref, be_ref, m_ref = layer_refs[5 * l:5 * l + 5]
        s_out = s_sizes[l + 1]
        d_out = dims[l + 1]

        # ---- Conv3x3 (valid): 9 whole-image MXU matmuls, f32 accumulation ----
        acc = None
        for dh in range(3):
            for dw in range(3):
                shift = dh * stride + dw             # static lane offset
                xs = x[:, shift:shift + s_out]       # (Cin, s_out)
                tap = dh * 3 + dw
                part = jnp.dot(w_ref[tap], xs,       # (Cout, Cin) @ (Cin, s_out)
                               preferred_element_type=jnp.float32)
                acc = part if acc is None else acc + part
        acc = acc + b_ref[...]                       # (Cout, s_out), + bias

        # ---- GroupNorm(1) over (C, H, W): masked, in-register statistics ----
        maskf = m_ref[...]                           # (1, s_out) 0/1 valid-pixel mask
        inv_count = 1.0 / float(d_out * d_out * width)
        mean = jnp.sum(acc * maskf) * inv_count
        diff = acc - mean
        var = jnp.sum(diff * diff * maskf) * inv_count
        y = diff * jax.lax.rsqrt(var + eps)          # EUP rsqrt
        y = y * g_ref[...] + be_ref[...]             # per-channel affine
        x = jnp.maximum(y, 0.0)                      # ReLU -> next layer input

    # ---- Global average pool + Linear, fused into the same kernel ----
    d_f = dims[depth]
    pooled = jnp.sum(x * maskf, axis=1, keepdims=True) * (1.0 / float(d_f * d_f))
    logits = jnp.dot(fcw_ref[...], pooled,           # (nc, width) @ (width, 1)
                     preferred_element_type=jnp.float32) + fcb_ref[...]
    o_ref[0] = logits                                # (num_classes, 1)


# -----------------------------------------------------------------------------
# Wrapper: NCHW in (like PyTorch), one pallas_call for the whole network.
# -----------------------------------------------------------------------------
def cnn_debug_forward(x_nchw, params, eps=EPS):
    """x_nchw: (N, 3, H, W) float32. Returns (N, num_classes)."""
    N, cin0, H, W = x_nchw.shape
    assert H == W, "square inputs expected (module uses 32x32)"
    depth = len(params["convs"])
    width = params["convs"][0][0].shape[-1]
    num_classes = params["fc_w"].shape[-1]

    # Per-layer spatial dim (valid 3x3) and padded flat-spatial lane sizes.
    dims = tuple(H - 2 * l for l in range(depth + 1))
    pad = _round_up(2 * W + 2, 8)                    # lookahead for one 3x3 window
    s_sizes = [0] * (depth + 1)
    s_sizes[depth] = _round_up((dims[depth] - 1) * W + dims[depth], 8)
    for l in range(depth - 1, -1, -1):
        s_sizes[l] = s_sizes[l + 1] + pad
    s_sizes[0] = max(s_sizes[0], H * W)
    s_sizes = tuple(s_sizes)

    def _full_spec(shape):
        zeros = (0,) * len(shape)
        return pl.BlockSpec(shape, lambda n: zeros)

    # NCHW -> lane-dense (N, C, H*W), zero padded along the flat-spatial axis.
    x_flat = x_nchw.reshape(N, cin0, H * W)
    x_flat = jnp.pad(x_flat, ((0, 0), (0, 0), (0, s_sizes[0] - H * W)))

    inputs = [x_flat]
    in_specs = [pl.BlockSpec((1, cin0, s_sizes[0]), lambda n: (n, 0, 0))]

    for l, (w, b, g, be) in enumerate(params["convs"]):
        kh, kw, cin, cout = w.shape
        # HWIO -> (9, Cout, Cin): each tap is a lane-dense (Cout, Cin) matrix.
        w_t = jnp.transpose(w, (0, 1, 3, 2)).reshape(kh * kw, cout, cin)
        d_out, s_out = dims[l + 1], s_sizes[l + 1]
        col = np.arange(s_out)
        mask = (((col // W) < d_out) & ((col % W) < d_out)).astype(np.float32)
        mask = jnp.asarray(mask).reshape(1, s_out)
        inputs += [w_t, b.reshape(cout, 1), g.reshape(cout, 1),
                   be.reshape(cout, 1), mask]
        in_specs += [_full_spec((kh * kw, cout, cin)), _full_spec((cout, 1)),
                     _full_spec((cout, 1)), _full_spec((cout, 1)),
                     _full_spec((1, s_out))]

    fcw_t = jnp.transpose(params["fc_w"])            # (num_classes, width)
    fcb = params["fc_b"].reshape(num_classes, 1)
    inputs += [fcw_t, fcb]
    in_specs += [_full_spec((num_classes, width)), _full_spec((num_classes, 1))]

    kernel = functools.partial(
        _fused_cnn_kernel, depth=depth, width=width, stride=W,
        dims=dims, s_sizes=s_sizes, eps=eps)

    out = pl.pallas_call(
        kernel,
        out_shape=jax.ShapeDtypeStruct((N, num_classes, 1), jnp.float32),
        grid=(N,),
        in_specs=in_specs,
        out_specs=pl.BlockSpec((1, num_classes, 1), lambda n: (n, 0, 0)),
        compiler_params=pltpu.CompilerParams(
            dimension_semantics=("parallel",)),       # megacore on v7x
    )(*inputs)
    return out[:, :, 0]


# -----------------------------------------------------------------------------
# Deterministic parameter init (PyTorch-like uniform(+/- 1/sqrt(fan_in)))
# -----------------------------------------------------------------------------
def init_params(key, num_classes=10, depth=4, width=16):
    convs = []
    cin = 3
    for _ in range(depth):
        key, kw, kb, kg, kbe = jax.random.split(key, 5)
        bound = 1.0 / np.sqrt(cin * 9)
        w = jax.random.uniform(kw, (3, 3, cin, width), jnp.float32, -bound, bound)
        b = jax.random.uniform(kb, (width,), jnp.float32, -bound, bound)
        g = 1.0 + 0.1 * jax.random.normal(kg, (width,), jnp.float32)
        be = 0.1 * jax.random.normal(kbe, (width,), jnp.float32)
        convs.append((w, b, g, be))
        cin = width
    key, kw, kb = jax.random.split(key, 3)
    bound = 1.0 / np.sqrt(width)
    fc_w = jax.random.uniform(kw, (width, num_classes), jnp.float32, -bound, bound)
    fc_b = jax.random.uniform(kb, (num_classes,), jnp.float32, -bound, bound)
    return {"convs": convs, "fc_w": fc_w, "fc_b": fc_b}


# -----------------------------------------------------------------------------
# Pure-JAX (f32 / HIGHEST) reference for correctness check
# -----------------------------------------------------------------------------
def ref_forward(x_nchw, params, eps=EPS):
    x = x_nchw
    for (w, b, g, be) in params["convs"]:
        w_oihw = jnp.transpose(w, (3, 2, 0, 1))
        x = jax.lax.conv_general_dilated(
            x, w_oihw, (1, 1), "VALID",
            dimension_numbers=("NCHW", "OIHW", "NCHW"),
            precision=jax.lax.Precision.HIGHEST)
        x = x + b[None, :, None, None]
        mean = jnp.mean(x, axis=(1, 2, 3), keepdims=True)
        var = jnp.mean(jnp.square(x - mean), axis=(1, 2, 3), keepdims=True)
        x = (x - mean) * jax.lax.rsqrt(var + eps)
        x = x * g[None, :, None, None] + be[None, :, None, None]
        x = jnp.maximum(x, 0.0)
    pooled = jnp.mean(x, axis=(2, 3))
    return jnp.dot(pooled, params["fc_w"],
                   precision=jax.lax.Precision.HIGHEST) + params["fc_b"]


if __name__ == "__main__":
    num_classes, depth, width = 10, 4, 16
    key = jax.random.PRNGKey(0)
    key, kx = jax.random.split(key)
    # Spatial size must be 32 (feature_size = 32 - 2*depth in the module).
    x = jax.random.normal(kx, (2, 3, 32, 32), jnp.float32)  # NCHW like PyTorch
    params = init_params(key, num_classes=num_classes, depth=depth, width=width)

    fwd = jax.jit(cnn_debug_forward)
    out = jax.block_until_ready(fwd(x, params))
    assert out.shape == (2, num_classes), out.shape

    ref = jax.block_until_ready(ref_forward(x, params))
    # Kernel uses TPU-default (bf16-pass) MXU precision with f32 accumulation
    # (per perf review); reference is full-f32 HIGHEST, hence the 2e-2 tolerance.
    np.testing.assert_allclose(np.asarray(out), np.asarray(ref), rtol=2e-2, atol=2e-2)

    print("KERNEL_OK")
</pallas_src>

<mosaic_0001>
module attributes {stable_mosaic.version = 11 : i64} {
  func.func @_fused_cnn_kernel(%arg0: i32, %arg1: memref<1x3x1048xf32, #tpu.memory_space<vmem>>, %arg2: memref<9x16x3xf32, #tpu.memory_space<vmem>>, %arg3: memref<16x1xf32, #tpu.memory_space<vmem>>, %arg4: memref<16x1xf32, #tpu.memory_space<vmem>>, %arg5: memref<16x1xf32, #tpu.memory_space<vmem>>, %arg6: memref<1x976xf32, #tpu.memory_space<vmem>>, %arg7: memref<9x16x16xf32, #tpu.memory_space<vmem>>, %arg8: memref<16x1xf32, #tpu.memory_space<vmem>>, %arg9: memref<16x1xf32, #tpu.memory_space<vmem>>, %arg10: memref<16x1xf32, #tpu.memory_space<vmem>>, %arg11: memref<1x904xf32, #tpu.memory_space<vmem>>, %arg12: memref<9x16x16xf32, #tpu.memory_space<vmem>>, %arg13: memref<16x1xf32, #tpu.memory_space<vmem>>, %arg14: memref<16x1xf32, #tpu.memory_space<vmem>>, %arg15: memref<16x1xf32, #tpu.memory_space<vmem>>, %arg16: memref<1x832xf32, #tpu.memory_space<vmem>>, %arg17: memref<9x16x16xf32, #tpu.memory_space<vmem>>, %arg18: memref<16x1xf32, #tpu.memory_space<vmem>>, %arg19: memref<16x1xf32, #tpu.memory_space<vmem>>, %arg20: memref<16x1xf32, #tpu.memory_space<vmem>>, %arg21: memref<1x760xf32, #tpu.memory_space<vmem>>, %arg22: memref<10x16xf32, #tpu.memory_space<vmem>>, %arg23: memref<10x1xf32, #tpu.memory_space<vmem>>, %arg24: memref<1x10x1xf32, #tpu.memory_space<vmem>>) attributes {dimension_semantics = [#tpu.dimension_semantics<parallel>], iteration_bounds = array<i64: 2>, scalar_prefetch = 0 : i64, scratch_operands = 0 : i64, tpu.core_type = #tpu.core_type<tc>, window_params = [{transform_indices = @transform_0, window_bounds = array<i64: 1, 3, 1048>}, {pipeline_mode = #tpu.pipeline_mode<synchronous>, transform_indices = @transform_1, window_bounds = array<i64: 9, 16, 3>}, {pipeline_mode = #tpu.pipeline_mode<synchronous>, transform_indices = @transform_2, window_bounds = array<i64: 16, 1>}, {pipeline_mode = #tpu.pipeline_mode<synchronous>, transform_indices = @transform_3, window_bounds = array<i64: 16, 1>}, {pipeline_mode = #tpu.pipeline_mode<synchronous>, transform_indices = @transform_4, window_bounds = array<i64: 16, 1>}, {pipeline_mode = #tpu.pipeline_mode<synchronous>, transform_indices = @transform_5, window_bounds = array<i64: 1, 976>}, {pipeline_mode = #tpu.pipeline_mode<synchronous>, transform_indices = @transform_6, window_bounds = array<i64: 9, 16, 16>}, {pipeline_mode = #tpu.pipeline_mode<synchronous>, transform_indices = @transform_7, window_bounds = array<i64: 16, 1>}, {pipeline_mode = #tpu.pipeline_mode<synchronous>, transform_indices = @transform_8, window_bounds = array<i64: 16, 1>}, {pipeline_mode = #tpu.pipeline_mode<synchronous>, transform_indices = @transform_9, window_bounds = array<i64: 16, 1>}, {pipeline_mode = #tpu.pipeline_mode<synchronous>, transform_indices = @transform_10, window_bounds = array<i64: 1, 904>}, {pipeline_mode = #tpu.pipeline_mode<synchronous>, transform_indices = @transform_11, window_bounds = array<i64: 9, 16, 16>}, {pipeline_mode = #tpu.pipeline_mode<synchronous>, transform_indices = @transform_12, window_bounds = array<i64: 16, 1>}, {pipeline_mode = #tpu.pipeline_mode<synchronous>, transform_indices = @transform_13, window_bounds = array<i64: 16, 1>}, {pipeline_mode = #tpu.pipeline_mode<synchronous>, transform_indices = @transform_14, window_bounds = array<i64: 16, 1>}, {pipeline_mode = #tpu.pipeline_mode<synchronous>, transform_indices = @transform_15, window_bounds = array<i64: 1, 832>}, {pipeline_mode = #tpu.pipeline_mode<synchronous>, transform_indices = @transform_16, window_bounds = array<i64: 9, 16, 16>}, {pipeline_mode = #tpu.pipeline_mode<synchronous>, transform_indices = @transform_17, window_bounds = array<i64: 16, 1>}, {pipeline_mode = #tpu.pipeline_mode<synchronous>, transform_indices = @transform_18, window_bounds = array<i64: 16, 1>}, {pipeline_mode = #tpu.pipeline_mode<synchronous>, transform_indices = @transform_19, window_bounds = array<i64: 16, 1>}, {pipeline_mode = #tpu.pipeline_mode<synchronous>, transform_indices = @transform_20, window_bounds = array<i64: 1, 760>}, {pipeline_mode = #tpu.pipeline_mode<synchronous>, transform_indices = @transform_21, window_bounds = array<i64: 10, 16>}, {pipeline_mode = #tpu.pipeline_mode<synchronous>, transform_indices = @transform_22, window_bounds = array<i64: 10, 1>}, {transform_indices = @transform_23, window_bounds = array<i64: 1, 10, 1>}]} {
    %c0 = arith.constant 0 : index
    %c0_0 = arith.constant 0 : index
    %c0_1 = arith.constant 0 : index
    %0 = vector.load %arg1[%c0, %c0_0, %c0_1] : memref<1x3x1048xf32, #tpu.memory_space<vmem>>, vector<1x3x1048xf32>
    %1 = vector.shape_cast %0 : vector<1x3x1048xf32> to vector<3x1048xf32>
    %2 = vector.extract_strided_slice %1 {offsets = [0, 0], sizes = [3, 976], strides = [1, 1]} : vector<3x1048xf32> to vector<3x976xf32>
    %c0_2 = arith.constant 0 : index
    %c0_3 = arith.constant 0 : index
    %c0_4 = arith.constant 0 : index
    %3 = vector.load %arg2[%c0_2, %c0_3, %c0_4] : memref<9x16x3xf32, #tpu.memory_space<vmem>>, vector<1x16x3xf32>
    %4 = vector.shape_cast %3 : vector<1x16x3xf32> to vector<16x3xf32>
    %cst = arith.constant dense<0.000000e+00> : vector<16x976xf32>
    %5 = tpu.matmul %4, %2, %cst {dimension_numbers = #tpu.dot_dimension_numbers<[1], [0], [0], [1], [0, 0, 1, 1], [], []>} : vector<16x3xf32>, vector<3x976xf32>, vector<16x976xf32> -> vector<16x976xf32>
    %6 = vector.extract_strided_slice %1 {offsets = [0, 1], sizes = [3, 976], strides = [1, 1]} : vector<3x1048xf32> to vector<3x976xf32>
    %c1 = arith.constant 1 : index
    %c0_5 = arith.constant 0 : index
    %c0_6 = arith.constant 0 : index
    %7 = vector.load %arg2[%c1, %c0_5, %c0_6] : memref<9x16x3xf32, #tpu.memory_space<vmem>>, vector<1x16x3xf32>
    %8 = vector.shape_cast %7 : vector<1x16x3xf32> to vector<16x3xf32>
    %cst_7 = arith.constant dense<0.000000e+00> : vector<16x976xf32>
    %9 = tpu.matmul %8, %6, %cst_7 {dimension_numbers = #tpu.dot_dimension_numbers<[1], [0], [0], [1], [0, 0, 1, 1], [], []>} : vector<16x3xf32>, vector<3x976xf32>, vector<16x976xf32> -> vector<16x976xf32>
    %10 = arith.addf %5, %9 : vector<16x976xf32>
    %11 = vector.extract_strided_slice %1 {offsets = [0, 2], sizes = [3, 976], strides = [1, 1]} : vector<3x1048xf32> to vector<3x976xf32>
    %c2 = arith.constant 2 : index
    %c0_8 = arith.constant 0 : index
    %c0_9 = arith.constant 0 : index
    %12 = vector.load %arg2[%c2, %c0_8, %c0_9] : memref<9x16x3xf32, #tpu.memory_space<vmem>>, vector<1x16x3xf32>
    %13 = vector.shape_cast %12 : vector<1x16x3xf32> to vector<16x3xf32>
    %cst_10 = arith.constant dense<0.000000e+00> : vector<16x976xf32>
    %14 = tpu.matmul %13, %11, %cst_10 {dimension_numbers = #tpu.dot_dimension_numbers<[1], [0], [0], [1], [0, 0, 1, 1], [], []>} : vector<16x3xf32>, vector<3x976xf32>, vector<16x976xf32> -> vector<16x976xf32>
    %15 = arith.addf %10, %14 : vector<16x976xf32>
    %16 = vector.extract_strided_slice %1 {offsets = [0, 32], sizes = [3, 976], strides = [1, 1]} : vector<3x1048xf32> to vector<3x976xf32>
    %c3 = arith.constant 3 : index
    %c0_11 = arith.constant 0 : index
    %c0_12 = arith.constant 0 : index
    %17 = vector.load %arg2[%c3, %c0_11, %c0_12] : memref<9x16x3xf32, #tpu.memory_space<vmem>>, vector<1x16x3xf32>
    %18 = vector.shape_cast %17 : vector<1x16x3xf32> to vector<16x3xf32>
    %cst_13 = arith.constant dense<0.000000e+00> : vector<16x976xf32>
    %19 = tpu.matmul %18, %16, %cst_13 {dimension_numbers = #tpu.dot_dimension_numbers<[1], [0], [0], [1], [0, 0, 1, 1], [], []>} : vector<16x3xf32>, vector<3x976xf32>, vector<16x976xf32> -> vector<16x976xf32>
    %20 = arith.addf %15, %19 : vector<16x976xf32>
    %21 = vector.extract_strided_slice %1 {offsets = [0, 33], sizes = [3, 976], strides = [1, 1]} : vector<3x1048xf32> to vector<3x976xf32>
    %c4 = arith.constant 4 : index
    %c0_14 = arith.constant 0 : index
    %c0_15 = arith.constant 0 : index
    %22 = vector.load %arg2[%c4, %c0_14, %c0_15] : memref<9x16x3xf32, #tpu.memory_space<vmem>>, vector<1x16x3xf32>
    %23 = vector.shape_cast %22 : vector<1x16x3xf32> to vector<16x3xf32>
    %cst_16 = arith.constant dense<0.000000e+00> : vector<16x976xf32>
    %24 = tpu.matmul %23, %21, %cst_16 {dimension_numbers = #tpu.dot_dimension_numbers<[1], [0], [0], [1], [0, 0, 1, 1], [], []>} : vector<16x3xf32>, vector<3x976xf32>, vector<16x976xf32> -> vector<16x976xf32>
    %25 = arith.addf %20, %24 : vector<16x976xf32>
    %26 = vector.extract_strided_slice %1 {offsets = [0, 34], sizes = [3, 976], strides = [1, 1]} : vector<3x1048xf32> to vector<3x976xf32>
    %c5 = arith.constant 5 : index
    %c0_17 = arith.constant 0 : index
    %c0_18 = arith.constant 0 : index
    %27 = vector.load %arg2[%c5, %c0_17, %c0_18] : memref<9x16x3xf32, #tpu.memory_space<vmem>>, vector<1x16x3xf32>
    %28 = vector.shape_cast %27 : vector<1x16x3xf32> to vector<16x3xf32>
    %cst_19 = arith.constant dense<0.000000e+00> : vector<16x976xf32>
    %29 = tpu.matmul %28, %26, %cst_19 {dimension_numbers = #tpu.dot_dimension_numbers<[1], [0], [0], [1], [0, 0, 1, 1], [], []>} : vector<16x3xf32>, vector<3x976xf32>, vector<16x976xf32> -> vector<16x976xf32>
    %30 = arith.addf %25, %29 : vector<16x976xf32>
    %31 = vector.extract_strided_slice %1 {offsets = [0, 64], sizes = [3, 976], strides = [1, 1]} : vector<3x1048xf32> to vector<3x976xf32>
    %c6 = arith.constant 6 : index
    %c0_20 = arith.constant 0 : index
    %c0_21 = arith.constant 0 : index
    %32 = vector.load %arg2[%c6, %c0_20, %c0_21] : memref<9x16x3xf32, #tpu.memory_space<vmem>>, vector<1x16x3xf32>
    %33 = vector.shape_cast %32 : vector<1x16x3xf32> to vector<16x3xf32>
    %cst_22 = arith.constant dense<0.000000e+00> : vector<16x976xf32>
    %34 = tpu.matmul %33, %31, %cst_22 {dimension_numbers = #tpu.dot_dimension_numbers<[1], [0], [0], [1], [0, 0, 1, 1], [], []>} : vector<16x3xf32>, vector<3x976xf32>, vector<16x976xf32> -> vector<16x976xf32>
    %35 = arith.addf %30, %34 : vector<16x976xf32>
    %36 = vector.extract_strided_slice %1 {offsets = [0, 65], sizes = [3, 976], strides = [1, 1]} : vector<3x1048xf32> to vector<3x976xf32>
    %c7 = arith.constant 7 : index
    %c0_23 = arith.constant 0 : index
    %c0_24 = arith.constant 0 : index
    %37 = vector.load %arg2[%c7, %c0_23, %c0_24] : memref<9x16x3xf32, #tpu.memory_space<vmem>>, vector<1x16x3xf32>
    %38 = vector.shape_cast %37 : vector<1x16x3xf32> to vector<16x3xf32>
    %cst_25 = arith.constant dense<0.000000e+00> : vector<16x976xf32>
    %39 = tpu.matmul %38, %36, %cst_25 {dimension_numbers = #tpu.dot_dimension_numbers<[1], [0], [0], [1], [0, 0, 1, 1], [], []>} : vector<16x3xf32>, vector<3x976xf32>, vector<16x976xf32> -> vector<16x976xf32>
    %40 = arith.addf %35, %39 : vector<16x976xf32>
    %41 = vector.extract_strided_slice %1 {offsets = [0, 66], sizes = [3, 976], strides = [1, 1]} : vector<3x1048xf32> to vector<3x976xf32>
    %c8 = arith.constant 8 : index
    %c0_26 = arith.constant 0 : index
    %c0_27 = arith.constant 0 : index
    %42 = vector.load %arg2[%c8, %c0_26, %c0_27] : memref<9x16x3xf32, #tpu.memory_space<vmem>>, vector<1x16x3xf32>
    %43 = vector.shape_cast %42 : vector<1x16x3xf32> to vector<16x3xf32>
    %cst_28 = arith.constant dense<0.000000e+00> : vector<16x976xf32>
    %44 = tpu.matmul %43, %41, %cst_28 {dimension_numbers = #tpu.dot_dimension_numbers<[1], [0], [0], [1], [0, 0, 1, 1], [], []>} : vector<16x3xf32>, vector<3x976xf32>, vector<16x976xf32> -> vector<16x976xf32>
    %45 = arith.addf %40, %44 : vector<16x976xf32>
    %c0_29 = arith.constant 0 : index
    %c0_30 = arith.constant 0 : index
    %46 = vector.load %arg3[%c0_29, %c0_30] : memref<16x1xf32, #tpu.memory_space<vmem>>, vector<16x1xf32>
    %47 = vector.broadcast %46 : vector<16x1xf32> to vector<16x976xf32>
    %48 = arith.addf %45, %47 : vector<16x976xf32>
    %c0_31 = arith.constant 0 : index
    %c0_32 = arith.constant 0 : index
    %49 = vector.load %arg6[%c0_31, %c0_32] : memref<1x976xf32, #tpu.memory_space<vmem>>, vector<1x976xf32>
    %50 = vector.broadcast %49 : vector<1x976xf32> to vector<16x976xf32>
    %51 = arith.mulf %48, %50 : vector<16x976xf32>
    %52 = vector.shape_cast %51 : vector<16x976xf32> to vector<1x16x976xf32>
    %cst_33 = arith.constant dense<0.000000e+00> : vector<1xf32>
    %53 = vector.multi_reduction <add>, %52, %cst_33 [1, 2] : vector<1x16x976xf32> to vector<1xf32>
    %54 = vector.shape_cast %53 : vector<1xf32> to vector<1x1x1xf32>
    %55 = vector.extract %54[0, 0, 0] : f32 from vector<1x1x1xf32>
    %cst_34 = arith.constant 6.94444461E-5 : f32
    %56 = arith.mulf %55, %cst_34 : f32
    %57 = vector.broadcast %56 : f32 to vector<16x976xf32>
    %58 = arith.subf %48, %57 : vector<16x976xf32>
    %59 = arith.mulf %58, %58 : vector<16x976xf32>
    %60 = vector.broadcast %49 : vector<1x976xf32> to vector<16x976xf32>
    %61 = arith.mulf %59, %60 : vector<16x976xf32>
    %62 = vector.shape_cast %61 : vector<16x976xf32> to vector<1x16x976xf32>
    %cst_35 = arith.constant dense<0.000000e+00> : vector<1xf32>
    %63 = vector.multi_reduction <add>, %62, %cst_35 [1, 2] : vector<1x16x976xf32> to vector<1xf32>
    %64 = vector.shape_cast %63 : vector<1xf32> to vector<1x1x1xf32>
    %65 = vector.extract %64[0, 0, 0] : f32 from vector<1x1x1xf32>
    %cst_36 = arith.constant 6.94444461E-5 : f32
    %66 = arith.mulf %65, %cst_36 : f32
    %cst_37 = arith.constant 9.99999974E-6 : f32
    %67 = arith.addf %66, %cst_37 : f32
    %68 = math.rsqrt %67 : f32
    %69 = vector.broadcast %68 : f32 to vector<16x976xf32>
    %70 = arith.mulf %58, %69 : vector<16x976xf32>
    %c0_38 = arith.constant 0 : index
    %c0_39 = arith.constant 0 : index
    %71 = vector.load %arg4[%c0_38, %c0_39] : memref<16x1xf32, #tpu.memory_space<vmem>>, vector<16x1xf32>
    %72 = vector.broadcast %71 : vector<16x1xf32> to vector<16x976xf32>
    %73 = arith.mulf %70, %72 : vector<16x976xf32>
    %c0_40 = arith.constant 0 : index
    %c0_41 = arith.constant 0 : index
    %74 = vector.load %arg5[%c0_40, %c0_41] : memref<16x1xf32, #tpu.memory_space<vmem>>, vector<16x1xf32>
    %75 = vector.broadcast %74 : vector<16x1xf32> to vector<16x976xf32>
    %76 = arith.addf %73, %75 : vector<16x976xf32>
    %cst_42 = arith.constant 0.000000e+00 : f32
    %77 = vector.broadcast %cst_42 : f32 to vector<16x976xf32>
    %78 = arith.maximumf %76, %77 : vector<16x976xf32>
    %79 = vector.extract_strided_slice %78 {offsets = [0, 0], sizes = [16, 904], strides = [1, 1]} : vector<16x976xf32> to vector<16x904xf32>
    %c0_43 = arith.constant 0 : index
    %c0_44 = arith.constant 0 : index
    %c0_45 = arith.constant 0 : index
    %80 = vector.load %arg7[%c0_43, %c0_44, %c0_45] : memref<9x16x16xf32, #tpu.memory_space<vmem>>, vector<1x16x16xf32>
    %81 = vector.shape_cast %80 : vector<1x16x16xf32> to vector<16x16xf32>
    %cst_46 = arith.constant dense<0.000000e+00> : vector<16x904xf32>
    %82 = tpu.matmul %81, %79, %cst_46 {dimension_numbers = #tpu.dot_dimension_numbers<[1], [0], [0], [1], [0, 0, 1, 1], [], []>} : vector<16x16xf32>, vector<16x904xf32>, vector<16x904xf32> -> vector<16x904xf32>
    %83 = vector.extract_strided_slice %78 {offsets = [0, 1], sizes = [16, 904], strides = [1, 1]} : vector<16x976xf32> to vector<16x904xf32>
    %c1_47 = arith.constant 1 : index
    %c0_48 = arith.constant 0 : index
    %c0_49 = arith.constant 0 : index
    %84 = vector.load %arg7[%c1_47, %c0_48, %c0_49] : memref<9x16x16xf32, #tpu.memory_space<vmem>>, vector<1x16x16xf32>
    %85 = vector.shape_cast %84 : vector<1x16x16xf32> to vector<16x16xf32>
    %cst_50 = arith.constant dense<0.000000e+00> : vector<16x904xf32>
    %86 = tpu.matmul %85, %83, %cst_50 {dimension_numbers = #tpu.dot_dimension_numbers<[1], [0], [0], [1], [0, 0, 1, 1], [], []>} : vector<16x16xf32>, vector<16x904xf32>, vector<16x904xf32> -> vector<16x904xf32>
    %87 = arith.addf %82, %86 : vector<16x904xf32>
    %88 = vector.extract_strided_slice %78 {offsets = [0, 2], sizes = [16, 904], strides = [1, 1]} : vector<16x976xf32> to vector<16x904xf32>
    %c2_51 = arith.constant 2 : index
    %c0_52 = arith.constant 0 : index
    %c0_53 = arith.constant 0 : index
    %89 = vector.load %arg7[%c2_51, %c0_52, %c0_53] : memref<9x16x16xf32, #tpu.memory_space<vmem>>, vector<1x16x16xf32>
    %90 = vector.shape_cast %89 : vector<1x16x16xf32> to vector<16x16xf32>
    %cst_54 = arith.constant dense<0.000000e+00> : vector<16x904xf32>
    %91 = tpu.matmul %90, %88, %cst_54 {dimension_numbers = #tpu.dot_dimension_numbers<[1], [0], [0], [1], [0, 0, 1, 1], [], []>} : vector<16x16xf32>, vector<16x904xf32>, vector<16x904xf32> -> vector<16x904xf32>
    %92 = arith.addf %87, %91 : vector<16x904xf32>
    %93 = vector.extract_strided_slice %78 {offsets = [0, 32], sizes = [16, 904], strides = [1, 1]} : vector<16x976xf32> to vector<16x904xf32>
    %c3_55 = arith.constant 3 : index
    %c0_56 = arith.constant 0 : index
    %c0_57 = arith.constant 0 : index
    %94 = vector.load %arg7[%c3_55, %c0_56, %c0_57] : memref<9x16x16xf32, #tpu.memory_space<vmem>>, vector<1x16x16xf32>
    %95 = vector.shape_cast %94 : vector<1x16x16xf32> to vector<16x16xf32>
    %cst_58 = arith.constant dense<0.000000e+00> : vector<16x904xf32>
    %96 = tpu.matmul %95, %93, %cst_58 {dimension_numbers = #tpu.dot_dimension_numbers<[1], [0], [0], [1], [0, 0, 1, 1], [], []>} : vector<16x16xf32>, vector<16x904xf32>, vector<16x904xf32> -> vector<16x904xf32>
    %97 = arith.addf %92, %96 : vector<16x904xf32>
    %98 = vector.extract_strided_slice %78 {offsets = [0, 33], sizes = [16, 904], strides = [1, 1]} : vector<16x976xf32> to vector<16x904xf32>
    %c4_59 = arith.constant 4 : index
    %c0_60 = arith.constant 0 : index
    %c0_61 = arith.constant 0 : index
    %99 = vector.load %arg7[%c4_59, %c0_60, %c0_61] : memref<9x16x16xf32, #tpu.memory_space<vmem>>, vector<1x16x16xf32>
    %100 = vector.shape_cast %99 : vector<1x16x16xf32> to vector<16x16xf32>
    %cst_62 = arith.constant dense<0.000000e+00> : vector<16x904xf32>
    %101 = tpu.matmul %100, %98, %cst_62 {dimension_numbers = #tpu.dot_dimension_numbers<[1], [0], [0], [1], [0, 0, 1, 1], [], []>} : vector<16x16xf32>, vector<16x904xf32>, vector<16x904xf32> -> vector<16x904xf32>
    %102 = arith.addf %97, %101 : vector<16x904xf32>
    %103 = vector.extract_strided_slice %78 {offsets = [0, 34], sizes = [16, 904], strides = [1, 1]} : vector<16x976xf32> to vector<16x904xf32>
    %c5_63 = arith.constant 5 : index
    %c0_64 = arith.constant 0 : index
    %c0_65 = arith.constant 0 : index
    %104 = vector.load %arg7[%c5_63, %c0_64, %c0_65] : memref<9x16x16xf32, #tpu.memory_space<vmem>>, vector<1x16x16xf32>
    %105 = vector.shape_cast %104 : vector<1x16x16xf32> to vector<16x16xf32>
    %cst_66 = arith.constant dense<0.000000e+00> : vector<16x904xf32>
    %106 = tpu.matmul %105, %103, %cst_66 {dimension_numbers = #tpu.dot_dimension_numbers<[1], [0], [0], [1], [0, 0, 1, 1], [], []>} : vector<16x16xf32>, vector<16x904xf32>, vector<16x904xf32> -> vector<16x904xf32>
    %107 = arith.addf %102, %106 : vector<16x904xf32>
    %108 = vector.extract_strided_slice %78 {offsets = [0, 64], sizes = [16, 904], strides = [1, 1]} : vector<16x976xf32> to vector<16x904xf32>
    %c6_67 = arith.constant 6 : index
    %c0_68 = arith.constant 0 : index
    %c0_69 = arith.constant 0 : index
    %109 = vector.load %arg7[%c6_67, %c0_68, %c0_69] : memref<9x16x16xf32, #tpu.memory_space<vmem>>, vector<1x16x16xf32>
    %110 = vector.shape_cast %109 : vector<1x16x16xf32> to vector<16x16xf32>
    %cst_70 = arith.constant dense<0.000000e+00> : vector<16x904xf32>
    %111 = tpu.matmul %110, %108, %cst_70 {dimension_numbers = #tpu.dot_dimension_numbers<[1], [0], [0], [1], [0, 0, 1, 1], [], []>} : vector<16x16xf32>, vector<16x904xf32>, vector<16x904xf32> -> vector<16x904xf32>
    %112 = arith.addf %107, %111 : vector<16x904xf32>
    %113 = vector.extract_strided_slice %78 {offsets = [0, 65], sizes = [16, 904], strides = [1, 1]} : vector<16x976xf32> to vector<16x904xf32>
    %c7_71 = arith.constant 7 : index
    %c0_72 = arith.constant 0 : index
    %c0_73 = arith.constant 0 : index
    %114 = vector.load %arg7[%c7_71, %c0_72, %c0_73] : memref<9x16x16xf32, #tpu.memory_space<vmem>>, vector<1x16x16xf32>
    %115 = vector.shape_cast %114 : vector<1x16x16xf32> to vector<16x16xf32>
    %cst_74 = arith.constant dense<0.000000e+00> : vector<16x904xf32>
    %116 = tpu.matmul %115, %113, %cst_74 {dimension_numbers = #tpu.dot_dimension_numbers<[1], [0], [0], [1], [0, 0, 1, 1], [], []>} : vector<16x16xf32>, vector<16x904xf32>, vector<16x904xf32> -> vector<16x904xf32>
    %117 = arith.addf %112, %116 : vector<16x904xf32>
    %118 = vector.extract_strided_slice %78 {offsets = [0, 66], sizes = [16, 904], strides = [1, 1]} : vector<16x976xf32> to vector<16x904xf32>
    %c8_75 = arith.constant 8 : index
    %c0_76 = arith.constant 0 : index
    %c0_77 = arith.constant 0 : index
    %119 = vector.load %arg7[%c8_75, %c0_76, %c0_77] : memref<9x16x16xf32, #tpu.memory_space<vmem>>, vector<1x16x16xf32>
    %120 = vector.shape_cast %119 : vector<1x16x16xf32> to vector<16x16xf32>
    %cst_78 = arith.constant dense<0.000000e+00> : vector<16x904xf32>
    %121 = tpu.matmul %120, %118, %cst_78 {dimension_numbers = #tpu.dot_dimension_numbers<[1], [0], [0], [1], [0, 0, 1, 1], [], []>} : vector<16x16xf32>, vector<16x904xf32>, vector<16x904xf32> -> vector<16x904xf32>
    %122 = arith.addf %117, %121 : vector<16x904xf32>
    %c0_79 = arith.constant 0 : index
    %c0_80 = arith.constant 0 : index
    %123 = vector.load %arg8[%c0_79, %c0_80] : memref<16x1xf32, #tpu.memory_space<vmem>>, vector<16x1xf32>
    %124 = vector.broadcast %123 : vector<16x1xf32> to vector<16x904xf32>
    %125 = arith.addf %122, %124 : vector<16x904xf32>
    %c0_81 = arith.constant 0 : index
    %c0_82 = arith.constant 0 : index
    %126 = vector.load %arg11[%c0_81, %c0_82] : memref<1x904xf32, #tpu.memory_space<vmem>>, vector<1x904xf32>
    %127 = vector.broadcast %126 : vector<1x904xf32> to vector<16x904xf32>
    %128 = arith.mulf %125, %127 : vector<16x904xf32>
    %129 = vector.shape_cast %128 : vector<16x904xf32> to vector<1x16x904xf32>
    %cst_83 = arith.constant dense<0.000000e+00> : vector<1xf32>
    %130 = vector.multi_reduction <add>, %129, %cst_83 [1, 2] : vector<1x16x904xf32> to vector<1xf32>
    %131 = vector.shape_cast %130 : vector<1xf32> to vector<1x1x1xf32>
    %132 = vector.extract %131[0, 0, 0] : f32 from vector<1x1x1xf32>
    %cst_84 = arith.constant 7.97193861E-5 : f32
    %133 = arith.mulf %132, %cst_84 : f32
    %134 = vector.broadcast %133 : f32 to vector<16x904xf32>
    %135 = arith.subf %125, %134 : vector<16x904xf32>
    %136 = arith.mulf %135, %135 : vector<16x904xf32>
    %137 = vector.broadcast %126 : vector<1x904xf32> to vector<16x904xf32>
    %138 = arith.mulf %136, %137 : vector<16x904xf32>
    %139 = vector.shape_cast %138 : vector<16x904xf32> to vector<1x16x904xf32>
    %cst_85 = arith.constant dense<0.000000e+00> : vector<1xf32>
    %140 = vector.multi_reduction <add>, %139, %cst_85 [1, 2] : vector<1x16x904xf32> to vector<1xf32>
    %141 = vector.shape_cast %140 : vector<1xf32> to vector<1x1x1xf32>
    %142 = vector.extract %141[0, 0, 0] : f32 from vector<1x1x1xf32>
    %cst_86 = arith.constant 7.97193861E-5 : f32
    %143 = arith.mulf %142, %cst_86 : f32
    %cst_87 = arith.constant 9.99999974E-6 : f32
    %144 = arith.addf %143, %cst_87 : f32
    %145 = math.rsqrt %144 : f32
    %146 = vector.broadcast %145 : f32 to vector<16x904xf32>
    %147 = arith.mulf %135, %146 : vector<16x904xf32>
    %c0_88 = arith.constant 0 : index
    %c0_89 = arith.constant 0 : index
    %148 = vector.load %arg9[%c0_88, %c0_89] : memref<16x1xf32, #tpu.memory_space<vmem>>, vector<16x1xf32>
    %149 = vector.broadcast %148 : vector<16x1xf32> to vector<16x904xf32>
    %150 = arith.mulf %147, %149 : vector<16x904xf32>
    %c0_90 = arith.constant 0 : index
    %c0_91 = arith.constant 0 : index
    %151 = vector.load %arg10[%c0_90, %c0_91] : memref<16x1xf32, #tpu.memory_space<vmem>>, vector<16x1xf32>
    %152 = vector.broadcast %151 : vector<16x1xf32> to vector<16x904xf32>
    %153 = arith.addf %150, %152 : vector<16x904xf32>
    %cst_92 = arith.constant 0.000000e+00 : f32
    %154 = vector.broadcast %cst_92 : f32 to vector<16x904xf32>
    %155 = arith.maximumf %153, %154 : vector<16x904xf32>
    %156 = vector.extract_strided_slice %155 {offsets = [0, 0], sizes = [16, 832], strides = [1, 1]} : vector<16x904xf32> to vector<16x832xf32>
    %c0_93 = arith.constant 0 : index
    %c0_94 = arith.constant 0 : index
    %c0_95 = arith.constant 0 : index
    %157 = vector.load %arg12[%c0_93, %c0_94, %c0_95] : memref<9x16x16xf32, #tpu.memory_space<vmem>>, vector<1x16x16xf32>
    %158 = vector.shape_cast %157 : vector<1x16x16xf32> to vector<16x16xf32>
    %cst_96 = arith.constant dense<0.000000e+00> : vector<16x832xf32>
    %159 = tpu.matmul %158, %156, %cst_96 {dimension_numbers = #tpu.dot_dimension_numbers<[1], [0], [0], [1], [0, 0, 1, 1], [], []>} : vector<16x16xf32>, vector<16x832xf32>, vector<16x832xf32> -> vector<16x832xf32>
    %160 = vector.extract_strided_slice %155 {offsets = [0, 1], sizes = [16, 832], strides = [1, 1]} : vector<16x904xf32> to vector<16x832xf32>
    %c1_97 = arith.constant 1 : index
    %c0_98 = arith.constant 0 : index
    %c0_99 = arith.constant 0 : index
    %161 = vector.load %arg12[%c1_97, %c0_98, %c0_99] : memref<9x16x16xf32, #tpu.memory_space<vmem>>, vector<1x16x16xf32>
    %162 = vector.shape_cast %161 : vector<1x16x16xf32> to vector<16x16xf32>
    %cst_100 = arith.constant dense<0.000000e+00> : vector<16x832xf32>
    %163 = tpu.matmul %162, %160, %cst_100 {dimension_numbers = #tpu.dot_dimension_numbers<[1], [0], [0], [1], [0, 0, 1, 1], [], []>} : vector<16x16xf32>, vector<16x832xf32>, vector<16x832xf32> -> vector<16x832xf32>
    %164 = arith.addf %159, %163 : vector<16x832xf32>
    %165 = vector.extract_strided_slice %155 {offsets = [0, 2], sizes = [16, 832], strides = [1, 1]} : vector<16x904xf32> to vector<16x832xf32>
    %c2_101 = arith.constant 2 : index
    %c0_102 = arith.constant 0 : index
    %c0_103 = arith.constant 0 : index
    %166 = vector.load %arg12[%c2_101, %c0_102, %c0_103] : memref<9x16x16xf32, #tpu.memory_space<vmem>>, vector<1x16x16xf32>
    %167 = vector.shape_cast %166 : vector<1x16x16xf32> to vector<16x16xf32>
    %cst_104 = arith.constant dense<0.000000e+00> : vector<16x832xf32>
    %168 = tpu.matmul %167, %165, %cst_104 {dimension_numbers = #tpu.dot_dimension_numbers<[1], [0], [0], [1], [0, 0, 1, 1], [], []>} : vector<16x16xf32>, vector<16x832xf32>, vector<16x832xf32> -> vector<16x832xf32>
    %169 = arith.addf %164, %168 : vector<16x832xf32>
    %170 = vector.extract_strided_slice %155 {offsets = [0, 32], sizes = [16, 832], strides = [1, 1]} : vector<16x904xf32> to vector<16x832xf32>
    %c3_105 = arith.constant 3 : index
    %c0_106 = arith.constant 0 : index
    %c0_107 = arith.constant 0 : index
    %171 = vector.load %arg12[%c3_105, %c0_106, %c0_107] : memref<9x16x16xf32, #tpu.memory_space<vmem>>, vector<1x16x16xf32>
    %172 = vector.shape_cast %171 : vector<1x16x16xf32> to vector<16x16xf32>
    %cst_108 = arith.constant dense<0.000000e+00> : vector<16x832xf32>
    %173 = tpu.matmul %172, %170, %cst_108 {dimension_numbers = #tpu.dot_dimension_numbers<[1], [0], [0], [1], [0, 0, 1, 1], [], []>} : vector<16x16xf32>, vector<16x832xf32>, vector<16x832xf32> -> vector<16x832xf32>
    %174 = arith.addf %169, %173 : vector<16x832xf32>
    %175 = vector.extract_strided_slice %155 {offsets = [0, 33], sizes = [16, 832], strides = [1, 1]} : vector<16x904xf32> to vector<16x832xf32>
    %c4_109 = arith.constant 4 : index
    %c0_110 = arith.constant 0 : index
    %c0_111 = arith.constant 0 : index
    %176 = vector.load %arg12[%c4_109, %c0_110, %c0_111] : memref<9x16x16xf32, #tpu.memory_space<vmem>>, vector<1x16x16xf32>
    %177 = vector.shape_cast %176 : vector<1x16x16xf32> to vector<16x16xf32>
    %cst_112 = arith.constant dense<0.000000e+00> : vector<16x832xf32>
    %178 = tpu.matmul %177, %175, %cst_112 {dimension_numbers = #tpu.dot_dimension_numbers<[1], [0], [0], [1], [0, 0, 1, 1], [], []>} : vector<16x16xf32>, vector<16x832xf32>, vector<16x832xf32> -> vector<16x832xf32>
    %179 = arith.addf %174, %178 : vector<16x832xf32>
    %180 = vector.extract_strided_slice %155 {offsets = [0, 34], sizes = [16, 832], strides = [1, 1]} : vector<16x904xf32> to vector<16x832xf32>
    %c5_113 = arith.constant 5 : index
    %c0_114 = arith.constant 0 : index
    %c0_115 = arith.constant 0 : index
    %181 = vector.load %arg12[%c5_113, %c0_114, %c0_115] : memref<9x16x16xf32, #tpu.memory_space<vmem>>, vector<1x16x16xf32>
    %182 = vector.shape_cast %181 : vector<1x16x16xf32> to vector<16x16xf32>
    %cst_116 = arith.constant dense<0.000000e+00> : vector<16x832xf32>
    %183 = tpu.matmul %182, %180, %cst_116 {dimension_numbers = #tpu.dot_dimension_numbers<[1], [0], [0], [1], [0, 0, 1, 1], [], []>} : vector<16x16xf32>, vector<16x832xf32>, vector<16x832xf32> -> vector<16x832xf32>
    %184 = arith.addf %179, %183 : vector<16x832xf32>
    %185 = vector.extract_strided_slice %155 {offsets = [0, 64], sizes = [16, 832], strides = [1, 1]} : vector<16x904xf32> to vector<16x832xf32>
    %c6_117 = arith.constant 6 : index
    %c0_118 = arith.constant 0 : index
    %c0_119 = arith.constant 0 : index
    %186 = vector.load %arg12[%c6_117, %c0_118, %c0_119] : memref<9x16x16xf32, #tpu.memory_space<vmem>>, vector<1x16x16xf32>
    %187 = vector.shape_cast %186 : vector<1x16x16xf32> to vector<16x16xf32>
    %cst_120 = arith.constant dense<0.000000e+00> : vector<16x832xf32>
    %188 = tpu.matmul %187, %185, %cst_120 {dimension_numbers = #tpu.dot_dimension_numbers<[1], [0], [0], [1], [0, 0, 1, 1], [], []>} : vector<16x16xf32>, vector<16x832xf32>, vector<16x832xf32> -> vector<16x832xf32>
    %189 = arith.addf %184, %188 : vector<16x832xf32>
    %190 = vector.extract_strided_slice %155 {offsets = [0, 65], sizes = [16, 832], strides = [1, 1]} : vector<16x904xf32> to vector<16x832xf32>
    %c7_121 = arith.constant 7 : index
    %c0_122 = arith.constant 0 : index
    %c0_123 = arith.constant 0 : index
    %191 = vector.load %arg12[%c7_121, %c0_122, %c0_123] : memref<9x16x16xf32, #tpu.memory_space<vmem>>, vector<1x16x16xf32>
    %192 = vector.shape_cast %191 : vector<1x16x16xf32> to vector<16x16xf32>
    %cst_124 = arith.constant dense<0.000000e+00> : vector<16x832xf32>
    %193 = tpu.matmul %192, %190, %cst_124 {dimension_numbers = #tpu.dot_dimension_numbers<[1], [0], [0], [1], [0, 0, 1, 1], [], []>} : vector<16x16xf32>, vector<16x832xf32>, vector<16x832xf32> -> vector<16x832xf32>
    %194 = arith.addf %189, %193 : vector<16x832xf32>
    %195 = vector.extract_strided_slice %155 {offsets = [0, 66], sizes = [16, 832], strides = [1, 1]} : vector<16x904xf32> to vector<16x832xf32>
    %c8_125 = arith.constant 8 : index
    %c0_126 = arith.constant 0 : index
    %c0_127 = arith.constant 0 : index
    %196 = vector.load %arg12[%c8_125, %c0_126, %c0_127] : memref<9x16x16xf32, #tpu.memory_space<vmem>>, vector<1x16x16xf32>
    %197 = vector.shape_cast %196 : vector<1x16x16xf32> to vector<16x16xf32>
    %cst_128 = arith.constant dense<0.000000e+00> : vector<16x832xf32>
    %198 = tpu.matmul %197, %195, %cst_128 {dimension_numbers = #tpu.dot_dimension_numbers<[1], [0], [0], [1], [0, 0, 1, 1], [], []>} : vector<16x16xf32>, vector<16x832xf32>, vector<16x832xf32> -> vector<16x832xf32>
    %199 = arith.addf %194, %198 : vector<16x832xf32>
    %c0_129 = arith.constant 0 : index
    %c0_130 = arith.constant 0 : index
    %200 = vector.load %arg13[%c0_129, %c0_130] : memref<16x1xf32, #tpu.memory_space<vmem>>, vector<16x1xf32>
    %201 = vector.broadcast %200 : vector<16x1xf32> to vector<16x832xf32>
    %202 = arith.addf %199, %201 : vector<16x832xf32>
    %c0_131 = arith.constant 0 : index
    %c0_132 = arith.constant 0 : index
    %203 = vector.load %arg16[%c0_131, %c0_132] : memref<1x832xf32, #tpu.memory_space<vmem>>, vector<1x832xf32>
    %204 = vector.broadcast %203 : vector<1x832xf32> to vector<16x832xf32>
    %205 = arith.mulf %202, %204 : vector<16x832xf32>
    %206 = vector.shape_cast %205 : vector<16x832xf32> to vector<1x16x832xf32>
    %cst_133 = arith.constant dense<0.000000e+00> : vector<1xf32>
    %207 = vector.multi_reduction <add>, %206, %cst_133 [1, 2] : vector<1x16x832xf32> to vector<1xf32>
    %208 = vector.shape_cast %207 : vector<1xf32> to vector<1x1x1xf32>
    %209 = vector.extract %208[0, 0, 0] : f32 from vector<1x1x1xf32>
    %cst_134 = arith.constant 9.24556225E-5 : f32
    %210 = arith.mulf %209, %cst_134 : f32
    %211 = vector.broadcast %210 : f32 to vector<16x832xf32>
    %212 = arith.subf %202, %211 : vector<16x832xf32>
    %213 = arith.mulf %212, %212 : vector<16x832xf32>
    %214 = vector.broadcast %203 : vector<1x832xf32> to vector<16x832xf32>
    %215 = arith.mulf %213, %214 : vector<16x832xf32>
    %216 = vector.shape_cast %215 : vector<16x832xf32> to vector<1x16x832xf32>
    %cst_135 = arith.constant dense<0.000000e+00> : vector<1xf32>
    %217 = vector.multi_reduction <add>, %216, %cst_135 [1, 2] : vector<1x16x832xf32> to vector<1xf32>
    %218 = vector.shape_cast %217 : vector<1xf32> to vector<1x1x1xf32>
    %219 = vector.extract %218[0, 0, 0] : f32 from vector<1x1x1xf32>
    %cst_136 = arith.constant 9.24556225E-5 : f32
    %220 = arith.mulf %219, %cst_136 : f32
    %cst_137 = arith.constant 9.99999974E-6 : f32
    %221 = arith.addf %220, %cst_137 : f32
    %222 = math.rsqrt %221 : f32
    %223 = vector.broadcast %222 : f32 to vector<16x832xf32>
    %224 = arith.mulf %212, %223 : vector<16x832xf32>
    %c0_138 = arith.constant 0 : index
    %c0_139 = arith.constant 0 : index
    %225 = vector.load %arg14[%c0_138, %c0_139] : memref<16x1xf32, #tpu.memory_space<vmem>>, vector<16x1xf32>
    %226 = vector.broadcast %225 : vector<16x1xf32> to vector<16x832xf32>
    %227 = arith.mulf %224, %226 : vector<16x832xf32>
    %c0_140 = arith.constant 0 : index
    %c0_141 = arith.constant 0 : index
    %228 = vector.load %arg15[%c0_140, %c0_141] : memref<16x1xf32, #tpu.memory_space<vmem>>, vector<16x1xf32>
    %229 = vector.broadcast %228 : vector<16x1xf32> to vector<16x832xf32>
    %230 = arith.addf %227, %229 : vector<16x832xf32>
    %cst_142 = arith.constant 0.000000e+00 : f32
    %231 = vector.broadcast %cst_142 : f32 to vector<16x832xf32>
    %232 = arith.maximumf %230, %231 : vector<16x832xf32>
    %233 = vector.extract_strided_slice %232 {offsets = [0, 0], sizes = [16, 760], strides = [1, 1]} : vector<16x832xf32> to vector<16x760xf32>
    %c0_143 = arith.constant 0 : index
    %c0_144 = arith.constant 0 : index
    %c0_145 = arith.constant 0 : index
    %234 = vector.load %arg17[%c0_143, %c0_144, %c0_145] : memref<9x16x16xf32, #tpu.memory_space<vmem>>, vector<1x16x16xf32>
    %235 = vector.shape_cast %234 : vector<1x16x16xf32> to vector<16x16xf32>
    %cst_146 = arith.constant dense<0.000000e+00> : vector<16x760xf32>
    %236 = tpu.matmul %235, %233, %cst_146 {dimension_numbers = #tpu.dot_dimension_numbers<[1], [0], [0], [1], [0, 0, 1, 1], [], []>} : vector<16x16xf32>, vector<16x760xf32>, vector<16x760xf32> -> vector<16x760xf32>
    %237 = vector.extract_strided_slice %232 {offsets = [0, 1], sizes = [16, 760], strides = [1, 1]} : vector<16x832xf32> to vector<16x760xf32>
    %c1_147 = arith.constant 1 : index
    %c0_148 = arith.constant 0 : index
    %c0_149 = arith.constant 0 : index
    %238 = vector.load %arg17[%c1_147, %c0_148, %c0_149] : memref<9x16x16xf32, #tpu.memory_space<vmem>>, vector<1x16x16xf32>
    %239 = vector.shape_cast %238 : vector<1x16x16xf32> to vector<16x16xf32>
    %cst_150 = arith.constant dense<0.000000e+00> : vector<16x760xf32>
    %240 = tpu.matmul %239, %237, %cst_150 {dimension_numbers = #tpu.dot_dimension_numbers<[1], [0], [0], [1], [0, 0, 1, 1], [], []>} : vector<16x16xf32>, vector<16x760xf32>, vector<16x760xf32> -> vector<16x760xf32>
    %241 = arith.addf %236, %240 : vector<16x760xf32>
    %242 = vector.extract_strided_slice %232 {offsets = [0, 2], sizes = [16, 760], strides = [1, 1]} : vector<16x832xf32> to vector<16x760xf32>
    %c2_151 = arith.constant 2 : index
    %c0_152 = arith.constant 0 : index
    %c0_153 = arith.constant 0 : index
    %243 = vector.load %arg17[%c2_151, %c0_152, %c0_153] : memref<9x16x16xf32, #tpu.memory_space<vmem>>, vector<1x16x16xf32>
    %244 = vector.shape_cast %243 : vector<1x16x16xf32> to vector<16x16xf32>
    %cst_154 = arith.constant dense<0.000000e+00> : vector<16x760xf32>
    %245 = tpu.matmul %244, %242, %cst_154 {dimension_numbers = #tpu.dot_dimension_numbers<[1], [0], [0], [1], [0, 0, 1, 1], [], []>} : vector<16x16xf32>, vector<16x760xf32>, vector<16x760xf32> -> vector<16x760xf32>
    %246 = arith.addf %241, %245 : vector<16x760xf32>
    %247 = vector.extract_strided_slice %232 {offsets = [0, 32], sizes = [16, 760], strides = [1, 1]} : vector<16x832xf32> to vector<16x760xf32>
    %c3_155 = arith.constant 3 : index
    %c0_156 = arith.constant 0 : index
    %c0_157 = arith.constant 0 : index
    %248 = vector.load %arg17[%c3_155, %c0_156, %c0_157] : memref<9x16x16xf32, #tpu.memory_space<vmem>>, vector<1x16x16xf32>
    %249 = vector.shape_cast %248 : vector<1x16x16xf32> to vector<16x16xf32>
    %cst_158 = arith.constant dense<0.000000e+00> : vector<16x760xf32>
    %250 = tpu.matmul %249, %247, %cst_158 {dimension_numbers = #tpu.dot_dimension_numbers<[1], [0], [0], [1], [0, 0, 1, 1], [], []>} : vector<16x16xf32>, vector<16x760xf32>, vector<16x760xf32> -> vector<16x760xf32>
    %251 = arith.addf %246, %250 : vector<16x760xf32>
    %252 = vector.extract_strided_slice %232 {offsets = [0, 33], sizes = [16, 760], strides = [1, 1]} : vector<16x832xf32> to vector<16x760xf32>
    %c4_159 = arith.constant 4 : index
    %c0_160 = arith.constant 0 : index
    %c0_161 = arith.constant 0 : index
    %253 = vector.load %arg17[%c4_159, %c0_160, %c0_161] : memref<9x16x16xf32, #tpu.memory_space<vmem>>, vector<1x16x16xf32>
    %254 = vector.shape_cast %253 : vector<1x16x16xf32> to vector<16x16xf32>
    %cst_162 = arith.constant dense<0.000000e+00> : vector<16x760xf32>
    %255 = tpu.matmul %254, %252, %cst_162 {dimension_numbers = #tpu.dot_dimension_numbers<[1], [0], [0], [1], [0, 0, 1, 1], [], []>} : vector<16x16xf32>, vector<16x760xf32>, vector<16x760xf32> -> vector<16x760xf32>
    %256 = arith.addf %251, %255 : vector<16x760xf32>
    %257 = vector.extract_strided_slice %232 {offsets = [0, 34], sizes = [16, 760], strides = [1, 1]} : vector<16x832xf32> to vector<16x760xf32>
    %c5_163 = arith.constant 5 : index
    %c0_164 = arith.constant 0 : index
    %c0_165 = arith.constant 0 : index
    %258 = vector.load %arg17[%c5_163, %c0_164, %c0_165] : memref<9x16x16xf32, #tpu.memory_space<vmem>>, vector<1x16x16xf32>
    %259 = vector.shape_cast %258 : vector<1x16x16xf32> to vector<16x16xf32>
    %cst_166 = arith.constant dense<0.000000e+00> : vector<16x760xf32>
    %260 = tpu.matmul %259, %257, %cst_166 {dimension_numbers = #tpu.dot_dimension_numbers<[1], [0], [0], [1], [0, 0, 1, 1], [], []>} : vector<16x16xf32>, vector<16x760xf32>, vector<16x760xf32> -> vector<16x760xf32>
    %261 = arith.addf %256, %260 : vector<16x760xf32>
    %262 = vector.extract_strided_slice %232 {offsets = [0, 64], sizes = [16, 760], strides = [1, 1]} : vector<16x832xf32> to vector<16x760xf32>
    %c6_167 = arith.constant 6 : index
    %c0_168 = arith.constant 0 : index
    %c0_169 = arith.constant 0 : index
    %263 = vector.load %arg17[%c6_167, %c0_168, %c0_169] : memref<9x16x16xf32, #tpu.memory_space<vmem>>, vector<1x16x16xf32>
    %264 = vector.shape_cast %263 : vector<1x16x16xf32> to vector<16x16xf32>
    %cst_170 = arith.constant dense<0.000000e+00> : vector<16x760xf32>
    %265 = tpu.matmul %264, %262, %cst_170 {dimension_numbers = #tpu.dot_dimension_numbers<[1], [0], [0], [1], [0, 0, 1, 1], [], []>} : vector<16x16xf32>, vector<16x760xf32>, vector<16x760xf32> -> vector<16x760xf32>
    %266 = arith.addf %261, %265 : vector<16x760xf32>
    %267 = vector.extract_strided_slice %232 {offsets = [0, 65], sizes = [16, 760], strides = [1, 1]} : vector<16x832xf32> to vector<16x760xf32>
    %c7_171 = arith.constant 7 : index
    %c0_172 = arith.constant 0 : index
    %c0_173 = arith.constant 0 : index
    %268 = vector.load %arg17[%c7_171, %c0_172, %c0_173] : memref<9x16x16xf32, #tpu.memory_space<vmem>>, vector<1x16x16xf32>
    %269 = vector.shape_cast %268 : vector<1x16x16xf32> to vector<16x16xf32>
    %cst_174 = arith.constant dense<0.000000e+00> : vector<16x760xf32>
    %270 = tpu.matmul %269, %267, %cst_174 {dimension_numbers = #tpu.dot_dimension_numbers<[1], [0], [0], [1], [0, 0, 1, 1], [], []>} : vector<16x16xf32>, vector<16x760xf32>, vector<16x760xf32> -> vector<16x760xf32>
    %271 = arith.addf %266, %270 : vector<16x760xf32>
    %272 = vector.extract_strided_slice %232 {offsets = [0, 66], sizes = [16, 760], strides = [1, 1]} : vector<16x832xf32> to vector<16x760xf32>
    %c8_175 = arith.constant 8 : index
    %c0_176 = arith.constant 0 : index
    %c0_177 = arith.constant 0 : index
    %273 = vector.load %arg17[%c8_175, %c0_176, %c0_177] : memref<9x16x16xf32, #tpu.memory_space<vmem>>, vector<1x16x16xf32>
    %274 = vector.shape_cast %273 : vector<1x16x16xf32> to vector<16x16xf32>
    %cst_178 = arith.constant dense<0.000000e+00> : vector<16x760xf32>
    %275 = tpu.matmul %274, %272, %cst_178 {dimension_numbers = #tpu.dot_dimension_numbers<[1], [0], [0], [1], [0, 0, 1, 1], [], []>} : vector<16x16xf32>, vector<16x760xf32>, vector<16x760xf32> -> vector<16x760xf32>
    %276 = arith.addf %271, %275 : vector<16x760xf32>
    %c0_179 = arith.constant 0 : index
    %c0_180 = arith.constant 0 : index
    %277 = vector.load %arg18[%c0_179, %c0_180] : memref<16x1xf32, #tpu.memory_space<vmem>>, vector<16x1xf32>
    %278 = vector.broadcast %277 : vector<16x1xf32> to vector<16x760xf32>
    %279 = arith.addf %276, %278 : vector<16x760xf32>
    %c0_181 = arith.constant 0 : index
    %c0_182 = arith.constant 0 : index
    %280 = vector.load %arg21[%c0_181, %c0_182] : memref<1x760xf32, #tpu.memory_space<vmem>>, vector<1x760xf32>
    %281 = vector.broadcast %280 : vector<1x760xf32> to vector<16x760xf32>
    %282 = arith.mulf %279, %281 : vector<16x760xf32>
    %283 = vector.shape_cast %282 : vector<16x760xf32> to vector<1x16x760xf32>
    %cst_183 = arith.constant dense<0.000000e+00> : vector<1xf32>
    %284 = vector.multi_reduction <add>, %283, %cst_183 [1, 2] : vector<1x16x760xf32> to vector<1xf32>
    %285 = vector.shape_cast %284 : vector<1xf32> to vector<1x1x1xf32>
    %286 = vector.extract %285[0, 0, 0] : f32 from vector<1x1x1xf32>
    %cst_184 = arith.constant 1.08506945E-4 : f32
    %287 = arith.mulf %286, %cst_184 : f32
    %288 = vector.broadcast %287 : f32 to vector<16x760xf32>
    %289 = arith.subf %279, %288 : vector<16x760xf32>
    %290 = arith.mulf %289, %289 : vector<16x760xf32>
    %291 = vector.broadcast %280 : vector<1x760xf32> to vector<16x760xf32>
    %292 = arith.mulf %290, %291 : vector<16x760xf32>
    %293 = vector.shape_cast %292 : vector<16x760xf32> to vector<1x16x760xf32>
    %cst_185 = arith.constant dense<0.000000e+00> : vector<1xf32>
    %294 = vector.multi_reduction <add>, %293, %cst_185 [1, 2] : vector<1x16x760xf32> to vector<1xf32>
    %295 = vector.shape_cast %294 : vector<1xf32> to vector<1x1x1xf32>
    %296 = vector.extract %295[0, 0, 0] : f32 from vector<1x1x1xf32>
    %cst_186 = arith.constant 1.08506945E-4 : f32
    %297 = arith.mulf %296, %cst_186 : f32
    %cst_187 = arith.constant 9.99999974E-6 : f32
    %298 = arith.addf %297, %cst_187 : f32
    %299 = math.rsqrt %298 : f32
    %300 = vector.broadcast %299 : f32 to vector<16x760xf32>
    %301 = arith.mulf %289, %300 : vector<16x760xf32>
    %c0_188 = arith.constant 0 : index
    %c0_189 = arith.constant 0 : index
    %302 = vector.load %arg19[%c0_188, %c0_189] : memref<16x1xf32, #tpu.memory_space<vmem>>, vector<16x1xf32>
    %303 = vector.broadcast %302 : vector<16x1xf32> to vector<16x760xf32>
    %304 = arith.mulf %301, %303 : vector<16x760xf32>
    %c0_190 = arith.constant 0 : index
    %c0_191 = arith.constant 0 : index
    %305 = vector.load %arg20[%c0_190, %c0_191] : memref<16x1xf32, #tpu.memory_space<vmem>>, vector<16x1xf32>
    %306 = vector.broadcast %305 : vector<16x1xf32> to vector<16x760xf32>
    %307 = arith.addf %304, %306 : vector<16x760xf32>
    %cst_192 = arith.constant 0.000000e+00 : f32
    %308 = vector.broadcast %cst_192 : f32 to vector<16x760xf32>
    %309 = arith.maximumf %307, %308 : vector<16x760xf32>
    %310 = vector.broadcast %280 : vector<1x760xf32> to vector<16x760xf32>
    %311 = arith.mulf %309, %310 : vector<16x760xf32>
    %cst_193 = arith.constant dense<0.000000e+00> : vector<16xf32>
    %312 = vector.multi_reduction <add>, %311, %cst_193 [1] : vector<16x760xf32> to vector<16xf32>
    %313 = vector.shape_cast %312 : vector<16xf32> to vector<16x1xf32>
    %cst_194 = arith.constant 0.00173611112 : f32
    %314 = vector.broadcast %cst_194 : f32 to vector<16x1xf32>
    %315 = arith.mulf %313, %314 : vector<16x1xf32>
    %c0_195 = arith.constant 0 : index
    %c0_196 = arith.constant 0 : index
    %316 = vector.load %arg22[%c0_195, %c0_196] : memref<10x16xf32, #tpu.memory_space<vmem>>, vector<10x16xf32>
    %cst_197 = arith.constant dense<0.000000e+00> : vector<10x1xf32>
    %317 = tpu.matmul %316, %315, %cst_197 {dimension_numbers = #tpu.dot_dimension_numbers<[1], [0], [0], [1], [0, 0, 1, 1], [], []>} : vector<10x16xf32>, vector<16x1xf32>, vector<10x1xf32> -> vector<10x1xf32>
    %c0_198 = arith.constant 0 : index
    %c0_199 = arith.constant 0 : index
    %318 = vector.load %arg23[%c0_198, %c0_199] : memref<10x1xf32, #tpu.memory_space<vmem>>, vector<10x1xf32>
    %319 = arith.addf %317, %318 : vector<10x1xf32>
    %c0_200 = arith.constant 0 : index
    %c0_201 = arith.constant 0 : index
    %c0_202 = arith.constant 0 : index
    %320 = vector.load %arg24[%c0_200, %c0_201, %c0_202] : memref<1x10x1xf32, #tpu.memory_space<vmem>>, vector<1x10x1xf32>
    %321 = vector.shape_cast %320 : vector<1x10x1xf32> to vector<10x1xf32>
    %322 = vector.shape_cast %319 : vector<10x1xf32> to vector<1x10x1xf32>
    tpu.vector_store %arg24[%c0_200, %c0_201, %c0_202], %322 {strides = array<i32>} : memref<1x10x1xf32, #tpu.memory_space<vmem>>, vector<1x10x1xf32>,
    return
  }
  func.func @transform_0(%arg0: i32) -> (i32, i32, i32) {
    %c0_i32 = arith.constant 0 : i32
    %c0_i32_0 = arith.constant 0 : i32
    %c0_i32_1 = arith.constant 0 : i32
    return %arg0, %c0_i32, %c0_i32_0 : i32, i32, i32
  }
  func.func @transform_1(%arg0: i32) -> (i32, i32, i32) {
    %c0_i32 = arith.constant 0 : i32
    %c0_i32_0 = arith.constant 0 : i32
    %c0_i32_1 = arith.constant 0 : i32
    %c0_i32_2 = arith.constant 0 : i32
    return %c0_i32, %c0_i32_0, %c0_i32_1 : i32, i32, i32
  }
  func.func @transform_2(%arg0: i32) -> (i32, i32) {
    %c0_i32 = arith.constant 0 : i32
    %c0_i32_0 = arith.constant 0 : i32
    %c0_i32_1 = arith.constant 0 : i32
    return %c0_i32, %c0_i32_0 : i32, i32
  }
  func.func @transform_3(%arg0: i32) -> (i32, i32) {
    %c0_i32 = arith.constant 0 : i32
    %c0_i32_0 = arith.constant 0 : i32
    %c0_i32_1 = arith.constant 0 : i32
    return %c0_i32, %c0_i32_0 : i32, i32
  }
  func.func @transform_4(%arg0: i32) -> (i32, i32) {
    %c0_i32 = arith.constant 0 : i32
    %c0_i32_0 = arith.constant 0 : i32
    %c0_i32_1 = arith.constant 0 : i32
    return %c0_i32, %c0_i32_0 : i32, i32
  }
  func.func @transform_5(%arg0: i32) -> (i32, i32) {
    %c0_i32 = arith.constant 0 : i32
    %c0_i32_0 = arith.constant 0 : i32
    %c0_i32_1 = arith.constant 0 : i32
    return %c0_i32, %c0_i32_0 : i32, i32
  }
  func.func @transform_6(%arg0: i32) -> (i32, i32, i32) {
    %c0_i32 = arith.constant 0 : i32
    %c0_i32_0 = arith.constant 0 : i32
    %c0_i32_1 = arith.constant 0 : i32
    %c0_i32_2 = arith.constant 0 : i32
    return %c0_i32, %c0_i32_0, %c0_i32_1 : i32, i32, i32
  }
  func.func @transform_7(%arg0: i32) -> (i32, i32) {
    %c0_i32 = arith.constant 0 : i32
    %c0_i32_0 = arith.constant 0 : i32
    %c0_i32_1 = arith.constant 0 : i32
    return %c0_i32, %c0_i32_0 : i32, i32
  }
  func.func @transform_8(%arg0: i32) -> (i32, i32) {
    %c0_i32 = arith.constant 0 : i32
    %c0_i32_0 = arith.constant 0 : i32
    %c0_i32_1 = arith.constant 0 : i32
    return %c0_i32, %c0_i32_0 : i32, i32
  }
  func.func @transform_9(%arg0: i32) -> (i32, i32) {
    %c0_i32 = arith.constant 0 : i32
    %c0_i32_0 = arith.constant 0 : i32
    %c0_i32_1 = arith.constant 0 : i32
    return %c0_i32, %c0_i32_0 : i32, i32
  }
  func.func @transform_10(%arg0: i32) -> (i32, i32) {
    %c0_i32 = arith.constant 0 : i32
    %c0_i32_0 = arith.constant 0 : i32
    %c0_i32_1 = arith.constant 0 : i32
    return %c0_i32, %c0_i32_0 : i32, i32
  }
  func.func @transform_11(%arg0: i32) -> (i32, i32, i32) {
    %c0_i32 = arith.constant 0 : i32
    %c0_i32_0 = arith.constant 0 : i32
    %c0_i32_1 = arith.constant 0 : i32
    %c0_i32_2 = arith.constant 0 : i32
    return %c0_i32, %c0_i32_0, %c0_i32_1 : i32, i32, i32
  }
  func.func @transform_12(%arg0: i32) -> (i32, i32) {
    %c0_i32 = arith.constant 0 : i32
    %c0_i32_0 = arith.constant 0 : i32
    %c0_i32_1 = arith.constant 0 : i32
    return %c0_i32, %c0_i32_0 : i32, i32
  }
  func.func @transform_13(%arg0: i32) -> (i32, i32) {
    %c0_i32 = arith.constant 0 : i32
    %c0_i32_0 = arith.constant 0 : i32
    %c0_i32_1 = arith.constant 0 : i32
    return %c0_i32, %c0_i32_0 : i32, i32
  }
  func.func @transform_14(%arg0: i32) -> (i32, i32) {
    %c0_i32 = arith.constant 0 : i32
    %c0_i32_0 = arith.constant 0 : i32
    %c0_i32_1 = arith.constant 0 : i32
    return %c0_i32, %c0_i32_0 : i32, i32
  }
  func.func @transform_15(%arg0: i32) -> (i32, i32) {
    %c0_i32 = arith.constant 0 : i32
    %c0_i32_0 = arith.constant 0 : i32
    %c0_i32_1 = arith.constant 0 : i32
    return %c0_i32, %c0_i32_0 : i32, i32
  }
  func.func @transform_16(%arg0: i32) -> (i32, i32, i32) {
    %c0_i32 = arith.constant 0 : i32
    %c0_i32_0 = arith.constant 0 : i32
    %c0_i32_1 = arith.constant 0 : i32
    %c0_i32_2 = arith.constant 0 : i32
    return %c0_i32, %c0_i32_0, %c0_i32_1 : i32, i32, i32
  }
  func.func @transform_17(%arg0: i32) -> (i32, i32) {
    %c0_i32 = arith.constant 0 : i32
    %c0_i32_0 = arith.constant 0 : i32
    %c0_i32_1 = arith.constant 0 : i32
    return %c0_i32, %c0_i32_0 : i32, i32
  }
  func.func @transform_18(%arg0: i32) -> (i32, i32) {
    %c0_i32 = arith.constant 0 : i32
    %c0_i32_0 = arith.constant 0 : i32
    %c0_i32_1 = arith.constant 0 : i32
    return %c0_i32, %c0_i32_0 : i32, i32
  }
  func.func @transform_19(%arg0: i32) -> (i32, i32) {
    %c0_i32 = arith.constant 0 : i32
    %c0_i32_0 = arith.constant 0 : i32
    %c0_i32_1 = arith.constant 0 : i32
    return %c0_i32, %c0_i32_0 : i32, i32
  }
  func.func @transform_20(%arg0: i32) -> (i32, i32) {
    %c0_i32 = arith.constant 0 : i32
    %c0_i32_0 = arith.constant 0 : i32
    %c0_i32_1 = arith.constant 0 : i32
    return %c0_i32, %c0_i32_0 : i32, i32
  }
  func.func @transform_21(%arg0: i32) -> (i32, i32) {
    %c0_i32 = arith.constant 0 : i32
    %c0_i32_0 = arith.constant 0 : i32
    %c0_i32_1 = arith.constant 0 : i32
    return %c0_i32, %c0_i32_0 : i32, i32
  }
  func.func @transform_22(%arg0: i32) -> (i32, i32) {
    %c0_i32 = arith.constant 0 : i32
    %c0_i32_0 = arith.constant 0 : i32
    %c0_i32_1 = arith.constant 0 : i32
    return %c0_i32, %c0_i32_0 : i32, i32
  }
  func.func @transform_23(%arg0: i32) -> (i32, i32, i32) {
    %c0_i32 = arith.constant 0 : i32
    %c0_i32_0 = arith.constant 0 : i32
    %c0_i32_1 = arith.constant 0 : i32
    return %arg0, %c0_i32, %c0_i32_0 : i32, i32, i32
  }
}

</mosaic_0001>

<bundles_post_ra>
// kernel: cnn_debug_forward.1
= control target key start
LH: loop header
LB: loop body
LE: loop exit
PB: predicated region body
PF: predicated region fallthrough
CT: control target
= control target key end

     0   :  { %s20959_s0 = inlined_call_operand.vmem [shape: f32[2,3,1048], index: 0, kind: input, shape index: {}]   ;;  %s20960_s1 = inlined_call_operand.vmem [shape: f32[9,16,3], index: 1, kind: input, shape index: {}]   ;;  %s20961_s2 = inlined_call_operand.vmem [shape: f32[16,1], index: 2, kind: input, shape index: {}]   ;;  %s20962_s3 = inlined_call_operand.vmem [shape: f32[16,1], index: 3, kind: input, shape index: {}]   ;;  %s20963_s4 = inlined_call_operand.vmem [shape: f32[16,1], index: 4, kind: input, shape index: {}]   ;;  %s20964_s5 = inlined_call_operand.vmem [shape: f32[1,976], index: 5, kind: input, shape index: {}]   ;;  %s20965_s6 = inlined_call_operand.vmem [shape: f32[9,16,16], index: 6, kind: input, shape index: {}]   ;;  %s20966_s7 = inlined_call_operand.vmem [shape: f32[16,1], index: 7, kind: input, shape index: {}]   ;;  %s20967_s8 = inlined_call_operand.vmem [shape: f32[16,1], index: 8, kind: input, shape index: {}]   ;;  %s20968_s9 = inlined_call_operand.vmem [shape: f32[16,1], index: 9, kind: input, shape index: {}]   ;;  %s20969_s10 = inlined_call_operand.vmem [shape: f32[1,904], index: 10, kind: input, shape index: {}]   ;;  %s20970_s11 = inlined_call_operand.vmem [shape: f32[9,16,16], index: 11, kind: input, shape index: {}]   ;;  %s20971_s12 = inlined_call_operand.vmem [shape: f32[16,1], index: 12, kind: input, shape index: {}]   ;;  %s20972_s13 = inlined_call_operand.vmem [shape: f32[16,1], index: 13, kind: input, shape index: {}]   ;;  %s20973_s14 = inlined_call_operand.vmem [shape: f32[16,1], index: 14, kind: input, shape index: {}]   ;;  %s20974_s15 = inlined_call_operand.vmem [shape: f32[1,832], index: 15, kind: input, shape index: {}]   ;;  %s20975_s16 = inlined_call_operand.vmem [shape: f32[9,16,16], index: 16, kind: input, shape index: {}]   ;;  %s20976_s17 = inlined_call_operand.vmem [shape: f32[16,1], index: 17, kind: input, shape index: {}]   ;;  %s20977_s18 = inlined_call_operand.vmem [shape: f32[16,1], index: 18, kind: input, shape index: {}]   ;;  %s20978_s19 = inlined_call_operand.vmem [shape: f32[16,1], index: 19, kind: input, shape index: {}]   ;;  %s20979_s20 = inlined_call_operand.vmem [shape: f32[1,760], index: 20, kind: input, shape index: {}]   ;;  %s20980_s21 = inlined_call_operand.vmem [shape: f32[10,16], index: 21, kind: input, shape index: {}]   ;;  %s20981_s22 = inlined_call_operand.vmem [shape: f32[10,1], index: 22, kind: input, shape index: {}]   ;;  %s20982_s23 = inlined_call_operand.vmem [shape: f32[2,10,1], index: 23, kind: output, shape index: {}]  }
   0x1   :  { %21011 = sst [smem:[#allocation2_spill]] %s20959_s0 }
   0x2   :  { %21012 = sst [smem:[#allocation3_spill]] %s20960_s1 }
   0x3   :  { %21013 = sst [smem:[#allocation4_spill]] %s20961_s2 }
   0x4   :  { %21014 = sst [smem:[#allocation5_spill]] %s20962_s3 }
   0x5   :  { %21015 = sst [smem:[#allocation6_spill]] %s20963_s4  ;;  %s17258_s4 = smov 0  }
   0x6   :  { %21016 = sst [smem:[#allocation7_spill]] %s20964_s5 }
   0x7   :  { %21017 = sst [smem:[#allocation8_spill]] %s20965_s6 }
   0x8   :  { %21018 = sst [smem:[#allocation9_spill]] %s20966_s7 }
   0x9   :  { %21019 = sst [smem:[#allocation10_spill]] %s20967_s8 }
   0xa   :  { %21020 = sst [smem:[#allocation11_spill]] %s20968_s9 }
   0xb LB: > { %s14790_s30 = sadd.s32 4294967295, %s17126_s4   ;;  %p14794_p0 = scmp.ge.s32.totalorder %s17126_s4, 1  ;;  %s17126_s4 = sphi %s17258_s4, %s33_s4  }
   0xc   : > { %p637_p1 = scmp.lt.s32.totalorder %s17126_s4, 3 }
   0xe   : > { %p638_p2 = pnand %p14794_p0, %p637_p1 }
   0xf   : > { %p701_p3 = scmp.lt.s32.totalorder (!%p638_p2), %s14790_s30, 1  ;;  %v17128_v0 = vmov (!%p638_p2), 0.0   ;;  %s21021_s1 = sld [smem:[#allocation2_spill]] (!%p638_p2)  ;;  %vm745_vm0 = vcmask (!%p638_p2), 1039360   ;;  %vm760_vm1 = vcmask (!%p638_p2), 1042432   ;;  %vm753_vm2 = vcmask (!%p638_p2), 23552  }
  0x10   : > { %641 = sbr.rel (%p638_p2) target bundleno = 4654 (0x122e), region = 112  ;;  %841 = vmatprep.mubr.f32.mxu0 (!%p638_p2), %v17128_v0  ;;  %2878 = vmatprep.mubr.f32.mxu1 (!%p638_p2), %v17128_v0  ;;  %s21003_s2 = smov (!%p638_p2), 127   ;;  %vm1434_vm3 = vcmask (!%p638_p2), 1031168   ;;  %vm2553_vm4 = vcmask (!%p638_p2), 769024   ;;  %vm1807_vm5 = vcmask (!%p638_p2), 785408   ;;  %vm2929_vm6 = vcmask (!%p638_p2), 523264  }
  0x11   : > { %s21001_s6 = smov (!%p638_p2), 126   ;;  %s20999_s27 = smov (!%p638_p2), 96   ;;  %vm3305_vm7 = vcmask (!%p638_p2), 515072   ;;  %vm2180_vm8 = vcmask (!%p638_p2), 777216   ;;  %vm3681_vm9 = vcmask (!%p638_p2), 506880   ;;  %vm4128_vm10 = vcmask (!%p638_p2), 654336  }
  0x12   : > { %s20997_s7 = smov (!%p638_p2), 95   ;;  %s20995_s28 = smov (!%p638_p2), 94   ;;  %vm4402_vm11 = vcmask (!%p638_p2), 130048   ;;  %vm7888_vm12 = vcmask (!%p638_p2), 64512   ;;  %vm14459_vm13 = vcmask (!%p638_p2), 982016   ;;  %vm14733_vm14 = vcmask (!%p638_p2), 1024  }
  0x13   : > { %s20993_s29 = smov (!%p638_p2), 64   ;;  %s20991_s3 = smov (!%p638_p2), 63   ;;  %vm14731_vm15 = vcmask (!%p638_p2), 7168  }
  0x14   : > { %s20989_s0 = smov (!%p638_p2), 62   ;;  %s21022_s5 = sld [smem:[#allocation3_spill]] (!%p638_p2) }
  0x15   : > { %s21034_s8 = sld [smem:[#allocation10_spill]] (!%p638_p2)  ;;  %s21035_s9 = sld [smem:[#allocation11_spill]] (!%p638_p2) }
  0x17   : > { %s21040_s30 = smov (!%p701_p3, %s14790_s30), 1 }
  0x18   : > { %s16183_s24 = smul.u32 36, %s21040_s30 }
  0x1a   : > { %s17274_s26 = scalar_lea.vmem %s21021_s1, %s16183_s24  ;;  %v14798_v15 = vld [vmem:[%s21022_s5 + $0x10] sm:$0xff]  ;;  %v14799_v20 = vld [vmem:[%s21022_s5 + $0x18] sm:$0xff]  ;;  %v716_v39 = vld [vmem:[%s21022_s5] sm:$0xff]  ;;  %s21023_s24 = sld [smem:[#allocation4_spill]] }
  0x1b   : > { %v17277_v1 = vld [vmem:[%s17274_s26] sm:$0x77]  ;;  %v17280_v2 = vld [vmem:[%s17274_s26 + $0x8] sm:$0x77]  ;;  %v17295_v5 = vld [vmem:[%s17274_s26 + $0x10] sm:$0x77] }
  0x1c   : > { %729 = vrot.lane.b32.xlu1 %v17277_v1, %s21003_s2  ;;  %v17286_v3 = vcombine.high %v17277_v1, %v17277_v1  ;;  %v17290_v4 = vcombine.high %v17280_v2, %v17280_v2  ;;  %v17301_v6 = vcombine.high %v17295_v5, %v17295_v5  ;;  %v17306_v7 = vld [vmem:[%s17274_s26 + $0x18] sm:$0x77]  ;;  %v715_v9 = vld [vmem:[%s17274_s26 + $0x20] sm:$0x7]  ;;  %v717_v42 = vld [vmem:[%s21022_s5 + $0x8] sm:$0xff]  ;;  %s21024_s26 = sld [smem:[#allocation7_spill]] }
  0x1d   : > { %v17312_v8 = vcombine.high %v17306_v7, %v17306_v7  ;;  %v14832_v60 = vld [vmem:[%s21022_s5 + $0x20] sm:$0xff] }
  0x1e   : > { %731 = vrot.lane.b32.xlu0 %v17286_v3, %s21003_s2 }
  0x20   : > { %735 = vrot.lane.b32.xlu1 %v17290_v4, %s21003_s2 }
  0x22   : > { %733 = vrot.lane.b32.xlu0 %v17280_v2, %s21003_s2 }
  0x24   : > { %739 = vrot.lane.b32.xlu1 %v17301_v6, %s21003_s2 }
  0x26   : > { %737 = vrot.lane.b32.xlu0 %v17295_v5, %s21003_s2 }
  0x28   : > { %743 = vrot.lane.b32.xlu1 %v17312_v8, %s21003_s2 }
  0x2a   : > { %741 = vrot.lane.b32.xlu0 %v17306_v7, %s21003_s2 }
  0x2c   : > { %1422 = vrot.lane.b32.xlu1 %v17280_v2, %s21001_s6 }
  0x2e   : > { %1420 = vrot.lane.b32.xlu0 %v17286_v3, %s21001_s6 }
  0x30   : > { %1424 = vrot.lane.b32.xlu1 %v17290_v4, %s21001_s6 }
  0x32   : > { %1418 = vrot.lane.b32.xlu0 %v17277_v1, %s21001_s6 }
  0x34   : > { %1428 = vrot.lane.b32.xlu1 %v17301_v6, %s21001_s6 }
  0x36   : > { %1426 = vrot.lane.b32.xlu0 %v17295_v5, %s21001_s6 }
  0x38   : > { %1432 = vrot.lane.b32.xlu1 %v17312_v8, %s21001_s6 }
  0x3a   : > { %1430 = vrot.lane.b32.xlu0 %v17306_v7, %s21001_s6 }
  0x3c   : > { %1795 = vrot.lane.b32.xlu1 %v17280_v2, %s20999_s27 }
  0x3e   : > { %1793 = vrot.lane.b32.xlu0 %v17286_v3, %s20999_s27 }
  0x40   : > { %1797 = vrot.lane.b32.xlu1 %v17290_v4, %s20999_s27 }
  0x42   : > { %1791 = vrot.lane.b32.xlu0 %v17277_v1, %s20999_s27 }
  0x44   : > { %1801 = vrot.lane.b32.xlu1 %v17301_v6, %s20999_s27 }
  0x46   : > { %1799 = vrot.lane.b32.xlu0 %v17295_v5, %s20999_s27 }
  0x48   : > { %1805 = vrot.lane.b32.xlu1 %v17312_v8, %s20999_s27 }
  0x4a   : > { %1803 = vrot.lane.b32.xlu0 %v17306_v7, %s20999_s27 }
  0x4c   : > { %2168 = vrot.lane.b32.xlu1 %v17280_v2, %s20997_s7 }
  0x4e   : > { %2166 = vrot.lane.b32.xlu0 %v17286_v3, %s20997_s7 }
  0x50   : > { %2170 = vrot.lane.b32.xlu1 %v17290_v4, %s20997_s7 }
  0x52   : > { %2164 = vrot.lane.b32.xlu0 %v17277_v1, %s20997_s7 }
  0x54   : > { %2174 = vrot.lane.b32.xlu1 %v17301_v6, %s20997_s7 }
  0x56   : > { %2172 = vrot.lane.b32.xlu0 %v17295_v5, %s20997_s7 }
  0x58   : > { %2178 = vrot.lane.b32.xlu1 %v17312_v8, %s20997_s7 }
  0x5a   : > { %2176 = vrot.lane.b32.xlu0 %v17306_v7, %s20997_s7  ;;  %s21027_s7 = smov 95  }
  0x5c   : > { %2541 = vrot.lane.b32.xlu1 %v17280_v2, %s20995_s28 }
  0x5e   : > { %2539 = vrot.lane.b32.xlu0 %v17286_v3, %s20995_s28 }
  0x60   : > { %2543 = vrot.lane.b32.xlu1 %v17290_v4, %s20995_s28 }
  0x62   : > { %2537 = vrot.lane.b32.xlu0 %v17277_v1, %s20995_s28 }
  0x64   : > { %2547 = vrot.lane.b32.xlu1 %v17301_v6, %s20995_s28 }
  0x66   : > { %2545 = vrot.lane.b32.xlu0 %v17295_v5, %s20995_s28 }
  0x68   : > { %2551 = vrot.lane.b32.xlu1 %v17312_v8, %s20995_s28 }
  0x6a   : > { %2549 = vrot.lane.b32.xlu0 %v17306_v7, %s20995_s28  ;;  %s21028_s28 = smov 94  }
  0x6c   : > { %2915 = vrot.lane.b32.xlu1 %v17280_v2, %s20993_s29 }
  0x6e   : > { %2913 = vrot.lane.b32.xlu0 %v17286_v3, %s20993_s29 }
  0x70   : > { %2917 = vrot.lane.b32.xlu1 %v17290_v4, %s20993_s29 }
  0x72   : > { %2911 = vrot.lane.b32.xlu0 %v17277_v1, %s20993_s29 }
  0x74   : > { %2921 = vrot.lane.b32.xlu1 %v17301_v6, %s20993_s29 }
  0x76   : > { %2919 = vrot.lane.b32.xlu0 %v17295_v5, %s20993_s29 }
  0x78   : > { %2925 = vrot.lane.b32.xlu1 %v17312_v8, %s20993_s29 }
  0x7a   : > { %2923 = vrot.lane.b32.xlu0 %v17306_v7, %s20993_s29 }
  0x7c   : > { %3289 = vrot.lane.b32.xlu1 %v17286_v3, %s20991_s3 }
  0x7e   : > { %2927 = vrot.lane.b32.xlu0 %v715_v9, %s20993_s29 }
  0x80   : > { %3287 = vrot.lane.b32.xlu1 %v17277_v1, %s20991_s3 }
  0x82   : > { %3291 = vrot.lane.b32.xlu0 %v17280_v2, %s20991_s3 }
  0x84   : > { %3295 = vrot.lane.b32.xlu1 %v17295_v5, %s20991_s3 }
  0x86   : > { %3293 = vrot.lane.b32.xlu0 %v17290_v4, %s20991_s3 }
  0x88   : > { %3299 = vrot.lane.b32.xlu1 %v17306_v7, %s20991_s3 }
  0x8a   : > { %3297 = vrot.lane.b32.xlu0 %v17301_v6, %s20991_s3 }
  0x8c   : > { %3303 = vrot.lane.b32.xlu1 %v715_v9, %s20991_s3 }
  0x8e   : > { %v730_v10 = vpop.permute.xlu1 %729  ;;  %3301 = vrot.lane.b32.xlu0 %v17312_v8, %s20991_s3  ;;  %s21025_s3 = sld [smem:[#allocation5_spill]] }
  0x90   : > { %v732_v11 = vpop.permute.xlu0 %731  ;;  %3667 = vrot.lane.b32.xlu1 %v17280_v2, %s20989_s0 }
  0x91   : > { %v746_v16 = vsel %vm745_vm0, %v730_v10, %v732_v11  ;;  %v17626_v10 = vld [vmem:[%s21022_s5 + $0x58] sm:$0xff] }
  0x92   : > { %v736_v12 = vpop.permute.xlu1 %735  ;;  %3665 = vrot.lane.b32.xlu0 %v17286_v3, %s20989_s0 }
  0x94   : > { %v734_v13 = vpop.permute.xlu0 %733  ;;  %3669 = vrot.lane.b32.xlu1 %v17290_v4, %s20989_s0 }
  0x95   : > { %v747_v14 = vsel %vm745_vm0, %v732_v11, %v734_v13  ;;  %v748_v21 = vsel %vm745_vm0, %v734_v13, %v736_v12 }
  0x96   : > { %14800 = vmatprep.subr.msk.mxu0 %vm760_vm1, %v747_v14  ;;  %v740_v17 = vpop.permute.xlu1 %739  ;;  %3663 = vrot.lane.b32.xlu0 %v17277_v1, %s20989_s0 }
  0x97   : > { %14801 = vmatpush1.msk.msra.mxu0 %vm760_vm1, %v746_v16 }
  0x98   : > { %14802 = vmatmul.mubr.msk.f32.vlgmr.msra.gmra.mrb[0].mxu0 %vm753_vm2, %v14798_v15  ;;  %v738_v18 = vpop.permute.xlu0 %737  ;;  %3673 = vrot.lane.b32.xlu1 %v17301_v6, %s20989_s0 }
  0x99   : > { %v749_v19 = vsel %vm745_vm0, %v736_v12, %v738_v18  ;;  %847 = vmatprep.mubr.f32.mxu0 %v17128_v0  ;;  %v750_v26 = vsel %vm745_vm0, %v738_v18, %v740_v17 }
  0x9a   : > { %14804 = vmatprep.subr.msk.mxu0 %vm760_vm1, %v749_v19  ;;  %v744_v22 = vpop.permute.xlu1 %743  ;;  %3671 = vrot.lane.b32.xlu0 %v17295_v5, %s20989_s0  ;;  %v17660_v19 = vld [vmem:[%s21022_s5 + $0x60] sm:$0xff] }
  0x9b   : > { %14805 = vmatpush1.msk.msra.mxu0 %vm760_vm1, %v748_v21 }
  0x9c   : > { %14803 = vmatmul.mubr.msk.f32.gmra.mrb[2].mxu0 %vm753_vm2, %v14799_v20  ;;  %v742_v23 = vpop.permute.xlu0 %741  ;;  %3677 = vrot.lane.b32.xlu1 %v17312_v8, %s20989_s0 }
  0x9d   : > { %918 = vmatprep.mubr.f32.mxu0 %v17128_v0  ;;  %v751_v24 = vsel %vm745_vm0, %v740_v17, %v742_v23  ;;  %v752_v31 = vsel %vm745_vm0, %v742_v23, %v744_v22 }
  0x9e   : > { %14808 = vmatprep.subr.msk.mxu0 %vm760_vm1, %v751_v24  ;;  %3675 = vrot.lane.b32.xlu0 %v17306_v7, %s20989_s0  ;;  %v17455_v25 = vpop.permute.xlu1 %1422 }
  0xa0   : > { %14806 = vmatmul.mubr.msk.f32.vlgmr.msra.gmra.mrb[4].mxu0 %vm753_vm2, %v14798_v15  ;;  %v17459_v27 = vpop.permute.xlu0 %1420 }
  0xa1   : > { %14809 = vmatpush1.msk.msra.mxu0 %vm760_vm1, %v750_v26  ;;  %924 = vmatprep.mubr.f32.mxu0 %v17128_v0  ;;  %v1436_v50 = vsel %vm1434_vm3, %v17459_v27, %v17455_v25 }
  0xa2   : > { %14812 = vmatprep.subr.msk.mxu0 %vm760_vm1, %v744_v22  ;;  %3679 = vrot.lane.b32.xlu0 %v715_v9, %s20989_s0  ;;  %v17465_v28 = vpop.permute.xlu1 %1424  ;;  %v17676_v22 = vld [vmem:[%s21022_s5 + $0x68] sm:$0xff] }
  0xa3   : > { %v1437_v63 = vsel %vm1434_vm3, %v17455_v25, %v17465_v28 }
  0xa4   : > { %14807 = vmatmul.mubr.msk.f32.gmra.mrb[6].mxu0 %vm753_vm2, %v14799_v20  ;;  %v1419_v29 = vpop.permute.xlu0 %1418 }
  0xa5   : > { %995 = vmatprep.mubr.f32.mxu0 %v17128_v0  ;;  %v1435_v54 = vsel %vm1434_vm3, %v1419_v29, %v17459_v27 }
  0xa6   : > { %v17469_v30 = vpop.permute.xlu1 %1428 }
  0xa8   : > { %14810 = vmatmul.mubr.msk.f32.vlgmr.msra.gmra.mrb[8].mxu0 %vm753_vm2, %v14798_v15  ;;  %v17473_v32 = vpop.permute.xlu0 %1426 }
  0xa9   : > { %14813 = vmatpush1.msk.msra.mxu0 %vm760_vm1, %v752_v31  ;;  %1001 = vmatprep.mubr.f32.mxu0 %v17128_v0  ;;  %v1438_v56 = vsel %vm1434_vm3, %v17465_v28, %v17473_v32  ;;  %v17710_v31 = vld [vmem:[%s21022_s5 + $0x30] sm:$0xff] }
  0xaa   : > { %14816 = vmatprep.subr.msk.mxu0 %vm760_vm1, %v17286_v3  ;;  %v17479_v33 = vpop.permute.xlu1 %1432 }
  0xac   : > { %14811 = vmatmul.mubr.msk.f32.gmra.mrb[10].mxu0 %vm753_vm2, %v14799_v20  ;;  %v17482_v34 = vpop.permute.xlu0 %1430 }
  0xad   : > { %1072 = vmatprep.mubr.f32.mxu0 %v17128_v0  ;;  %v1440_v62 = vsel %vm1434_vm3, %v17469_v30, %v17482_v34 }
  0xae   : > { %v17485_v35 = vpop.permute.xlu1 %1795 }
  0xb0   : > { %14814 = vmatmul.mubr.msk.f32.vlgmr.msra.gmra.mrb[12].mxu0 %vm753_vm2, %v14798_v15  ;;  %v17488_v36 = vpop.permute.xlu0 %1793  ;;  %v1441_v15 = vsel %vm1434_vm3, %v17482_v34, %v17479_v33 }
  0xb1   : > { %1078 = vmatprep.mubr.f32.mxu0 %v17128_v0  ;;  %14817 = vmatpush1.msk.msra.mxu0 %vm760_vm1, %v17277_v1  ;;  %v1809_v14 = vsel %vm1807_vm5, %v17488_v36, %v17485_v35 }
  0xb2   : > { %14820 = vmatprep.subr.msk.mxu0 %vm760_vm1, %v17290_v4  ;;  %v17495_v37 = vpop.permute.xlu1 %1797 }
  0xb3   : > { %v1810_v34 = vsel %vm1807_vm5, %v17485_v35, %v17495_v37 }
  0xb4   : > { %14815 = vmatmul.mubr.msk.f32.gmra.mrb[14].mxu0 %vm753_vm2, %v14799_v20  ;;  %v17498_v38 = vpop.permute.xlu0 %1791 }
  0xb5   : > { %1171 = vmatprep.mubr.f32.mxu0 %v17128_v0  ;;  %v1808_v23 = vsel %vm1807_vm5, %v17498_v38, %v17488_v36  ;;  %v17730_v38 = vld [vmem:[%s21022_s5 + $0x38] sm:$0xff] }
  0xb6   : > { %v17504_v40 = vpop.permute.xlu1 %1801 }
  0xb8   : > { %14818 = vmatmul.mubr.msk.f32.vlgmr.msra.gmra.mrb[0].mxu0 %vm753_vm2, %v716_v39  ;;  %v17507_v41 = vpop.permute.xlu0 %1799 }
  0xb9   : > { %1177 = vmatprep.mubr.f32.mxu0 %v17128_v0  ;;  %14821 = vmatpush1.msk.msra.mxu0 %vm760_vm1, %v17280_v2  ;;  %v17595_v2 = vld [vmem:[%s21022_s5 + $0x28] sm:$0xff]  ;;  %v1811_v25 = vsel %vm1807_vm5, %v17495_v37, %v17507_v41  ;;  %v17739_v37 = vld [vmem:[%s21022_s5 + $0x70] sm:$0xff] }
  0xba   : > { %14824 = vmatprep.subr.msk.mxu0 %vm760_vm1, %v17301_v6  ;;  %v17517_v43 = vpop.permute.xlu1 %1805 }
  0xbc   : > { %14819 = vmatmul.mubr.msk.f32.gmra.mrb[2].mxu0 %vm753_vm2, %v717_v42  ;;  %v17520_v44 = vpop.permute.xlu0 %1803 }
  0xbd   : > { %1248 = vmatprep.mubr.f32.mxu0 %v17128_v0 }
  0xbe   : > { %v17523_v45 = vpop.permute.xlu1 %2168 }
  0xc0   : > { %14822 = vmatmul.mubr.msk.f32.vlgmr.msra.gmra.mrb[4].mxu0 %vm753_vm2, %v716_v39  ;;  %v17526_v46 = vpop.permute.xlu0 %2166 }
  0xc1   : > { %1254 = vmatprep.mubr.f32.mxu0 %v17128_v0  ;;  %14825 = vmatpush1.msk.msra.mxu0 %vm760_vm1, %v17295_v5  ;;  %v17606_v5 = vld [vmem:[%s21022_s5 + $0x50] sm:$0xff] }
  0xc2   : > { %14828 = vmatprep.subr.msk.mxu0 %vm760_vm1, %v17312_v8  ;;  %v17533_v47 = vpop.permute.xlu1 %2170  ;;  %v1439_v8 = vsel %vm1434_vm3, %v17473_v32, %v17469_v30 }
  0xc4   : > { %14823 = vmatmul.mubr.msk.f32.gmra.mrb[6].mxu0 %vm753_vm2, %v717_v42  ;;  %v17536_v48 = vpop.permute.xlu0 %2164 }
  0xc5   : > { %1325 = vmatprep.mubr.f32.mxu0 %v17128_v0 }
  0xc6   : > { %v17539_v49 = vpop.permute.xlu1 %2174 }
  0xc8   : > { %14826 = vmatmul.mubr.msk.f32.vlgmr.msra.gmra.mrb[8].mxu0 %vm753_vm2, %v716_v39  ;;  %v17545_v51 = vpop.permute.xlu0 %2172 }
  0xc9   : > { %1331 = vmatprep.mubr.f32.mxu0 %v17128_v0  ;;  %14829 = vmatpush1.msk.msra.mxu0 %vm760_vm1, %v17306_v7 }
  0xca   : > { %14834 = vmatprep.subr.msk.mxu0 %vm760_vm1, %v1436_v50  ;;  %v17551_v52 = vpop.permute.xlu1 %2178 }
  0xcc   : > { %14827 = vmatmul.mubr.msk.f32.gmra.mrb[10].mxu0 %vm753_vm2, %v717_v42  ;;  %v17554_v53 = vpop.permute.xlu0 %2176 }
  0xcd   : > { %1402 = vmatprep.mubr.f32.mxu0 %v17128_v0 }
  0xce   : > { %v17559_v55 = vpop.permute.xlu1 %2541 }
  0xd0   : > { %14830 = vmatmul.mubr.msk.f32.vlgmr.msra.gmra.mrb[12].mxu0 %vm753_vm2, %v716_v39  ;;  %v17565_v57 = vpop.permute.xlu0 %2539 }
  0xd1   : > { %14835 = vmatpush1.msk.msra.mxu0 %vm760_vm1, %v1435_v54  ;;  %1408 = vmatprep.mubr.f32.mxu0 %v17128_v0  ;;  %v4036_v54 = vld [vmem:[%s21023_s24] sm:$0xff] }
  0xd2   : > { %14838 = vmatprep.subr.msk.mxu0 %vm760_vm1, %v1438_v56  ;;  %v17570_v58 = vpop.permute.xlu1 %2543  ;;  %v4037_v56 = vld [vmem:[%s21023_s24 + $0x8] sm:$0xff]  ;;  %s21038_s24 = smov 96  }
  0xd4   : > { %14831 = vmatmul.mubr.msk.f32.gmra.mrb[14].mxu0 %vm753_vm2, %v717_v42  ;;  %v17573_v59 = vpop.permute.xlu0 %2537 }
  0xd5   : > { %1528 = vmatprep.mubr.f32.mxu0 %v17128_v0 }
  0xd6   : > { %v17579_v61 = vpop.permute.xlu1 %2547 }
  0xd8   : > { %14836 = vmatmul.mubr.msk.f32.vlgmr.msra.gmra.mrb[0].mxu0 %vm753_vm2, %v14832_v60  ;;  %v17588_v1 = vpop.permute.xlu0 %2545 }
  0xd9   : > { %14839 = vmatpush1.msk.msra.mxu0 %vm760_vm1, %v1437_v63  ;;  %1534 = vmatprep.mubr.f32.mxu0 %v17128_v0  ;;  %v17137_v63 = vmov 0  }
  0xda   : > { %14842 = vmatprep.subr.msk.mxu0 %vm760_vm1, %v1440_v62  ;;  %v2552_v3 = vpop.permute.xlu1 %2551  ;;  %16226 = vset.pattern.permute.xlu1 %v17137_v63 }
  0xdb   : > { %14900 = vmatprep.subr.msk.mxu1 %vm760_vm1, %v2552_v3  ;;  %16227 = vset.pattern.permute.xlu0 %v17137_v63 }
  0xdc   : > { %14837 = vmatmul.mubr.msk.f32.gmra.mrb[2].mxu0 %vm753_vm2, %v17595_v2  ;;  %v17601_v4 = vpop.permute.xlu0 %2549  ;;  %4040 = vperm.xlu1 %16226, %v4036_v54  }
  0xdd   : > { %1605 = vmatprep.mubr.f32.mxu0 %v17128_v0  ;;  %v2560_v6 = vsel %vm2553_vm4, %v17601_v4, %v2552_v3  ;;  %4045 = vperm.xlu0 %16227, %v4037_v56  }
  0xde   : > { %v17611_v7 = vpop.permute.xlu1 %2915  ;;  %14901 = vmatpush1.msk.msra.mxu1 %vm760_vm1, %v2560_v6 }
  0xdf   : > { %14902 = vmatmul.mubr.msk.f32.vlgmr.msra.gmra.mrb[0].mxu1 %vm753_vm2, %v17606_v5 }
  0xe0   : > { %14840 = vmatmul.mubr.msk.f32.vlgmr.msra.gmra.mrb[4].mxu0 %vm753_vm2, %v14832_v60  ;;  %v17620_v9 = vpop.permute.xlu0 %2913  ;;  %2884 = vmatprep.mubr.f32.mxu1 %v17128_v0 }
  0xe1   : > { %14843 = vmatpush1.msk.msra.mxu0 %vm760_vm1, %v1439_v8  ;;  %1611 = vmatprep.mubr.f32.mxu0 %v17128_v0 }
  0xe2   : > { %14846 = vmatprep.subr.msk.mxu0 %vm760_vm1, %v17479_v33  ;;  %v2918_v11 = vpop.permute.xlu1 %2917  ;;  %v1813_v33 = vsel %vm1807_vm5, %v17504_v40, %v17520_v44 }
  0xe3   : > { %14903 = vmatmul.mubr.msk.f32.gmra.mrb[2].mxu1 %vm753_vm2, %v17626_v10  ;;  %v2932_v16 = vsel %vm2929_vm6, %v17611_v7, %v2918_v11 }
  0xe4   : > { %14841 = vmatmul.mubr.msk.f32.gmra.mrb[6].mxu0 %vm753_vm2, %v17595_v2  ;;  %v17636_v12 = vpop.permute.xlu0 %2911  ;;  %3101 = vmatprep.mubr.f32.mxu1 %v17128_v0 }
  0xe5   : > { %1682 = vmatprep.mubr.f32.mxu0 %v17128_v0 }
  0xe6   : > { %v17640_v13 = vpop.permute.xlu1 %2921 }
  0xe8   : > { %14844 = vmatmul.mubr.msk.f32.vlgmr.msra.gmra.mrb[8].mxu0 %vm753_vm2, %v14832_v60  ;;  %v17651_v17 = vpop.permute.xlu0 %2919 }
  0xe9   : > { %14847 = vmatpush1.msk.msra.mxu0 %vm760_vm1, %v1441_v15  ;;  %1688 = vmatprep.mubr.f32.mxu0 %v17128_v0  ;;  %v2933_v18 = vsel %vm2929_vm6, %v2918_v11, %v17651_v17  ;;  %v1814_v15 = vsel %vm1807_vm5, %v17520_v44, %v17517_v43 }
  0xea   : > { %14852 = vmatprep.subr.msk.mxu0 %vm760_vm1, %v1809_v14  ;;  %14910 = vmatprep.subr.msk.mxu1 %vm760_vm1, %v2933_v18  ;;  %v2926_v20 = vpop.permute.xlu1 %2925  ;;  %v2182_v14 = vsel %vm2180_vm8, %v17526_v46, %v17523_v45 }
  0xeb   : > { %14911 = vmatpush1.msk.msra.mxu1 %vm760_vm1, %v2932_v16 }
  0xec   : > { %14845 = vmatmul.mubr.msk.f32.gmra.mrb[10].mxu0 %vm753_vm2, %v17595_v2  ;;  %v17667_v21 = vpop.permute.xlu0 %2923  ;;  %14912 = vmatmul.mubr.msk.f32.vlgmr.msra.gmra.mrb[4].mxu1 %vm753_vm2, %v17660_v19 }
  0xed   : > { %1759 = vmatprep.mubr.f32.mxu0 %v17128_v0  ;;  %3107 = vmatprep.mubr.f32.mxu1 %v17128_v0  ;;  %v2936_v26 = vsel %vm2929_vm6, %v17667_v21, %v2926_v20 }
  0xee   : > { %v17681_v24 = vpop.permute.xlu1 %3289 }
  0xf0   : > { %14848 = vmatmul.mubr.msk.f32.vlgmr.msra.gmra.mrb[12].mxu0 %vm753_vm2, %v14832_v60  ;;  %v2928_v27 = vpop.permute.xlu0 %2927  ;;  %14913 = vmatmul.mubr.msk.f32.gmra.mrb[6].mxu1 %vm753_vm2, %v17676_v22  ;;  %v17764_v60 = vld [vmem:[%s21022_s5 + $0x78] sm:$0xff] }
  0xf1   : > { %14853 = vmatpush1.msk.msra.mxu0 %vm760_vm1, %v1808_v23  ;;  %1765 = vmatprep.mubr.f32.mxu0 %v17128_v0  ;;  %v2937_v28 = vsel %vm2929_vm6, %v2926_v20, %v2928_v27  ;;  %v17823_v23 = vld [vmem:[%s21022_s5 + $0x80] sm:$0xff] }
  0xf2   : > { %14856 = vmatprep.subr.msk.mxu0 %vm760_vm1, %v1811_v25  ;;  %14918 = vmatprep.subr.msk.mxu1 %vm760_vm1, %v2937_v28  ;;  %v17696_v29 = vpop.permute.xlu1 %3287  ;;  %v2181_v25 = vsel %vm2180_vm8, %v17536_v48, %v17526_v46  ;;  %v17844_v48 = vld [vmem:[%s21022_s5 + $0x88] sm:$0xff] }
  0xf3   : > { %14919 = vmatpush1.msk.msra.mxu1 %vm760_vm1, %v2936_v26  ;;  %3255 = vmatprep.mubr.f32.mxu1 %v17128_v0  ;;  %v2184_v26 = vsel %vm2180_vm8, %v17533_v47, %v17545_v51 }
  0xf4   : > { %14849 = vmatmul.mubr.msk.f32.gmra.mrb[14].mxu0 %vm753_vm2, %v17595_v2  ;;  %v17702_v30 = vpop.permute.xlu0 %3291  ;;  %14920 = vmatmul.mubr.msk.f32.vlgmr.msra.gmra.mrb[0].mxu1 %vm753_vm2, %v17660_v19  ;;  %v1812_v2 = vsel %vm1807_vm5, %v17507_v41, %v17504_v40 }
  0xf5   : > { %1901 = vmatprep.mubr.f32.mxu0 %v17128_v0  ;;  %3261 = vmatprep.mubr.f32.mxu1 %v17128_v0 }
  0xf6   : > { %v17713_v32 = vpop.permute.xlu1 %3295 }
  0xf8   : > { %14854 = vmatmul.mubr.msk.f32.vlgmr.msra.gmra.mrb[0].mxu0 %vm753_vm2, %v17710_v31  ;;  %v3294_v36 = vpop.permute.xlu0 %3293  ;;  %14921 = vmatmul.mubr.msk.f32.gmra.mrb[2].mxu1 %vm753_vm2, %v17676_v22 }
  0xf9   : > { %14857 = vmatpush1.msk.msra.mxu0 %vm760_vm1, %v1810_v34  ;;  %1907 = vmatprep.mubr.f32.mxu0 %v17128_v0  ;;  %v3308_v39 = vsel %vm3305_vm7, %v17702_v30, %v3294_v36  ;;  %v3309_v35 = vsel %vm3305_vm7, %v3294_v36, %v17713_v32  ;;  %v2186_v36 = vsel %vm2180_vm8, %v17539_v49, %v17554_v53 }
  0xfa   : > { %14860 = vmatprep.subr.msk.mxu0 %vm760_vm1, %v1813_v33  ;;  %14928 = vmatprep.subr.msk.mxu1 %vm760_vm1, %v3309_v35  ;;  %v17743_v42 = vpop.permute.xlu1 %3299  ;;  %v14868_v33 = vld [vmem:[%s21022_s5 + $0x40] sm:$0xff] }
  0xfb   : > { %14929 = vmatpush1.msk.msra.mxu1 %vm760_vm1, %v3308_v39  ;;  %3477 = vmatprep.mubr.f32.mxu1 %v17128_v0  ;;  %v14869_v39 = vld [vmem:[%s21022_s5 + $0x48] sm:$0xff]  ;;  %s21033_s5 = sld [smem:[#allocation9_spill]] }
  0xfc   : > { %14855 = vmatmul.mubr.msk.f32.gmra.mrb[2].mxu0 %vm753_vm2, %v17730_v38  ;;  %v17749_v50 = vpop.permute.xlu0 %3297  ;;  %14930 = vmatmul.mubr.msk.f32.vlgmr.msra.gmra.mrb[4].mxu1 %vm753_vm2, %v17739_v37 }
  0xfd   : > { %1978 = vmatprep.mubr.f32.mxu0 %v17128_v0  ;;  %3483 = vmatprep.mubr.f32.mxu1 %v17128_v0 }
  0xfe   : > { %v3304_v62 = vpop.permute.xlu1 %3303 }
 0x100   : > { %14858 = vmatmul.mubr.msk.f32.vlgmr.msra.gmra.mrb[4].mxu0 %vm753_vm2, %v17710_v31  ;;  %v3302_v3 = vpop.permute.xlu0 %3301  ;;  %14931 = vmatmul.mubr.msk.f32.gmra.mrb[6].mxu1 %vm753_vm2, %v17764_v60 }
 0x101   : > { %14861 = vmatpush1.msk.msra.mxu0 %vm760_vm1, %v1812_v2  ;;  %1984 = vmatprep.mubr.f32.mxu0 %v17128_v0  ;;  %v3312_v6 = vsel %vm3305_vm7, %v17743_v42, %v3302_v3  ;;  %v3313_v8 = vsel %vm3305_vm7, %v3302_v3, %v3304_v62 }
 0x102   : > { %14864 = vmatprep.subr.msk.mxu0 %vm760_vm1, %v17517_v43  ;;  %14936 = vmatprep.subr.msk.mxu1 %vm760_vm1, %v3313_v8  ;;  %v17781_v40 = vpop.permute.xlu1 %3667 }
 0x103   : > { %14937 = vmatpush1.msk.msra.mxu1 %vm760_vm1, %v3312_v6  ;;  %3631 = vmatprep.mubr.f32.mxu1 %v17128_v0 }
 0x104   : > { %14859 = vmatmul.mubr.msk.f32.gmra.mrb[6].mxu0 %vm753_vm2, %v17730_v38  ;;  %v17787_v41 = vpop.permute.xlu0 %3665  ;;  %14938 = vmatmul.mubr.msk.f32.vlgmr.msra.gmra.mrb[0].mxu1 %vm753_vm2, %v17739_v37 }
 0x105   : > { %2055 = vmatprep.mubr.f32.mxu0 %v17128_v0  ;;  %3637 = vmatprep.mubr.f32.mxu1 %v17128_v0 }
 0x106   : > { %v3670_v11 = vpop.permute.xlu1 %3669 }
 0x107   : > { %v3684_v43 = vsel %vm3681_vm9, %v17781_v40, %v3670_v11 }
 0x108   : > { %14862 = vmatmul.mubr.msk.f32.vlgmr.msra.gmra.mrb[8].mxu0 %vm753_vm2, %v17710_v31  ;;  %v17801_v16 = vpop.permute.xlu0 %3663  ;;  %14939 = vmatmul.mubr.msk.f32.gmra.mrb[2].mxu1 %vm753_vm2, %v17764_v60 }
 0x109   : > { %14865 = vmatpush1.msk.msra.mxu0 %vm760_vm1, %v1814_v15  ;;  %2061 = vmatprep.mubr.f32.mxu0 %v17128_v0  ;;  %v4066_v15 = vlaneseq }
 0x10a   : > { %14870 = vmatprep.subr.msk.mxu0 %vm760_vm1, %v2182_v14  ;;  %3853 = vmatprep.mubr.f32.mxu1 %v17128_v0  ;;  %v17809_v18 = vpop.permute.xlu1 %3673 }
 0x10c   : > { %14863 = vmatmul.mubr.msk.f32.gmra.mrb[10].mxu0 %vm753_vm2, %v17730_v38  ;;  %v17815_v44 = vpop.permute.xlu0 %3671 }
 0x10d   : > { %2132 = vmatprep.mubr.f32.mxu0 %v17128_v0  ;;  %v3685_v20 = vsel %vm3681_vm9, %v3670_v11, %v17815_v44 }
 0x10e   : > { %14946 = vmatprep.subr.msk.mxu1 %vm760_vm1, %v3685_v20  ;;  %v3678_v46 = vpop.permute.xlu1 %3677 }
 0x10f   : > { %14947 = vmatpush1.msk.msra.mxu1 %vm760_vm1, %v3684_v43 }
 0x110   : > { %14866 = vmatmul.mubr.msk.f32.vlgmr.msra.gmra.mrb[12].mxu0 %vm753_vm2, %v17710_v31  ;;  %14948 = vmatmul.mubr.msk.f32.vlgmr.msra.gmra.mrb[4].mxu1 %vm753_vm2, %v17823_v23  ;;  %v17837_v27 = vpop.permute.xlu0 %3675 }
 0x111   : > { %14871 = vmatpush1.msk.msra.mxu0 %vm760_vm1, %v2181_v25  ;;  %2138 = vmatprep.mubr.f32.mxu0 %v17128_v0  ;;  %v3688_v28 = vsel %vm3681_vm9, %v17837_v27, %v3678_v46 }
 0x112   : > { %14874 = vmatprep.subr.msk.mxu0 %vm760_vm1, %v2184_v26  ;;  %3859 = vmatprep.mubr.f32.mxu1 %v17128_v0 }
 0x114   : > { %14867 = vmatmul.mubr.msk.f32.gmra.mrb[14].mxu0 %vm753_vm2, %v17730_v38  ;;  %14949 = vmatmul.mubr.msk.f32.gmra.mrb[6].mxu1 %vm753_vm2, %v17844_v48  ;;  %v3680_v31 = vpop.permute.xlu0 %3679  ;;  %v2183_v38 = vsel %vm2180_vm8, %v17523_v45, %v17533_v47  ;;  %v2185_v45 = vsel %vm2180_vm8, %v17545_v51, %v17539_v49  ;;  %v2555_v47 = vsel %vm2553_vm4, %v17565_v57, %v17559_v55 }
 0x115   : > { %2274 = vmatprep.mubr.f32.mxu0 %v17128_v0  ;;  %v3689_v34 = vsel %vm3681_vm9, %v3678_v46, %v3680_v31  ;;  %4007 = vmatprep.mubr.f32.mxu1 %v17128_v0  ;;  %v2187_v49 = vsel %vm2180_vm8, %v17554_v53, %v17551_v52  ;;  %v2554_v51 = vsel %vm2553_vm4, %v17573_v59, %v17565_v57 }
 0x116   : > { %14954 = vmatprep.subr.msk.mxu1 %vm760_vm1, %v3689_v34  ;;  %v2559_v53 = vsel %vm2553_vm4, %v17579_v61, %v17601_v4  ;;  %v2556_v57 = vsel %vm2553_vm4, %v17559_v55, %v17570_v58  ;;  %v2931_v59 = vsel %vm2929_vm6, %v17620_v9, %v17611_v7  ;;  %v2558_v55 = vsel %vm2553_vm4, %v17588_v1, %v17579_v61 }
 0x117   : > { %14955 = vmatpush1.msk.msra.mxu1 %vm760_vm1, %v3688_v28  ;;  %v2930_v61 = vsel %vm2929_vm6, %v17636_v12, %v17620_v9  ;;  %v2934_v4 = vsel %vm2929_vm6, %v17651_v17, %v17640_v13  ;;  %v3311_v7 = vsel %vm3305_vm7, %v17749_v50, %v17743_v42  ;;  %v3310_v9 = vsel %vm3305_vm7, %v17713_v32, %v17749_v50 }
 0x118   : > { %14872 = vmatmul.mubr.msk.f32.vlgmr.msra.gmra.mrb[0].mxu0 %vm753_vm2, %v14868_v33  ;;  %14956 = vmatmul.mubr.msk.f32.vlgmr.msra.gmra.mrb[0].mxu1 %vm753_vm2, %v17823_v23  ;;  %v3682_v12 = vsel %vm3681_vm9, %v17801_v16, %v17787_v41  ;;  %v3686_v17 = vsel %vm3681_vm9, %v17815_v44, %v17809_v18  ;;  %v18035_v16 = vshrl.u32 %v4066_v15, 7  ;;  %v4064_v44 = vld [vmem:[%s21024_s26] sm:$0xff]  ;;  %s21026_s26 = sld [smem:[#allocation6_spill]] }
 0x119   : > { %14875 = vmatpush1.msk.msra.mxu0 %vm760_vm1, %v2183_v38  ;;  %2280 = vmatprep.mubr.f32.mxu0 %v17128_v0 }
 0x11a   : > { %14878 = vmatprep.subr.msk.mxu0 %vm760_vm1, %v2186_v36  ;;  %4013 = vmatprep.mubr.f32.mxu1 %v17128_v0  ;;  %v18041_v43 = vsub.s32 1, %v18035_v16  ;;  %v18047_v20 = vsub.s32 2, %v18035_v16  ;;  %v18053_v26 = vsub.s32 3, %v18035_v16  ;;  %v18070_v38 = vsub.s32 4, %v18035_v16 }
 0x11c   : > { %14873 = vmatmul.mubr.msk.f32.gmra.mrb[2].mxu0 %vm753_vm2, %v14869_v39  ;;  %14957 = vmatmul.mubr.msk.f32.gmra.mrb[2].mxu1 %vm753_vm2, %v17844_v48  ;;  %v18056_v46 = vrot.slane %v4064_v44, %v18041_v43 }
 0x11d   : > { %2351 = vmatprep.mubr.f32.mxu0 %v17128_v0  ;;  %4550 = vmatprep.mubr.f32.mxu1 %v17128_v0 }
 0x120   : > { %14876 = vmatmul.mubr.msk.f32.vlgmr.msra.gmra.mrb[4].mxu0 %vm753_vm2, %v14868_v33 }
 0x121   : > { %14879 = vmatpush1.msk.msra.mxu0 %vm760_vm1, %v2185_v45  ;;  %2357 = vmatprep.mubr.f32.mxu0 %v17128_v0  ;;  %v18075_v45 = vrot.slane %v4064_v44, %v18053_v26 }
 0x122   : > { %14882 = vmatprep.subr.msk.mxu0 %vm760_vm1, %v17551_v52  ;;  %v2557_v52 = vsel %vm2553_vm4, %v17570_v58, %v17588_v1  ;;  %v2935_v58 = vsel %vm2929_vm6, %v17640_v13, %v17667_v21  ;;  %v3307_v1 = vsel %vm3305_vm7, %v17681_v24, %v17702_v30  ;;  %v3687_v13 = vsel %vm3681_vm9, %v17809_v18, %v17837_v27 }
 0x123   : > { %v18038_v18 = vsub.s32 0, %v18035_v16 }
 0x124   : > { %14877 = vmatmul.mubr.msk.f32.gmra.mrb[6].mxu0 %vm753_vm2, %v14869_v39 }
 0x125   : > { %2428 = vmatprep.mubr.f32.mxu0 %v17128_v0 }
 0x128   : > { %14880 = vmatmul.mubr.msk.f32.vlgmr.msra.gmra.mrb[8].mxu0 %vm753_vm2, %v14868_v33 }
 0x129   : > { %14883 = vmatpush1.msk.msra.mxu0 %vm760_vm1, %v2187_v49  ;;  %2434 = vmatprep.mubr.f32.mxu0 %v17128_v0 }
 0x12a   : > { %14888 = vmatprep.subr.msk.mxu0 %vm760_vm1, %v2555_v47 }
 0x12c   : > { %14881 = vmatmul.mubr.msk.f32.gmra.mrb[10].mxu0 %vm753_vm2, %v14869_v39 }
 0x12d   : > { %2505 = vmatprep.mubr.f32.mxu0 %v17128_v0 }
 0x130   : > { %14884 = vmatmul.mubr.msk.f32.vlgmr.msra.gmra.mrb[12].mxu0 %vm753_vm2, %v14868_v33  ;;  %v18063_v33 = vrot.slane %v4064_v44, %v18047_v20 }
 0x131   : > { %14889 = vmatpush1.msk.msra.mxu0 %vm760_vm1, %v2554_v51  ;;  %2511 = vmatprep.mubr.f32.mxu0 %v17128_v0  ;;  %v18080_v51 = vsub.s32 5, %v18035_v16 }
 0x132   : > { %14892 = vmatprep.subr.msk.mxu0 %vm760_vm1, %v2557_v52 }
 0x134   : > { %14885 = vmatmul.mubr.msk.f32.gmra.mrb[14].mxu0 %vm753_vm2, %v14869_v39 }
 0x135   : > { %2647 = vmatprep.mubr.f32.mxu0 %v17128_v0 }
 0x138   : > { %14890 = vmatmul.mubr.msk.f32.vlgmr.msra.gmra.mrb[0].mxu0 %vm753_vm2, %v17606_v5 }
 0x139   : > { %14893 = vmatpush1.msk.msra.mxu0 %vm760_vm1, %v2556_v57  ;;  %2653 = vmatprep.mubr.f32.mxu0 %v17128_v0 }
 0x13a   : > { %14896 = vmatprep.subr.msk.mxu0 %vm760_vm1, %v2559_v53 }
 0x13c   : > { %14891 = vmatmul.mubr.msk.f32.gmra.mrb[2].mxu0 %vm753_vm2, %v17626_v10 }
 0x13d   : > { %2724 = vmatprep.mubr.f32.mxu0 %v17128_v0 }
 0x140   : > { %14894 = vmatmul.mubr.msk.f32.vlgmr.msra.gmra.mrb[4].mxu0 %vm753_vm2, %v17606_v5 }
 0x141   : > { %14897 = vmatpush1.msk.msra.mxu0 %vm760_vm1, %v2558_v55  ;;  %2730 = vmatprep.mubr.f32.mxu0 %v17128_v0  ;;  %v18086_v55 = vrot.slane %v4064_v44, %v18070_v38 }
 0x142   : > { %14906 = vmatprep.subr.msk.mxu0 %vm760_vm1, %v2931_v59  ;;  %v4096_v59 = vsub.s32 7, %v18035_v16 }
 0x144   : > { %14895 = vmatmul.mubr.msk.f32.gmra.mrb[6].mxu0 %vm753_vm2, %v17626_v10 }
 0x145   : > { %2801 = vmatprep.mubr.f32.mxu0 %v17128_v0 }
 0x148   : > { %14898 = vmatmul.mubr.msk.f32.vlgmr.msra.gmra.mrb[8].mxu0 %vm753_vm2, %v17606_v5  ;;  %v3306_v5 = vsel %vm3305_vm7, %v17696_v29, %v17681_v24 }
 0x149   : > { %14907 = vmatpush1.msk.msra.mxu0 %vm760_vm1, %v2930_v61  ;;  %2807 = vmatprep.mubr.f32.mxu0 %v17128_v0 }
 0x14a   : > { %14914 = vmatprep.subr.msk.mxu0 %vm760_vm1, %v2935_v58  ;;  %v18089_v58 = vsub.s32 6, %v18035_v16 }
 0x14c   : > { %14899 = vmatmul.mubr.msk.f32.gmra.mrb[10].mxu0 %vm753_vm2, %v17626_v10  ;;  %v3683_v10 = vsel %vm3681_vm9, %v17787_v41, %v17781_v40 }
 0x14d   : > { %3024 = vmatprep.mubr.f32.mxu0 %v17128_v0 }
 0x150   : > { %14908 = vmatmul.mubr.msk.f32.vlgmr.msra.gmra.mrb[0].mxu0 %vm753_vm2, %v17660_v19 }
 0x151   : > { %14915 = vmatpush1.msk.msra.mxu0 %vm760_vm1, %v2934_v4  ;;  %3030 = vmatprep.mubr.f32.mxu0 %v17128_v0 }
 0x152   : > { %14924 = vmatprep.subr.msk.mxu0 %vm760_vm1, %v3307_v1 }
 0x154   : > { %14909 = vmatmul.mubr.msk.f32.gmra.mrb[2].mxu0 %vm753_vm2, %v17676_v22 }
 0x155   : > { %3178 = vmatprep.mubr.f32.mxu0 %v17128_v0 }
 0x158   : > { %14916 = vmatmul.mubr.msk.f32.vlgmr.msra.gmra.mrb[8].mxu0 %vm753_vm2, %v17660_v19 }
 0x159   : > { %14925 = vmatpush1.msk.msra.mxu0 %vm760_vm1, %v3306_v5  ;;  %3184 = vmatprep.mubr.f32.mxu0 %v17128_v0  ;;  %v18094_v5 = vrot.slane %v4064_v44, %v18080_v51 }
 0x15a   : > { %14932 = vmatprep.subr.msk.mxu0 %vm760_vm1, %v3311_v7 }
 0x15b   : > { %v4041_v25 = vpop.permute.xlu1 %4040 }
 0x15c   : > { %14917 = vmatmul.mubr.msk.f32.gmra.mrb[10].mxu0 %vm753_vm2, %v17676_v22 }
 0x15d   : > { %3400 = vmatprep.mubr.f32.mxu0 %v17128_v0 }
 0x160   : > { %14926 = vmatmul.mubr.msk.f32.vlgmr.msra.gmra.mrb[0].mxu0 %vm753_vm2, %v17739_v37 }
 0x161   : > { %14933 = vmatpush1.msk.msra.mxu0 %vm760_vm1, %v3310_v9  ;;  %3406 = vmatprep.mubr.f32.mxu0 %v17128_v0 }
 0x162   : > { %14942 = vmatprep.subr.msk.mxu0 %vm760_vm1, %v3683_v10 }
 0x164   : > { %14927 = vmatmul.mubr.msk.f32.gmra.mrb[2].mxu0 %vm753_vm2, %v17764_v60 }
 0x165   : > { %3554 = vmatprep.mubr.f32.mxu0 %v17128_v0 }
 0x168   : > { %14934 = vmatmul.mubr.msk.f32.vlgmr.msra.gmra.mrb[8].mxu0 %vm753_vm2, %v17739_v37 }
 0x169   : > { %14943 = vmatpush1.msk.msra.mxu0 %vm760_vm1, %v3682_v12  ;;  %3560 = vmatprep.mubr.f32.mxu0 %v17128_v0 }
 0x16a   : > { %14950 = vmatprep.subr.msk.mxu0 %vm760_vm1, %v3687_v13 }
 0x16c   : > { %14935 = vmatmul.mubr.msk.f32.gmra.mrb[10].mxu0 %vm753_vm2, %v17764_v60 }
 0x16d   : > { %3776 = vmatprep.mubr.f32.mxu0 %v17128_v0 }
 0x170   : > { %14944 = vmatmul.mubr.msk.f32.vlgmr.msra.gmra.mrb[0].mxu0 %vm753_vm2, %v17823_v23 }
 0x171   : > { %14951 = vmatpush1.msk.msra.mxu0 %vm760_vm1, %v3686_v17  ;;  %3782 = vmatprep.mubr.f32.mxu0 %v17128_v0  ;;  %v18104_v17 = vrot.slane %v4064_v44, %v4096_v59 }
 0x174   : > { %14945 = vmatmul.mubr.msk.f32.gmra.mrb[2].mxu0 %vm753_vm2, %v17844_v48 }
 0x175   : > { %3930 = vmatprep.mubr.f32.mxu0 %v17128_v0 }
 0x178   : > { %14952 = vmatmul.mubr.msk.f32.vlgmr.msra.gmra.mrb[8].mxu0 %vm753_vm2, %v17823_v23  ;;  %v18050_v23 = vrot.slane %v4064_v44, %v18038_v18 }
 0x179   : > { %3936 = vmatprep.mubr.f32.mxu0 %v17128_v0 }
 0x17c   : > { %14953 = vmatmul.mubr.msk.f32.gmra.mrb[10].mxu0 %vm753_vm2, %v17844_v48 }
 0x17d   : > { %4473 = vmatprep.mubr.f32.mxu0 %v17128_v0 }
 0x1e3   : > { %v3855_v19 = vpop.f32.mrb[4].mxu1 }
 0x1e4   : > { %v3857_v21 = vpop.f32.mrb[5].mxu1 }
 0x1e7   : > { %v3861_v22 = vpop.f32.mrb[6].mxu1 }
 0x1e8   : > { %v3863_v24 = vpop.f32.mrb[7].mxu1 }
 0x1eb   : > { %v4009_v29 = vpop.f32.mrb[0].mxu1 }
 0x1ec   : > { %v4011_v30 = vpop.f32.mrb[1].mxu1 }
 0x1ef   : > { %v4015_v32 = vpop.f32.mrb[2].mxu1 }
 0x1f0   : > { %v4017_v35 = vpop.f32.mrb[3].mxu1 }
 0x203   : > { %v2507_v37 = vpop.f32.mrb[12].mxu0 }
 0x204   : > { %v15723_v42 = vadd.f32 %v4009_v29, %v2507_v37  ;;  %v2509_v50 = vpop.f32.mrb[13].mxu0 }
 0x205   : > { %v15724_v54 = vadd.f32 %v4011_v30, %v2509_v50 }
 0x207   : > { %v2513_v56 = vpop.f32.mrb[14].mxu0  ;;  %v18100_v13 = vadd.f32 %v15724_v54, %v4041_v25 }
 0x208   : > { %v18031_v60 = vadd.f32 %v4015_v32, %v2513_v56  ;;  %v2515_v62 = vpop.f32.mrb[15].mxu0 }
 0x209   : > { %v18033_v63 = vadd.f32 %v4017_v35, %v2515_v62  ;;  %v4046_v35 = vpop.permute.xlu0 %4045  ;;  %v4113_v37 = vmul.f32 %v18104_v17, %v18100_v13 }
 0x213   : > { %v2726_v2 = vpop.f32.mrb[4].mxu0 }
 0x214   : > { %v15719_v3 = vadd.f32 %v3855_v19, %v2726_v2  ;;  %v2728_v6 = vpop.f32.mrb[5].mxu0  ;;  %v4129_v2 = vsel %vm4128_vm10, %v4113_v37, 0.0 }
 0x215   : > { %v15720_v8 = vadd.f32 %v3857_v21, %v2728_v6  ;;  %v18108_v21 = vadd.f32 %v15723_v42, %v4041_v25 }
 0x216   : > { %v18060_v31 = vadd.f32 %v15719_v3, %v4041_v25 }
 0x217   : > { %v2732_v40 = vpop.f32.mrb[6].mxu0  ;;  %v18072_v39 = vadd.f32 %v15720_v8, %v4041_v25 }
 0x218   : > { %v15721_v41 = vadd.f32 %v3861_v22, %v2732_v40  ;;  %v2734_v11 = vpop.f32.mrb[7].mxu0  ;;  %v4108_v53 = vmul.f32 %v18063_v33, %v18060_v31  ;;  %v18111_v22 = vrot.slane %v4064_v44, %v18089_v58 }
 0x219   : > { %v15722_v14 = vadd.f32 %v3863_v24, %v2734_v11  ;;  %v4109_v61 = vmul.f32 %v18075_v45, %v18072_v39 }
 0x21a   : > { %v4112_v54 = vmul.f32 %v18111_v22, %v18108_v21  ;;  %v18124_v3 = vadd.f32 %v15721_v41, %v4046_v35 }
 0x21b   : > { %v18128_v40 = vadd.f32 %v15722_v14, %v4046_v35 }
 0x21c   : > { %v4116_v44 = vmul.f32 %v18063_v33, %v18124_v3 }
 0x21d   : > { %v4117_v41 = vmul.f32 %v18075_v45, %v18128_v40 }
 0x243   : > { %v3778_v27 = vpop.f32.mrb[0].mxu0 }
 0x244   : > { %v18058_v48 = vadd.f32 %v4041_v25, %v3778_v27  ;;  %v3780_v28 = vpop.f32.mrb[1].mxu0 }
 0x245   : > { %v18065_v34 = vadd.f32 %v4041_v25, %v3780_v28 }
 0x246   : > { %v4106_v36 = vmul.f32 %v18050_v23, %v18058_v48 }
 0x247   : > { %v4107_v47 = vmul.f32 %v18056_v46, %v18065_v34  ;;  %v3784_v49 = vpop.f32.mrb[2].mxu0 }
 0x248   : > { %v3786_v52 = vpop.f32.mrb[3].mxu0  ;;  %v18117_v50 = vadd.f32 %v4046_v35, %v3784_v49 }
 0x249   : > { %v4122_v57 = vadd.f32 %v4107_v47, %v4106_v36  ;;  %v18121_v56 = vadd.f32 %v4046_v35, %v3786_v52  ;;  %v18141_v47 = vadd.f32 %v18033_v63, %v4046_v35  ;;  %v18146_v52 = vadd.f32 %v18031_v60, %v4046_v35  ;;  %v4247_v60 = vld [vmem:[%s21025_s3] sm:$0xff] }
 0x24a   : > { %v4114_v6 = vmul.f32 %v18050_v23, %v18117_v50 }
 0x24b   : > { %v4123_v1 = vadd.f32 %v4122_v57, %v4108_v53  ;;  %v3932_v4 = vpop.f32.mrb[8].mxu0  ;;  %v4115_v11 = vmul.f32 %v18056_v46, %v18121_v56 }
 0x24c   : > { %v18096_v7 = vadd.f32 %v4041_v25, %v3932_v4  ;;  %v3934_v9 = vpop.f32.mrb[9].mxu0  ;;  %v4120_v4 = vmul.f32 %v18111_v22, %v18146_v52 }
 0x24d   : > { %v4124_v10 = vadd.f32 %v4123_v1, %v4109_v61  ;;  %v18098_v12 = vadd.f32 %v4041_v25, %v3934_v9  ;;  %v4121_v61 = vmul.f32 %v18104_v17, %v18141_v47 }
 0x24e   : > { %v4110_v19 = vmul.f32 %v18086_v55, %v18096_v7 }
 0x24f   : > { %v4111_v24 = vmul.f32 %v18094_v5, %v18098_v12  ;;  %v3938_v29 = vpop.f32.mrb[10].mxu0  ;;  %v4138_v9 = vsel %vm4128_vm10, %v4121_v61, 0.0 }
 0x250   : > { %v4125_v30 = vadd.f32 %v4124_v10, %v4110_v19  ;;  %v3940_v32 = vpop.f32.mrb[11].mxu0  ;;  %v18134_v25 = vadd.f32 %v4046_v35, %v3938_v29  ;;  %v4275_v19 = vld [vmem:[%s21026_s26] sm:$0xff] }
 0x251   : > { %v18138_v36 = vadd.f32 %v4046_v35, %v3940_v32 }
 0x252   : > { %v4126_v42 = vadd.f32 %v4125_v30, %v4111_v24  ;;  %v4118_v14 = vmul.f32 %v18086_v55, %v18134_v25  ;;  %v4276_v24 = vld [vmem:[%s21026_s26 + $0x8] sm:$0xff] }
 0x253   : > { %v4119_v57 = vmul.f32 %v18094_v5, %v18138_v36 }
 0x254   : > { %v4127_v62 = vadd.f32 %v4126_v42, %v4112_v54 }
 0x256   : > { %v4130_v8 = vadd.f32 %v4129_v2, %v4127_v62 }
 0x258   : > { %v4131_v15 = vadd.f32 %v4130_v8, %v4114_v6 }
 0x25a   : > { %v4132_v27 = vadd.f32 %v4131_v15, %v4115_v11 }
 0x25c   : > { %v4133_v28 = vadd.f32 %v4132_v27, %v4116_v44 }
 0x25e   : > { %v4134_v49 = vadd.f32 %v4133_v28, %v4117_v41 }
 0x260   : > { %v4135_v53 = vadd.f32 %v4134_v49, %v4118_v14 }
 0x262   : > { %v4136_v1 = vadd.f32 %v4135_v53, %v4119_v57 }
 0x264   : > { %v4137_v63 = vadd.f32 %v4136_v1, %v4120_v4 }
 0x266   : > { %v4139_v10 = vadd.f32 %v4138_v9, %v4137_v63 }
 0x268   : > { %4140 = vadd.xlane.f32.xlu1 %v4139_v10 }
 0x279   : > { %4251 = vperm.xlu1 %16226, %v4247_v60  }
 0x27d   : > { %4279 = vperm.xlu1 %16226, %v4275_v19  }
 0x281   : > { %4284 = vperm.xlu1 %16226, %v4276_v24  }
 0x2f5   : > { %v4141_v29 = vpop.xlane.xlu1 %4140 }
 0x2f6   : > { %v4142_v30 = vrot.slane %v4141_v29, 4 }
 0x2f8   : > { %v4143_v32 = vadd.f32 %v4142_v30, %v4141_v29 }
 0x2fa   : > { %v4144_v35 = vrot.slane %v4143_v32, 2 }
 0x2fc   : > { %v4145_v37 = vadd.f32 %v4144_v35, %v4143_v32 }
 0x2fe   : > { %v4146_v54 = vrot.slane %v4145_v37, 1 }
 0x300   : > { %v4147_v42 = vadd.f32 %v4146_v54, %v4145_v37 }
 0x302   : > { %16184 = vpush %v4147_v42 }
 0x333   : > { %s16185_s25 = spop %16184 }
 0x334   : > { %s4149_s29 = smul.f32 6.9444446e-05, %s16185_s25 }
 0x336   : > { %v4150_v62 = vstv %s4149_s29 }
 0x337   : > { %v18165_v2 = vsub.f32 %v18058_v48, %v4150_v62  ;;  %v18168_v6 = vsub.f32 %v18065_v34, %v4150_v62  ;;  %v18171_v8 = vsub.f32 %v18060_v31, %v4150_v62  ;;  %v18178_v44 = vsub.f32 %v18072_v39, %v4150_v62 }
 0x338   : > { %v18181_v27 = vsub.f32 %v18096_v7, %v4150_v62  ;;  %v18188_v41 = vsub.f32 %v18098_v12, %v4150_v62  ;;  %v18193_v14 = vsub.f32 %v18100_v13, %v4150_v62  ;;  %v18196_v39 = vsub.f32 %v18108_v21, %v4150_v62 }
 0x339   : > { %v4167_v11 = vmul.f32 %v18165_v2, %v18165_v2  ;;  %v4168_v15 = vmul.f32 %v18168_v6, %v18168_v6  ;;  %v4169_v48 = vmul.f32 %v18171_v8, %v18171_v8  ;;  %v4170_v28 = vmul.f32 %v18178_v44, %v18178_v44 }
 0x33a   : > { %v4171_v7 = vmul.f32 %v18181_v27, %v18181_v27  ;;  %v4172_v57 = vmul.f32 %v18188_v41, %v18188_v41  ;;  %v4174_v1 = vmul.f32 %v18193_v14, %v18193_v14  ;;  %v18207_v13 = vsub.f32 %v18117_v50, %v4150_v62 }
 0x33b   : > { %v4183_v34 = vmul.f32 %v4167_v11, %v18050_v23  ;;  %v4184_v31 = vmul.f32 %v4168_v15, %v18056_v46  ;;  %v4185_v49 = vmul.f32 %v4169_v48, %v18063_v33  ;;  %v4186_v12 = vmul.f32 %v4170_v28, %v18075_v45 }
 0x33c   : > { %v4173_v21 = vmul.f32 %v18196_v39, %v18196_v39  ;;  %v4187_v4 = vmul.f32 %v4171_v7, %v18086_v55  ;;  %v18213_v9 = vsub.f32 %v18121_v56, %v4150_v62  ;;  %v4188_v10 = vmul.f32 %v4172_v57, %v18094_v5 }
 0x33d   : > { %v4199_v53 = vadd.f32 %v4184_v31, %v4183_v34  ;;  %v4190_v19 = vmul.f32 %v4174_v1, %v18104_v17  ;;  %v4161_v24 = vsub.f32 %v18124_v3, %v4150_v62  ;;  %v4175_v50 = vmul.f32 %v18207_v13, %v18207_v13 }
 0x33e   : > { %v4189_v29 = vmul.f32 %v4173_v21, %v18111_v22  ;;  %v18222_v32 = vsub.f32 %v18128_v40, %v4150_v62  ;;  %v4176_v56 = vmul.f32 %v18213_v9, %v18213_v9  ;;  %v18228_v54 = vsub.f32 %v18134_v25, %v4150_v62 }
 0x33f   : > { %v4200_v61 = vadd.f32 %v4199_v53, %v4185_v49  ;;  %v4205_v37 = vsel %vm4128_vm10, %v4190_v19, 0.0  ;;  %v4177_v42 = vmul.f32 %v4161_v24, %v4161_v24  ;;  %v4191_v3 = vmul.f32 %v4175_v50, %v18050_v23 }
 0x340   : > { %v18232_v15 = vsub.f32 %v18138_v36, %v4150_v62  ;;  %v4178_v40 = vmul.f32 %v18222_v32, %v18222_v32  ;;  %v4192_v48 = vmul.f32 %v4176_v56, %v18056_v46  ;;  %v18238_v31 = vsub.f32 %v18141_v47, %v4150_v62 }
 0x341   : > { %v4201_v63 = vadd.f32 %v4200_v61, %v4186_v12  ;;  %v18241_v28 = vsub.f32 %v18146_v52, %v4150_v62  ;;  %v4179_v25 = vmul.f32 %v18228_v54, %v18228_v54  ;;  %v4193_v23 = vmul.f32 %v4177_v42, %v18063_v33 }
 0x342   : > { %v4180_v36 = vmul.f32 %v18232_v15, %v18232_v15  ;;  %v4194_v49 = vmul.f32 %v4178_v40, %v18075_v45  ;;  %v4182_v46 = vmul.f32 %v18238_v31, %v18238_v31 }
 0x343   : > { %v4202_v60 = vadd.f32 %v4201_v63, %v4187_v4  ;;  %v4181_v47 = vmul.f32 %v18241_v28, %v18241_v28  ;;  %v4195_v52 = vmul.f32 %v4179_v25, %v18086_v55  ;;  %v4248_v63 = vld [vmem:[%s21025_s3 + $0x8] sm:$0xff] }
 0x344   : > { %v4196_v57 = vmul.f32 %v4180_v36, %v18094_v5  ;;  %v4198_v33 = vmul.f32 %v4182_v46, %v18104_v17 }
 0x345   : > { %v4203_v30 = vadd.f32 %v4202_v60, %v4188_v10  ;;  %v4197_v61 = vmul.f32 %v4181_v47, %v18111_v22 }
 0x346   : > { %v4214_v45 = vsel %vm4128_vm10, %v4198_v33, 0.0 }
 0x347   : > { %v4204_v35 = vadd.f32 %v4203_v30, %v4189_v29  ;;  %v4252_v30 = vpop.permute.xlu1 %4251 }
 0x349   : > { %v4206_v11 = vadd.f32 %v4205_v37, %v4204_v35 }
 0x34b   : > { %v4207_v34 = vadd.f32 %v4206_v11, %v4191_v3  ;;  %v18261_v56 = vpop.permute.xlu1 %4279 }
 0x34d   : > { %v4208_v7 = vadd.f32 %v4207_v34, %v4192_v48 }
 0x34f   : > { %v4209_v53 = vadd.f32 %v4208_v7, %v4193_v23  ;;  %v4285_v46 = vpop.permute.xlu1 %4284 }
 0x351   : > { %v4210_v62 = vadd.f32 %v4209_v53, %v4194_v49 }
 0x353   : > { %v4211_v12 = vadd.f32 %v4210_v62, %v4195_v52 }
 0x355   : > { %v4212_v1 = vadd.f32 %v4211_v12, %v4196_v57 }
 0x357   : > { %v4213_v21 = vadd.f32 %v4212_v1, %v4197_v61 }
 0x359   : > { %v4215_v4 = vadd.f32 %v4214_v45, %v4213_v21 }
 0x35b   : > { %4216 = vadd.xlane.f32.xlu0 %v4215_v4 }
 0x371   : > { %4256 = vperm.xlu0 %16227, %v4248_v63  }
 0x3e8   : > { %v4217_v55 = vpop.xlane.xlu0 %4216 }
 0x3e9   : > { %v4218_v10 = vrot.slane %v4217_v55, 4 }
 0x3eb   : > { %v4219_v60 = vadd.f32 %v4218_v10, %v4217_v55 }
 0x3ed   : > { %v4220_v5 = vrot.slane %v4219_v60, 2 }
 0x3ef   : > { %v4221_v19 = vadd.f32 %v4220_v5, %v4219_v60 }
 0x3f0   : > { %v4257_v40 = vpop.permute.xlu0 %4256 }
 0x3f1   : > { %v4222_v50 = vrot.slane %v4221_v19, 1 }
 0x3f3   : > { %v4223_v17 = vadd.f32 %v4222_v50, %v4221_v19 }
 0x3f5   : > { %16186 = vpush %v4223_v17 }
 0x426   : > { %s16187_s0 = spop %16186 }
 0x427   : > { %s4225_s1 = smul.f32 6.9444446e-05, %s16187_s0  ;;  %s21029_s0 = smov 64  }
 0x429   : > { %s4226_s25 = sadd.f32 1e-05, %s4225_s1  ;;  %s21030_s1 = smov 63  }
 0x42b   : > { %v4227_v22 = vstv %s4226_s25  ;;  %s21031_s25 = smov 62  }
 0x42c   : > { %17112 = vrsqrt.f32 %v4227_v22 }
 0x436   : > { %v17113_v29 = vpop.eup %17112 }
 0x437   : > { %16188 = vpush %v17113_v29 }
 0x468   : > { %s16189_s29 = spop %16188 }
 0x469   : > { %v4230_v35 = vstv %s16189_s29 }
 0x46a   : > { %v4232_v37 = vmul.f32 %v4230_v35, %v18168_v6  ;;  %v4233_v42 = vmul.f32 %v4230_v35, %v18171_v8  ;;  %v4240_v3 = vmul.f32 %v4230_v35, %v18213_v9  ;;  %v4241_v11 = vmul.f32 %v4230_v35, %v4161_v24 }
 0x46b   : > { %v4234_v48 = vmul.f32 %v4230_v35, %v18178_v44  ;;  %v4235_v34 = vmul.f32 %v4230_v35, %v18181_v27  ;;  %v4231_v25 = vmul.f32 %v4230_v35, %v18165_v2  ;;  %v4239_v23 = vmul.f32 %v4230_v35, %v18207_v13 }
 0x46c   : > { %v4260_v7 = vmul.f32 %v4252_v30, %v4232_v37  ;;  %v4261_v36 = vmul.f32 %v4252_v30, %v4233_v42  ;;  %v4268_v49 = vmul.f32 %v4257_v40, %v4240_v3  ;;  %v4269_v53 = vmul.f32 %v4257_v40, %v4241_v11 }
 0x46d   : > { %v4262_v6 = vmul.f32 %v4252_v30, %v4234_v48  ;;  %v4263_v47 = vmul.f32 %v4252_v30, %v4235_v34  ;;  %v4259_v8 = vmul.f32 %v4252_v30, %v4231_v25  ;;  %v4267_v52 = vmul.f32 %v4257_v40, %v4239_v23 }
 0x46e   : > { %v18271_v9 = vadd.f32 %v18261_v56, %v4260_v7  ;;  %v18274_v44 = vadd.f32 %v18261_v56, %v4261_v36  ;;  %v18276_v27 = vadd.f32 %v4285_v46, %v4268_v49  ;;  %v18278_v2 = vadd.f32 %v4285_v46, %v4269_v53 }
 0x46f   : > { %v18281_v13 = vadd.f32 %v18261_v56, %v4262_v6  ;;  %v18284_v24 = vadd.f32 %v18261_v56, %v4263_v47  ;;  %v18287_v62 = vadd.f32 %v18261_v56, %v4259_v8  ;;  %v18289_v57 = vadd.f32 %v4285_v46, %v4267_v52 }
 0x470   : > { %v4304_v12 = vmax.f32 %v18271_v9, 0.0  ;;  %v4305_v33 = vmax.f32 %v18274_v44, 0.0  ;;  %v4312_v61 = vmax.f32 %v18276_v27, 0.0  ;;  %v4313_v1 = vmax.f32 %v18278_v2, 0.0 }
 0x471   : > { %v4306_v21 = vmax.f32 %v18281_v13, 0.0  ;;  %v4307_v45 = vmax.f32 %v18284_v24, 0.0  ;;  %v4303_v4 = vmax.f32 %v18287_v62, 0.0  ;;  %v4311_v63 = vmax.f32 %v18289_v57, 0.0 }
 0x472   : > { %v18301_v55 = vpack.i.bf16 %v4305_v33, %v4304_v12  ;;  %v18303_v10 = vpack.i.bf16 %v4313_v1, %v4312_v61  ;;  %v4236_v60 = vmul.f32 %v4230_v35, %v18188_v41  ;;  %v4237_v5 = vmul.f32 %v4230_v35, %v18196_v39 }
 0x473   : > { %v18307_v19 = vpack.i.bf16 %v4307_v45, %v4306_v21  ;;  %v18309_v50 = vpack.i.bf16 %v4311_v63, %v4303_v4  ;;  %v4242_v17 = vmul.f32 %v4230_v35, %v18222_v32  ;;  %v4243_v22 = vmul.f32 %v4230_v35, %v18228_v54 }
 0x474   : > { %16229 = vrot.lane.b32.xlu0 %v18301_v55, %s21003_s2  ;;  %16234 = vrot.lane.b32.xlu1 %v18303_v10, %s21003_s2  ;;  %v4264_v29 = vmul.f32 %v4252_v30, %v4236_v60  ;;  %v4265_v37 = vmul.f32 %v4252_v30, %v4237_v5  ;;  %v4238_v41 = vmul.f32 %v4230_v35, %v18193_v14 }
 0x475   : > { %v4270_v42 = vmul.f32 %v4257_v40, %v4242_v17  ;;  %v4271_v39 = vmul.f32 %v4257_v40, %v4243_v22  ;;  %v4246_v3 = vmul.f32 %v4230_v35, %v18238_v31  ;;  %v4244_v11 = vmul.f32 %v4230_v35, %v18232_v15 }
 0x476   : > { %v4292_v32 = vadd.f32 %v18261_v56, %v4264_v29  ;;  %v4293_v54 = vadd.f32 %v18261_v56, %v4265_v37  ;;  %v4266_v48 = vmul.f32 %v4252_v30, %v4238_v41  ;;  %v4245_v34 = vmul.f32 %v4230_v35, %v18241_v28 }
 0x477   : > { %v4298_v25 = vadd.f32 %v4285_v46, %v4270_v42  ;;  %v4299_v23 = vadd.f32 %v4285_v46, %v4271_v39  ;;  %v4274_v7 = vmul.f32 %v4257_v40, %v4246_v3  ;;  %v4272_v36 = vmul.f32 %v4257_v40, %v4244_v11 }
 0x478   : > { %16244 = vrot.lane.b32.xlu1 %v18307_v19, %s21003_s2  ;;  %16239 = vrot.lane.b32.xlu0 %v18309_v50, %s21003_s2  ;;  %v4308_v14 = vmax.f32 %v4292_v32, 0.0  ;;  %v4309_v31 = vmax.f32 %v4293_v54, 0.0  ;;  %v4294_v15 = vadd.f32 %v18261_v56, %v4266_v48  ;;  %v4273_v49 = vmul.f32 %v4257_v40, %v4245_v34 }
 0x479   : > { %v4314_v53 = vmax.f32 %v4298_v25, 0.0  ;;  %v4315_v6 = vmax.f32 %v4299_v23, 0.0  ;;  %v4302_v30 = vadd.f32 %v4285_v46, %v4274_v7  ;;  %v4300_v47 = vadd.f32 %v4285_v46, %v4272_v36  ;;  %v7797_v25 = vld [vmem:[%s21033_s5 + $0x8] sm:$0xff] }
 0x47a   : > { %v18328_v28 = vpack.i.bf16 %v4309_v31, %v4308_v14  ;;  %v4310_v35 = vmax.f32 %v4294_v15, 0.0  ;;  %v4301_v8 = vadd.f32 %v4285_v46, %v4273_v49  ;;  %v18352_v46 = vpack.c.bf16 %v4312_v61, %v4304_v12 }
 0x47b   : > { %v18330_v52 = vpack.i.bf16 %v4315_v6, %v4314_v53  ;;  %v4318_v9 = vmax.f32 %v4302_v30, 0.0  ;;  %v4316_v27 = vmax.f32 %v4300_v47, 0.0  ;;  %v18354_v13 = vpack.c.bf16 %v4314_v53, %v4306_v21 }
 0x47c   : > { %16254 = vrot.lane.b32.xlu1 %v18328_v28, %s21003_s2  ;;  %v4317_v2 = vmax.f32 %v4301_v8, 0.0  ;;  %v18356_v24 = vpack.c.bf16 %v4311_v63, %v4303_v4  ;;  %v18362_v57 = vpack.c.bf16 %v4313_v1, %v4305_v33  ;;  %v18368_v5 = vpack.c.bf16 %v4315_v6, %v4307_v45 }
 0x47d   : > { %16249 = vrot.lane.b32.xlu0 %v18330_v52, %s21003_s2  ;;  %v18336_v56 = vpack.i.bf16 %v4318_v9, %v4310_v35  ;;  %v18358_v62 = vpack.c.bf16 %v4316_v27, %v4308_v14  ;;  %v18364_v60 = vpack.c.bf16 %v4318_v9, %v4310_v35  ;;  %v7796_v14 = vld [vmem:[%s21033_s5] sm:$0xff] }
 0x47e   : > { %v18338_v40 = vpack.i.bf16 %v4317_v2, %v4316_v27  ;;  %v18370_v17 = vpack.c.bf16 %v4317_v2, %v4309_v31 }
 0x480   : > { %16264 = vrot.lane.b32.xlu1 %v18336_v56, %s21003_s2 }
 0x481   : > { %16259 = vrot.lane.b32.xlu0 %v18338_v40, %s21003_s2 }
 0x484   : > { %16274 = vrot.lane.b32.xlu1 %v18303_v10, %s21001_s6 }
 0x485   : > { %16269 = vrot.lane.b32.xlu0 %v18301_v55, %s21001_s6 }
 0x488   : > { %16284 = vrot.lane.b32.xlu1 %v18307_v19, %s21001_s6 }
 0x489   : > { %16279 = vrot.lane.b32.xlu0 %v18309_v50, %s21001_s6 }
 0x48c   : > { %16294 = vrot.lane.b32.xlu1 %v18328_v28, %s21001_s6 }
 0x48d   : > { %16289 = vrot.lane.b32.xlu0 %v18330_v52, %s21001_s6 }
 0x490   : > { %16304 = vrot.lane.b32.xlu1 %v18336_v56, %s21001_s6 }
 0x491   : > { %16299 = vrot.lane.b32.xlu0 %v18338_v40, %s21001_s6  ;;  %s21032_s6 = sld [smem:[#allocation8_spill]] }
 0x494   : > { %16314 = vrot.lane.b32.xlu1 %v18303_v10, %s20999_s27 }
 0x495   : > { %16309 = vrot.lane.b32.xlu0 %v18301_v55, %s20999_s27 }
 0x497   : > { %v18479_v54 = vld [vmem:[%s21032_s6 + $0x10] sm:$0xff]  ;;  %v14959_v8 = vld [vmem:[%s21032_s6 + $0x18] sm:$0xff] }
 0x498   : > { %16324 = vrot.lane.b32.xlu1 %v18307_v19, %s20999_s27 }
 0x499   : > { %16319 = vrot.lane.b32.xlu0 %v18309_v50, %s20999_s27 }
 0x49c   : > { %16334 = vrot.lane.b32.xlu1 %v18328_v28, %s20999_s27 }
 0x49d   : > { %16329 = vrot.lane.b32.xlu0 %v18330_v52, %s20999_s27 }
 0x4a0   : > { %16344 = vrot.lane.b32.xlu1 %v18336_v56, %s20999_s27 }
 0x4a1   : > { %16339 = vrot.lane.b32.xlu0 %v18338_v40, %s20999_s27  ;;  %s21037_s27 = smov 126  }
 0x4a4   : > { %16354 = vrot.lane.b32.xlu1 %v18303_v10, %s21027_s7 }
 0x4a5   : > { %16349 = vrot.lane.b32.xlu0 %v18301_v55, %s21027_s7 }
 0x4a8   : > { %16364 = vrot.lane.b32.xlu1 %v18307_v19, %s21027_s7 }
 0x4a9   : > { %16359 = vrot.lane.b32.xlu0 %v18309_v50, %s21027_s7 }
 0x4ac   : > { %16374 = vrot.lane.b32.xlu1 %v18328_v28, %s21027_s7 }
 0x4ad   : > { %16369 = vrot.lane.b32.xlu0 %v18330_v52, %s21027_s7 }
 0x4b0   : > { %16384 = vrot.lane.b32.xlu1 %v18336_v56, %s21027_s7 }
 0x4b1   : > { %16379 = vrot.lane.b32.xlu0 %v18338_v40, %s21027_s7 }
 0x4b4   : > { %16394 = vrot.lane.b32.xlu1 %v18303_v10, %s21028_s28 }
 0x4b5   : > { %16389 = vrot.lane.b32.xlu0 %v18301_v55, %s21028_s28 }
 0x4b8   : > { %16404 = vrot.lane.b32.xlu1 %v18307_v19, %s21028_s28 }
 0x4b9   : > { %16399 = vrot.lane.b32.xlu0 %v18309_v50, %s21028_s28 }
 0x4bc   : > { %16414 = vrot.lane.b32.xlu1 %v18328_v28, %s21028_s28 }
 0x4bd   : > { %16409 = vrot.lane.b32.xlu0 %v18330_v52, %s21028_s28 }
 0x4c0   : > { %16424 = vrot.lane.b32.xlu1 %v18336_v56, %s21028_s28 }
 0x4c1   : > { %16419 = vrot.lane.b32.xlu0 %v18338_v40, %s21028_s28 }
 0x4c4   : > { %16434 = vrot.lane.b32.xlu1 %v18303_v10, %s21029_s0 }
 0x4c5   : > { %16429 = vrot.lane.b32.xlu0 %v18301_v55, %s21029_s0 }
 0x4c8   : > { %16444 = vrot.lane.b32.xlu1 %v18307_v19, %s21029_s0 }
 0x4c9   : > { %16439 = vrot.lane.b32.xlu0 %v18309_v50, %s21029_s0 }
 0x4cc   : > { %16454 = vrot.lane.b32.xlu1 %v18328_v28, %s21029_s0 }
 0x4cd   : > { %16449 = vrot.lane.b32.xlu0 %v18330_v52, %s21029_s0 }
 0x4d0   : > { %16464 = vrot.lane.b32.xlu1 %v18336_v56, %s21029_s0 }
 0x4d1   : > { %16459 = vrot.lane.b32.xlu0 %v18338_v40, %s21029_s0 }
 0x4d4   : > { %16474 = vrot.lane.b32.xlu1 %v18303_v10, %s21030_s1 }
 0x4d5   : > { %16469 = vrot.lane.b32.xlu0 %v18301_v55, %s21030_s1 }
 0x4d8   : > { %16484 = vrot.lane.b32.xlu1 %v18307_v19, %s21030_s1 }
 0x4d9   : > { %16479 = vrot.lane.b32.xlu0 %v18309_v50, %s21030_s1 }
 0x4dc   : > { %16494 = vrot.lane.b32.xlu1 %v18328_v28, %s21030_s1 }
 0x4dd   : > { %16489 = vrot.lane.b32.xlu0 %v18330_v52, %s21030_s1 }
 0x4e0   : > { %16504 = vrot.lane.b32.xlu1 %v18336_v56, %s21030_s1 }
 0x4e1   : > { %16499 = vrot.lane.b32.xlu0 %v18338_v40, %s21030_s1 }
 0x4e4   : > { %16514 = vrot.lane.b32.xlu1 %v18303_v10, %s21031_s25 }
 0x4e5   : > { %16509 = vrot.lane.b32.xlu0 %v18301_v55, %s21031_s25 }
 0x4e6   : > { %v16230_v44 = vpop.permute.xlu0 %16229  ;;  %v16235_v12 = vpop.permute.xlu1 %16234 }
 0x4e7   : > { %v16232_v33 = vunpack.i.h.bf16 %v16230_v44  ;;  %v16231_v61 = vunpack.i.l.bf16 %v16230_v44  ;;  %v16237_v1 = vunpack.i.h.bf16 %v16235_v12  ;;  %v16236_v21 = vunpack.i.l.bf16 %v16235_v12 }
 0x4e8   : > { %16524 = vrot.lane.b32.xlu1 %v18307_v19, %s21031_s25 }
 0x4e9   : > { %16519 = vrot.lane.b32.xlu0 %v18309_v50, %s21031_s25  ;;  %v4373_v45 = vsel %vm745_vm0, %v16231_v61, %v16232_v33  ;;  %v4380_v4 = vsel %vm745_vm0, %v16236_v21, %v16237_v1 }
 0x4ea   : > { %v16245_v63 = vpop.permute.xlu1 %16244  ;;  %v16240_v10 = vpop.permute.xlu0 %16239  ;;  %v15319_v22 = vpack.c.bf16 %v4380_v4, %v4373_v45 }
 0x4eb   : > { %v16242_v55 = vunpack.i.h.bf16 %v16240_v10  ;;  %v16241_v29 = vunpack.i.l.bf16 %v16240_v10  ;;  %v16246_v37 = vunpack.i.l.bf16 %v16245_v63  ;;  %v16247_v50 = vunpack.i.h.bf16 %v16245_v63 }
 0x4ec   : > { %16534 = vrot.lane.b32.xlu1 %v18328_v28, %s21031_s25  ;;  %15320 = vmatprep.subr.bf16.mxu0 %v15319_v22 }
 0x4ed   : > { %v4379_v41 = vsel %vm745_vm0, %v16242_v55, %v16236_v21  ;;  %v4372_v19 = vsel %vm745_vm0, %v16241_v29, %v16231_v61  ;;  %16529 = vrot.lane.b32.xlu0 %v18330_v52, %s21031_s25  ;;  %v4374_v48 = vsel %vm745_vm0, %v16232_v33, %v16246_v37  ;;  %v4375_v31 = vsel %vm745_vm0, %v16246_v37, %v16247_v50 }
 0x4ee   : > { %v16255_v42 = vpop.permute.xlu1 %16254  ;;  %v15321_v39 = vpack.c.bf16 %v4379_v41, %v4372_v19 }
 0x4ef   : > { %v16250_v3 = vpop.permute.xlu0 %16249  ;;  %v16256_v34 = vunpack.i.l.bf16 %v16255_v42  ;;  %v16257_v23 = vunpack.i.h.bf16 %v16255_v42 }
 0x4f0   : > { %v16252_v11 = vunpack.i.h.bf16 %v16250_v3  ;;  %v16251_v32 = vunpack.i.l.bf16 %v16250_v3  ;;  %16544 = vrot.lane.b32.xlu1 %v18336_v56, %s21031_s25  ;;  %15322 = vmatpush1.bf16.msra.mxu0 %v15321_v39 }
 0x4f1   : > { %16539 = vrot.lane.b32.xlu0 %v18338_v40, %s21031_s25  ;;  %v4376_v52 = vsel %vm745_vm0, %v16247_v50, %v16256_v34  ;;  %v4377_v44 = vsel %vm745_vm0, %v16256_v34, %v16257_v23 }
 0x4f2   : > { %v4381_v7 = vsel %vm745_vm0, %v16237_v1, %v16251_v32  ;;  %v16265_v36 = vpop.permute.xlu1 %16264  ;;  %v4382_v15 = vsel %vm745_vm0, %v16251_v32, %v16252_v11 }
 0x4f3   : > { %v16267_v49 = vunpack.i.h.bf16 %v16265_v36  ;;  %v16266_v53 = vunpack.i.l.bf16 %v16265_v36  ;;  %v16260_v6 = vpop.permute.xlu0 %16259  ;;  %14960 = vmatmul.mubr.msk.f32.vlgmr.msra.gmra.mrb[16].mxu0 %vm4402_vm11, %v18479_v54  ;;  %v15323_v30 = vpack.c.bf16 %v4382_v15, %v4375_v31  ;;  %v15325_v47 = vpack.c.bf16 %v4381_v7, %v4374_v48  ;;  %v18566_v48 = vld [vmem:[%s21032_s6 + $0x8] sm:$0xff] }
 0x4f4   : > { %v16262_v28 = vunpack.i.h.bf16 %v16260_v6  ;;  %v16261_v35 = vunpack.i.l.bf16 %v16260_v6  ;;  %7805 = vperm.xlu1 %16226, %v7797_v25   ;;  %4479 = vmatprep.mubr.f32.mxu0 %v17128_v0 }
 0x4f5   : > { %v4378_v9 = vsel %vm745_vm0, %v16257_v23, %v16266_v53  ;;  %7800 = vperm.xlu0 %16227, %v7796_v14   ;;  %15324 = vmatprep.subr.bf16.mxu1 %v15323_v30  ;;  %v15331_v27 = vpack.c.bf16 %v16267_v49, %v16266_v53 }
 0x4f6   : > { %v4385_v2 = vsel %vm745_vm0, %v16262_v28, %v16267_v49  ;;  %v4383_v56 = vsel %vm745_vm0, %v16252_v11, %v16261_v35  ;;  %15326 = vmatpush1.bf16.msra.mxu1 %v15325_v47  ;;  %v18503_v40 = vpop.permute.xlu1 %16274  ;;  %v4384_v12 = vsel %vm745_vm0, %v16261_v35, %v16262_v28 }
 0x4f7   : > { %v18507_v33 = vpop.permute.xlu0 %16269  ;;  %15332 = vmatprep.subr.bf16.mxu1 %v15331_v27  ;;  %14961 = vmatmul.mubr.msk.f32.gmra.mrb[18].mxu0 %vm4402_vm11, %v14959_v8  ;;  %v15327_v61 = vpack.c.bf16 %v4384_v12, %v4377_v44  ;;  %v15329_v1 = vpack.c.bf16 %v4383_v56, %v4376_v52  ;;  %v15333_v21 = vpack.c.bf16 %v4385_v2, %v4378_v9  ;;  %v16277_v63 = vunpack.i.h.bf16 %v18503_v40 }
 0x4f8   : > { %4627 = vmatprep.mubr.f32.mxu0 %v17128_v0  ;;  %v16276_v10 = vunpack.i.l.bf16 %v18503_v40  ;;  %v16272_v22 = vunpack.i.h.bf16 %v18507_v33  ;;  %v16271_v55 = vunpack.i.l.bf16 %v18507_v33 }
 0x4f9   : > { %14962 = vmatmul.mubr.msk.f32.vlgmr.msra.gmra.mrb[8].mxu1 %vm4402_vm11, %v18479_v54  ;;  %15328 = vmatprep.subr.bf16.mxu0 %v15327_v61 }
 0x4fa   : > { %15330 = vmatpush1.bf16.msra.mxu0 %v15329_v1  ;;  %15334 = vmatpush1.bf16.msra.mxu1 %v15333_v21  ;;  %v18513_v45 = vpop.permute.xlu1 %16284  ;;  %v5067_v41 = vsel %vm1434_vm3, %v16271_v55, %v16272_v22  ;;  %v5074_v19 = vsel %vm1434_vm3, %v16276_v10, %v16277_v63 }
 0x4fb   : > { %v16280_v4 = vpop.permute.xlu0 %16279  ;;  %15336 = vmatprep.subr.bf16.mxu0 %v18352_v46  ;;  %15340 = vmatprep.subr.bf16.mxu1 %v18354_v13  ;;  %v16286_v42 = vunpack.i.l.bf16 %v18513_v45  ;;  %v15351_v11 = vpack.c.bf16 %v5074_v19, %v5067_v41 }
 0x4fc   : > { %4556 = vmatprep.mubr.f32.mxu1 %v17128_v0  ;;  %v16282_v39 = vunpack.i.h.bf16 %v16280_v4  ;;  %v16281_v3 = vunpack.i.l.bf16 %v16280_v4  ;;  %v18628_v4 = vld [vmem:[%s21032_s6 + $0x20] sm:$0xff] }
 0x4fd   : > { %14963 = vmatmul.mubr.msk.f32.gmra.mrb[10].mxu1 %vm4402_vm11, %v14959_v8  ;;  %14964 = vmatmul.mubr.msk.f32.vlgmr.msra.gmra.mrb[20].mxu0 %vm4402_vm11, %v18479_v54  ;;  %v5068_v56 = vsel %vm1434_vm3, %v16272_v22, %v16286_v42 }
 0x4fe   : > { %15338 = vmatpush1.bf16.msra.mxu0 %v18356_v24  ;;  %v18526_v46 = vpop.permute.xlu1 %16294  ;;  %4633 = vmatprep.mubr.f32.mxu0 %v17128_v0  ;;  %v5073_v36 = vsel %vm1434_vm3, %v16282_v39, %v16276_v10  ;;  %v5066_v14 = vsel %vm1434_vm3, %v16281_v3, %v16271_v55 }
 0x4ff   : > { %v18529_v13 = vpop.permute.xlu0 %16289  ;;  %15344 = vmatprep.subr.bf16.mxu0 %v18358_v62  ;;  %4704 = vmatprep.mubr.f32.mxu1 %v17128_v0  ;;  %v4319_v62 = vld [vmem:[%s21032_s6] sm:$0xff]  ;;  %v16296_v23 = vunpack.i.l.bf16 %v18526_v46  ;;  %v15353_v6 = vpack.c.bf16 %v5073_v36, %v5066_v14 }
 0x500   : > { %v16292_v29 = vunpack.i.h.bf16 %v18529_v13  ;;  %v16291_v37 = vunpack.i.l.bf16 %v18529_v13 }
 0x501   : > { %14965 = vmatmul.mubr.msk.f32.gmra.mrb[22].mxu0 %vm4402_vm11, %v14959_v8  ;;  %14966 = vmatmul.mubr.msk.f32.vlgmr.msra.gmra.mrb[12].mxu1 %vm4402_vm11, %v18479_v54 }
 0x502   : > { %15342 = vmatpush1.bf16.msra.mxu1 %v18362_v57  ;;  %v18539_v24 = vpop.permute.xlu1 %16304  ;;  %4710 = vmatprep.mubr.f32.mxu1 %v17128_v0  ;;  %v16287_v57 = vunpack.i.h.bf16 %v18513_v45  ;;  %v5076_v34 = vsel %vm1434_vm3, %v16291_v37, %v16292_v29  ;;  %v5075_v47 = vsel %vm1434_vm3, %v16277_v63, %v16291_v37 }
 0x503   : > { %15348 = vmatprep.subr.bf16.mxu1 %v18364_v60  ;;  %v18550_v50 = vpop.permute.xlu0 %16299  ;;  %4787 = vmatprep.mubr.f32.mxu0 %v17128_v0  ;;  %v16306_v28 = vunpack.i.l.bf16 %v18539_v24  ;;  %v15357_v44 = vpack.c.bf16 %v5075_v47, %v5068_v56 }
 0x504   : > { %v16302_v32 = vunpack.i.h.bf16 %v18550_v50  ;;  %v16301_v54 = vunpack.i.l.bf16 %v18550_v50  ;;  %v5069_v7 = vsel %vm1434_vm3, %v16286_v42, %v16287_v57  ;;  %v5070_v22 = vsel %vm1434_vm3, %v16287_v57, %v16296_v23  ;;  %v18662_v50 = vld [vmem:[%s21032_s6 + $0x28] sm:$0xff] }
 0x505   : > { %14967 = vmatmul.mubr.msk.f32.gmra.mrb[14].mxu1 %vm4402_vm11, %v14959_v8  ;;  %14968 = vmatmul.mubr.msk.f32.vlgmr.msra.gmra.mrb[16].mxu0 %vm4402_vm11, %v4319_v62  ;;  %v15355_v31 = vpack.c.bf16 %v5076_v34, %v5069_v7 }
 0x506   : > { %15346 = vmatpush1.bf16.msra.mxu0 %v18368_v5  ;;  %v18560_v60 = vpop.permute.xlu1 %16314  ;;  %4793 = vmatprep.mubr.f32.mxu0 %v17128_v0  ;;  %v16297_v5 = vunpack.i.h.bf16 %v18526_v46  ;;  %v5078_v49 = vsel %vm1434_vm3, %v16301_v54, %v16302_v32  ;;  %v5077_v12 = vsel %vm1434_vm3, %v16292_v29, %v16301_v54 }
 0x507   : > { %15352 = vmatprep.subr.bf16.mxu0 %v15351_v11  ;;  %v18571_v25 = vpop.permute.xlu0 %16309  ;;  %4864 = vmatprep.mubr.f32.mxu1 %v17128_v0  ;;  %v16317_v8 = vunpack.i.h.bf16 %v18560_v60  ;;  %v16316_v52 = vunpack.i.l.bf16 %v18560_v60  ;;  %v15361_v37 = vpack.c.bf16 %v5077_v12, %v5070_v22 }
 0x508   : > { %v5071_v30 = vsel %vm1434_vm3, %v16296_v23, %v16297_v5  ;;  %v16312_v9 = vunpack.i.h.bf16 %v18571_v25  ;;  %v16311_v27 = vunpack.i.l.bf16 %v18571_v25  ;;  %v5072_v46 = vsel %vm1434_vm3, %v16297_v5, %v16306_v28 }
 0x509   : > { %14969 = vmatmul.mubr.msk.f32.gmra.mrb[18].mxu0 %vm4402_vm11, %v18566_v48  ;;  %14970 = vmatmul.mubr.msk.f32.vlgmr.msra.gmra.mrb[8].mxu1 %vm4402_vm11, %v4319_v62  ;;  %v15359_v35 = vpack.c.bf16 %v5078_v49, %v5071_v30  ;;  %v5469_v10 = vsel %vm1807_vm5, %v16316_v52, %v16317_v8 }
 0x50a   : > { %15350 = vmatpush1.bf16.msra.mxu1 %v18370_v17  ;;  %v18585_v15 = vpop.permute.xlu1 %16324  ;;  %4870 = vmatprep.mubr.f32.mxu1 %v17128_v0  ;;  %v16307_v17 = vunpack.i.h.bf16 %v18539_v24  ;;  %v5462_v63 = vsel %vm1807_vm5, %v16311_v27, %v16312_v9 }
 0x50b   : > { %15356 = vmatprep.subr.bf16.mxu1 %v15355_v31  ;;  %v18591_v53 = vpop.permute.xlu0 %16319  ;;  %4941 = vmatprep.mubr.f32.mxu0 %v17128_v0  ;;  %v16327_v13 = vunpack.i.h.bf16 %v18585_v15  ;;  %v16326_v29 = vunpack.i.l.bf16 %v18585_v15  ;;  %v15367_v41 = vpack.c.bf16 %v5469_v10, %v5462_v63 }
 0x50c   : > { %v15363_v61 = vpack.c.bf16 %v16307_v17, %v16306_v28  ;;  %v5079_v24 = vsel %vm1434_vm3, %v16302_v32, %v16307_v17  ;;  %v16322_v45 = vunpack.i.h.bf16 %v18591_v53 }
 0x50d   : > { %14971 = vmatmul.mubr.msk.f32.gmra.mrb[10].mxu1 %vm4402_vm11, %v18566_v48  ;;  %14972 = vmatmul.mubr.msk.f32.vlgmr.msra.gmra.mrb[20].mxu0 %vm4402_vm11, %v4319_v62  ;;  %v15365_v54 = vpack.c.bf16 %v5079_v24, %v5072_v46 }
 0x50e   : > { %15354 = vmatpush1.bf16.msra.mxu0 %v15353_v6  ;;  %v18605_v2 = vpop.permute.xlu1 %16334  ;;  %4947 = vmatprep.mubr.f32.mxu0 %v17128_v0  ;;  %v5468_v34 = vsel %vm1807_vm5, %v16322_v45, %v16316_v52  ;;  %v5463_v52 = vsel %vm1807_vm5, %v16312_v9, %v16326_v29 }
 0x50f   : > { %15360 = vmatprep.subr.bf16.mxu0 %v15359_v35  ;;  %v18611_v40 = vpop.permute.xlu0 %16329  ;;  %5018 = vmatprep.mubr.f32.mxu1 %v17128_v0  ;;  %v16337_v11 = vunpack.i.h.bf16 %v18605_v2  ;;  %v16336_v32 = vunpack.i.l.bf16 %v18605_v2 }
 0x510   : > { %v16332_v33 = vunpack.i.h.bf16 %v18611_v40  ;;  %v16331_v1 = vunpack.i.l.bf16 %v18611_v40  ;;  %v18728_v40 = vld [vmem:[%s21032_s6 + $0x30] sm:$0xff] }
 0x511   : > { %14973 = vmatmul.mubr.msk.f32.gmra.mrb[22].mxu0 %vm4402_vm11, %v18566_v48  ;;  %14974 = vmatmul.mubr.msk.f32.vlgmr.msra.gmra.mrb[12].mxu1 %vm4402_vm11, %v4319_v62  ;;  %v16321_v62 = vunpack.i.l.bf16 %v18591_v53  ;;  %v5466_v49 = vsel %vm1807_vm5, %v16336_v32, %v16337_v11 }
 0x512   : > { %15358 = vmatpush1.bf16.msra.mxu1 %v15357_v44  ;;  %v18622_v21 = vpop.permute.xlu1 %16344  ;;  %5024 = vmatprep.mubr.f32.mxu1 %v17128_v0  ;;  %v5471_v39 = vsel %vm1807_vm5, %v16331_v1, %v16332_v33  ;;  %v5470_v53 = vsel %vm1807_vm5, %v16317_v8, %v16331_v1  ;;  %v5465_v1 = vsel %vm1807_vm5, %v16327_v13, %v16336_v32 }
 0x513   : > { %15364 = vmatprep.subr.bf16.mxu1 %v15363_v61  ;;  %v18639_v55 = vpop.permute.xlu0 %16339  ;;  %5166 = vmatprep.mubr.f32.mxu0 %v17128_v0  ;;  %v5461_v5 = vsel %vm1807_vm5, %v16321_v62, %v16311_v27  ;;  %v16347_v6 = vunpack.i.h.bf16 %v18622_v21  ;;  %v16346_v30 = vunpack.i.l.bf16 %v18622_v21  ;;  %v15373_v2 = vpack.c.bf16 %v5470_v53, %v5463_v52 }
 0x514   : > { %v16342_v19 = vunpack.i.h.bf16 %v18639_v55  ;;  %v16341_v57 = vunpack.i.l.bf16 %v18639_v55  ;;  %v15369_v31 = vpack.c.bf16 %v5468_v34, %v5461_v5  ;;  %v18762_v55 = vld [vmem:[%s21032_s6 + $0x38] sm:$0xff] }
 0x515   : > { %14975 = vmatmul.mubr.msk.f32.gmra.mrb[14].mxu1 %vm4402_vm11, %v18566_v48  ;;  %14978 = vmatmul.mubr.msk.f32.vlgmr.msra.gmra.mrb[16].mxu0 %vm4402_vm11, %v18628_v4  ;;  %v5464_v48 = vsel %vm1807_vm5, %v16326_v29, %v16327_v13  ;;  %v15379_v44 = vpack.c.bf16 %v16347_v6, %v16346_v30 }
 0x516   : > { %15362 = vmatpush1.bf16.msra.mxu0 %v15361_v37  ;;  %v18656_v42 = vpop.permute.xlu1 %16354  ;;  %5172 = vmatprep.mubr.f32.mxu0 %v17128_v0  ;;  %v15371_v23 = vpack.c.bf16 %v5471_v39, %v5464_v48  ;;  %v5473_v36 = vsel %vm1807_vm5, %v16341_v57, %v16342_v19  ;;  %v5472_v56 = vsel %vm1807_vm5, %v16332_v33, %v16341_v57 }
 0x517   : > { %15368 = vmatprep.subr.bf16.mxu0 %v15367_v41  ;;  %v18667_v3 = vpop.permute.xlu0 %16349  ;;  %5243 = vmatprep.mubr.f32.mxu1 %v17128_v0  ;;  %v15375_v47 = vpack.c.bf16 %v5473_v36, %v5466_v49  ;;  %v16357_v17 = vunpack.i.h.bf16 %v18656_v42  ;;  %v16356_v28 = vunpack.i.l.bf16 %v18656_v42  ;;  %v15377_v22 = vpack.c.bf16 %v5472_v56, %v5465_v1 }
 0x518   : > { %v16352_v35 = vunpack.i.h.bf16 %v18667_v3  ;;  %v16351_v60 = vunpack.i.l.bf16 %v18667_v3  ;;  %v5474_v46 = vsel %vm1807_vm5, %v16342_v19, %v16347_v6 }
 0x519   : > { %14979 = vmatmul.mubr.msk.f32.gmra.mrb[18].mxu0 %vm4402_vm11, %v18662_v50  ;;  %14980 = vmatmul.mubr.msk.f32.vlgmr.msra.gmra.mrb[8].mxu1 %vm4402_vm11, %v18628_v4  ;;  %v5864_v33 = vsel %vm2180_vm8, %v16356_v28, %v16357_v17 }
 0x51a   : > { %15366 = vmatpush1.bf16.msra.mxu1 %v15365_v54  ;;  %v18681_v7 = vpop.permute.xlu1 %16364  ;;  %5249 = vmatprep.mubr.f32.mxu1 %v17128_v0  ;;  %v5857_v61 = vsel %vm2180_vm8, %v16351_v60, %v16352_v35 }
 0x51b   : > { %15372 = vmatprep.subr.bf16.mxu1 %v15371_v23  ;;  %v18687_v14 = vpop.permute.xlu0 %16359  ;;  %5320 = vmatprep.mubr.f32.mxu0 %v17128_v0  ;;  %v16367_v63 = vunpack.i.h.bf16 %v18681_v7  ;;  %v16366_v10 = vunpack.i.l.bf16 %v18681_v7  ;;  %v15383_v29 = vpack.c.bf16 %v5864_v33, %v5857_v61 }
 0x51c   : > { %v16362_v15 = vunpack.i.h.bf16 %v18687_v14  ;;  %v16361_v13 = vunpack.i.l.bf16 %v18687_v14 }
 0x51d   : > { %14981 = vmatmul.mubr.msk.f32.gmra.mrb[10].mxu1 %vm4402_vm11, %v18662_v50  ;;  %14982 = vmatmul.mubr.msk.f32.vlgmr.msra.gmra.mrb[20].mxu0 %vm4402_vm11, %v18628_v4  ;;  %v5859_v39 = vsel %vm2180_vm8, %v16366_v10, %v16367_v63 }
 0x51e   : > { %15370 = vmatpush1.bf16.msra.mxu0 %v15369_v31  ;;  %v18704_v8 = vpop.permute.xlu1 %16374  ;;  %5326 = vmatprep.mubr.f32.mxu0 %v17128_v0  ;;  %v5856_v32 = vsel %vm2180_vm8, %v16361_v13, %v16351_v60 }
 0x51f   : > { %15376 = vmatprep.subr.bf16.mxu0 %v15375_v47  ;;  %v18710_v27 = vpop.permute.xlu0 %16369  ;;  %5397 = vmatprep.mubr.f32.mxu1 %v17128_v0  ;;  %v16377_v19 = vunpack.i.h.bf16 %v18704_v8  ;;  %v16376_v57 = vunpack.i.l.bf16 %v18704_v8 }
 0x520   : > { %v16372_v25 = vunpack.i.h.bf16 %v18710_v27  ;;  %v16371_v9 = vunpack.i.l.bf16 %v18710_v27  ;;  %v18828_v27 = vld [vmem:[%s21032_s6 + $0x40] sm:$0xff] }
 0x521   : > { %14983 = vmatmul.mubr.msk.f32.gmra.mrb[22].mxu0 %vm4402_vm11, %v18662_v50  ;;  %14984 = vmatmul.mubr.msk.f32.vlgmr.msra.gmra.mrb[12].mxu1 %vm4402_vm11, %v18628_v4  ;;  %v5467_v4 = vsel %vm1807_vm5, %v16337_v11, %v16346_v30  ;;  %v5863_v11 = vsel %vm2180_vm8, %v16362_v15, %v16356_v28  ;;  %v5861_v36 = vsel %vm2180_vm8, %v16376_v57, %v16377_v19 }
 0x522   : > { %15374 = vmatpush1.bf16.msra.mxu1 %v15373_v2  ;;  %v18722_v12 = vpop.permute.xlu1 %16384  ;;  %5403 = vmatprep.mubr.f32.mxu1 %v17128_v0  ;;  %v5866_v62 = vsel %vm2180_vm8, %v16371_v9, %v16372_v25  ;;  %v15385_v23 = vpack.c.bf16 %v5863_v11, %v5856_v32  ;;  %v5865_v14 = vsel %vm2180_vm8, %v16357_v17, %v16371_v9 }
 0x523   : > { %15380 = vmatprep.subr.bf16.mxu1 %v15379_v44  ;;  %v18739_v21 = vpop.permute.xlu0 %16379  ;;  %5561 = vmatprep.mubr.f32.mxu0 %v17128_v0  ;;  %v15387_v54 = vpack.c.bf16 %v5866_v62, %v5859_v39  ;;  %v16387_v31 = vunpack.i.h.bf16 %v18722_v12  ;;  %v16386_v49 = vunpack.i.l.bf16 %v18722_v12  ;;  %v5858_v28 = vsel %vm2180_vm8, %v16352_v35, %v16366_v10 }
 0x524   : > { %v16382_v37 = vunpack.i.h.bf16 %v18739_v21  ;;  %v16381_v24 = vunpack.i.l.bf16 %v18739_v21  ;;  %v15389_v8 = vpack.c.bf16 %v5865_v14, %v5858_v28  ;;  %v5860_v9 = vsel %vm2180_vm8, %v16367_v63, %v16376_v57  ;;  %v18862_v21 = vld [vmem:[%s21032_s6 + $0x48] sm:$0xff] }
 0x525   : > { %14985 = vmatmul.mubr.msk.f32.gmra.mrb[14].mxu1 %vm4402_vm11, %v18662_v50  ;;  %14988 = vmatmul.mubr.msk.f32.vlgmr.msra.gmra.mrb[16].mxu0 %vm4402_vm11, %v18728_v40  ;;  %v15381_v50 = vpack.c.bf16 %v5474_v46, %v5467_v4  ;;  %v15395_v2 = vpack.c.bf16 %v16387_v31, %v16386_v49 }
 0x526   : > { %15378 = vmatpush1.bf16.msra.mxu0 %v15377_v22  ;;  %v18756_v45 = vpop.permute.xlu1 %16394  ;;  %5567 = vmatprep.mubr.f32.mxu0 %v17128_v0  ;;  %v5868_v34 = vsel %vm2180_vm8, %v16381_v24, %v16382_v37  ;;  %v5867_v52 = vsel %vm2180_vm8, %v16372_v25, %v16381_v24  ;;  %v5869_v4 = vsel %vm2180_vm8, %v16382_v37, %v16387_v31 }
 0x527   : > { %15384 = vmatprep.subr.bf16.mxu0 %v15383_v29  ;;  %v18767_v41 = vpop.permute.xlu0 %16389  ;;  %5638 = vmatprep.mubr.f32.mxu1 %v17128_v0  ;;  %v15391_v53 = vpack.c.bf16 %v5868_v34, %v5861_v36  ;;  %v16397_v6 = vunpack.i.h.bf16 %v18756_v45  ;;  %v16396_v30 = vunpack.i.l.bf16 %v18756_v45  ;;  %v15393_v1 = vpack.c.bf16 %v5867_v52, %v5860_v9 }
 0x528   : > { %v16392_v47 = vunpack.i.h.bf16 %v18767_v41  ;;  %v16391_v42 = vunpack.i.l.bf16 %v18767_v41 }
 0x529   : > { %14989 = vmatmul.mubr.msk.f32.gmra.mrb[18].mxu0 %vm4402_vm11, %v18762_v55  ;;  %14990 = vmatmul.mubr.msk.f32.vlgmr.msra.gmra.mrb[8].mxu1 %vm4402_vm11, %v18728_v40  ;;  %v6259_v25 = vsel %vm2553_vm4, %v16396_v30, %v16397_v6 }
 0x52a   : > { %15382 = vmatpush1.bf16.msra.mxu1 %v15381_v50  ;;  %v18781_v48 = vpop.permute.xlu1 %16404  ;;  %5644 = vmatprep.mubr.f32.mxu1 %v17128_v0  ;;  %v6252_v44 = vsel %vm2553_vm4, %v16391_v42, %v16392_v47 }
 0x52b   : > { %15388 = vmatprep.subr.bf16.mxu1 %v15387_v54  ;;  %v18787_v5 = vpop.permute.xlu0 %16399  ;;  %5715 = vmatprep.mubr.f32.mxu0 %v17128_v0  ;;  %v16407_v61 = vunpack.i.h.bf16 %v18781_v48  ;;  %v16406_v33 = vunpack.i.l.bf16 %v18781_v48  ;;  %v15399_v10 = vpack.c.bf16 %v6259_v25, %v6252_v44 }
 0x52c   : > { %v16402_v7 = vunpack.i.h.bf16 %v18787_v5  ;;  %v16401_v63 = vunpack.i.l.bf16 %v18787_v5 }
 0x52d   : > { %14991 = vmatmul.mubr.msk.f32.gmra.mrb[10].mxu1 %vm4402_vm11, %v18762_v55  ;;  %14992 = vmatmul.mubr.msk.f32.vlgmr.msra.gmra.mrb[20].mxu0 %vm4402_vm11, %v18728_v40  ;;  %v6254_v62 = vsel %vm2553_vm4, %v16406_v33, %v16407_v61 }
 0x52e   : > { %15386 = vmatpush1.bf16.msra.mxu0 %v15385_v23  ;;  %v18804_v17 = vpop.permute.xlu1 %16414  ;;  %5721 = vmatprep.mubr.f32.mxu0 %v17128_v0  ;;  %v6251_v57 = vsel %vm2553_vm4, %v16401_v63, %v16391_v42 }
 0x52f   : > { %15392 = vmatprep.subr.bf16.mxu0 %v15391_v53  ;;  %v18810_v60 = vpop.permute.xlu0 %16409  ;;  %5792 = vmatprep.mubr.f32.mxu1 %v17128_v0  ;;  %v16417_v37 = vunpack.i.h.bf16 %v18804_v17  ;;  %v16416_v24 = vunpack.i.l.bf16 %v18804_v17 }
 0x530   : > { %v16412_v3 = vunpack.i.h.bf16 %v18810_v60  ;;  %v16411_v35 = vunpack.i.l.bf16 %v18810_v60  ;;  %v18928_v60 = vld [vmem:[%s21032_s6 + $0x50] sm:$0xff] }
 0x531   : > { %14993 = vmatmul.mubr.msk.f32.gmra.mrb[22].mxu0 %vm4402_vm11, %v18762_v55  ;;  %14994 = vmatmul.mubr.msk.f32.vlgmr.msra.gmra.mrb[12].mxu1 %vm4402_vm11, %v18728_v40  ;;  %v5862_v40 = vsel %vm2180_vm8, %v16377_v19, %v16386_v49  ;;  %v6258_v19 = vsel %vm2553_vm4, %v16402_v7, %v16396_v30  ;;  %v6256_v34 = vsel %vm2553_vm4, %v16416_v24, %v16417_v37 }
 0x532   : > { %15390 = vmatpush1.bf16.msra.mxu1 %v15389_v8  ;;  %v18822_v56 = vpop.permute.xlu1 %16424  ;;  %5798 = vmatprep.mubr.f32.mxu1 %v17128_v0  ;;  %v6261_v13 = vsel %vm2553_vm4, %v16411_v35, %v16412_v3  ;;  %v15401_v54 = vpack.c.bf16 %v6258_v19, %v6251_v57  ;;  %v6260_v5 = vsel %vm2553_vm4, %v16397_v6, %v16411_v35 }
 0x533   : > { %15396 = vmatprep.subr.bf16.mxu1 %v15395_v2  ;;  %v18839_v12 = vpop.permute.xlu0 %16419  ;;  %5956 = vmatprep.mubr.f32.mxu0 %v17128_v0  ;;  %v15403_v50 = vpack.c.bf16 %v6261_v13, %v6254_v62  ;;  %v16427_v23 = vunpack.i.h.bf16 %v18822_v56  ;;  %v16426_v36 = vunpack.i.l.bf16 %v18822_v56  ;;  %v6253_v30 = vsel %vm2553_vm4, %v16392_v47, %v16406_v33 }
 0x534   : > { %v16422_v22 = vunpack.i.h.bf16 %v18839_v12  ;;  %v16421_v46 = vunpack.i.l.bf16 %v18839_v12  ;;  %v15405_v17 = vpack.c.bf16 %v6260_v5, %v6253_v30  ;;  %v6255_v35 = vsel %vm2553_vm4, %v16407_v61, %v16416_v24  ;;  %v18962_v12 = vld [vmem:[%s21032_s6 + $0x58] sm:$0xff] }
 0x535   : > { %14995 = vmatmul.mubr.msk.f32.gmra.mrb[14].mxu1 %vm4402_vm11, %v18762_v55  ;;  %14998 = vmatmul.mubr.msk.f32.vlgmr.msra.gmra.mrb[16].mxu0 %vm4402_vm11, %v18828_v27  ;;  %v15397_v55 = vpack.c.bf16 %v5869_v4, %v5862_v40  ;;  %v15411_v8 = vpack.c.bf16 %v16427_v23, %v16426_v36 }
 0x536   : > { %15394 = vmatpush1.bf16.msra.mxu0 %v15393_v1  ;;  %v18856_v15 = vpop.permute.xlu1 %16434  ;;  %5962 = vmatprep.mubr.f32.mxu0 %v17128_v0  ;;  %v6263_v11 = vsel %vm2553_vm4, %v16421_v46, %v16422_v22  ;;  %v6262_v28 = vsel %vm2553_vm4, %v16412_v3, %v16421_v46  ;;  %v6264_v40 = vsel %vm2553_vm4, %v16422_v22, %v16427_v23 }
 0x537   : > { %15400 = vmatprep.subr.bf16.mxu0 %v15399_v10  ;;  %v18867_v29 = vpop.permute.xlu0 %16429  ;;  %6033 = vmatprep.mubr.f32.mxu1 %v17128_v0  ;;  %v15407_v14 = vpack.c.bf16 %v6263_v11, %v6256_v34  ;;  %v16437_v31 = vunpack.i.h.bf16 %v18856_v15  ;;  %v16436_v49 = vunpack.i.l.bf16 %v18856_v15  ;;  %v15409_v9 = vpack.c.bf16 %v6262_v28, %v6255_v35 }
 0x538   : > { %v16432_v53 = vunpack.i.h.bf16 %v18867_v29  ;;  %v16431_v45 = vunpack.i.l.bf16 %v18867_v29 }
 0x539   : > { %14999 = vmatmul.mubr.msk.f32.gmra.mrb[18].mxu0 %vm4402_vm11, %v18862_v21  ;;  %15000 = vmatmul.mubr.msk.f32.vlgmr.msra.gmra.mrb[8].mxu1 %vm4402_vm11, %v18828_v27  ;;  %v6654_v3 = vsel %vm2929_vm6, %v16436_v49, %v16437_v31 }
 0x53a   : > { %15398 = vmatpush1.bf16.msra.mxu1 %v15397_v55  ;;  %v18881_v39 = vpop.permute.xlu1 %16444  ;;  %6039 = vmatprep.mubr.f32.mxu1 %v17128_v0  ;;  %v6647_v2 = vsel %vm2929_vm6, %v16431_v45, %v16432_v53 }
 0x53b   : > { %15404 = vmatprep.subr.bf16.mxu1 %v15403_v50  ;;  %v18887_v32 = vpop.permute.xlu0 %16439  ;;  %6110 = vmatprep.mubr.f32.mxu0 %v17128_v0  ;;  %v16447_v44 = vunpack.i.h.bf16 %v18881_v39  ;;  %v16446_v25 = vunpack.i.l.bf16 %v18881_v39  ;;  %v15415_v33 = vpack.c.bf16 %v6654_v3, %v6647_v2 }
 0x53c   : > { %v16442_v48 = vunpack.i.h.bf16 %v18887_v32  ;;  %v16441_v61 = vunpack.i.l.bf16 %v18887_v32 }
 0x53d   : > { %15001 = vmatmul.mubr.msk.f32.gmra.mrb[10].mxu1 %vm4402_vm11, %v18862_v21  ;;  %15002 = vmatmul.mubr.msk.f32.vlgmr.msra.gmra.mrb[20].mxu0 %vm4402_vm11, %v18828_v27  ;;  %v6649_v13 = vsel %vm2929_vm6, %v16446_v25, %v16447_v44 }
 0x53e   : > { %15402 = vmatpush1.bf16.msra.mxu0 %v15401_v54  ;;  %v18904_v6 = vpop.permute.xlu1 %16454  ;;  %6116 = vmatprep.mubr.f32.mxu0 %v17128_v0  ;;  %v6646_v24 = vsel %vm2929_vm6, %v16441_v61, %v16431_v45 }
 0x53f   : > { %15408 = vmatprep.subr.bf16.mxu0 %v15407_v14  ;;  %v18910_v42 = vpop.permute.xlu0 %16449  ;;  %6187 = vmatprep.mubr.f32.mxu1 %v17128_v0  ;;  %v16457_v22 = vunpack.i.h.bf16 %v18904_v6  ;;  %v16456_v46 = vunpack.i.l.bf16 %v18904_v6 }
 0x540   : > { %v16452_v41 = vunpack.i.h.bf16 %v18910_v42  ;;  %v16451_v47 = vunpack.i.l.bf16 %v18910_v42  ;;  %v19028_v42 = vld [vmem:[%s21032_s6 + $0x60] sm:$0xff] }
 0x541   : > { %15003 = vmatmul.mubr.msk.f32.gmra.mrb[22].mxu0 %vm4402_vm11, %v18862_v21  ;;  %15004 = vmatmul.mubr.msk.f32.vlgmr.msra.gmra.mrb[12].mxu1 %vm4402_vm11, %v18828_v27  ;;  %v6257_v27 = vsel %vm2553_vm4, %v16417_v37, %v16426_v36  ;;  %v6653_v37 = vsel %vm2929_vm6, %v16442_v48, %v16436_v49  ;;  %v6651_v11 = vsel %vm2929_vm6, %v16456_v46, %v16457_v22 }
 0x542   : > { %15406 = vmatpush1.bf16.msra.mxu1 %v15405_v17  ;;  %v18922_v52 = vpop.permute.xlu1 %16464  ;;  %6193 = vmatprep.mubr.f32.mxu1 %v17128_v0  ;;  %v6656_v63 = vsel %vm2929_vm6, %v16451_v47, %v16452_v41  ;;  %v15417_v50 = vpack.c.bf16 %v6653_v37, %v6646_v24  ;;  %v6655_v32 = vsel %vm2929_vm6, %v16437_v31, %v16451_v47 }
 0x543   : > { %15412 = vmatprep.subr.bf16.mxu1 %v15411_v8  ;;  %v18939_v56 = vpop.permute.xlu0 %16459  ;;  %6351 = vmatprep.mubr.f32.mxu0 %v17128_v0  ;;  %v15419_v55 = vpack.c.bf16 %v6656_v63, %v6649_v13  ;;  %v16467_v54 = vunpack.i.h.bf16 %v18922_v52  ;;  %v16466_v34 = vunpack.i.l.bf16 %v18922_v52  ;;  %v6648_v49 = vsel %vm2929_vm6, %v16432_v53, %v16446_v25 }
 0x544   : > { %v16462_v1 = vunpack.i.h.bf16 %v18939_v56  ;;  %v16461_v4 = vunpack.i.l.bf16 %v18939_v56  ;;  %v15421_v6 = vpack.c.bf16 %v6655_v32, %v6648_v49  ;;  %v6650_v47 = vsel %vm2929_vm6, %v16447_v44, %v16456_v46  ;;  %v19060_v56 = vld [vmem:[%s21032_s6 + $0x68] sm:$0xff] }
 0x545   : > { %15005 = vmatmul.mubr.msk.f32.gmra.mrb[14].mxu1 %vm4402_vm11, %v18862_v21  ;;  %15008 = vmatmul.mubr.msk.f32.vlgmr.msra.gmra.mrb[16].mxu0 %vm4402_vm11, %v18928_v60  ;;  %v15413_v21 = vpack.c.bf16 %v6264_v40, %v6257_v27  ;;  %v15427_v17 = vpack.c.bf16 %v16467_v54, %v16466_v34 }
 0x546   : > { %15410 = vmatpush1.bf16.msra.mxu0 %v15409_v9  ;;  %v18956_v7 = vpop.permute.xlu1 %16474  ;;  %6357 = vmatprep.mubr.f32.mxu0 %v17128_v0  ;;  %v6658_v19 = vsel %vm2929_vm6, %v16461_v4, %v16462_v1  ;;  %v6657_v30 = vsel %vm2929_vm6, %v16452_v41, %v16461_v4  ;;  %v6659_v27 = vsel %vm2929_vm6, %v16462_v1, %v16467_v54 }
 0x547   : > { %15416 = vmatprep.subr.bf16.mxu0 %v15415_v33  ;;  %v18967_v10 = vpop.permute.xlu0 %16469  ;;  %6428 = vmatprep.mubr.f32.mxu1 %v17128_v0  ;;  %v15423_v5 = vpack.c.bf16 %v6658_v19, %v6651_v11  ;;  %v16477_v23 = vunpack.i.h.bf16 %v18956_v7  ;;  %v16476_v36 = vunpack.i.l.bf16 %v18956_v7  ;;  %v15425_v35 = vpack.c.bf16 %v6657_v30, %v6650_v47 }
 0x548   : > { %v16472_v14 = vunpack.i.h.bf16 %v18967_v10  ;;  %v16471_v15 = vunpack.i.l.bf16 %v18967_v10 }
 0x549   : > { %15009 = vmatmul.mubr.msk.f32.gmra.mrb[18].mxu0 %vm4402_vm11, %v18962_v12  ;;  %15010 = vmatmul.mubr.msk.f32.vlgmr.msra.gmra.mrb[8].mxu1 %vm4402_vm11, %v18928_v60  ;;  %v7049_v41 = vsel %vm3305_vm7, %v16476_v36, %v16477_v23 }
 0x54a   : > { %15414 = vmatpush1.bf16.msra.mxu1 %v15413_v21  ;;  %v18981_v62 = vpop.permute.xlu1 %16484  ;;  %6434 = vmatprep.mubr.f32.mxu1 %v17128_v0  ;;  %v7042_v8 = vsel %vm3305_vm7, %v16471_v15, %v16472_v14 }
 0x54b   : > { %15420 = vmatprep.subr.bf16.mxu1 %v15419_v55  ;;  %v18987_v57 = vpop.permute.xlu0 %16479  ;;  %6505 = vmatprep.mubr.f32.mxu0 %v17128_v0  ;;  %v16487_v2 = vunpack.i.h.bf16 %v18981_v62  ;;  %v16486_v3 = vunpack.i.l.bf16 %v18981_v62  ;;  %v15431_v25 = vpack.c.bf16 %v7049_v41, %v7042_v8 }
 0x54c   : > { %v16482_v39 = vunpack.i.h.bf16 %v18987_v57  ;;  %v16481_v44 = vunpack.i.l.bf16 %v18987_v57 }
 0x54d   : > { %15011 = vmatmul.mubr.msk.f32.gmra.mrb[10].mxu1 %vm4402_vm11, %v18962_v12  ;;  %15012 = vmatmul.mubr.msk.f32.vlgmr.msra.gmra.mrb[20].mxu0 %vm4402_vm11, %v18928_v60  ;;  %v7044_v63 = vsel %vm3305_vm7, %v16486_v3, %v16487_v2 }
 0x54e   : > { %15418 = vmatpush1.bf16.msra.mxu0 %v15417_v50  ;;  %v19004_v31 = vpop.permute.xlu1 %16494  ;;  %6511 = vmatprep.mubr.f32.mxu0 %v17128_v0  ;;  %v7041_v46 = vsel %vm3305_vm7, %v16481_v44, %v16471_v15 }
 0x54f   : > { %15424 = vmatprep.subr.bf16.mxu0 %v15423_v5  ;;  %v19010_v45 = vpop.permute.xlu0 %16489  ;;  %6582 = vmatprep.mubr.f32.mxu1 %v17128_v0  ;;  %v16497_v33 = vunpack.i.h.bf16 %v19004_v31  ;;  %v16496_v1 = vunpack.i.l.bf16 %v19004_v31 }
 0x550   : > { %v16492_v29 = vunpack.i.h.bf16 %v19010_v45  ;;  %v16491_v53 = vunpack.i.l.bf16 %v19010_v45  ;;  %v15026_v45 = vld [vmem:[%s21032_s6 + $0x70] sm:$0xff] }
 0x551   : > { %15013 = vmatmul.mubr.msk.f32.gmra.mrb[22].mxu0 %vm4402_vm11, %v18962_v12  ;;  %15014 = vmatmul.mubr.msk.f32.vlgmr.msra.gmra.mrb[12].mxu1 %vm4402_vm11, %v18928_v60  ;;  %v6652_v60 = vsel %vm2929_vm6, %v16457_v22, %v16466_v34  ;;  %v7048_v22 = vsel %vm3305_vm7, %v16482_v39, %v16476_v36  ;;  %v7046_v55 = vsel %vm3305_vm7, %v16496_v1, %v16497_v33 }
 0x552   : > { %15422 = vmatpush1.bf16.msra.mxu1 %v15421_v6  ;;  %v19022_v28 = vpop.permute.xlu1 %16504  ;;  %6588 = vmatprep.mubr.f32.mxu1 %v17128_v0  ;;  %v7051_v48 = vsel %vm3305_vm7, %v16491_v53, %v16492_v29  ;;  %v15433_v24 = vpack.c.bf16 %v7048_v22, %v7041_v46  ;;  %v7050_v19 = vsel %vm3305_vm7, %v16477_v23, %v16491_v53 }
 0x553   : > { %15428 = vmatprep.subr.bf16.mxu1 %v15427_v17  ;;  %v19039_v52 = vpop.permute.xlu0 %16499  ;;  %6746 = vmatprep.mubr.f32.mxu0 %v17128_v0  ;;  %v15435_v21 = vpack.c.bf16 %v7051_v48, %v7044_v63  ;;  %v16507_v57 = vunpack.i.h.bf16 %v19022_v28  ;;  %v16506_v50 = vunpack.i.l.bf16 %v19022_v28  ;;  %v7043_v23 = vsel %vm3305_vm7, %v16472_v14, %v16486_v3 }
 0x554   : > { %v16502_v9 = vunpack.i.h.bf16 %v19039_v52  ;;  %v16501_v40 = vunpack.i.l.bf16 %v19039_v52  ;;  %v15437_v15 = vpack.c.bf16 %v7050_v19, %v7043_v23  ;;  %v7045_v17 = vsel %vm3305_vm7, %v16487_v2, %v16496_v1  ;;  %v15027_v52 = vld [vmem:[%s21032_s6 + $0x78] sm:$0xff] }
 0x555   : > { %15015 = vmatmul.mubr.msk.f32.gmra.mrb[14].mxu1 %vm4402_vm11, %v18962_v12  ;;  %15018 = vmatmul.mubr.msk.f32.vlgmr.msra.gmra.mrb[16].mxu0 %vm4402_vm11, %v19028_v42  ;;  %v15429_v12 = vpack.c.bf16 %v6659_v27, %v6652_v60  ;;  %v15443_v49 = vpack.c.bf16 %v16507_v57, %v16506_v50  ;;  %v7047_v53 = vsel %vm3305_vm7, %v16497_v33, %v16506_v50 }
 0x556   : > { %15426 = vmatpush1.bf16.msra.mxu0 %v15425_v35  ;;  %6752 = vmatprep.mubr.f32.mxu0 %v17128_v0  ;;  %v19070_v4 = vpop.permute.xlu1 %16514  ;;  %v7053_v13 = vsel %vm3305_vm7, %v16501_v40, %v16502_v9  ;;  %v7052_v31 = vsel %vm3305_vm7, %v16492_v29, %v16501_v40  ;;  %v7054_v47 = vsel %vm3305_vm7, %v16502_v9, %v16507_v57 }
 0x557   : > { %15432 = vmatprep.subr.bf16.mxu0 %v15431_v25  ;;  %v19065_v61 = vpop.permute.xlu0 %16509  ;;  %6823 = vmatprep.mubr.f32.mxu1 %v17128_v0  ;;  %v15439_v11 = vpack.c.bf16 %v7053_v13, %v7046_v55  ;;  %v16517_v32 = vunpack.i.h.bf16 %v19070_v4  ;;  %v16516_v54 = vunpack.i.l.bf16 %v19070_v4  ;;  %v15441_v41 = vpack.c.bf16 %v7052_v31, %v7045_v17 }
 0x558   : > { %v16512_v34 = vunpack.i.h.bf16 %v19065_v61  ;;  %v16511_v7 = vunpack.i.l.bf16 %v19065_v61  ;;  %v15445_v25 = vpack.c.bf16 %v7054_v47, %v7047_v53  ;;  %v15036_v61 = vld [vmem:[%s21032_s6 + $0x80] sm:$0xff] }
 0x559   : > { %15019 = vmatmul.mubr.msk.f32.gmra.mrb[18].mxu0 %vm4402_vm11, %v19060_v56  ;;  %15020 = vmatmul.mubr.msk.f32.vlgmr.msra.gmra.mrb[8].mxu1 %vm4402_vm11, %v19028_v42  ;;  %v7444_v30 = vsel %vm3681_vm9, %v16516_v54, %v16517_v32 }
 0x55a   : > { %15430 = vmatpush1.bf16.msra.mxu1 %v15429_v12  ;;  %6829 = vmatprep.mubr.f32.mxu1 %v17128_v0  ;;  %v19102_v5 = vpop.permute.xlu1 %16524  ;;  %v7437_v6 = vsel %vm3681_vm9, %v16511_v7, %v16512_v34 }
 0x55b   : > { %15436 = vmatprep.subr.bf16.mxu1 %v15435_v21  ;;  %v19085_v37 = vpop.permute.xlu0 %16519  ;;  %6900 = vmatprep.mubr.f32.mxu0 %v17128_v0  ;;  %v16527_v28 = vunpack.i.h.bf16 %v19102_v5  ;;  %v15447_v2 = vpack.c.bf16 %v7444_v30, %v7437_v6 }
 0x55c   : > { %v16522_v62 = vunpack.i.h.bf16 %v19085_v37  ;;  %v16521_v60 = vunpack.i.l.bf16 %v19085_v37 }
 0x55d   : > { %15021 = vmatmul.mubr.msk.f32.gmra.mrb[10].mxu1 %vm4402_vm11, %v19060_v56  ;;  %15022 = vmatmul.mubr.msk.f32.vlgmr.msra.gmra.mrb[20].mxu0 %vm4402_vm11, %v19028_v42 }
 0x55e   : > { %15434 = vmatpush1.bf16.msra.mxu0 %v15433_v24  ;;  %6906 = vmatprep.mubr.f32.mxu0 %v17128_v0  ;;  %v16535_v8 = vpop.permute.xlu1 %16534  ;;  %v7443_v40 = vsel %vm3681_vm9, %v16522_v62, %v16516_v54 }
 0x55f   : > { %15440 = vmatprep.subr.bf16.mxu0 %v15439_v11  ;;  %v19108_v36 = vpop.permute.xlu0 %16529  ;;  %6977 = vmatprep.mubr.f32.mxu1 %v17128_v0  ;;  %v16537_v39 = vunpack.i.h.bf16 %v16535_v8  ;;  %v16536_v44 = vunpack.i.l.bf16 %v16535_v8 }
 0x560   : > { %v16532_v10 = vunpack.i.h.bf16 %v19108_v36  ;;  %v16531_v14 = vunpack.i.l.bf16 %v19108_v36 }
 0x561   : > { %15023 = vmatmul.mubr.msk.f32.gmra.mrb[22].mxu0 %vm4402_vm11, %v19060_v56  ;;  %15024 = vmatmul.mubr.msk.f32.vlgmr.msra.gmra.mrb[12].mxu1 %vm4402_vm11, %v19028_v42  ;;  %v16526_v42 = vunpack.i.l.bf16 %v19102_v5  ;;  %v7441_v63 = vsel %vm3681_vm9, %v16536_v44, %v16537_v39  ;;  %v7440_v19 = vsel %vm3681_vm9, %v16527_v28, %v16536_v44 }
 0x562   : > { %15438 = vmatpush1.bf16.msra.mxu1 %v15437_v15  ;;  %6983 = vmatprep.mubr.f32.mxu1 %v17128_v0  ;;  %v7446_v27 = vsel %vm3681_vm9, %v16531_v14, %v16532_v10  ;;  %v16545_v33 = vpop.permute.xlu1 %16544  ;;  %v7445_v22 = vsel %vm3681_vm9, %v16517_v32, %v16531_v14  ;;  %v15037_v32 = vld [vmem:[%s21032_s6 + $0x88] sm:$0xff] }
 0x563   : > { %15444 = vmatprep.subr.bf16.mxu1 %v15443_v49  ;;  %v19133_v29 = vpop.permute.xlu0 %16539  ;;  %7141 = vmatprep.mubr.f32.mxu0 %v17128_v0  ;;  %v7439_v9 = vsel %vm3681_vm9, %v16526_v42, %v16527_v28  ;;  %v16547_v46 = vunpack.i.h.bf16 %v16545_v33  ;;  %v16546_v21 = vunpack.i.l.bf16 %v16545_v33  ;;  %v7438_v37 = vsel %vm3681_vm9, %v16512_v34, %v16526_v42  ;;  %v7824_v34 = vld [vmem:[%s20969_s10] sm:$0xff] }
 0x564   : > { %v16542_v3 = vunpack.i.h.bf16 %v19133_v29  ;;  %v16541_v35 = vunpack.i.l.bf16 %v19133_v29  ;;  %v15451_v48 = vpack.c.bf16 %v7446_v27, %v7439_v9  ;;  %v15453_v4 = vpack.c.bf16 %v7445_v22, %v7438_v37 }
 0x565   : > { %15025 = vmatmul.mubr.msk.f32.gmra.mrb[14].mxu1 %vm4402_vm11, %v19060_v56  ;;  %15028 = vmatmul.mubr.msk.f32.vlgmr.msra.gmra.mrb[16].mxu0 %vm4402_vm11, %v15026_v45  ;;  %v7436_v56 = vsel %vm3681_vm9, %v16521_v60, %v16511_v7  ;;  %v15459_v55 = vpack.c.bf16 %v16547_v46, %v16546_v21  ;;  %v7442_v50 = vsel %vm3681_vm9, %v16537_v39, %v16546_v21 }
 0x566   : > { %15442 = vmatpush1.bf16.msra.mxu0 %v15441_v41  ;;  %7147 = vmatprep.mubr.f32.mxu0 %v17128_v0  ;;  %v7448_v1 = vsel %vm3681_vm9, %v16541_v35, %v16542_v3  ;;  %v15449_v12 = vpack.c.bf16 %v7443_v40, %v7436_v56  ;;  %v7447_v24 = vsel %vm3681_vm9, %v16532_v10, %v16541_v35 }
 0x567   : > { %15448 = vmatprep.subr.bf16.mxu0 %v15447_v2  ;;  %7218 = vmatprep.mubr.f32.mxu1 %v17128_v0  ;;  %v15455_v13 = vpack.c.bf16 %v7448_v1, %v7441_v63  ;;  %v15457_v57 = vpack.c.bf16 %v7447_v24, %v7440_v19  ;;  %v7449_v11 = vsel %vm3681_vm9, %v16542_v3, %v16547_v46 }
 0x568   : > { %v15461_v54 = vpack.c.bf16 %v7449_v11, %v7442_v50  ;;  %v19210_v7 = vrot.slane %v7824_v34, %v18038_v18  ;;  %v19213_v36 = vrot.slane %v7824_v34, %v18041_v43  ;;  %v19222_v14 = vrot.slane %v7824_v34, %v18047_v20 }
 0x569   : > { %15029 = vmatmul.mubr.msk.f32.gmra.mrb[18].mxu0 %vm4402_vm11, %v15027_v52  ;;  %15030 = vmatmul.mubr.msk.f32.vlgmr.msra.gmra.mrb[8].mxu1 %vm4402_vm11, %v15026_v45  ;;  %v19227_v17 = vrot.slane %v7824_v34, %v18053_v26  ;;  %v19236_v47 = vrot.slane %v7824_v34, %v18070_v38  ;;  %v19241_v3 = vrot.slane %v7824_v34, %v18080_v51 }
 0x56a   : > { %15446 = vmatpush1.bf16.msra.mxu1 %v15445_v25  ;;  %7224 = vmatprep.mubr.f32.mxu1 %v17128_v0  ;;  %v19250_v40 = vrot.slane %v7824_v34, %v18089_v58  ;;  %v19256_v1 = vrot.slane %v7824_v34, %v4096_v59 }
 0x56b   : > { %15452 = vmatprep.subr.bf16.mxu1 %v15451_v48  ;;  %7295 = vmatprep.mubr.f32.mxu0 %v17128_v0 }
 0x56d   : > { %15031 = vmatmul.mubr.msk.f32.gmra.mrb[10].mxu1 %vm4402_vm11, %v15027_v52  ;;  %15032 = vmatmul.mubr.msk.f32.vlgmr.msra.gmra.mrb[20].mxu0 %vm4402_vm11, %v15026_v45 }
 0x56e   : > { %15450 = vmatpush1.bf16.msra.mxu0 %v15449_v12  ;;  %7301 = vmatprep.mubr.f32.mxu0 %v17128_v0 }
 0x56f   : > { %15456 = vmatprep.subr.bf16.mxu0 %v15455_v13  ;;  %7372 = vmatprep.mubr.f32.mxu1 %v17128_v0 }
 0x571   : > { %15033 = vmatmul.mubr.msk.f32.gmra.mrb[22].mxu0 %vm4402_vm11, %v15027_v52  ;;  %15034 = vmatmul.mubr.msk.f32.vlgmr.msra.gmra.mrb[12].mxu1 %vm4402_vm11, %v15026_v45 }
 0x572   : > { %15454 = vmatpush1.bf16.msra.mxu1 %v15453_v4  ;;  %7378 = vmatprep.mubr.f32.mxu1 %v17128_v0 }
 0x573   : > { %15460 = vmatprep.subr.bf16.mxu1 %v15459_v55  ;;  %7536 = vmatprep.mubr.f32.mxu0 %v17128_v0  ;;  %v7806_v21 = vpop.permute.xlu1 %7805 }
 0x574   : > { %v7801_v5 = vpop.permute.xlu0 %7800 }
 0x575   : > { %15035 = vmatmul.mubr.msk.f32.gmra.mrb[14].mxu1 %vm4402_vm11, %v15027_v52  ;;  %15038 = vmatmul.mubr.msk.f32.vlgmr.msra.gmra.mrb[16].mxu0 %vm4402_vm11, %v15036_v61 }
 0x576   : > { %15458 = vmatpush1.bf16.msra.mxu0 %v15457_v57  ;;  %7542 = vmatprep.mubr.f32.mxu0 %v17128_v0 }
 0x577   : > { %7613 = vmatprep.mubr.f32.mxu1 %v17128_v0 }
 0x579   : > { %15039 = vmatmul.mubr.msk.f32.gmra.mrb[18].mxu0 %vm4402_vm11, %v15037_v32  ;;  %15040 = vmatmul.mubr.msk.f32.vlgmr.msra.gmra.mrb[8].mxu1 %vm4402_vm11, %v15036_v61 }
 0x57a   : > { %15462 = vmatpush1.bf16.msra.mxu1 %v15461_v54  ;;  %7619 = vmatprep.mubr.f32.mxu1 %v17128_v0 }
 0x57b   : > { %7690 = vmatprep.mubr.f32.mxu0 %v17128_v0 }
 0x57d   : > { %15041 = vmatmul.mubr.msk.f32.gmra.mrb[10].mxu1 %vm4402_vm11, %v15037_v32  ;;  %15042 = vmatmul.mubr.msk.f32.vlgmr.msra.gmra.mrb[20].mxu0 %vm4402_vm11, %v15036_v61 }
 0x57e   : > { %7696 = vmatprep.mubr.f32.mxu0 %v17128_v0  ;;  %7767 = vmatprep.mubr.f32.mxu1 %v17128_v0 }
 0x581   : > { %15043 = vmatmul.mubr.msk.f32.gmra.mrb[22].mxu0 %vm4402_vm11, %v15037_v32  ;;  %15044 = vmatmul.mubr.msk.f32.vlgmr.msra.gmra.mrb[12].mxu1 %vm4402_vm11, %v15036_v61 }
 0x582   : > { %7773 = vmatprep.mubr.f32.mxu1 %v17128_v0  ;;  %8222 = vmatprep.mubr.f32.mxu0 %v17128_v0 }
 0x585   : > { %15045 = vmatmul.mubr.msk.f32.gmra.mrb[14].mxu1 %vm4402_vm11, %v15037_v32 }
 0x586   : > { %8299 = vmatprep.mubr.f32.mxu1 %v17128_v0 }
 0x648   : > { %v7538_v23 = vpop.f32.mrb[16].mxu0 }
 0x649   : > { %v19215_v15 = vadd.f32 %v7801_v5, %v7538_v23  ;;  %v7540_v31 = vpop.f32.mrb[17].mxu0 }
 0x64a   : > { %v19217_v49 = vadd.f32 %v7801_v5, %v7540_v31 }
 0x64b   : > { %v7866_v10 = vmul.f32 %v19210_v7, %v19215_v15 }
 0x64c   : > { %v7867_v45 = vmul.f32 %v19213_v36, %v19217_v49  ;;  %v7544_v6 = vpop.f32.mrb[18].mxu0  ;;  %v7615_v30 = vpop.f32.mrb[8].mxu1 }
 0x64d   : > { %v19229_v29 = vadd.f32 %v7801_v5, %v7615_v30  ;;  %v7546_v53 = vpop.f32.mrb[19].mxu0  ;;  %v7617_v28 = vpop.f32.mrb[9].mxu1  ;;  %v19262_v37 = vadd.f32 %v7806_v21, %v7544_v6 }
 0x64e   : > { %v7882_v42 = vadd.f32 %v7867_v45, %v7866_v10  ;;  %v19231_v8 = vadd.f32 %v7801_v5, %v7617_v28  ;;  %v19268_v55 = vadd.f32 %v7806_v21, %v7546_v53 }
 0x64f   : > { %v7868_v41 = vmul.f32 %v19222_v14, %v19229_v29  ;;  %v7874_v50 = vmul.f32 %v19210_v7, %v19262_v37 }
 0x650   : > { %v7869_v62 = vmul.f32 %v19227_v17, %v19231_v8  ;;  %v7621_v60 = vpop.f32.mrb[10].mxu1  ;;  %v7692_v2 = vpop.f32.mrb[20].mxu0  ;;  %v7875_v54 = vmul.f32 %v19213_v36, %v19268_v55 }
 0x651   : > { %v7883_v35 = vadd.f32 %v7882_v42, %v7868_v41  ;;  %v19243_v52 = vadd.f32 %v7801_v5, %v7692_v2  ;;  %v7623_v27 = vpop.f32.mrb[11].mxu1  ;;  %v7694_v39 = vpop.f32.mrb[21].mxu0  ;;  %v19273_v11 = vadd.f32 %v7806_v21, %v7621_v60 }
 0x652   : > { %v19245_v44 = vadd.f32 %v7801_v5, %v7694_v39  ;;  %v19277_v34 = vadd.f32 %v7806_v21, %v7623_v27 }
 0x653   : > { %v7884_v25 = vadd.f32 %v7883_v35, %v7869_v62  ;;  %v7870_v9 = vmul.f32 %v19236_v47, %v19243_v52  ;;  %v7876_v23 = vmul.f32 %v19222_v14, %v19273_v11 }
 0x654   : > { %v7871_v56 = vmul.f32 %v19241_v3, %v19245_v44  ;;  %v7698_v48 = vpop.f32.mrb[22].mxu0  ;;  %v7769_v33 = vpop.f32.mrb[12].mxu1  ;;  %v7877_v45 = vmul.f32 %v19227_v17, %v19277_v34 }
 0x655   : > { %v7885_v12 = vadd.f32 %v7884_v25, %v7870_v9  ;;  %v19258_v63 = vadd.f32 %v7801_v5, %v7769_v33  ;;  %v7700_v22 = vpop.f32.mrb[23].mxu0  ;;  %v7771_v46 = vpop.f32.mrb[13].mxu1  ;;  %v19281_v31 = vadd.f32 %v7806_v21, %v7698_v48  ;;  %v8035_v48 = vld [vmem:[%s21035_s9] sm:$0xff] }
 0x656   : > { %v19260_v13 = vadd.f32 %v7801_v5, %v7771_v46  ;;  %v19285_v6 = vadd.f32 %v7806_v21, %v7700_v22 }
 0x657   : > { %v7886_v4 = vadd.f32 %v7885_v12, %v7871_v56  ;;  %v7872_v24 = vmul.f32 %v19250_v40, %v19258_v63  ;;  %v7878_v28 = vmul.f32 %v19236_v47, %v19281_v31  ;;  %v8007_v56 = vld [vmem:[%s21034_s8] sm:$0xff] }
 0x658   : > { %v7873_v16 = vmul.f32 %v19256_v1, %v19260_v13  ;;  %v7775_v59 = vpop.f32.mrb[14].mxu1  ;;  %v7879_v62 = vmul.f32 %v19241_v3, %v19285_v6 }
 0x659   : > { %v7887_v61 = vadd.f32 %v7886_v4, %v7872_v24  ;;  %v7777_v19 = vpop.f32.mrb[15].mxu1  ;;  %v19291_v42 = vadd.f32 %v7806_v21, %v7775_v59 }
 0x65a   : > { %v7889_v57 = vsel %vm7888_vm12, %v7873_v16, 0.0  ;;  %v19287_v53 = vadd.f32 %v7806_v21, %v7777_v19 }
 0x65b   : > { %v7890_v32 = vadd.f32 %v7889_v57, %v7887_v61  ;;  %v7880_v35 = vmul.f32 %v19250_v40, %v19291_v42 }
 0x65c   : > { %v7881_v2 = vmul.f32 %v19256_v1, %v19287_v53 }
 0x65d   : > { %v7891_v5 = vadd.f32 %v7890_v32, %v7874_v50 }
 0x65e   : > { %v7898_v25 = vsel %vm7888_vm12, %v7881_v2, 0.0 }
 0x65f   : > { %v7892_v10 = vadd.f32 %v7891_v5, %v7875_v54 }
 0x661   : > { %v7893_v30 = vadd.f32 %v7892_v10, %v7876_v23 }
 0x663   : > { %v7894_v41 = vadd.f32 %v7893_v30, %v7877_v45 }
 0x665   : > { %v7895_v60 = vadd.f32 %v7894_v41, %v7878_v28 }
 0x667   : > { %v7896_v27 = vadd.f32 %v7895_v60, %v7879_v62 }
 0x669   : > { %v7897_v39 = vadd.f32 %v7896_v27, %v7880_v35 }
 0x66b   : > { %v7899_v9 = vadd.f32 %v7898_v25, %v7897_v39 }
 0x66d   : > { %7900 = vadd.xlane.f32.xlu0 %v7899_v9 }
 0x683   : > { %8011 = vperm.xlu0 %16227, %v8007_v56  }
 0x687   : > { %8039 = vperm.xlu0 %16227, %v8035_v48  }
 0x6fa   : > { %v7901_v33 = vpop.xlane.xlu0 %7900 }
 0x6fb   : > { %v7902_v12 = vrot.slane %v7901_v33, 4 }
 0x6fd   : > { %v7903_v22 = vadd.f32 %v7902_v12, %v7901_v33 }
 0x6ff   : > { %v7904_v46 = vrot.slane %v7903_v22, 2 }
 0x701   : > { %v7905_v21 = vadd.f32 %v7904_v46, %v7903_v22 }
 0x703   : > { %v7906_v4 = vrot.slane %v7905_v21, 1 }
 0x705   : > { %v7907_v24 = vadd.f32 %v7906_v4, %v7905_v21 }
 0x707   : > { %16190 = vpush %v7907_v24 }
 0x738   : > { %s16191_s26 = spop %16190 }
 0x739   : > { %s7909_s29 = smul.f32 7.9719386e-05, %s16191_s26 }
 0x73b   : > { %v7910_v16 = vstv %s7909_s29 }
 0x73c   : > { %v19307_v59 = vsub.f32 %v19215_v15, %v7910_v16  ;;  %v19310_v61 = vsub.f32 %v19217_v49, %v7910_v16  ;;  %v19313_v19 = vsub.f32 %v19229_v29, %v7910_v16  ;;  %v19320_v32 = vsub.f32 %v19231_v8, %v7910_v16 }
 0x73d   : > { %v19323_v54 = vsub.f32 %v19243_v52, %v7910_v16  ;;  %v19330_v5 = vsub.f32 %v19245_v44, %v7910_v16  ;;  %v19335_v10 = vsub.f32 %v19260_v13, %v7910_v16  ;;  %v19338_v8 = vsub.f32 %v19258_v63, %v7910_v16 }
 0x73e   : > { %v7927_v57 = vmul.f32 %v19307_v59, %v19307_v59  ;;  %v7928_v50 = vmul.f32 %v19310_v61, %v19310_v61  ;;  %v7929_v15 = vmul.f32 %v19313_v19, %v19313_v19  ;;  %v7930_v23 = vmul.f32 %v19320_v32, %v19320_v32 }
 0x73f   : > { %v7931_v52 = vmul.f32 %v19323_v54, %v19323_v54  ;;  %v7932_v28 = vmul.f32 %v19330_v5, %v19330_v5  ;;  %v7934_v62 = vmul.f32 %v19335_v10, %v19335_v10  ;;  %v19349_v13 = vsub.f32 %v19262_v37, %v7910_v16 }
 0x740   : > { %v7943_v49 = vmul.f32 %v7927_v57, %v19210_v7  ;;  %v7944_v29 = vmul.f32 %v7928_v50, %v19213_v36  ;;  %v7945_v45 = vmul.f32 %v7929_v15, %v19222_v14  ;;  %v7946_v44 = vmul.f32 %v7930_v23, %v19227_v17 }
 0x741   : > { %v7933_v63 = vmul.f32 %v19338_v8, %v19338_v8  ;;  %v7947_v60 = vmul.f32 %v7931_v52, %v19236_v47  ;;  %v19355_v35 = vsub.f32 %v19268_v55, %v7910_v16  ;;  %v7948_v27 = vmul.f32 %v7932_v28, %v19241_v3 }
 0x742   : > { %v7959_v30 = vadd.f32 %v7944_v29, %v7943_v49  ;;  %v7950_v25 = vmul.f32 %v7934_v62, %v19256_v1  ;;  %v7921_v9 = vsub.f32 %v19273_v11, %v7910_v16  ;;  %v7935_v37 = vmul.f32 %v19349_v13, %v19349_v13 }
 0x743   : > { %v7949_v56 = vmul.f32 %v7933_v63, %v19250_v40  ;;  %v19364_v33 = vsub.f32 %v19277_v34, %v7910_v16  ;;  %v7936_v55 = vmul.f32 %v19355_v35, %v19355_v35  ;;  %v19370_v46 = vsub.f32 %v19281_v31, %v7910_v16  ;;  %v8008_v63 = vld [vmem:[%s21034_s8 + $0x8] sm:$0xff] }
 0x744   : > { %v7960_v41 = vadd.f32 %v7959_v30, %v7945_v45  ;;  %v7965_v22 = vsel %vm7888_vm12, %v7950_v25, 0.0  ;;  %v7937_v21 = vmul.f32 %v7921_v9, %v7921_v9  ;;  %v7951_v11 = vmul.f32 %v7935_v37, %v19210_v7 }
 0x745   : > { %v19374_v24 = vsub.f32 %v19285_v6, %v7910_v16  ;;  %v7938_v34 = vmul.f32 %v19364_v33, %v19364_v33  ;;  %v7952_v57 = vmul.f32 %v7936_v55, %v19213_v36  ;;  %v19380_v15 = vsub.f32 %v19287_v53, %v7910_v16 }
 0x746   : > { %v7961_v2 = vadd.f32 %v7960_v41, %v7946_v44  ;;  %v19383_v49 = vsub.f32 %v19291_v42, %v7910_v16  ;;  %v7939_v31 = vmul.f32 %v19370_v46, %v19370_v46  ;;  %v7953_v7 = vmul.f32 %v7937_v21, %v19222_v14 }
 0x747   : > { %v7940_v6 = vmul.f32 %v19374_v24, %v19374_v24  ;;  %v7954_v23 = vmul.f32 %v7938_v34, %v19227_v17  ;;  %v7942_v36 = vmul.f32 %v19380_v15, %v19380_v15 }
 0x748   : > { %v7962_v39 = vadd.f32 %v7961_v2, %v7947_v60  ;;  %v7941_v53 = vmul.f32 %v19383_v49, %v19383_v49  ;;  %v7955_v42 = vmul.f32 %v7939_v31, %v19236_v47  ;;  %v8036_v47 = vld [vmem:[%s21035_s9 + $0x8] sm:$0xff] }
 0x749   : > { %v7956_v45 = vmul.f32 %v7940_v6, %v19241_v3  ;;  %v7958_v14 = vmul.f32 %v7942_v36, %v19256_v1 }
 0x74a   : > { %v7963_v48 = vadd.f32 %v7962_v39, %v7948_v27  ;;  %v7957_v28 = vmul.f32 %v7941_v53, %v19250_v40 }
 0x74b   : > { %v7974_v17 = vsel %vm7888_vm12, %v7958_v14, 0.0 }
 0x74c   : > { %v7964_v12 = vadd.f32 %v7963_v48, %v7949_v56  ;;  %v19406_v56 = vpop.permute.xlu0 %8011 }
 0x74e   : > { %v7966_v4 = vadd.f32 %v7965_v22, %v7964_v12 }
 0x750   : > { %v7967_v50 = vadd.f32 %v7966_v4, %v7951_v11  ;;  %v19431_v31 = vpop.permute.xlu0 %8039 }
 0x752   : > { %v7968_v29 = vadd.f32 %v7967_v50, %v7952_v57 }
 0x754   : > { %v7969_v52 = vadd.f32 %v7968_v29, %v7953_v7 }
 0x756   : > { %v7970_v16 = vadd.f32 %v7969_v52, %v7954_v23 }
 0x758   : > { %v7971_v30 = vadd.f32 %v7970_v16, %v7955_v42 }
 0x75a   : > { %v7972_v44 = vadd.f32 %v7971_v30, %v7956_v45 }
 0x75c   : > { %v7973_v41 = vadd.f32 %v7972_v44, %v7957_v28 }
 0x75e   : > { %v7975_v62 = vadd.f32 %v7974_v17, %v7973_v41 }
 0x760   : > { %7976 = vadd.xlane.f32.xlu1 %v7975_v62 }
 0x771   : > { %8016 = vperm.xlu1 %16226, %v8008_v63  }
 0x775   : > { %8044 = vperm.xlu1 %16226, %v8036_v47  }
 0x7ed   : > { %v7977_v3 = vpop.xlane.xlu1 %7976 }
 0x7ee   : > { %v7978_v1 = vrot.slane %v7977_v3, 4 }
 0x7f0   : > { %v7979_v60 = vadd.f32 %v7978_v1, %v7977_v3 }
 0x7f1   : > { %v19408_v48 = vpop.permute.xlu1 %8016 }
 0x7f2   : > { %v7980_v40 = vrot.slane %v7979_v60, 2 }
 0x7f4   : > { %v7981_v2 = vadd.f32 %v7980_v40, %v7979_v60 }
 0x7f6   : > { %v7982_v27 = vrot.slane %v7981_v2, 1 }
 0x7f8   : > { %v7983_v39 = vadd.f32 %v7982_v27, %v7981_v2 }
 0x7fa   : > { %16192 = vpush %v7983_v39 }
 0x82b   : > { %s16193_s26 = spop %16192 }
 0x82c   : > { %s7985_s29 = smul.f32 7.9719386e-05, %s16193_s26 }
 0x82e   : > { %s7986_s5 = sadd.f32 1e-05, %s7985_s29 }
 0x830   : > { %v7987_v25 = vstv %s7986_s5  ;;  %s21036_s5 = smov 127  }
 0x831   : > { %17114 = vrsqrt.f32 %v7987_v25 }
 0x83b   : > { %v17115_v37 = vpop.eup %17114 }
 0x83c   : > { %16194 = vpush %v17115_v37 }
 0x86d   : > { %s16195_s2 = spop %16194 }
 0x86e   : > { %v19410_v55 = vstv %s16195_s2 }
 0x86f   : > { %v8000_v12 = vmul.f32 %v19410_v55, %v19355_v35  ;;  %v8001_v22 = vmul.f32 %v19410_v55, %v7921_v9  ;;  %v7992_v21 = vmul.f32 %v19410_v55, %v19310_v61  ;;  %v7993_v11 = vmul.f32 %v19410_v55, %v19313_v19 }
 0x870   : > { %v7996_v4 = vmul.f32 %v19410_v55, %v19330_v5  ;;  %v7997_v34 = vmul.f32 %v19410_v55, %v19338_v8  ;;  %v7991_v57 = vmul.f32 %v19410_v55, %v19307_v59  ;;  %v7999_v35 = vmul.f32 %v19410_v55, %v19349_v13  ;;  %v19433_v5 = vpop.permute.xlu1 %8044 }
 0x871   : > { %v8028_v9 = vmul.f32 %v19408_v48, %v8000_v12  ;;  %v8029_v50 = vmul.f32 %v19408_v48, %v8001_v22  ;;  %v8020_v61 = vmul.f32 %v19406_v56, %v7992_v21  ;;  %v8021_v19 = vmul.f32 %v19406_v56, %v7993_v11 }
 0x872   : > { %v8024_v8 = vmul.f32 %v19406_v56, %v7996_v4  ;;  %v8025_v7 = vmul.f32 %v19406_v56, %v7997_v34  ;;  %v8019_v59 = vmul.f32 %v19406_v56, %v7991_v57  ;;  %v8027_v13 = vmul.f32 %v19408_v48, %v7999_v35 }
 0x873   : > { %v8056_v29 = vadd.f32 %v19433_v5, %v8028_v9  ;;  %v19441_v6 = vadd.f32 %v19433_v5, %v8029_v50  ;;  %v8048_v23 = vadd.f32 %v19431_v31, %v8020_v61  ;;  %v19445_v52 = vadd.f32 %v19431_v31, %v8021_v19 }
 0x874   : > { %v8052_v36 = vadd.f32 %v19431_v31, %v8024_v8  ;;  %v19449_v53 = vadd.f32 %v19431_v31, %v8025_v7  ;;  %v8047_v42 = vadd.f32 %v19431_v31, %v8019_v59  ;;  %v8055_v16 = vadd.f32 %v19433_v5, %v8027_v13 }
 0x875   : > { %v8072_v45 = vmax.f32 %v8056_v29, 0.0  ;;  %v8073_v30 = vmax.f32 %v19441_v6, 0.0  ;;  %v8064_v14 = vmax.f32 %v8048_v23, 0.0  ;;  %v8065_v28 = vmax.f32 %v19445_v52, 0.0 }
 0x876   : > { %v8068_v44 = vmax.f32 %v8052_v36, 0.0  ;;  %v8069_v41 = vmax.f32 %v19449_v53, 0.0  ;;  %v8063_v17 = vmax.f32 %v8047_v42, 0.0  ;;  %v8071_v62 = vmax.f32 %v8055_v16, 0.0 }
 0x877   : > { %v19456_v63 = vpack.i.bf16 %v8073_v30, %v8072_v45  ;;  %v19458_v47 = vpack.i.bf16 %v8065_v28, %v8064_v14  ;;  %v7995_v3 = vmul.f32 %v19410_v55, %v19323_v54  ;;  %v8003_v1 = vmul.f32 %v19410_v55, %v19370_v46 }
 0x878   : > { %v8004_v60 = vmul.f32 %v19410_v55, %v19374_v24  ;;  %v8005_v40 = vmul.f32 %v19410_v55, %v19383_v49  ;;  %v19474_v54 = vpack.i.bf16 %v8069_v41, %v8068_v44  ;;  %v7994_v24 = vmul.f32 %v19410_v55, %v19320_v32 }
 0x879   : > { %16554 = vrot.lane.b32.xlu1 %v19456_v63, %s21036_s5  ;;  %16549 = vrot.lane.b32.xlu0 %v19458_v47, %s21036_s5  ;;  %v8023_v2 = vmul.f32 %v19406_v56, %v7995_v3  ;;  %v8031_v27 = vmul.f32 %v19408_v48, %v8003_v1  ;;  %v19480_v49 = vpack.i.bf16 %v8071_v62, %v8063_v17 }
 0x87a   : > { %v8032_v46 = vmul.f32 %v19408_v48, %v8004_v60  ;;  %v8033_v39 = vmul.f32 %v19408_v48, %v8005_v40  ;;  %v8002_v12 = vmul.f32 %v19410_v55, %v19364_v33  ;;  %v8022_v11 = vmul.f32 %v19406_v56, %v7994_v24 }
 0x87b   : > { %v8051_v25 = vadd.f32 %v19431_v31, %v8023_v2  ;;  %v8059_v37 = vadd.f32 %v19433_v5, %v8031_v27  ;;  %v19524_v29 = vpack.c.bf16 %v8072_v45, %v8064_v14  ;;  %v19526_v6 = vpack.c.bf16 %v8071_v62, %v8063_v17 }
 0x87c   : > { %v8060_v22 = vadd.f32 %v19433_v5, %v8032_v46  ;;  %v8061_v21 = vadd.f32 %v19433_v5, %v8033_v39  ;;  %v8030_v34 = vmul.f32 %v19408_v48, %v8002_v12  ;;  %v8050_v35 = vadd.f32 %v19431_v31, %v8022_v11 }
 0x87d   : > { %16564 = vrot.lane.b32.xlu1 %v19474_v54, %s21036_s5  ;;  %16559 = vrot.lane.b32.xlu0 %v19480_v49, %s21036_s5  ;;  %v19493_v32 = vmax.f32 %v8051_v25, 0.0  ;;  %v19495_v4 = vmax.f32 %v8059_v37, 0.0  ;;  %v19538_v53 = vpack.c.bf16 %v8073_v30, %v8065_v28  ;;  %v7998_v16 = vmul.f32 %v19410_v55, %v19335_v10 }
 0x87e   : > { %v8076_v57 = vmax.f32 %v8060_v22, 0.0  ;;  %v8077_v33 = vmax.f32 %v8061_v21, 0.0  ;;  %v8058_v50 = vadd.f32 %v19433_v5, %v8030_v34  ;;  %v19507_v19 = vmax.f32 %v8050_v35, 0.0  ;;  %v19639_v34 = vld [vmem:[%s20970_s11 + $0x10] sm:$0xff] }
 0x87f   : > { %v16573_v9 = vpack.i.bf16 %v19495_v4, %v19493_v32  ;;  %v15489_v36 = vpack.c.bf16 %v19495_v4, %v19493_v32  ;;  %v8006_v45 = vmul.f32 %v19410_v55, %v19380_v15  ;;  %v8026_v30 = vmul.f32 %v19406_v56, %v7998_v16 }
 0x880   : > { %v19502_v61 = vpack.i.bf16 %v8077_v33, %v8076_v57  ;;  %v19509_v8 = vmax.f32 %v8058_v50, 0.0  ;;  %v16773_v59 = vpack.i.bf16 %v19493_v32, %v19507_v19  ;;  %v19528_v23 = vpack.c.bf16 %v8076_v57, %v8068_v44  ;;  %v11471_v44 = vld [vmem:[%s20971_s12] sm:$0xff] }
 0x881   : > { %16574 = vrot.lane.b32.xlu1 %v16573_v9, %s21036_s5  ;;  %v19540_v42 = vpack.c.bf16 %v8077_v33, %v8069_v41  ;;  %v8034_v14 = vmul.f32 %v19408_v48, %v8006_v45  ;;  %v8054_v28 = vadd.f32 %v19431_v31, %v8026_v30  ;;  %v11472_v48 = vld [vmem:[%s20971_s12 + $0x8] sm:$0xff] }
 0x882   : > { %16569 = vrot.lane.b32.xlu0 %v19502_v61, %s21036_s5  ;;  %v16593_v7 = vpack.i.bf16 %v19509_v8, %v19507_v19  ;;  %v16778_v13 = vpack.i.bf16 %v19495_v4, %v19509_v8  ;;  %v15483_v52 = vpack.c.bf16 %v19509_v8, %v19507_v19  ;;  %v19720_v19 = vld [vmem:[%s20970_s11 + $0x8] sm:$0xff] }
 0x883   : > { %v8062_v10 = vadd.f32 %v19433_v5, %v8034_v14  ;;  %v8070_v15 = vmax.f32 %v8054_v28, 0.0 }
 0x885   : > { %16584 = vrot.lane.b32.xlu1 %v19456_v63, %s21037_s27  ;;  %v8078_v55 = vmax.f32 %v8062_v10, 0.0 }
 0x886   : > { %16579 = vrot.lane.b32.xlu0 %v19458_v47, %s21037_s27 }
 0x887   : > { %v16793_v56 = vpack.i.bf16 %v8078_v55, %v8070_v15 }
 0x889   : > { %16594 = vrot.lane.b32.xlu1 %v16593_v7, %s21036_s5 }
 0x88a   : > { %16589 = vrot.lane.b32.xlu0 %v19480_v49, %s21037_s27 }
 0x88d   : > { %16604 = vrot.lane.b32.xlu1 %v19502_v61, %s21037_s27 }
 0x88e   : > { %16599 = vrot.lane.b32.xlu0 %v19474_v54, %s21037_s27 }
 0x891   : > { %16614 = vrot.lane.b32.xlu1 %v19458_v47, %s21038_s24 }
 0x892   : > { %16609 = vrot.lane.b32.xlu0 %v16573_v9, %s21037_s27 }
 0x895   : > { %16624 = vrot.lane.b32.xlu1 %v19480_v49, %s21038_s24 }
 0x896   : > { %16619 = vrot.lane.b32.xlu0 %v19456_v63, %s21038_s24 }
 0x899   : > { %16634 = vrot.lane.b32.xlu1 %v19502_v61, %s21038_s24 }
 0x89a   : > { %16629 = vrot.lane.b32.xlu0 %v19474_v54, %s21038_s24 }
 0x89d   : > { %16644 = vrot.lane.b32.xlu1 %v16593_v7, %s21037_s27 }
 0x89e   : > { %16639 = vrot.lane.b32.xlu0 %v16573_v9, %s21038_s24 }
 0x8a1   : > { %16654 = vrot.lane.b32.xlu1 %v19456_v63, %s21027_s7 }
 0x8a2   : > { %16649 = vrot.lane.b32.xlu0 %v19458_v47, %s21027_s7 }
 0x8a5   : > { %16664 = vrot.lane.b32.xlu1 %v16593_v7, %s21038_s24 }
 0x8a6   : > { %16659 = vrot.lane.b32.xlu0 %v19480_v49, %s21027_s7 }
 0x8a9   : > { %16674 = vrot.lane.b32.xlu1 %v19502_v61, %s21027_s7 }
 0x8aa   : > { %16669 = vrot.lane.b32.xlu0 %v19474_v54, %s21027_s7 }
 0x8ad   : > { %16684 = vrot.lane.b32.xlu1 %v19458_v47, %s21028_s28 }
 0x8ae   : > { %16679 = vrot.lane.b32.xlu0 %v16573_v9, %s21027_s7 }
 0x8b1   : > { %16694 = vrot.lane.b32.xlu1 %v19480_v49, %s21028_s28 }
 0x8b2   : > { %16689 = vrot.lane.b32.xlu0 %v19456_v63, %s21028_s28 }
 0x8b5   : > { %16704 = vrot.lane.b32.xlu1 %v19474_v54, %s21028_s28 }
 0x8b6   : > { %16699 = vrot.lane.b32.xlu0 %v16593_v7, %s21027_s7 }
 0x8b9   : > { %16714 = vrot.lane.b32.xlu1 %v16573_v9, %s21028_s28 }
 0x8ba   : > { %16709 = vrot.lane.b32.xlu0 %v19502_v61, %s21028_s28 }
 0x8bd   : > { %16724 = vrot.lane.b32.xlu1 %v19458_v47, %s21029_s0 }
 0x8be   : > { %16719 = vrot.lane.b32.xlu0 %v16593_v7, %s21028_s28 }
 0x8c1   : > { %16734 = vrot.lane.b32.xlu1 %v19480_v49, %s21029_s0 }
 0x8c2   : > { %16729 = vrot.lane.b32.xlu0 %v19456_v63, %s21029_s0 }
 0x8c5   : > { %16744 = vrot.lane.b32.xlu1 %v19502_v61, %s21029_s0 }
 0x8c6   : > { %16739 = vrot.lane.b32.xlu0 %v19474_v54, %s21029_s0 }
 0x8c9   : > { %16754 = vrot.lane.b32.xlu1 %v16593_v7, %s21029_s0 }
 0x8ca   : > { %16749 = vrot.lane.b32.xlu0 %v16573_v9, %s21029_s0 }
 0x8cd   : > { %16764 = vrot.lane.b32.xlu1 %v19456_v63, %s21030_s1 }
 0x8ce   : > { %16759 = vrot.lane.b32.xlu0 %v19458_v47, %s21030_s1 }
 0x8d1   : > { %16774 = vrot.lane.b32.xlu1 %v16773_v59, %s21030_s1 }
 0x8d2   : > { %16769 = vrot.lane.b32.xlu0 %v19480_v49, %s21030_s1 }
 0x8d5   : > { %16784 = vrot.lane.b32.xlu1 %v19474_v54, %s21030_s1 }
 0x8d6   : > { %16779 = vrot.lane.b32.xlu0 %v16778_v13, %s21030_s1 }
 0x8d9   : > { %16794 = vrot.lane.b32.xlu1 %v16793_v56, %s21030_s1 }
 0x8da   : > { %16789 = vrot.lane.b32.xlu0 %v19502_v61, %s21030_s1 }
 0x8dd   : > { %16804 = vrot.lane.b32.xlu1 %v19456_v63, %s21031_s25 }
 0x8de   : > { %16799 = vrot.lane.b32.xlu0 %v19458_v47, %s21031_s25 }
 0x8e1   : > { %16814 = vrot.lane.b32.xlu1 %v16773_v59, %s21031_s25 }
 0x8e2   : > { %16809 = vrot.lane.b32.xlu0 %v19480_v49, %s21031_s25 }
 0x8e5   : > { %16824 = vrot.lane.b32.xlu1 %v19474_v54, %s21031_s25 }
 0x8e6   : > { %16819 = vrot.lane.b32.xlu0 %v16778_v13, %s21031_s25  ;;  %v19655_v13 = vld [vmem:[%s20970_s11 + $0x18] sm:$0xff] }
 0x8e9   : > { %16834 = vrot.lane.b32.xlu1 %v16793_v56, %s21031_s25 }
 0x8ea   : > { %16829 = vrot.lane.b32.xlu0 %v19502_v61, %s21031_s25 }
 0x8eb   : > { %v16555_v31 = vpop.permute.xlu1 %16554  ;;  %v16550_v5 = vpop.permute.xlu0 %16549 }
 0x8ec   : > { %v16557_v41 = vunpack.i.h.bf16 %v16555_v31  ;;  %v16556_v17 = vunpack.i.l.bf16 %v16555_v31  ;;  %v16552_v62 = vunpack.i.h.bf16 %v16550_v5  ;;  %v16551_v63 = vunpack.i.l.bf16 %v16550_v5 }
 0x8ed   : > { %11480 = vperm.xlu1 %16226, %v11472_v48  }
 0x8ee   : > { %11475 = vperm.xlu0 %16227, %v11471_v44   ;;  %v8127_v47 = vsel %vm745_vm0, %v16551_v63, %v16552_v62  ;;  %v8133_v3 = vsel %vm745_vm0, %v16556_v17, %v16557_v41 }
 0x8ef   : > { %v16565_v1 = vpop.permute.xlu1 %16564  ;;  %v16560_v60 = vpop.permute.xlu0 %16559  ;;  %v15463_v40 = vpack.c.bf16 %v8133_v3, %v8127_v47 }
 0x8f0   : > { %v16562_v2 = vunpack.i.h.bf16 %v16560_v60  ;;  %v16561_v27 = vunpack.i.l.bf16 %v16560_v60  ;;  %v16567_v39 = vunpack.i.h.bf16 %v16565_v1  ;;  %v16566_v24 = vunpack.i.l.bf16 %v16565_v1 }
 0x8f1   : > { %15464 = vmatprep.subr.bf16.mxu0 %v15463_v40 }
 0x8f2   : > { %v8132_v54 = vsel %vm745_vm0, %v16562_v2, %v16556_v17  ;;  %v8126_v46 = vsel %vm745_vm0, %v16561_v27, %v16551_v63  ;;  %v8131_v9 = vsel %vm745_vm0, %v16566_v24, %v16567_v39 }
 0x8f3   : > { %v16575_v49 = vpop.permute.xlu1 %16574  ;;  %v15465_v25 = vpack.c.bf16 %v8132_v54, %v8126_v46 }
 0x8f4   : > { %v16577_v37 = vunpack.i.h.bf16 %v16575_v49  ;;  %v16576_v12 = vunpack.i.l.bf16 %v16575_v49  ;;  %v16570_v22 = vpop.permute.xlu0 %16569 }
 0x8f5   : > { %v16572_v21 = vunpack.i.h.bf16 %v16570_v22  ;;  %v16571_v11 = vunpack.i.l.bf16 %v16570_v22  ;;  %15466 = vmatpush1.bf16.msra.mxu0 %v15465_v25 }
 0x8f6   : > { %v8130_v57 = vsel %vm745_vm0, %v16576_v12, %v16566_v24 }
 0x8f7   : > { %v8136_v33 = vsel %vm745_vm0, %v16577_v37, %v16571_v11  ;;  %v19643_v35 = vpop.permute.xlu1 %16584  ;;  %v8137_v50 = vsel %vm745_vm0, %v16571_v11, %v16572_v21 }
 0x8f8   : > { %v19647_v61 = vpop.permute.xlu0 %16579  ;;  %15048 = vmatmul.mubr.msk.f32.vlgmr.msra.gmra.mrb[24].mxu0 %vm4402_vm11, %v19639_v34  ;;  %v15471_v7 = vpack.c.bf16 %v8137_v50, %v8131_v9  ;;  %v15473_v59 = vpack.c.bf16 %v8136_v33, %v8130_v57  ;;  %v16587_v5 = vunpack.i.h.bf16 %v19643_v35 }
 0x8f9   : > { %8228 = vmatprep.mubr.f32.mxu0 %v17128_v0  ;;  %v16582_v44 = vunpack.i.h.bf16 %v19647_v61  ;;  %v16581_v17 = vunpack.i.l.bf16 %v19647_v61 }
 0x8fa   : > { %15472 = vmatprep.subr.bf16.mxu0 %v15471_v7 }
 0x8fb   : > { %15474 = vmatpush1.bf16.msra.mxu0 %v15473_v59  ;;  %v16595_v16 = vpop.permute.xlu1 %16594  ;;  %v8808_v3 = vsel %vm1434_vm3, %v16581_v17, %v16582_v44 }
 0x8fc   : > { %v16597_v45 = vunpack.i.h.bf16 %v16595_v16  ;;  %v16596_v30 = vunpack.i.l.bf16 %v16595_v16  ;;  %v16590_v14 = vpop.permute.xlu0 %16589  ;;  %15480 = vmatprep.subr.bf16.mxu0 %v19524_v29  ;;  %15049 = vmatmul.mubr.msk.f32.gmra.mrb[26].mxu0 %vm4402_vm11, %v19655_v13  ;;  %v16586_v29 = vunpack.i.l.bf16 %v19643_v35 }
 0x8fd   : > { %8376 = vmatprep.mubr.f32.mxu0 %v17128_v0  ;;  %v16592_v1 = vunpack.i.h.bf16 %v16590_v14  ;;  %v16591_v60 = vunpack.i.l.bf16 %v16590_v14 }
 0x8fe   : > { %v8134_v28 = vsel %vm745_vm0, %v16557_v41, %v16597_v45  ;;  %v8128_v10 = vsel %vm745_vm0, %v16552_v62, %v16596_v30  ;;  %v8129_v15 = vsel %vm745_vm0, %v16596_v30, %v16576_v12  ;;  %v8135_v55 = vsel %vm745_vm0, %v16597_v45, %v16577_v37 }
 0x8ff   : > { %v19665_v56 = vpop.permute.xlu1 %16604  ;;  %v15467_v48 = vpack.c.bf16 %v8135_v55, %v8129_v15  ;;  %v15469_v31 = vpack.c.bf16 %v8134_v28, %v8128_v10  ;;  %v15475_v41 = vpack.c.bf16 %v16572_v21, %v16567_v39  ;;  %v8807_v32 = vsel %vm1434_vm3, %v16591_v60, %v16581_v17  ;;  %v15064_v15 = vld [vmem:[%s20970_s11 + $0x20] sm:$0xff] }
 0x900   : > { %v19671_v63 = vpop.permute.xlu0 %16599  ;;  %15052 = vmatmul.mubr.msk.f32.vlgmr.msra.gmra.mrb[28].mxu0 %vm4402_vm11, %v19639_v34  ;;  %v16607_v27 = vunpack.i.h.bf16 %v19665_v56  ;;  %v16606_v54 = vunpack.i.l.bf16 %v19665_v56 }
 0x901   : > { %15482 = vmatpush1.bf16.msra.mxu0 %v19526_v6  ;;  %15468 = vmatprep.subr.bf16.mxu1 %v15467_v48  ;;  %v8814_v6 = vsel %vm1434_vm3, %v16586_v29, %v16587_v5  ;;  %v16602_v46 = vunpack.i.h.bf16 %v19671_v63  ;;  %v16601_v39 = vunpack.i.l.bf16 %v19671_v63 }
 0x902   : > { %15488 = vmatprep.subr.bf16.mxu0 %v19528_v23  ;;  %15470 = vmatpush1.bf16.msra.mxu1 %v15469_v31  ;;  %v19696_v23 = vld [vmem:[%s20970_s11] sm:$0xff]  ;;  %v15495_v2 = vpack.c.bf16 %v8814_v6, %v8808_v3  ;;  %v8818_v49 = vsel %vm1434_vm3, %v16606_v54, %v16607_v27 }
 0x903   : > { %v19677_v62 = vpop.permute.xlu1 %16614  ;;  %8382 = vmatprep.mubr.f32.mxu0 %v17128_v0  ;;  %15476 = vmatprep.subr.bf16.mxu1 %v15475_v41 }
 0x904   : > { %v19680_v47 = vpop.permute.xlu0 %16609  ;;  %15053 = vmatmul.mubr.msk.f32.gmra.mrb[30].mxu0 %vm4402_vm11, %v19655_v13  ;;  %v16616_v50 = vunpack.i.l.bf16 %v19677_v62 }
 0x905   : > { %15050 = vmatmul.mubr.msk.f32.vlgmr.msra.gmra.mrb[16].mxu1 %vm4402_vm11, %v19639_v34  ;;  %8534 = vmatprep.mubr.f32.mxu0 %v17128_v0  ;;  %v16612_v25 = vunpack.i.h.bf16 %v19680_v47  ;;  %v16611_v37 = vunpack.i.l.bf16 %v19680_v47 }
 0x906   : > { %15478 = vmatpush3.bf16.msra.mxu1 %v15475_v41  ;;  %8305 = vmatprep.mubr.f32.mxu1 %v17128_v0 }
 0x907   : > { %v19699_v40 = vpop.permute.xlu1 %16624  ;;  %15484 = vmatprep.subr.bf16.mxu1 %v15483_v52  ;;  %v8813_v52 = vsel %vm1434_vm3, %v16592_v1, %v16586_v29  ;;  %v8817_v59 = vsel %vm1434_vm3, %v16612_v25, %v16606_v54 }
 0x908   : > { %v19708_v24 = vpop.permute.xlu0 %16619  ;;  %15056 = vmatmul.mubr.msk.f32.vlgmr.msra.gmra.mrb[24].mxu0 %vm4402_vm11, %v19696_v23  ;;  %v15497_v22 = vpack.c.bf16 %v8813_v52, %v8807_v32  ;;  %v16627_v35 = vunpack.i.h.bf16 %v19699_v40  ;;  %v16626_v48 = vunpack.i.l.bf16 %v19699_v40  ;;  %v15507_v40 = vpack.c.bf16 %v16607_v27, %v16602_v46 }
 0x909   : > { %15490 = vmatpush1.bf16.msra.mxu0 %v15489_v36  ;;  %15051 = vmatmul.mubr.msk.f32.gmra.mrb[18].mxu1 %vm4402_vm11, %v19655_v13  ;;  %v8812_v36 = vsel %vm1434_vm3, %v16601_v39, %v16602_v46  ;;  %v16622_v11 = vunpack.i.h.bf16 %v19708_v24 }
 0x90a   : > { %15496 = vmatprep.subr.bf16.mxu0 %v15495_v2  ;;  %8540 = vmatprep.mubr.f32.mxu0 %v17128_v0  ;;  %v15503_v21 = vpack.c.bf16 %v8818_v49, %v8812_v36  ;;  %v15065_v2 = vld [vmem:[%s20970_s11 + $0x28] sm:$0xff] }
 0x90b   : > { %v19723_v8 = vpop.permute.xlu1 %16634  ;;  %15253 = vmatprep.mubr.msk.f32.mxu1 %vm4402_vm11, %v19639_v34  ;;  %v16621_v34 = vunpack.i.l.bf16 %v19708_v24 }
 0x90c   : > { %v19729_v4 = vpop.permute.xlu0 %16629  ;;  %15057 = vmatmul.mubr.msk.f32.gmra.mrb[26].mxu0 %vm4402_vm11, %v19720_v19  ;;  %v16637_v61 = vunpack.i.h.bf16 %v19723_v8 }
 0x90d   : > { %15254 = vmatmul.mubr.msk.f32.vlgmr.msra.gmra.mrb[20].mxu1 %vm4402_vm11, %v19655_v13  ;;  %8688 = vmatprep.mubr.f32.mxu0 %v17128_v0  ;;  %v8811_v13 = vsel %vm1434_vm3, %v16611_v37, %v16601_v39  ;;  %v9197_v14 = vsel %vm1807_vm5, %v16621_v34, %v16622_v11  ;;  %v16632_v29 = vunpack.i.h.bf16 %v19729_v4  ;;  %v9190_v39 = vsel %vm1807_vm5, %v16626_v48, %v16616_v50 }
 0x90e   : > { %15486 = vmatpush1.bf16.msra.mxu1 %v19538_v53  ;;  %8611 = vmatprep.mubr.f32.mxu1 %v17128_v0  ;;  %v16617_v53 = vunpack.i.h.bf16 %v19677_v62  ;;  %v15505_v31 = vpack.c.bf16 %v8817_v59, %v8811_v13  ;;  %v9196_v52 = vsel %vm1807_vm5, %v16627_v35, %v16621_v34  ;;  %v15074_v59 = vld [vmem:[%s20970_s11 + $0x30] sm:$0xff] }
 0x90f   : > { %15492 = vmatprep.subr.bf16.mxu1 %v19540_v42  ;;  %v16645_v12 = vpop.permute.xlu1 %16644  ;;  %v15513_v36 = vpack.c.bf16 %v9196_v52, %v9190_v39 }
 0x910   : > { %v16647_v57 = vunpack.i.h.bf16 %v16645_v12  ;;  %v16646_v33 = vunpack.i.l.bf16 %v16645_v12  ;;  %v19749_v9 = vpop.permute.xlu0 %16639  ;;  %15060 = vmatmul.mubr.msk.f32.vlgmr.msra.gmra.mrb[28].mxu0 %vm4402_vm11, %v19696_v23  ;;  %v9191_v55 = vsel %vm1807_vm5, %v16616_v50, %v16617_v53 }
 0x911   : > { %15498 = vmatpush1.bf16.msra.mxu0 %v15497_v22  ;;  %15058 = vmatmul.mubr.msk.f32.vlgmr.msra.gmra.mrb[16].mxu1 %vm4402_vm11, %v19696_v23  ;;  %v15511_v41 = vpack.c.bf16 %v9197_v14, %v9191_v55  ;;  %v16641_v47 = vunpack.i.l.bf16 %v19749_v9 }
 0x912   : > { %15494 = vmatpush3.bf16.msra.mxu1 %v19540_v42  ;;  %15504 = vmatprep.subr.bf16.mxu0 %v15503_v21  ;;  %v8810_v7 = vsel %vm1434_vm3, %v16646_v33, %v16611_v37  ;;  %v8816_v45 = vsel %vm1434_vm3, %v16647_v57, %v16612_v25  ;;  %v8815_v28 = vsel %vm1434_vm3, %v16587_v5, %v16647_v57  ;;  %v16636_v5 = vunpack.i.l.bf16 %v19723_v8 }
 0x913   : > { %v19761_v16 = vpop.permute.xlu1 %16654  ;;  %8694 = vmatprep.mubr.f32.mxu0 %v17128_v0  ;;  %8617 = vmatprep.mubr.f32.mxu1 %v17128_v0  ;;  %v15499_v42 = vpack.c.bf16 %v8816_v45, %v8810_v7  ;;  %v8809_v10 = vsel %vm1434_vm3, %v16582_v44, %v16646_v33  ;;  %v16631_v44 = vunpack.i.l.bf16 %v19729_v4  ;;  %v15523_v7 = vpack.c.bf16 %v16637_v61, %v16632_v29 }
 0x914   : > { %v19766_v30 = vpop.permute.xlu0 %16649  ;;  %15061 = vmatmul.mubr.msk.f32.gmra.mrb[30].mxu0 %vm4402_vm11, %v19720_v19  ;;  %v15501_v60 = vpack.c.bf16 %v8815_v28, %v8809_v10  ;;  %v16657_v25 = vunpack.i.h.bf16 %v19761_v16  ;;  %v16656_v37 = vunpack.i.l.bf16 %v19761_v16 }
 0x915   : > { %15059 = vmatmul.mubr.msk.f32.gmra.mrb[18].mxu1 %vm4402_vm11, %v19720_v19  ;;  %8903 = vmatprep.mubr.f32.mxu0 %v17128_v0  ;;  %v9195_v46 = vsel %vm1807_vm5, %v16631_v44, %v16632_v29  ;;  %v16652_v12 = vunpack.i.h.bf16 %v19766_v30  ;;  %v16651_v22 = vunpack.i.l.bf16 %v19766_v30  ;;  %v9194_v62 = vsel %vm1807_vm5, %v16641_v47, %v16631_v44 }
 0x916   : > { %15500 = vmatprep.subr.bf16.mxu1 %v15499_v42  ;;  %15260 = vmatprep.mubr.msk.f32.mxu1 %vm4402_vm11, %v19696_v23  ;;  %v16642_v23 = vunpack.i.h.bf16 %v19749_v9 }
 0x917   : > { %v16665_v17 = vpop.permute.xlu1 %16664 }
 0x918   : > { %v16667_v3 = vunpack.i.h.bf16 %v16665_v17  ;;  %v16666_v6 = vunpack.i.l.bf16 %v16665_v17  ;;  %v19797_v1 = vpop.permute.xlu0 %16659  ;;  %15066 = vmatmul.mubr.msk.f32.vlgmr.msra.gmra.mrb[24].mxu0 %vm4402_vm11, %v15064_v15  ;;  %v9200_v33 = vsel %vm1807_vm5, %v16642_v23, %v16636_v5 }
 0x919   : > { %15506 = vmatpush1.bf16.msra.mxu0 %v15505_v31  ;;  %15261 = vmatmul.mubr.msk.f32.vlgmr.msra.gmra.mrb[20].mxu1 %vm4402_vm11, %v19720_v19  ;;  %v9201_v19 = vsel %vm1807_vm5, %v16636_v5, %v16637_v61  ;;  %v16662_v13 = vunpack.i.h.bf16 %v19797_v1  ;;  %v16661_v16 = vunpack.i.l.bf16 %v19797_v1  ;;  %v15521_v30 = vpack.c.bf16 %v9200_v33, %v9194_v62  ;;  %v15075_v61 = vld [vmem:[%s20970_s11 + $0x38] sm:$0xff] }
 0x91a   : > { %15502 = vmatpush1.bf16.msra.mxu1 %v15501_v60  ;;  %15512 = vmatprep.subr.bf16.mxu0 %v15511_v41  ;;  %v9193_v54 = vsel %vm1807_vm5, %v16666_v6, %v16641_v47  ;;  %v9199_v56 = vsel %vm1807_vm5, %v16667_v3, %v16642_v23  ;;  %v15519_v49 = vpack.c.bf16 %v9201_v19, %v9195_v46 }
 0x91b   : > { %15508 = vmatprep.subr.bf16.mxu1 %v15507_v40  ;;  %v19813_v32 = vpop.permute.xlu1 %16674  ;;  %8909 = vmatprep.mubr.f32.mxu0 %v17128_v0  ;;  %v15515_v27 = vpack.c.bf16 %v9199_v56, %v9193_v54  ;;  %v9192_v34 = vsel %vm1807_vm5, %v16617_v53, %v16666_v6  ;;  %v9198_v57 = vsel %vm1807_vm5, %v16622_v11, %v16667_v3 }
 0x91c   : > { %v19817_v63 = vpop.permute.xlu0 %16669  ;;  %15067 = vmatmul.mubr.msk.f32.gmra.mrb[26].mxu0 %vm4402_vm11, %v15065_v2  ;;  %8980 = vmatprep.mubr.f32.mxu1 %v17128_v0  ;;  %v15517_v24 = vpack.c.bf16 %v9198_v57, %v9192_v34  ;;  %v9574_v11 = vsel %vm2180_vm8, %v16651_v22, %v16652_v12  ;;  %v9580_v53 = vsel %vm2180_vm8, %v16656_v37, %v16657_v25  ;;  %v16677_v8 = vunpack.i.h.bf16 %v19813_v32 }
 0x91d   : > { %15068 = vmatmul.mubr.msk.f32.vlgmr.msra.gmra.mrb[16].mxu1 %vm4402_vm11, %v15064_v15  ;;  %9057 = vmatprep.mubr.f32.mxu0 %v17128_v0  ;;  %v15527_v42 = vpack.c.bf16 %v9580_v53, %v9574_v11  ;;  %v16676_v14 = vunpack.i.l.bf16 %v19813_v32  ;;  %v16672_v28 = vunpack.i.h.bf16 %v19817_v63  ;;  %v16671_v10 = vunpack.i.l.bf16 %v19817_v63 }
 0x91e   : > { %15510 = vmatpush3.bf16.msra.mxu1 %v15507_v40  ;;  %8986 = vmatprep.mubr.f32.mxu1 %v17128_v0  ;;  %v9579_v5 = vsel %vm2180_vm8, %v16662_v13, %v16656_v37  ;;  %v9573_v17 = vsel %vm2180_vm8, %v16661_v16, %v16651_v22 }
 0x91f   : > { %15516 = vmatprep.subr.bf16.mxu1 %v15515_v27  ;;  %v19828_v4 = vpop.permute.xlu1 %16684  ;;  %v9578_v3 = vsel %vm2180_vm8, %v16671_v10, %v16672_v28  ;;  %v9584_v6 = vsel %vm2180_vm8, %v16676_v14, %v16677_v8  ;;  %v15539_v56 = vpack.c.bf16 %v16677_v8, %v16672_v28 }
 0x920   : > { %v19834_v21 = vpop.permute.xlu0 %16679  ;;  %15070 = vmatmul.mubr.msk.f32.vlgmr.msra.gmra.mrb[28].mxu0 %vm4402_vm11, %v15064_v15  ;;  %v15535_v32 = vpack.c.bf16 %v9584_v6, %v9578_v3  ;;  %v16686_v37 = vunpack.i.l.bf16 %v19828_v4 }
 0x921   : > { %15514 = vmatpush1.bf16.msra.mxu0 %v15513_v36  ;;  %15069 = vmatmul.mubr.msk.f32.gmra.mrb[18].mxu1 %vm4402_vm11, %v15065_v2  ;;  %v16681_v55 = vunpack.i.l.bf16 %v19834_v21  ;;  %v16682_v31 = vunpack.i.h.bf16 %v19834_v21 }
 0x922   : > { %15520 = vmatprep.subr.bf16.mxu0 %v15519_v49  ;;  %9063 = vmatprep.mubr.f32.mxu0 %v17128_v0  ;;  %v19907_v49 = vld [vmem:[%s20970_s11 + $0x40] sm:$0xff] }
 0x923   : > { %v19846_v9 = vpop.permute.xlu1 %16694  ;;  %15267 = vmatprep.mubr.msk.f32.mxu1 %vm4402_vm11, %v15064_v15  ;;  %v9583_v21 = vsel %vm2180_vm8, %v16682_v31, %v16676_v14  ;;  %v9577_v34 = vsel %vm2180_vm8, %v16681_v55, %v16671_v10 }
 0x924   : > { %v19850_v50 = vpop.permute.xlu0 %16689  ;;  %15071 = vmatmul.mubr.msk.f32.gmra.mrb[30].mxu0 %vm4402_vm11, %v15065_v2  ;;  %v15537_v53 = vpack.c.bf16 %v9583_v21, %v9577_v34 }
 0x925   : > { %15268 = vmatmul.mubr.msk.f32.vlgmr.msra.gmra.mrb[20].mxu1 %vm4402_vm11, %v15065_v2  ;;  %9286 = vmatprep.mubr.f32.mxu0 %v17128_v0  ;;  %v15529_v2 = vpack.c.bf16 %v9579_v5, %v9573_v17  ;;  %v16692_v54 = vunpack.i.h.bf16 %v19850_v50  ;;  %v16691_v63 = vunpack.i.l.bf16 %v19850_v50  ;;  %v19934_v50 = vld [vmem:[%s20970_s11 + $0x48] sm:$0xff] }
 0x926   : > { %15518 = vmatpush1.bf16.msra.mxu1 %v15517_v24  ;;  %9363 = vmatprep.mubr.f32.mxu1 %v17128_v0  ;;  %v16696_v24 = vunpack.i.l.bf16 %v19846_v9 }
 0x927   : > { %15524 = vmatprep.subr.bf16.mxu1 %v15523_v7  ;;  %v19865_v45 = vpop.permute.xlu1 %16704  ;;  %v9963_v62 = vsel %vm2553_vm4, %v16691_v63, %v16692_v54 }
 0x928   : > { %v16700_v15 = vpop.permute.xlu0 %16699  ;;  %15076 = vmatmul.mubr.msk.f32.vlgmr.msra.gmra.mrb[24].mxu0 %vm4402_vm11, %v15074_v59  ;;  %v16707_v28 = vunpack.i.h.bf16 %v19865_v45  ;;  %v16706_v10 = vunpack.i.l.bf16 %v19865_v45 }
 0x929   : > { %v16702_v35 = vunpack.i.h.bf16 %v16700_v15  ;;  %v16701_v48 = vunpack.i.l.bf16 %v16700_v15  ;;  %15522 = vmatpush1.bf16.msra.mxu0 %v15521_v30  ;;  %15078 = vmatmul.mubr.msk.f32.vlgmr.msra.gmra.mrb[16].mxu1 %vm4402_vm11, %v15074_v59 }
 0x92a   : > { %15526 = vmatpush3.bf16.msra.mxu1 %v15523_v7  ;;  %15528 = vmatprep.subr.bf16.mxu0 %v15527_v42  ;;  %v9961_v6 = vsel %vm2553_vm4, %v16706_v10, %v16707_v28 }
 0x92b   : > { %v19879_v29 = vpop.permute.xlu1 %16714  ;;  %9292 = vmatprep.mubr.f32.mxu0 %v17128_v0  ;;  %9369 = vmatprep.mubr.f32.mxu1 %v17128_v0  ;;  %v9576_v44 = vsel %vm2180_vm8, %v16701_v48, %v16681_v55  ;;  %v9582_v47 = vsel %vm2180_vm8, %v16702_v35, %v16682_v31  ;;  %v9581_v1 = vsel %vm2180_vm8, %v16657_v25, %v16702_v35  ;;  %v16687_v25 = vunpack.i.h.bf16 %v19828_v4 }
 0x92c   : > { %v19885_v41 = vpop.permute.xlu0 %16709  ;;  %15077 = vmatmul.mubr.msk.f32.gmra.mrb[26].mxu0 %vm4402_vm11, %v15075_v61  ;;  %v9575_v60 = vsel %vm2180_vm8, %v16652_v12, %v16701_v48  ;;  %v15531_v23 = vpack.c.bf16 %v9582_v47, %v9576_v44  ;;  %v16716_v27 = vunpack.i.l.bf16 %v19879_v29  ;;  %v16717_v36 = vunpack.i.h.bf16 %v19879_v29 }
 0x92d   : > { %15079 = vmatmul.mubr.msk.f32.gmra.mrb[18].mxu1 %vm4402_vm11, %v15075_v61  ;;  %9440 = vmatprep.mubr.f32.mxu0 %v17128_v0  ;;  %v15533_v52 = vpack.c.bf16 %v9581_v1, %v9575_v60  ;;  %v9957_v7 = vsel %vm2553_vm4, %v16686_v37, %v16687_v25  ;;  %v16712_v30 = vunpack.i.h.bf16 %v19885_v41  ;;  %v16711_v42 = vunpack.i.l.bf16 %v19885_v41  ;;  %v19972_v41 = vld [vmem:[%s20970_s11 + $0x50] sm:$0xff] }
 0x92e   : > { %15274 = vmatprep.mubr.msk.f32.mxu1 %vm4402_vm11, %v15074_v59  ;;  %15532 = vmatprep.subr.bf16.mxu1 %v15531_v23  ;;  %v15543_v16 = vpack.c.bf16 %v9963_v62, %v9957_v7 }
 0x92f   : > { %v19896_v40 = vpop.permute.xlu1 %16724  ;;  %v15555_v5 = vpack.c.bf16 %v16712_v30, %v16707_v28  ;;  %v9967_v45 = vsel %vm2553_vm4, %v16711_v42, %v16712_v30 }
 0x930   : > { %v16720_v39 = vpop.permute.xlu0 %16719  ;;  %15080 = vmatmul.mubr.msk.f32.vlgmr.msra.gmra.mrb[28].mxu0 %vm4402_vm11, %v15074_v59  ;;  %v16697_v59 = vunpack.i.h.bf16 %v19846_v9  ;;  %v9956_v9 = vsel %vm2553_vm4, %v16696_v24, %v16686_v37 }
 0x931   : > { %v16722_v46 = vunpack.i.h.bf16 %v16720_v39  ;;  %v16721_v19 = vunpack.i.l.bf16 %v16720_v39  ;;  %15530 = vmatpush1.bf16.msra.mxu0 %v15529_v2  ;;  %15275 = vmatmul.mubr.msk.f32.vlgmr.msra.gmra.mrb[20].mxu1 %vm4402_vm11, %v15075_v61 }
 0x932   : > { %15534 = vmatpush1.bf16.msra.mxu1 %v15533_v52  ;;  %15536 = vmatprep.subr.bf16.mxu0 %v15535_v32  ;;  %v9962_v55 = vsel %vm2553_vm4, %v16697_v59, %v16691_v63  ;;  %v19994_v32 = vld [vmem:[%s20970_s11 + $0x58] sm:$0xff]  ;;  %v9966_v63 = vsel %vm2553_vm4, %v16717_v36, %v16711_v42 }
 0x933   : > { %15540 = vmatprep.subr.bf16.mxu1 %v15539_v56  ;;  %v19911_v12 = vpop.permute.xlu1 %16734  ;;  %9446 = vmatprep.mubr.f32.mxu0 %v17128_v0  ;;  %v9959_v22 = vsel %vm2553_vm4, %v16721_v19, %v16716_v27  ;;  %v9965_v4 = vsel %vm2553_vm4, %v16722_v46, %v16717_v36  ;;  %v9958_v8 = vsel %vm2553_vm4, %v16687_v25, %v16721_v19  ;;  %v16726_v19 = vunpack.i.l.bf16 %v19896_v40 }
 0x934   : > { %v19919_v57 = vpop.permute.xlu0 %16729  ;;  %15081 = vmatmul.mubr.msk.f32.gmra.mrb[30].mxu0 %vm4402_vm11, %v15075_v61  ;;  %9746 = vmatprep.mubr.f32.mxu1 %v17128_v0  ;;  %v15547_v33 = vpack.c.bf16 %v9965_v4, %v9959_v22  ;;  %v9964_v14 = vsel %vm2553_vm4, %v16692_v54, %v16722_v46  ;;  %v15545_v3 = vpack.c.bf16 %v9962_v55, %v9956_v9  ;;  %v16727_v46 = vunpack.i.h.bf16 %v19896_v40 }
 0x935   : > { %15088 = vmatmul.mubr.msk.f32.vlgmr.msra.gmra.mrb[16].mxu1 %vm4402_vm11, %v19907_v49  ;;  %9669 = vmatprep.mubr.f32.mxu0 %v17128_v0  ;;  %v15549_v35 = vpack.c.bf16 %v9964_v14, %v9958_v8  ;;  %v16732_v60 = vunpack.i.h.bf16 %v19919_v57  ;;  %v16731_v23 = vunpack.i.l.bf16 %v19919_v57  ;;  %v15551_v54 = vpack.c.bf16 %v9967_v45, %v9961_v6 }
 0x936   : > { %15542 = vmatpush3.bf16.msra.mxu1 %v15539_v56  ;;  %9752 = vmatprep.mubr.f32.mxu1 %v17128_v0  ;;  %v9960_v56 = vsel %vm2553_vm4, %v16716_v27, %v16706_v10  ;;  %v16737_v21 = vunpack.i.h.bf16 %v19911_v12  ;;  %v16736_v62 = vunpack.i.l.bf16 %v19911_v12  ;;  %v20042_v12 = vld [vmem:[%s20970_s11 + $0x60] sm:$0xff] }
 0x937   : > { %15548 = vmatprep.subr.bf16.mxu1 %v15547_v33  ;;  %v19937_v11 = vpop.permute.xlu1 %16744  ;;  %v10346_v29 = vsel %vm2929_vm6, %v16731_v23, %v16732_v60  ;;  %v15553_v22 = vpack.c.bf16 %v9966_v63, %v9960_v56  ;;  %v10340_v33 = vsel %vm2929_vm6, %v16726_v19, %v16727_v46 }
 0x938   : > { %v19941_v13 = vpop.permute.xlu0 %16739  ;;  %15086 = vmatmul.mubr.msk.f32.vlgmr.msra.gmra.mrb[24].mxu0 %vm4402_vm11, %v19907_v49  ;;  %v16747_v27 = vunpack.i.h.bf16 %v19937_v11  ;;  %v15559_v7 = vpack.c.bf16 %v10346_v29, %v10340_v33  ;;  %v10339_v14 = vsel %vm2929_vm6, %v16736_v62, %v16726_v19  ;;  %v10345_v9 = vsel %vm2929_vm6, %v16737_v21, %v16731_v23 }
 0x939   : > { %15538 = vmatpush1.bf16.msra.mxu0 %v15537_v53  ;;  %15089 = vmatmul.mubr.msk.f32.gmra.mrb[18].mxu1 %vm4402_vm11, %v19934_v50  ;;  %v16742_v36 = vunpack.i.h.bf16 %v19941_v13  ;;  %v15561_v45 = vpack.c.bf16 %v10345_v9, %v10339_v14 }
 0x93a   : > { %15544 = vmatprep.subr.bf16.mxu0 %v15543_v16  ;;  %9675 = vmatprep.mubr.f32.mxu0 %v17128_v0  ;;  %v16741_v16 = vunpack.i.l.bf16 %v19941_v13 }
 0x93b   : > { %v16755_v15 = vpop.permute.xlu1 %16754  ;;  %15281 = vmatprep.mubr.msk.f32.mxu1 %vm4402_vm11, %v19907_v49  ;;  %v15571_v59 = vpack.c.bf16 %v16747_v27, %v16742_v36 }
 0x93c   : > { %v16757_v48 = vunpack.i.h.bf16 %v16755_v15  ;;  %v16756_v61 = vunpack.i.l.bf16 %v16755_v15  ;;  %v19958_v31 = vpop.permute.xlu0 %16749  ;;  %15087 = vmatmul.mubr.msk.f32.gmra.mrb[26].mxu0 %vm4402_vm11, %v19934_v50  ;;  %v10344_v15 = vsel %vm2929_vm6, %v16741_v16, %v16742_v36 }
 0x93d   : > { %v16752_v44 = vunpack.i.h.bf16 %v19958_v31  ;;  %v16751_v17 = vunpack.i.l.bf16 %v19958_v31  ;;  %15282 = vmatmul.mubr.msk.f32.vlgmr.msra.gmra.mrb[20].mxu1 %vm4402_vm11, %v19934_v50  ;;  %9823 = vmatprep.mubr.f32.mxu0 %v17128_v0 }
 0x93e   : > { %15550 = vmatpush1.bf16.msra.mxu1 %v15549_v35  ;;  %10129 = vmatprep.mubr.f32.mxu1 %v17128_v0  ;;  %v10341_v40 = vsel %vm2929_vm6, %v16727_v46, %v16756_v61  ;;  %v10347_v37 = vsel %vm2929_vm6, %v16732_v60, %v16757_v48 }
 0x93f   : > { %15556 = vmatprep.subr.bf16.mxu1 %v15555_v5  ;;  %v19974_v47 = vpop.permute.xlu1 %16764  ;;  %v10342_v1 = vsel %vm2929_vm6, %v16756_v61, %v16751_v17  ;;  %v10348_v39 = vsel %vm2929_vm6, %v16757_v48, %v16752_v44  ;;  %v15565_v24 = vpack.c.bf16 %v10347_v37, %v10341_v40  ;;  %v10343_v19 = vsel %vm2929_vm6, %v16751_v17, %v16741_v16  ;;  %v20137_v16 = vld [vmem:[%s20970_s11 + $0x78] sm:$0xff] }
 0x940   : > { %v19982_v2 = vpop.permute.xlu0 %16759  ;;  %15090 = vmatmul.mubr.msk.f32.vlgmr.msra.gmra.mrb[28].mxu0 %vm4402_vm11, %v19907_v49  ;;  %v15563_v52 = vpack.c.bf16 %v10348_v39, %v10342_v1 }
 0x941   : > { %15546 = vmatpush1.bf16.msra.mxu0 %v15545_v3  ;;  %15098 = vmatmul.mubr.msk.f32.vlgmr.msra.gmra.mrb[16].mxu1 %vm4402_vm11, %v19972_v41  ;;  %v16767_v3 = vunpack.i.h.bf16 %v19974_v47  ;;  %v16762_v39 = vunpack.i.h.bf16 %v19982_v2 }
 0x942   : > { %15552 = vmatprep.subr.bf16.mxu0 %v15551_v54  ;;  %15558 = vmatpush3.bf16.msra.mxu1 %v15555_v5  ;;  %v20068_v5 = vld [vmem:[%s20970_s11 + $0x68] sm:$0xff]  ;;  %v16766_v54 = vunpack.i.l.bf16 %v19974_v47 }
 0x943   : > { %15564 = vmatprep.subr.bf16.mxu1 %v15563_v52  ;;  %v20004_v49 = vpop.permute.xlu1 %16774  ;;  %9829 = vmatprep.mubr.f32.mxu0 %v17128_v0  ;;  %v16761_v52 = vunpack.i.l.bf16 %v19982_v2 }
 0x944   : > { %v20007_v25 = vpop.permute.xlu0 %16769  ;;  %15091 = vmatmul.mubr.msk.f32.gmra.mrb[30].mxu0 %vm4402_vm11, %v19934_v50  ;;  %10135 = vmatprep.mubr.f32.mxu1 %v17128_v0  ;;  %v16777_v34 = vunpack.i.h.bf16 %v20004_v49  ;;  %v16776_v57 = vunpack.i.l.bf16 %v20004_v49  ;;  %v16746_v50 = vunpack.i.l.bf16 %v19937_v11 }
 0x945   : > { %15099 = vmatmul.mubr.msk.f32.gmra.mrb[18].mxu1 %vm4402_vm11, %v19994_v32  ;;  %10052 = vmatprep.mubr.f32.mxu0 %v17128_v0  ;;  %v10729_v40 = vsel %vm3305_vm7, %v16761_v52, %v16762_v39  ;;  %v16772_v31 = vunpack.i.h.bf16 %v20007_v25  ;;  %v16771_v17 = vunpack.i.l.bf16 %v20007_v25 }
 0x946   : > { %15288 = vmatprep.mubr.msk.f32.mxu1 %vm4402_vm11, %v19972_v41  ;;  %v10731_v13 = vsel %vm3305_vm7, %v16776_v57, %v16777_v34  ;;  %v10350_v55 = vsel %vm2929_vm6, %v16746_v50, %v16747_v27  ;;  %v10730_v63 = vsel %vm3305_vm7, %v16762_v39, %v16776_v57  ;;  %v10349_v46 = vsel %vm2929_vm6, %v16752_v44, %v16746_v50 }
 0x947   : > { %v20025_v4 = vpop.permute.xlu1 %16784  ;;  %v15567_v23 = vpack.c.bf16 %v10350_v55, %v10344_v15  ;;  %v10736_v44 = vsel %vm3305_vm7, %v16766_v54, %v16767_v3  ;;  %v15569_v37 = vpack.c.bf16 %v10349_v46, %v10343_v19 }
 0x948   : > { %v20030_v53 = vpop.permute.xlu0 %16779  ;;  %15096 = vmatmul.mubr.msk.f32.vlgmr.msra.gmra.mrb[24].mxu0 %vm4402_vm11, %v19972_v41  ;;  %v16787_v1 = vunpack.i.h.bf16 %v20025_v4  ;;  %v15575_v25 = vpack.c.bf16 %v10736_v44, %v10729_v40 }
 0x949   : > { %v16782_v30 = vunpack.i.h.bf16 %v20030_v53  ;;  %v16781_v42 = vunpack.i.l.bf16 %v20030_v53  ;;  %15554 = vmatpush1.bf16.msra.mxu0 %v15553_v22  ;;  %15289 = vmatmul.mubr.msk.f32.vlgmr.msra.gmra.mrb[20].mxu1 %vm4402_vm11, %v19994_v32  ;;  %v15125_v53 = vld [vmem:[%s20970_s11 + $0x88] sm:$0xff] }
 0x94a   : > { %15560 = vmatprep.subr.bf16.mxu0 %v15559_v7  ;;  %15566 = vmatpush1.bf16.msra.mxu1 %v15565_v24  ;;  %v10735_v7 = vsel %vm3305_vm7, %v16772_v31, %v16766_v54 }
 0x94b   : > { %15572 = vmatprep.subr.bf16.mxu1 %v15571_v59  ;;  %v16795_v11 = vpop.permute.xlu1 %16794  ;;  %10058 = vmatprep.mubr.f32.mxu0 %v17128_v0  ;;  %v10738_v8 = vsel %vm3305_vm7, %v16781_v42, %v16782_v30  ;;  %v10737_v56 = vsel %vm3305_vm7, %v16767_v3, %v16781_v42  ;;  %v16786_v42 = vunpack.i.l.bf16 %v20025_v4  ;;  %v15124_v4 = vld [vmem:[%s20970_s11 + $0x80] sm:$0xff] }
 0x94c   : > { %v20053_v28 = vpop.permute.xlu0 %16789  ;;  %15097 = vmatmul.mubr.msk.f32.gmra.mrb[26].mxu0 %vm4402_vm11, %v19994_v32  ;;  %10512 = vmatprep.mubr.f32.mxu1 %v17128_v0  ;;  %v15579_v10 = vpack.c.bf16 %v10738_v8, %v10731_v13  ;;  %v16797_v35 = vunpack.i.h.bf16 %v16795_v11  ;;  %v16796_v48 = vunpack.i.l.bf16 %v16795_v11  ;;  %v15581_v29 = vpack.c.bf16 %v10737_v56, %v10730_v63 }
 0x94d   : > { %15108 = vmatmul.mubr.msk.f32.vlgmr.msra.gmra.mrb[16].mxu1 %vm4402_vm11, %v20042_v12  ;;  %10206 = vmatprep.mubr.f32.mxu0 %v17128_v0  ;;  %v16792_v61 = vunpack.i.h.bf16 %v20053_v28  ;;  %v16791_v62 = vunpack.i.l.bf16 %v20053_v28  ;;  %v10733_v56 = vsel %vm3305_vm7, %v16786_v42, %v16787_v1 }
 0x94e   : > { %15574 = vmatpush3.bf16.msra.mxu1 %v15571_v59  ;;  %10518 = vmatprep.mubr.f32.mxu1 %v17128_v0  ;;  %v10728_v59 = vsel %vm3305_vm7, %v16771_v17, %v16761_v52 }
 0x94f   : > { %15580 = vmatprep.subr.bf16.mxu1 %v15579_v10  ;;  %v20071_v6 = vpop.permute.xlu1 %16804  ;;  %v10741_v47 = vsel %vm3305_vm7, %v16792_v61, %v16797_v35  ;;  %v15577_v39 = vpack.c.bf16 %v10735_v7, %v10728_v59 }
 0x950   : > { %v20074_v60 = vpop.permute.xlu0 %16799  ;;  %15100 = vmatmul.mubr.msk.f32.vlgmr.msra.gmra.mrb[28].mxu0 %vm4402_vm11, %v19972_v41  ;;  %v10734_v41 = vsel %vm3305_vm7, %v16787_v1, %v16796_v48  ;;  %v16807_v11 = vunpack.i.h.bf16 %v20071_v6  ;;  %v16806_v63 = vunpack.i.l.bf16 %v20071_v6 }
 0x951   : > { %15562 = vmatpush1.bf16.msra.mxu0 %v15561_v45  ;;  %15109 = vmatmul.mubr.msk.f32.gmra.mrb[18].mxu1 %vm4402_vm11, %v20068_v5  ;;  %v15587_v36 = vpack.c.bf16 %v10741_v47, %v10734_v41  ;;  %v16802_v48 = vunpack.i.h.bf16 %v20074_v60  ;;  %v16801_v46 = vunpack.i.l.bf16 %v20074_v60  ;;  %v10732_v60 = vsel %vm3305_vm7, %v16777_v34, %v16786_v42 }
 0x952   : > { %15568 = vmatprep.subr.bf16.mxu0 %v15567_v23  ;;  %10212 = vmatprep.mubr.f32.mxu0 %v17128_v0  ;;  %v10740_v23 = vsel %vm3305_vm7, %v16791_v62, %v16792_v61  ;;  %v11125_v1 = vsel %vm3681_vm9, %v16806_v63, %v16807_v11 }
 0x953   : > { %v20092_v2 = vpop.permute.xlu1 %16814  ;;  %15295 = vmatprep.mubr.msk.f32.mxu1 %vm4402_vm11, %v20042_v12  ;;  %v15583_v61 = vpack.c.bf16 %v10740_v23, %v10733_v56  ;;  %v11118_v6 = vsel %vm3681_vm9, %v16801_v46, %v16802_v48 }
 0x954   : > { %v20102_v27 = vpop.permute.xlu0 %16809  ;;  %15101 = vmatmul.mubr.msk.f32.gmra.mrb[30].mxu0 %vm4402_vm11, %v19994_v32  ;;  %v20117_v32 = vld [vmem:[%s20970_s11 + $0x70] sm:$0xff]  ;;  %v16817_v22 = vunpack.i.h.bf16 %v20092_v2  ;;  %v16816_v21 = vunpack.i.l.bf16 %v20092_v2 }
 0x955   : > { %15296 = vmatmul.mubr.msk.f32.vlgmr.msra.gmra.mrb[20].mxu1 %vm4402_vm11, %v20068_v5  ;;  %10435 = vmatprep.mubr.f32.mxu0 %v17128_v0  ;;  %v16811_v19 = vunpack.i.l.bf16 %v20102_v27 }
 0x956   : > { %15582 = vmatpush1.bf16.msra.mxu1 %v15581_v29  ;;  %10903 = vmatprep.mubr.f32.mxu1 %v17128_v0  ;;  %v11120_v8 = vsel %vm3681_vm9, %v16816_v21, %v16817_v22  ;;  %v11119_v52 = vsel %vm3681_vm9, %v16802_v48, %v16816_v21  ;;  %v15591_v29 = vpack.c.bf16 %v11125_v1, %v11118_v6 }
 0x957   : > { %15588 = vmatprep.subr.bf16.mxu1 %v15587_v36  ;;  %v20121_v57 = vpop.permute.xlu1 %16824 }
 0x958   : > { %v20123_v33 = vpop.permute.xlu0 %16819  ;;  %15106 = vmatmul.mubr.msk.f32.vlgmr.msra.gmra.mrb[24].mxu0 %vm4402_vm11, %v20042_v12  ;;  %v16827_v9 = vunpack.i.h.bf16 %v20121_v57  ;;  %v16826_v34 = vunpack.i.l.bf16 %v20121_v57 }
 0x959   : > { %v16822_v50 = vunpack.i.h.bf16 %v20123_v33  ;;  %v16821_v24 = vunpack.i.l.bf16 %v20123_v33  ;;  %15570 = vmatpush1.bf16.msra.mxu0 %v15569_v37  ;;  %15118 = vmatmul.mubr.msk.f32.vlgmr.msra.gmra.mrb[16].mxu1 %vm4402_vm11, %v20117_v32 }
 0x95a   : > { %15576 = vmatprep.subr.bf16.mxu0 %v15575_v25  ;;  %15590 = vmatpush3.bf16.msra.mxu1 %v15587_v36  ;;  %v11122_v31 = vsel %vm3681_vm9, %v16826_v34, %v16827_v9  ;;  %v11121_v21 = vsel %vm3681_vm9, %v16817_v22, %v16826_v34 }
 0x95b   : > { %v16835_v13 = vpop.permute.xlu1 %16834  ;;  %10441 = vmatprep.mubr.f32.mxu0 %v17128_v0  ;;  %10909 = vmatprep.mubr.f32.mxu1 %v17128_v0  ;;  %v11127_v14 = vsel %vm3681_vm9, %v16821_v24, %v16822_v50  ;;  %v11126_v45 = vsel %vm3681_vm9, %v16807_v11, %v16821_v24 }
 0x95c   : > { %v16837_v10 = vunpack.i.h.bf16 %v16835_v13  ;;  %v16836_v15 = vunpack.i.l.bf16 %v16835_v13  ;;  %v20150_v55 = vpop.permute.xlu0 %16829  ;;  %15107 = vmatmul.mubr.msk.f32.gmra.mrb[26].mxu0 %vm4402_vm11, %v20068_v5  ;;  %v15595_v35 = vpack.c.bf16 %v11127_v14, %v11120_v8  ;;  %v15597_v28 = vpack.c.bf16 %v11126_v45, %v11119_v52 }
 0x95d   : > { %v16832_v3 = vunpack.i.h.bf16 %v20150_v55  ;;  %15119 = vmatmul.mubr.msk.f32.gmra.mrb[18].mxu1 %vm4402_vm11, %v20137_v16  ;;  %10589 = vmatprep.mubr.f32.mxu0 %v17128_v0  ;;  %v16831_v49 = vunpack.i.l.bf16 %v20150_v55 }
 0x95e   : > { %15596 = vmatprep.subr.bf16.mxu1 %v15595_v35  ;;  %15302 = vmatprep.mubr.msk.f32.mxu1 %vm4402_vm11, %v20117_v32  ;;  %v11123_v54 = vsel %vm3681_vm9, %v16827_v9, %v16836_v15 }
 0x95f   : > { %v11130_v41 = vsel %vm3681_vm9, %v16832_v3, %v16837_v10  ;;  %v11129_v40 = vsel %vm3681_vm9, %v16831_v49, %v16832_v3  ;;  %v11128_v37 = vsel %vm3681_vm9, %v16822_v50, %v16831_v49  ;;  %v11497_v50 = vld [vmem:[%s20974_s15] sm:$0x7f] }
 0x960   : > { %15110 = vmatmul.mubr.msk.f32.vlgmr.msra.gmra.mrb[28].mxu0 %vm4402_vm11, %v20042_v12  ;;  %v15603_v47 = vpack.c.bf16 %v11130_v41, %v11123_v54  ;;  %v10739_v12 = vsel %vm3305_vm7, %v16782_v30, %v16791_v62  ;;  %v15599_v17 = vpack.c.bf16 %v11129_v40, %v11122_v31  ;;  %v15601_v57 = vpack.c.bf16 %v11128_v37, %v11121_v21 }
 0x961   : > { %15578 = vmatpush1.bf16.msra.mxu0 %v15577_v39  ;;  %15303 = vmatmul.mubr.msk.f32.vlgmr.msra.gmra.mrb[20].mxu1 %vm4402_vm11, %v20137_v16  ;;  %v15585_v30 = vpack.c.bf16 %v10739_v12, %v10732_v60  ;;  %v20243_v24 = vrot.slane %v11497_v50, %v18038_v18  ;;  %v20253_v8 = vrot.slane %v11497_v50, %v18047_v20 }
 0x962   : > { %15584 = vmatprep.subr.bf16.mxu0 %v15583_v61  ;;  %15598 = vmatpush1.bf16.msra.mxu1 %v15597_v28  ;;  %v20262_v15 = vrot.slane %v11497_v50, %v18053_v26  ;;  %v20269_v23 = vrot.slane %v11497_v50, %v18089_v58  ;;  %v20272_v54 = vrot.slane %v11497_v50, %v18070_v38 }
 0x963   : > { %15604 = vmatprep.subr.bf16.mxu1 %v15603_v47  ;;  %10595 = vmatprep.mubr.f32.mxu0 %v17128_v0  ;;  %v20279_v28 = vrot.slane %v11497_v50, %v18080_v51 }
 0x964   : > { %15111 = vmatmul.mubr.msk.f32.gmra.mrb[30].mxu0 %vm4402_vm11, %v20068_v5  ;;  %11292 = vmatprep.mubr.f32.mxu1 %v17128_v0  ;;  %v16812_v5 = vunpack.i.h.bf16 %v20102_v27  ;;  %v11117_v27 = vsel %vm3681_vm9, %v16811_v19, %v16801_v46 }
 0x965   : > { %15128 = vmatmul.mubr.msk.f32.vlgmr.msra.gmra.mrb[16].mxu1 %vm4402_vm11, %v15124_v4  ;;  %10826 = vmatprep.mubr.f32.mxu0 %v17128_v0 }
 0x966   : > { %15606 = vmatpush3.bf16.msra.mxu1 %v15603_v47  ;;  %11298 = vmatprep.mubr.f32.mxu1 %v17128_v0  ;;  %v11124_v36 = vsel %vm3681_vm9, %v16812_v5, %v16806_v63 }
 0x967   : > { %v15593_v44 = vpack.c.bf16 %v11124_v36, %v11117_v27 }
 0x968   : > { %15116 = vmatmul.mubr.msk.f32.vlgmr.msra.gmra.mrb[24].mxu0 %vm4402_vm11, %v20117_v32 }
 0x969   : > { %15586 = vmatpush1.bf16.msra.mxu0 %v15585_v30  ;;  %15129 = vmatmul.mubr.msk.f32.gmra.mrb[18].mxu1 %vm4402_vm11, %v15125_v53 }
 0x96a   : > { %15592 = vmatprep.subr.bf16.mxu0 %v15591_v29  ;;  %10832 = vmatprep.mubr.f32.mxu0 %v17128_v0 }
 0x96b   : > { %15309 = vmatprep.mubr.msk.f32.mxu1 %vm4402_vm11, %v15124_v4 }
 0x96c   : > { %15117 = vmatmul.mubr.msk.f32.gmra.mrb[26].mxu0 %vm4402_vm11, %v20137_v16 }
 0x96d   : > { %15310 = vmatmul.mubr.msk.f32.vlgmr.msra.gmra.mrb[20].mxu1 %vm4402_vm11, %v15125_v53  ;;  %10980 = vmatprep.mubr.f32.mxu0 %v17128_v0  ;;  %v11476_v7 = vpop.permute.xlu0 %11475 }
 0x96e   : > { %11859 = vmatprep.mubr.f32.mxu1 %v17128_v0 }
 0x970   : > { %15120 = vmatmul.mubr.msk.f32.vlgmr.msra.gmra.mrb[28].mxu0 %vm4402_vm11, %v20117_v32 }
 0x971   : > { %15594 = vmatpush1.bf16.msra.mxu0 %v15593_v44  ;;  %10986 = vmatprep.mubr.f32.mxu0 %v17128_v0 }
 0x972   : > { %15600 = vmatprep.subr.bf16.mxu0 %v15599_v17 }
 0x974   : > { %15121 = vmatmul.mubr.msk.f32.gmra.mrb[30].mxu0 %vm4402_vm11, %v20137_v16  ;;  %v20246_v16 = vrot.slane %v11497_v50, %v18041_v43 }
 0x975   : > { %11215 = vmatprep.mubr.f32.mxu0 %v17128_v0 }
 0x978   : > { %15126 = vmatmul.mubr.msk.f32.vlgmr.msra.gmra.mrb[24].mxu0 %vm4402_vm11, %v15124_v4 }
 0x979   : > { %15602 = vmatpush1.bf16.msra.mxu0 %v15601_v57  ;;  %11221 = vmatprep.mubr.f32.mxu0 %v17128_v0 }
 0x97c   : > { %15127 = vmatmul.mubr.msk.f32.gmra.mrb[26].mxu0 %vm4402_vm11, %v15125_v53 }
 0x97d   : > { %11369 = vmatprep.mubr.f32.mxu0 %v17128_v0 }
 0x980   : > { %15130 = vmatmul.mubr.msk.f32.vlgmr.msra.gmra.mrb[28].mxu0 %vm4402_vm11, %v15124_v4  ;;  %v11481_v4 = vpop.permute.xlu1 %11480 }
 0x981   : > { %11375 = vmatprep.mubr.f32.mxu0 %v17128_v0 }
 0x984   : > { %15131 = vmatmul.mubr.msk.f32.gmra.mrb[30].mxu0 %vm4402_vm11, %v15125_v53 }
 0xa38   : > { %v11294_v32 = vpop.f32.mrb[16].mxu1 }
 0xa39   : > { %v11296_v2 = vpop.f32.mrb[17].mxu1  ;;  %v20250_v13 = vadd.f32 %v11476_v7, %v11294_v32 }
 0xa3a   : > { %v20259_v10 = vadd.f32 %v11476_v7, %v11296_v2 }
 0xa3b   : > { %v11536_v45 = vmul.f32 %v20253_v8, %v20250_v13 }
 0xa3c   : > { %v11300_v33 = vpop.f32.mrb[18].mxu1  ;;  %v11537_v39 = vmul.f32 %v20262_v15, %v20259_v10 }
 0xa3d   : > { %v11302_v22 = vpop.f32.mrb[19].mxu1  ;;  %v11492_v49 = vadd.f32 %v11481_v4, %v11300_v33 }
 0xa3e   : > { %v20287_v27 = vadd.f32 %v11481_v4, %v11302_v22 }
 0xa3f   : > { %v11543_v31 = vmul.f32 %v20253_v8, %v11492_v49 }
 0xa40   : > { %v15311_v25 = vpop.f32.mrb[20].mxu1  ;;  %v11544_v57 = vmul.f32 %v20262_v15, %v20287_v27 }
 0xa41   : > { %v11448_v62 = vpop.f32.mrb[21].mxu1  ;;  %v20293_v21 = vadd.f32 %v15311_v25, %v11481_v4 }
 0xa42   : > { %v20276_v52 = vadd.f32 %v11476_v7, %v11448_v62 }
 0xa43   : > { %v11547_v62 = vmul.f32 %v20269_v23, %v20293_v21 }
 0xa44   : > { %v11540_v12 = vmul.f32 %v20269_v23, %v20276_v52 }
 0xa45   : > { %v11561_v25 = vsel %vm2929_vm6, %v11547_v62, 0.0 }
 0xa46   : > { %v11553_v29 = vsel %vm2929_vm6, %v11540_v12, 0.0 }
 0xa4b   : > { %v11217_v59 = vpop.f32.mrb[24].mxu0 }
 0xa4c   : > { %v20248_v42 = vadd.f32 %v11476_v7, %v11217_v59  ;;  %v11219_v11 = vpop.f32.mrb[25].mxu0 }
 0xa4d   : > { %v20255_v14 = vadd.f32 %v11476_v7, %v11219_v11 }
 0xa4e   : > { %v11534_v9 = vmul.f32 %v20243_v24, %v20248_v42 }
 0xa4f   : > { %v11535_v55 = vmul.f32 %v20246_v16, %v20255_v14  ;;  %v11223_v35 = vpop.f32.mrb[26].mxu0 }
 0xa50   : > { %v11225_v48 = vpop.f32.mrb[27].mxu0  ;;  %v11490_v60 = vadd.f32 %v11481_v4, %v11223_v35 }
 0xa51   : > { %v11548_v3 = vadd.f32 %v11535_v55, %v11534_v9  ;;  %v11491_v5 = vadd.f32 %v11481_v4, %v11225_v48  ;;  %v11660_v9 = vld [vmem:[%s20972_s13] sm:$0xff] }
 0xa52   : > { %v11541_v34 = vmul.f32 %v20243_v24, %v11490_v60  ;;  %v11686_v55 = vld [vmem:[%s20973_s14] sm:$0xff] }
 0xa53   : > { %v11549_v56 = vadd.f32 %v11548_v3, %v11536_v45  ;;  %v11371_v41 = vpop.f32.mrb[28].mxu0  ;;  %v11542_v40 = vmul.f32 %v20246_v16, %v11491_v5 }
 0xa54   : > { %v11487_v61 = vadd.f32 %v11476_v7, %v11371_v41  ;;  %v11373_v47 = vpop.f32.mrb[29].mxu0 }
 0xa55   : > { %v11550_v63 = vadd.f32 %v11549_v56, %v11537_v39  ;;  %v11488_v46 = vadd.f32 %v11476_v7, %v11373_v47 }
 0xa56   : > { %v11538_v58 = vmul.f32 %v20272_v54, %v11487_v61 }
 0xa57   : > { %v11539_v6 = vmul.f32 %v20279_v28, %v11488_v46  ;;  %v11377_v1 = vpop.f32.mrb[30].mxu0 }
 0xa58   : > { %v11551_v53 = vadd.f32 %v11550_v63, %v11538_v58  ;;  %v11379_v30 = vpop.f32.mrb[31].mxu0  ;;  %v20291_v17 = vadd.f32 %v11481_v4, %v11377_v1 }
 0xa59   : > { %v20297_v2 = vadd.f32 %v11481_v4, %v11379_v30 }
 0xa5a   : > { %v11552_v19 = vadd.f32 %v11551_v53, %v11539_v6  ;;  %v11545_v33 = vmul.f32 %v20272_v54, %v20291_v17 }
 0xa5b   : > { %v11546_v7 = vmul.f32 %v20279_v28, %v20297_v2 }
 0xa5c   : > { %v11554_v36 = vadd.f32 %v11553_v29, %v11552_v19 }
 0xa5e   : > { %v11555_v44 = vadd.f32 %v11554_v36, %v11541_v34 }
 0xa60   : > { %v11556_v37 = vadd.f32 %v11555_v44, %v11542_v40 }
 0xa62   : > { %v11557_v32 = vadd.f32 %v11556_v37, %v11543_v31 }
 0xa64   : > { %v11558_v22 = vadd.f32 %v11557_v32, %v11544_v57 }
 0xa66   : > { %v11559_v50 = vadd.f32 %v11558_v22, %v11545_v33 }
 0xa68   : > { %v11560_v59 = vadd.f32 %v11559_v50, %v11546_v7 }
 0xa6a   : > { %v11562_v11 = vadd.f32 %v11561_v25, %v11560_v59 }
 0xa6c   : > { %11563 = vadd.xlane.f32.xlu0 %v11562_v11 }
 0xa82   : > { %11664 = vperm.xlu0 %16227, %v11660_v9  }
 0xa86   : > { %11690 = vperm.xlu0 %16227, %v11686_v55  }
 0xaf9   : > { %v11564_v35 = vpop.xlane.xlu0 %11563 }
 0xafa   : > { %v11565_v48 = vrot.slane %v11564_v35, 4 }
 0xafc   : > { %v11566_v45 = vadd.f32 %v11565_v48, %v11564_v35 }
 0xafe   : > { %v11567_v3 = vrot.slane %v11566_v45, 2 }
 0xb00   : > { %v11568_v39 = vadd.f32 %v11567_v3, %v11566_v45 }
 0xb02   : > { %v11569_v56 = vrot.slane %v11568_v39, 1 }
 0xb04   : > { %v11570_v41 = vadd.f32 %v11569_v56, %v11568_v39 }
 0xb06   : > { %16196 = vpush %v11570_v41 }
 0xb37   : > { %s16197_s6 = spop %16196 }
 0xb38   : > { %s11572_s8 = smul.f32 9.245562e-05, %s16197_s6 }
 0xb3a   : > { %v11573_v47 = vstv %s11572_s8 }
 0xb3b   : > { %v20313_v63 = vsub.f32 %v20248_v42, %v11573_v47  ;;  %v20316_v58 = vsub.f32 %v20255_v14, %v11573_v47  ;;  %v20319_v4 = vsub.f32 %v20250_v13, %v11573_v47  ;;  %v20326_v1 = vsub.f32 %v20259_v10, %v11573_v47 }
 0xb3c   : > { %v20328_v53 = vsub.f32 %v11487_v61, %v11573_v47  ;;  %v20333_v14 = vsub.f32 %v20276_v52, %v11573_v47  ;;  %v20337_v19 = vsub.f32 %v11488_v46, %v11573_v47  ;;  %v20346_v52 = vsub.f32 %v11490_v60, %v11573_v47 }
 0xb3d   : > { %v11588_v12 = vmul.f32 %v20313_v63, %v20313_v63  ;;  %v11589_v6 = vmul.f32 %v20316_v58, %v20316_v58  ;;  %v11590_v42 = vmul.f32 %v20319_v4, %v20319_v4  ;;  %v11591_v29 = vmul.f32 %v20326_v1, %v20326_v1 }
 0xb3e   : > { %v11592_v10 = vmul.f32 %v20328_v53, %v20328_v53  ;;  %v11594_v36 = vmul.f32 %v20333_v14, %v20333_v14  ;;  %v11593_v40 = vmul.f32 %v20337_v19, %v20337_v19  ;;  %v20351_v31 = vsub.f32 %v11491_v5, %v11573_v47 }
 0xb3f   : > { %v11602_v13 = vmul.f32 %v11588_v12, %v20243_v24  ;;  %v11603_v30 = vmul.f32 %v11589_v6, %v20246_v16  ;;  %v11604_v61 = vmul.f32 %v11590_v42, %v20253_v8  ;;  %v11605_v46 = vmul.f32 %v11591_v29, %v20262_v15 }
 0xb40   : > { %v11606_v37 = vmul.f32 %v11592_v10, %v20272_v54  ;;  %v11608_v32 = vmul.f32 %v11594_v36, %v20269_v23  ;;  %v20355_v33 = vsub.f32 %v11492_v49, %v11573_v47  ;;  %v11595_v22 = vmul.f32 %v20346_v52, %v20346_v52 }
 0xb41   : > { %v11616_v34 = vadd.f32 %v11603_v30, %v11602_v13  ;;  %v11607_v60 = vmul.f32 %v11593_v40, %v20279_v28  ;;  %v11584_v50 = vsub.f32 %v20287_v27, %v11573_v47  ;;  %v11596_v7 = vmul.f32 %v20351_v31, %v20351_v31  ;;  %v11661_v30 = vld [vmem:[%s20972_s13 + $0x8] sm:$0xff] }
 0xb42   : > { %v11621_v59 = vsel %vm2929_vm6, %v11608_v32, 0.0  ;;  %v11585_v25 = vsub.f32 %v20291_v17, %v11573_v47  ;;  %v11597_v49 = vmul.f32 %v20355_v33, %v20355_v33  ;;  %v11609_v11 = vmul.f32 %v11595_v22, %v20243_v24 }
 0xb43   : > { %v11617_v44 = vadd.f32 %v11616_v34, %v11604_v61  ;;  %v20369_v55 = vsub.f32 %v20293_v21, %v11573_v47  ;;  %v11586_v35 = vsub.f32 %v20297_v2, %v11573_v47  ;;  %v11598_v27 = vmul.f32 %v11584_v50, %v11584_v50 }
 0xb44   : > { %v11610_v48 = vmul.f32 %v11596_v7, %v20246_v16  ;;  %v11599_v3 = vmul.f32 %v11585_v25, %v11585_v25  ;;  %v11611_v39 = vmul.f32 %v11597_v49, %v20253_v8 }
 0xb45   : > { %v11618_v57 = vadd.f32 %v11617_v44, %v11605_v46  ;;  %v11601_v17 = vmul.f32 %v20369_v55, %v20369_v55  ;;  %v11600_v41 = vmul.f32 %v11586_v35, %v11586_v35  ;;  %v11612_v24 = vmul.f32 %v11598_v27, %v20262_v15  ;;  %v11687_v15 = vld [vmem:[%s20973_s14 + $0x8] sm:$0xff]  ;;  %v20387_v46 = vpop.permute.xlu0 %11664 }
 0xb46   : > { %v11613_v21 = vmul.f32 %v11599_v3, %v20272_v54 }
 0xb47   : > { %v11619_v62 = vadd.f32 %v11618_v57, %v11606_v37  ;;  %v11615_v2 = vmul.f32 %v11601_v17, %v20269_v23  ;;  %v11614_v47 = vmul.f32 %v11600_v41, %v20279_v28 }
 0xb49   : > { %v11620_v5 = vadd.f32 %v11619_v62, %v11607_v60  ;;  %v11629_v13 = vsel %vm2929_vm6, %v11615_v2, 0.0 }
 0xb4b   : > { %v11622_v9 = vadd.f32 %v11621_v59, %v11620_v5 }
 0xb4d   : > { %v11623_v45 = vadd.f32 %v11622_v9, %v11609_v11 }
 0xb4f   : > { %v11624_v56 = vadd.f32 %v11623_v45, %v11610_v48 }
 0xb51   : > { %v11625_v12 = vadd.f32 %v11624_v56, %v11611_v39 }
 0xb53   : > { %v11626_v6 = vadd.f32 %v11625_v12, %v11612_v24 }
 0xb55   : > { %v11627_v16 = vadd.f32 %v11626_v6, %v11613_v21 }
 0xb57   : > { %v11628_v42 = vadd.f32 %v11627_v16, %v11614_v47 }
 0xb59   : > { %v11630_v8 = vadd.f32 %v11629_v13, %v11628_v42 }
 0xb5b   : > { %11631 = vadd.xlane.f32.xlu1 %v11630_v8 }
 0xb6c   : > { %11669 = vperm.xlu1 %16226, %v11661_v30  }
 0xb70   : > { %11695 = vperm.xlu1 %16226, %v11687_v15  }
 0xbe8   : > { %v11632_v54 = vpop.xlane.xlu1 %11631 }
 0xbe9   : > { %v11633_v23 = vrot.slane %v11632_v54, 4 }
 0xbeb   : > { %v11634_v29 = vadd.f32 %v11633_v23, %v11632_v54 }
 0xbec   : > { %v20389_v44 = vpop.permute.xlu1 %11669 }
 0xbed   : > { %v11635_v28 = vrot.slane %v11634_v29, 2 }
 0xbef   : > { %v11636_v10 = vadd.f32 %v11635_v28, %v11634_v29 }
 0xbf0   : > { %v11696_v48 = vpop.permute.xlu1 %11695 }
 0xbf1   : > { %v11637_v61 = vrot.slane %v11636_v10, 1 }
 0xbf3   : > { %v11638_v34 = vadd.f32 %v11637_v61, %v11636_v10 }
 0xbf5   : > { %16198 = vpush %v11638_v34 }
 0xc26   : > { %s16199_s3 = spop %16198 }
 0xc27   : > { %s11640_s26 = smul.f32 9.245562e-05, %s16199_s3 }
 0xc29   : > { %s11641_s9 = sadd.f32 1e-05, %s11640_s26 }
 0xc2b   : > { %v11642_v36 = vstv %s11641_s9  ;;  %s15208_s9 = sshll.u32 %s21040_s30, 4 }
 0xc2c   : > { %17116 = vrsqrt.f32 %v11642_v36 }
 0xc36   : > { %v17117_v40 = vpop.eup %17116 }
 0xc37   : > { %16200 = vpush %v17117_v40 }
 0xc68   : > { %s16201_s8 = spop %16200 }
 0xc69   : > { %v11645_v37 = vstv %s16201_s8 }
 0xc6a   : > { %v11646_v57 = vmul.f32 %v11645_v37, %v20313_v63  ;;  %v11647_v32 = vmul.f32 %v11645_v37, %v20316_v58  ;;  %v11648_v22 = vmul.f32 %v11645_v37, %v20319_v4  ;;  %v11649_v60 = vmul.f32 %v11645_v37, %v20326_v1 }
 0xc6b   : > { %v11650_v62 = vmul.f32 %v11645_v37, %v20328_v53  ;;  %v11651_v7 = vmul.f32 %v11645_v37, %v20337_v19  ;;  %v11653_v5 = vmul.f32 %v11645_v37, %v20346_v52  ;;  %v11654_v59 = vmul.f32 %v11645_v37, %v20351_v31  ;;  %v11691_v53 = vpop.permute.xlu0 %11690 }
 0xc6c   : > { %v11655_v49 = vmul.f32 %v11645_v37, %v20355_v33  ;;  %v11656_v11 = vmul.f32 %v11645_v37, %v11584_v50  ;;  %v11657_v9 = vmul.f32 %v11645_v37, %v11585_v25  ;;  %v11658_v27 = vmul.f32 %v11645_v37, %v11586_v35 }
 0xc6d   : > { %v11680_v63 = vmul.f32 %v20389_v44, %v11654_v59  ;;  %v11673_v58 = vmul.f32 %v20387_v46, %v11647_v32  ;;  %v11674_v4 = vmul.f32 %v20387_v46, %v11648_v22  ;;  %v11675_v1 = vmul.f32 %v20387_v46, %v11649_v60 }
 0xc6e   : > { %v11681_v19 = vmul.f32 %v20389_v44, %v11655_v49  ;;  %v11676_v52 = vmul.f32 %v20387_v46, %v11650_v62  ;;  %v11672_v31 = vmul.f32 %v20387_v46, %v11646_v57  ;;  %v11679_v33 = vmul.f32 %v20389_v44, %v11653_v5 }
 0xc6f   : > { %v11706_v50 = vadd.f32 %v11696_v48, %v11680_v63  ;;  %v11699_v25 = vadd.f32 %v11691_v53, %v11673_v58  ;;  %v11700_v35 = vadd.f32 %v11691_v53, %v11674_v4  ;;  %v11701_v45 = vadd.f32 %v11691_v53, %v11675_v1  ;;  %v14387_v1 = vld [vmem:[%s20976_s17] sm:$0xff] }
 0xc70   : > { %v11707_v3 = vadd.f32 %v11696_v48, %v11681_v19  ;;  %v11702_v39 = vadd.f32 %v11691_v53, %v11676_v52  ;;  %v11698_v56 = vadd.f32 %v11691_v53, %v11672_v31  ;;  %v11705_v17 = vadd.f32 %v11696_v48, %v11679_v33 }
 0xc71   : > { %v11720_v41 = vmax.f32 %v11706_v50, 0.0  ;;  %v11713_v24 = vmax.f32 %v11699_v25, 0.0  ;;  %v11714_v12 = vmax.f32 %v11700_v35, 0.0  ;;  %v11677_v16 = vmul.f32 %v20387_v46, %v11651_v7 }
 0xc72   : > { %v11721_v21 = vmax.f32 %v11707_v3, 0.0  ;;  %v11712_v6 = vmax.f32 %v11698_v56, 0.0  ;;  %v11719_v2 = vmax.f32 %v11705_v17, 0.0  ;;  %v11684_v42 = vmul.f32 %v20389_v44, %v11658_v27 }
 0xc73   : > { %v20408_v47 = vpack.i.bf16 %v11714_v12, %v11713_v24  ;;  %v11682_v13 = vmul.f32 %v20389_v44, %v11656_v11  ;;  %v11715_v30 = vmax.f32 %v11701_v45, 0.0  ;;  %v11716_v15 = vmax.f32 %v11702_v39, 0.0 }
 0xc74   : > { %v20413_v8 = vpack.i.bf16 %v11721_v21, %v11720_v41  ;;  %v11683_v54 = vmul.f32 %v20389_v44, %v11657_v9  ;;  %v11703_v23 = vadd.f32 %v11691_v53, %v11677_v16  ;;  %v11710_v29 = vadd.f32 %v11696_v48, %v11684_v42 }
 0xc75   : > { %16839 = vrot.lane.b32.xlu0 %v20408_v47, %s21036_s5  ;;  %v11708_v28 = vadd.f32 %v11696_v48, %v11682_v13  ;;  %v20420_v61 = vpack.i.bf16 %v11719_v2, %v11712_v6  ;;  %v20422_v36 = vpack.i.bf16 %v11716_v15, %v11715_v30  ;;  %v11652_v22 = vmul.f32 %v11645_v37, %v20333_v14 }
 0xc76   : > { %16844 = vrot.lane.b32.xlu1 %v20413_v8, %s21036_s5  ;;  %v11709_v10 = vadd.f32 %v11696_v48, %v11683_v54  ;;  %v20424_v40 = vmax.f32 %v11703_v23, 0.0  ;;  %v20426_v57 = vmax.f32 %v11710_v29, 0.0  ;;  %v11659_v60 = vmul.f32 %v11645_v37, %v20369_v55 }
 0xc77   : > { %v11722_v34 = vmax.f32 %v11708_v28, 0.0  ;;  %v11678_v7 = vmul.f32 %v20387_v46, %v11652_v22  ;;  %v20450_v37 = vpack.c.bf16 %v11719_v2, %v11712_v6  ;;  %v20456_v63 = vpack.c.bf16 %v11721_v21, %v11714_v12 }
 0xc78   : > { %v11723_v32 = vmax.f32 %v11709_v10, 0.0  ;;  %v16863_v5 = vpack.i.bf16 %v20426_v57, %v20424_v40  ;;  %v11685_v59 = vmul.f32 %v20389_v44, %v11659_v60  ;;  %v20448_v44 = vpack.c.bf16 %v11720_v41, %v11713_v24 }
 0xc79   : > { %16849 = vrot.lane.b32.xlu0 %v20420_v61, %s21036_s5  ;;  %v11704_v49 = vadd.f32 %v11691_v53, %v11678_v7  ;;  %v20454_v27 = vpack.c.bf16 %v11722_v34, %v11715_v30  ;;  %v15627_v58 = vpack.c.bf16 %v20426_v57, %v20424_v40  ;;  %v14388_v53 = vld [vmem:[%s20976_s17 + $0x8] sm:$0xff] }
 0xc7a   : > { %16854 = vrot.lane.b32.xlu1 %v20422_v36, %s21036_s5  ;;  %v16858_v62 = vpack.i.bf16 %v11723_v32, %v11722_v34  ;;  %v11711_v11 = vadd.f32 %v11696_v48, %v11685_v59  ;;  %v20460_v4 = vpack.c.bf16 %v11723_v32, %v11716_v15 }
 0xc7b   : > { %v11718_v14 = vmax.f32 %v11704_v49, 0.0 }
 0xc7c   : > { %v11725_v9 = vmax.f32 %v11711_v11, 0.0 }
 0xc7d   : > { %16859 = vrot.lane.b32.xlu0 %v16858_v62, %s21036_s5  ;;  %v17098_v46 = vpack.i.bf16 %v11718_v14, %v20424_v40 }
 0xc7e   : > { %16864 = vrot.lane.b32.xlu1 %v16863_v5, %s21036_s5  ;;  %v17103_v55 = vpack.i.bf16 %v11725_v9, %v20426_v57  ;;  %v11727_v9 = vld [vmem:[%s20975_s16 + $0x8] sm:$0xff] }
 0xc81   : > { %16869 = vrot.lane.b32.xlu0 %v20408_v47, %s21037_s27 }
 0xc82   : > { %16874 = vrot.lane.b32.xlu1 %v20413_v8, %s21037_s27 }
 0xc85   : > { %16879 = vrot.lane.b32.xlu0 %v20420_v61, %s21037_s27 }
 0xc86   : > { %16884 = vrot.lane.b32.xlu1 %v20422_v36, %s21037_s27 }
 0xc89   : > { %16889 = vrot.lane.b32.xlu0 %v16858_v62, %s21037_s27 }
 0xc8a   : > { %16894 = vrot.lane.b32.xlu1 %v16863_v5, %s21037_s27 }
 0xc8d   : > { %16899 = vrot.lane.b32.xlu0 %v20408_v47, %s21038_s24 }
 0xc8e   : > { %16904 = vrot.lane.b32.xlu1 %v20413_v8, %s21038_s24 }
 0xc91   : > { %16909 = vrot.lane.b32.xlu0 %v20420_v61, %s21038_s24 }
 0xc92   : > { %16914 = vrot.lane.b32.xlu1 %v20422_v36, %s21038_s24 }
 0xc95   : > { %16919 = vrot.lane.b32.xlu0 %v16858_v62, %s21038_s24 }
 0xc96   : > { %16924 = vrot.lane.b32.xlu1 %v17098_v46, %s21038_s24 }
 0xc99   : > { %16929 = vrot.lane.b32.xlu0 %v17103_v55, %s21038_s24 }
 0xc9a   : > { %16934 = vrot.lane.b32.xlu1 %v20408_v47, %s21027_s7 }
 0xc9d   : > { %16939 = vrot.lane.b32.xlu0 %v20413_v8, %s21027_s7 }
 0xc9e   : > { %16944 = vrot.lane.b32.xlu1 %v20420_v61, %s21027_s7 }
 0xca1   : > { %16949 = vrot.lane.b32.xlu0 %v20422_v36, %s21027_s7 }
 0xca2   : > { %16954 = vrot.lane.b32.xlu1 %v16858_v62, %s21027_s7 }
 0xca5   : > { %16959 = vrot.lane.b32.xlu0 %v17098_v46, %s21027_s7 }
 0xca6   : > { %16964 = vrot.lane.b32.xlu1 %v17103_v55, %s21027_s7 }
 0xca9   : > { %16969 = vrot.lane.b32.xlu0 %v20408_v47, %s21028_s28 }
 0xcaa   : > { %16974 = vrot.lane.b32.xlu1 %v20413_v8, %s21028_s28 }
 0xcad   : > { %16979 = vrot.lane.b32.xlu0 %v20420_v61, %s21028_s28 }
 0xcae   : > { %16984 = vrot.lane.b32.xlu1 %v20422_v36, %s21028_s28 }
 0xcb1   : > { %16989 = vrot.lane.b32.xlu0 %v16858_v62, %s21028_s28 }
 0xcb2   : > { %16994 = vrot.lane.b32.xlu1 %v17098_v46, %s21028_s28 }
 0xcb5   : > { %16999 = vrot.lane.b32.xlu0 %v17103_v55, %s21028_s28 }
 0xcb6   : > { %17004 = vrot.lane.b32.xlu1 %v20408_v47, %s21029_s0 }
 0xcb9   : > { %17009 = vrot.lane.b32.xlu0 %v20413_v8, %s21029_s0 }
 0xcba   : > { %17014 = vrot.lane.b32.xlu1 %v20420_v61, %s21029_s0 }
 0xcbd   : > { %17019 = vrot.lane.b32.xlu0 %v20422_v36, %s21029_s0 }
 0xcbe   : > { %17024 = vrot.lane.b32.xlu1 %v16858_v62, %s21029_s0 }
 0xcc1   : > { %17029 = vrot.lane.b32.xlu0 %v17098_v46, %s21029_s0 }
 0xcc2   : > { %17034 = vrot.lane.b32.xlu1 %v17103_v55, %s21029_s0 }
 0xcc5   : > { %17039 = vrot.lane.b32.xlu0 %v20408_v47, %s21030_s1 }
 0xcc6   : > { %17044 = vrot.lane.b32.xlu1 %v20413_v8, %s21030_s1 }
 0xcc9   : > { %17049 = vrot.lane.b32.xlu0 %v20420_v61, %s21030_s1 }
 0xcca   : > { %17054 = vrot.lane.b32.xlu1 %v20422_v36, %s21030_s1 }
 0xccd   : > { %17059 = vrot.lane.b32.xlu0 %v16858_v62, %s21030_s1 }
 0xcce   : > { %17064 = vrot.lane.b32.xlu1 %v17098_v46, %s21030_s1 }
 0xcd1   : > { %17069 = vrot.lane.b32.xlu0 %v17103_v55, %s21030_s1 }
 0xcd2   : > { %17074 = vrot.lane.b32.xlu1 %v20408_v47, %s21031_s25 }
 0xcd5   : > { %17079 = vrot.lane.b32.xlu0 %v20413_v8, %s21031_s25  ;;  %v15134_v8 = vld [vmem:[%s20975_s16 + $0x10] sm:$0xff] }
 0xcd6   : > { %17084 = vrot.lane.b32.xlu1 %v20420_v61, %s21031_s25  ;;  %v15135_v61 = vld [vmem:[%s20975_s16 + $0x18] sm:$0xff] }
 0xcd9   : > { %17089 = vrot.lane.b32.xlu0 %v20422_v36, %s21031_s25 }
 0xcda   : > { %17094 = vrot.lane.b32.xlu1 %v16858_v62, %s21031_s25  ;;  %v11726_v62 = vld [vmem:[%s20975_s16] sm:$0xff] }
 0xcdd   : > { %17099 = vrot.lane.b32.xlu0 %v17098_v46, %s21031_s25 }
 0xcde   : > { %17104 = vrot.lane.b32.xlu1 %v17103_v55, %s21031_s25 }
 0xce1   : > { %14391 = vperm.xlu0 %16227, %v14387_v1  }
 0xce2   : > { %14396 = vperm.xlu1 %16226, %v14388_v53  }
 0xce7   : > { %v16840_v48 = vpop.permute.xlu0 %16839 }
 0xce8   : > { %v16845_v19 = vpop.permute.xlu1 %16844  ;;  %v16842_v52 = vunpack.i.h.bf16 %v16840_v48  ;;  %v16841_v31 = vunpack.i.l.bf16 %v16840_v48 }
 0xce9   : > { %v16847_v33 = vunpack.i.h.bf16 %v16845_v19  ;;  %v16846_v50 = vunpack.i.l.bf16 %v16845_v19 }
 0xcea   : > { %v11768_v25 = vsel %vm745_vm0, %v16841_v31, %v16842_v52 }
 0xceb   : > { %v16850_v35 = vpop.permute.xlu0 %16849  ;;  %v11773_v45 = vsel %vm745_vm0, %v16846_v50, %v16847_v33 }
 0xcec   : > { %v16855_v3 = vpop.permute.xlu1 %16854  ;;  %v16852_v39 = vunpack.i.h.bf16 %v16850_v35  ;;  %v16851_v56 = vunpack.i.l.bf16 %v16850_v35  ;;  %v15607_v17 = vpack.c.bf16 %v11773_v45, %v11768_v25 }
 0xced   : > { %v16856_v41 = vunpack.i.l.bf16 %v16855_v3  ;;  %v16857_v21 = vunpack.i.h.bf16 %v16855_v3 }
 0xcee   : > { %v11772_v24 = vsel %vm745_vm0, %v16852_v39, %v16846_v50  ;;  %v11767_v12 = vsel %vm745_vm0, %v16851_v56, %v16841_v31  ;;  %15608 = vmatprep.subr.bf16.mxu1 %v15607_v17  ;;  %v15148_v39 = vld [vmem:[%s20975_s16 + $0x20] sm:$0xff] }
 0xcef   : > { %v15609_v6 = vpack.c.bf16 %v11772_v24, %v11767_v12  ;;  %v16860_v2 = vpop.permute.xlu0 %16859  ;;  %v11769_v13 = vsel %vm745_vm0, %v16842_v52, %v16856_v41  ;;  %v11770_v28 = vsel %vm745_vm0, %v16856_v41, %v16857_v21 }
 0xcf0   : > { %v16865_v47 = vpop.permute.xlu1 %16864  ;;  %v16862_v16 = vunpack.i.h.bf16 %v16860_v2  ;;  %v16861_v42 = vunpack.i.l.bf16 %v16860_v2 }
 0xcf1   : > { %15610 = vmatpush1.bf16.msra.mxu1 %v15609_v6  ;;  %v16867_v30 = vunpack.i.h.bf16 %v16865_v47  ;;  %v16866_v15 = vunpack.i.l.bf16 %v16865_v47 }
 0xcf2   : > { %v11774_v54 = vsel %vm745_vm0, %v16847_v33, %v16861_v42  ;;  %v11775_v23 = vsel %vm745_vm0, %v16861_v42, %v16862_v16 }
 0xcf3   : > { %v15613_v29 = vpack.c.bf16 %v11774_v54, %v11769_v13  ;;  %v15611_v10 = vpack.c.bf16 %v11775_v23, %v11770_v28  ;;  %v15615_v34 = vpack.c.bf16 %v16867_v30, %v16866_v15  ;;  %v11771_v36 = vsel %vm745_vm0, %v16857_v21, %v16866_v15  ;;  %v16870_v60 = vpop.permute.xlu0 %16869 }
 0xcf4   : > { %15136 = vmatmul.mubr.msk.f32.vlgmr.msra.gmra.mrb[22].mxu1 %vm4402_vm11, %v15134_v8  ;;  %v11776_v32 = vsel %vm745_vm0, %v16862_v16, %v16867_v30  ;;  %v16875_v7 = vpop.permute.xlu1 %16874  ;;  %v16872_v11 = vunpack.i.h.bf16 %v16870_v60  ;;  %v16871_v14 = vunpack.i.l.bf16 %v16870_v60  ;;  %v15149_v16 = vld [vmem:[%s20975_s16 + $0x28] sm:$0xff] }
 0xcf5   : > { %11865 = vmatprep.mubr.f32.mxu1 %v17128_v0  ;;  %15612 = vmatprep.subr.bf16.mxu1 %v15611_v10  ;;  %v15617_v22 = vpack.c.bf16 %v11776_v32, %v11771_v36  ;;  %v16877_v59 = vunpack.i.h.bf16 %v16875_v7  ;;  %v16876_v49 = vunpack.i.l.bf16 %v16875_v7 }
 0xcf6   : > { %15614 = vmatpush1.bf16.msra.mxu1 %v15613_v29  ;;  %v12291_v55 = vsel %vm1434_vm3, %v16871_v14, %v16872_v11 }
 0xcf7   : > { %15616 = vmatprep.subr.bf16.mxu1 %v15615_v34  ;;  %v16880_v5 = vpop.permute.xlu0 %16879  ;;  %v12296_v46 = vsel %vm1434_vm3, %v16876_v49, %v16877_v59 }
 0xcf8   : > { %15137 = vmatmul.mubr.msk.f32.gmra.mrb[24].mxu1 %vm4402_vm11, %v15135_v61  ;;  %v15631_v1 = vpack.c.bf16 %v12296_v46, %v12291_v55 }
 0xcf9   : > { %11936 = vmatprep.mubr.f32.mxu1 %v17128_v0 }
 0xcfc   : > { %15138 = vmatmul.mubr.msk.f32.vlgmr.msra.gmra.mrb[26].mxu1 %vm4402_vm11, %v15134_v8 }
 0xcfd   : > { %15618 = vmatpush1.bf16.msra.mxu1 %v15617_v22  ;;  %11942 = vmatprep.mubr.f32.mxu1 %v17128_v0 }
 0xcfe   : > { %15620 = vmatprep.subr.bf16.mxu1 %v20448_v44  ;;  %v16890_v44 = vpop.permute.xlu0 %16889 }
 0xcff   : > { %v16892_v53 = vunpack.i.h.bf16 %v16890_v44  ;;  %v16891_v48 = vunpack.i.l.bf16 %v16890_v44 }
 0xd00   : > { %15139 = vmatmul.mubr.msk.f32.gmra.mrb[28].mxu1 %vm4402_vm11, %v15135_v61 }
 0xd01   : > { %12013 = vmatprep.mubr.f32.mxu1 %v17128_v0  ;;  %v12298_v52 = vsel %vm1434_vm3, %v16891_v48, %v16892_v53  ;;  %v12297_v3 = vsel %vm1434_vm3, %v16877_v59, %v16891_v48 }
 0xd02   : > { %v20594_v25 = vpop.permute.xlu0 %16899 }
 0xd03   : > { %v16902_v2 = vunpack.i.h.bf16 %v20594_v25  ;;  %v16901_v47 = vunpack.i.l.bf16 %v20594_v25 }
 0xd04   : > { %15140 = vmatmul.mubr.msk.f32.vlgmr.msra.gmra.mrb[30].mxu1 %vm4402_vm11, %v15134_v8 }
 0xd05   : > { %15622 = vmatpush1.bf16.msra.mxu1 %v20450_v37  ;;  %12019 = vmatprep.mubr.f32.mxu1 %v17128_v0  ;;  %v16885_v37 = vpop.permute.xlu1 %16884  ;;  %v12595_v8 = vsel %vm1807_vm5, %v16901_v47, %v16902_v2 }
 0xd06   : > { %15624 = vmatprep.subr.bf16.mxu1 %v20454_v27  ;;  %v16882_v27 = vunpack.i.h.bf16 %v16880_v5  ;;  %v16887_v40 = vunpack.i.h.bf16 %v16885_v37  ;;  %v16886_v57 = vunpack.i.l.bf16 %v16885_v37  ;;  %v16910_v12 = vpop.permute.xlu0 %16909 }
 0xd07   : > { %v16912_v29 = vunpack.i.h.bf16 %v16910_v12  ;;  %v16911_v28 = vunpack.i.l.bf16 %v16910_v12 }
 0xd08   : > { %15141 = vmatmul.mubr.msk.f32.gmra.mrb[32].mxu1 %vm4402_vm11, %v15135_v61  ;;  %v12293_v33 = vsel %vm1434_vm3, %v16886_v57, %v16887_v40  ;;  %v12292_v56 = vsel %vm1434_vm3, %v16872_v11, %v16886_v57 }
 0xd09   : > { %12096 = vmatprep.mubr.f32.mxu1 %v17128_v0  ;;  %v16895_v50 = vpop.permute.xlu1 %16894  ;;  %v15637_v41 = vpack.c.bf16 %v12297_v3, %v12292_v56  ;;  %v12594_v60 = vsel %vm1807_vm5, %v16911_v28, %v16901_v47 }
 0xd0a   : > { %v16897_v35 = vunpack.i.h.bf16 %v16895_v50  ;;  %v16896_v45 = vunpack.i.l.bf16 %v16895_v50  ;;  %v16920_v54 = vpop.permute.xlu0 %16919 }
 0xd0b   : > { %v16922_v61 = vunpack.i.h.bf16 %v16920_v54  ;;  %v16921_v34 = vunpack.i.l.bf16 %v16920_v54 }
 0xd0c   : > { %15142 = vmatmul.mubr.msk.f32.vlgmr.msra.gmra.mrb[22].mxu1 %vm4402_vm11, %v11726_v62  ;;  %v15639_v24 = vpack.c.bf16 %v16897_v35, %v16896_v45  ;;  %v12294_v42 = vsel %vm1434_vm3, %v16887_v40, %v16896_v45  ;;  %v12299_v13 = vsel %vm1434_vm3, %v16892_v53, %v16897_v35 }
 0xd0d   : > { %15626 = vmatpush1.bf16.msra.mxu1 %v20456_v63  ;;  %12102 = vmatprep.mubr.f32.mxu1 %v17128_v0  ;;  %v16881_v63 = vunpack.i.l.bf16 %v16880_v5  ;;  %v16905_v17 = vpop.permute.xlu1 %16904  ;;  %v15641_v23 = vpack.c.bf16 %v12299_v13, %v12294_v42  ;;  %v12603_v7 = vsel %vm1807_vm5, %v16921_v34, %v16922_v61 }
 0xd0e   : > { %15628 = vmatprep.subr.bf16.mxu1 %v15627_v58  ;;  %v12295_v58 = vsel %vm1434_vm3, %v16882_v27, %v16876_v49  ;;  %v16907_v21 = vunpack.i.h.bf16 %v16905_v17  ;;  %v16906_v6 = vunpack.i.l.bf16 %v16905_v17  ;;  %v16930_v5 = vpop.permute.xlu0 %16929  ;;  %v15156_v27 = vld [vmem:[%s20975_s16 + $0x30] sm:$0xff] }
 0xd0f   : > { %v12290_v19 = vsel %vm1434_vm3, %v16881_v63, %v16871_v14  ;;  %v16932_v14 = vunpack.i.h.bf16 %v16930_v5 }
 0xd10   : > { %15143 = vmatmul.mubr.msk.f32.gmra.mrb[24].mxu1 %vm4402_vm11, %v11727_v9  ;;  %v15633_v31 = vpack.c.bf16 %v12295_v58, %v12290_v19  ;;  %v12601_v30 = vsel %vm1807_vm5, %v16906_v6, %v16907_v21  ;;  %v12600_v22 = vsel %vm1807_vm5, %v16912_v29, %v16906_v6  ;;  %v12602_v37 = vsel %vm1807_vm5, %v16907_v21, %v16921_v34 }
 0xd11   : > { %12173 = vmatprep.mubr.f32.mxu1 %v17128_v0  ;;  %v16915_v15 = vpop.permute.xlu1 %16914  ;;  %v15643_v10 = vpack.c.bf16 %v12601_v30, %v12595_v8  ;;  %v15645_v59 = vpack.c.bf16 %v12600_v22, %v12594_v60 }
 0xd12   : > { %v16917_v36 = vunpack.i.h.bf16 %v16915_v15  ;;  %v16916_v32 = vunpack.i.l.bf16 %v16915_v15  ;;  %v16940_v53 = vpop.permute.xlu0 %16939 }
 0xd13   : > { %v16942_v19 = vunpack.i.h.bf16 %v16940_v53 }
 0xd14   : > { %15144 = vmatmul.mubr.msk.f32.vlgmr.msra.gmra.mrb[26].mxu1 %vm4402_vm11, %v11726_v62  ;;  %v12597_v49 = vsel %vm1807_vm5, %v16916_v32, %v16917_v36 }
 0xd15   : > { %15630 = vmatpush1.bf16.msra.mxu1 %v20460_v4  ;;  %12179 = vmatprep.mubr.f32.mxu1 %v17128_v0  ;;  %v15635_v4 = vpack.c.bf16 %v12298_v52, %v12293_v33  ;;  %v15647_v11 = vpack.c.bf16 %v12603_v7, %v12597_v49  ;;  %v16941_v52 = vunpack.i.l.bf16 %v16940_v53 }
 0xd16   : > { %15632 = vmatprep.subr.bf16.mxu1 %v15631_v1  ;;  %v12596_v1 = vsel %vm1807_vm5, %v16902_v2, %v16916_v32  ;;  %v16950_v3 = vpop.permute.xlu0 %16949  ;;  %v15164_v32 = vld [vmem:[%s20975_s16 + $0x40] sm:$0xff] }
 0xd17   : > { %v15649_v48 = vpack.c.bf16 %v12602_v37, %v12596_v1  ;;  %v12905_v25 = vsel %vm2180_vm8, %v16941_v52, %v16942_v19  ;;  %v16952_v6 = vunpack.i.h.bf16 %v16950_v3  ;;  %v16951_v2 = vunpack.i.l.bf16 %v16950_v3 }
 0xd18   : > { %15145 = vmatmul.mubr.msk.f32.gmra.mrb[28].mxu1 %vm4402_vm11, %v11727_v9 }
 0xd19   : > { %12250 = vmatprep.mubr.f32.mxu1 %v17128_v0  ;;  %v12901_v13 = vsel %vm2180_vm8, %v16951_v2, %v16952_v6 }
 0xd1a   : > { %v16960_v42 = vpop.permute.xlu0 %16959 }
 0xd1b   : > { %v16962_v28 = vunpack.i.h.bf16 %v16960_v42 }
 0xd1c   : > { %15146 = vmatmul.mubr.msk.f32.vlgmr.msra.gmra.mrb[30].mxu1 %vm4402_vm11, %v11726_v62  ;;  %v16925_v62 = vpop.permute.xlu1 %16924 }
 0xd1d   : > { %15634 = vmatpush1.bf16.msra.mxu1 %v15633_v31  ;;  %12256 = vmatprep.mubr.f32.mxu1 %v17128_v0  ;;  %v16927_v46 = vunpack.i.h.bf16 %v16925_v62  ;;  %v16926_v44 = vunpack.i.l.bf16 %v16925_v62  ;;  %v15157_v31 = vld [vmem:[%s20975_s16 + $0x38] sm:$0xff] }
 0xd1e   : > { %15636 = vmatprep.subr.bf16.mxu1 %v15635_v4 }
 0xd1f   : > { %v12599_v40 = vsel %vm1807_vm5, %v16926_v44, %v16927_v46  ;;  %v12598_v35 = vsel %vm1807_vm5, %v16917_v36, %v16926_v44 }
 0xd20   : > { %15147 = vmatmul.mubr.msk.f32.gmra.mrb[32].mxu1 %vm4402_vm11, %v11727_v9  ;;  %v16931_v9 = vunpack.i.l.bf16 %v16930_v5  ;;  %v20626_v55 = vpop.permute.xlu1 %16934 }
 0xd21   : > { %12382 = vmatprep.mubr.f32.mxu1 %v17128_v0  ;;  %v16937_v33 = vunpack.i.h.bf16 %v20626_v55  ;;  %v16936_v50 = vunpack.i.l.bf16 %v20626_v55  ;;  %v15165_v55 = vld [vmem:[%s20975_s16 + $0x48] sm:$0xff] }
 0xd22   : > { %v12605_v63 = vsel %vm1807_vm5, %v16931_v9, %v16932_v14  ;;  %v12604_v4 = vsel %vm1807_vm5, %v16922_v61, %v16931_v9  ;;  %v20660_v61 = vpop.permute.xlu0 %16969 }
 0xd23   : > { %v15651_v58 = vpack.c.bf16 %v12605_v63, %v12599_v40  ;;  %v12899_v56 = vsel %vm2180_vm8, %v16936_v50, %v16937_v33  ;;  %v12900_v36 = vsel %vm2180_vm8, %v16937_v33, %v16951_v2  ;;  %v16972_v14 = vunpack.i.h.bf16 %v20660_v61 }
 0xd24   : > { %15150 = vmatmul.mubr.msk.f32.vlgmr.msra.gmra.mrb[22].mxu1 %vm4402_vm11, %v15148_v39  ;;  %v16945_v57 = vpop.permute.xlu1 %16944  ;;  %v16971_v9 = vunpack.i.l.bf16 %v20660_v61 }
 0xd25   : > { %15638 = vmatpush1.bf16.msra.mxu1 %v15637_v41  ;;  %12388 = vmatprep.mubr.f32.mxu1 %v17128_v0  ;;  %v16947_v17 = vunpack.i.h.bf16 %v16945_v57  ;;  %v16946_v41 = vunpack.i.l.bf16 %v16945_v57 }
 0xd26   : > { %15640 = vmatprep.subr.bf16.mxu1 %v15639_v24  ;;  %v15655_v24 = vpack.c.bf16 %v12905_v25, %v12899_v56  ;;  %v16980_v5 = vpop.permute.xlu0 %16979  ;;  %v13203_v37 = vsel %vm2553_vm4, %v16971_v9, %v16972_v14 }
 0xd27   : > { %v12898_v47 = vsel %vm2180_vm8, %v16946_v41, %v16936_v50  ;;  %v16981_v40 = vunpack.i.l.bf16 %v16980_v5 }
 0xd28   : > { %15151 = vmatmul.mubr.msk.f32.gmra.mrb[24].mxu1 %vm4402_vm11, %v15149_v16  ;;  %v16955_v45 = vpop.permute.xlu1 %16954 }
 0xd29   : > { %12459 = vmatprep.mubr.f32.mxu1 %v17128_v0  ;;  %v16957_v12 = vunpack.i.h.bf16 %v16955_v45  ;;  %v16956_v21 = vunpack.i.l.bf16 %v16955_v45  ;;  %v13202_v50 = vsel %vm2553_vm4, %v16981_v40, %v16971_v9 }
 0xd2a   : > { %v16990_v1 = vpop.permute.xlu0 %16989 }
 0xd2b   : > { %v12907_v8 = vsel %vm2180_vm8, %v16956_v21, %v16957_v12  ;;  %v12906_v34 = vsel %vm2180_vm8, %v16942_v19, %v16956_v21  ;;  %v16991_v19 = vunpack.i.l.bf16 %v16990_v1 }
 0xd2c   : > { %15152 = vmatmul.mubr.msk.f32.vlgmr.msra.gmra.mrb[26].mxu1 %vm4402_vm11, %v15148_v39  ;;  %v16965_v30 = vpop.permute.xlu1 %16964  ;;  %v15659_v54 = vpack.c.bf16 %v12907_v8, %v12901_v13  ;;  %v15661_v7 = vpack.c.bf16 %v12906_v34, %v12900_v36 }
 0xd2d   : > { %15642 = vmatpush1.bf16.msra.mxu1 %v15641_v23  ;;  %12465 = vmatprep.mubr.f32.mxu1 %v17128_v0  ;;  %v16967_v23 = vunpack.i.h.bf16 %v16965_v30  ;;  %v16966_v29 = vunpack.i.l.bf16 %v16965_v30 }
 0xd2e   : > { %15644 = vmatprep.subr.bf16.mxu1 %v15643_v10  ;;  %v16961_v10 = vunpack.i.l.bf16 %v16960_v42 }
 0xd2f   : > { %v12909_v60 = vsel %vm2180_vm8, %v16966_v29, %v16967_v23  ;;  %v12908_v46 = vsel %vm2180_vm8, %v16957_v12, %v16966_v29  ;;  %v15173_v23 = vld [vmem:[%s20975_s16 + $0x58] sm:$0xff] }
 0xd30   : > { %15153 = vmatmul.mubr.msk.f32.gmra.mrb[28].mxu1 %vm4402_vm11, %v15149_v16  ;;  %v12903_v22 = vsel %vm2180_vm8, %v16961_v10, %v16962_v28  ;;  %v16975_v62 = vpop.permute.xlu1 %16974  ;;  %v12902_v44 = vsel %vm2180_vm8, %v16952_v6, %v16961_v10  ;;  %v15172_v6 = vld [vmem:[%s20975_s16 + $0x50] sm:$0xff] }
 0xd31   : > { %12536 = vmatprep.mubr.f32.mxu1 %v17128_v0  ;;  %v16977_v49 = vunpack.i.h.bf16 %v16975_v62  ;;  %v15665_v53 = vpack.c.bf16 %v12908_v46, %v12902_v44 }
 0xd33   : > { %v13210_v21 = vsel %vm2553_vm4, %v16977_v49, %v16991_v19 }
 0xd34   : > { %15154 = vmatmul.mubr.msk.f32.vlgmr.msra.gmra.mrb[30].mxu1 %vm4402_vm11, %v15148_v39  ;;  %v15653_v39 = vpack.c.bf16 %v12604_v4, %v12598_v35  ;;  %v16985_v63 = vpop.permute.xlu1 %16984  ;;  %v17000_v35 = vpop.permute.xlu0 %16999 }
 0xd35   : > { %15646 = vmatpush1.bf16.msra.mxu1 %v15645_v59  ;;  %12542 = vmatprep.mubr.f32.mxu1 %v17128_v0  ;;  %v15663_v59 = vpack.c.bf16 %v12909_v60, %v12903_v22  ;;  %v17002_v56 = vunpack.i.h.bf16 %v17000_v35 }
 0xd36   : > { %15648 = vmatprep.subr.bf16.mxu1 %v15647_v11  ;;  %v16976_v11 = vunpack.i.l.bf16 %v16975_v62 }
 0xd38   : > { %15155 = vmatmul.mubr.msk.f32.gmra.mrb[32].mxu1 %vm4402_vm11, %v15149_v16  ;;  %v12904_v16 = vsel %vm2180_vm8, %v16947_v17, %v16941_v52  ;;  %v16987_v52 = vunpack.i.h.bf16 %v16985_v63  ;;  %v16995_v4 = vpop.permute.xlu1 %16994  ;;  %v17001_v17 = vunpack.i.l.bf16 %v17000_v35 }
 0xd39   : > { %12688 = vmatprep.mubr.f32.mxu1 %v17128_v0  ;;  %v15657_v15 = vpack.c.bf16 %v12904_v16, %v12898_v47  ;;  %v16996_v12 = vunpack.i.l.bf16 %v16995_v4  ;;  %v17010_v16 = vpop.permute.xlu0 %17009 }
 0xd3a   : > { %v13213_v2 = vsel %vm2553_vm4, %v17001_v17, %v17002_v56 }
 0xd3b   : > { %v13206_v34 = vsel %vm2553_vm4, %v16987_v52, %v16996_v12 }
 0xd3c   : > { %15158 = vmatmul.mubr.msk.f32.vlgmr.msra.gmra.mrb[22].mxu1 %vm4402_vm11, %v15156_v27  ;;  %v20694_v41 = vpop.permute.xlu1 %17004 }
 0xd3d   : > { %15650 = vmatpush1.bf16.msra.mxu1 %v15649_v48  ;;  %12694 = vmatprep.mubr.f32.mxu1 %v17128_v0  ;;  %v16982_v48 = vunpack.i.h.bf16 %v16980_v5  ;;  %v17007_v29 = vunpack.i.h.bf16 %v20694_v41  ;;  %v17006_v28 = vunpack.i.l.bf16 %v20694_v41  ;;  %v15181_v41 = vld [vmem:[%s20975_s16 + $0x68] sm:$0xff] }
 0xd3e   : > { %15652 = vmatprep.subr.bf16.mxu1 %v15651_v58  ;;  %v16992_v58 = vunpack.i.h.bf16 %v16990_v1 }
 0xd3f   : > { %v13208_v33 = vsel %vm2553_vm4, %v16982_v48, %v16976_v11  ;;  %v13507_v60 = vsel %vm2929_vm6, %v17006_v28, %v17007_v29 }
 0xd40   : > { %15159 = vmatmul.mubr.msk.f32.gmra.mrb[24].mxu1 %vm4402_vm11, %v15157_v31  ;;  %v13211_v25 = vsel %vm2553_vm4, %v16991_v19, %v16992_v58  ;;  %v15669_v45 = vpack.c.bf16 %v13208_v33, %v13202_v50  ;;  %v17015_v8 = vpop.permute.xlu1 %17014  ;;  %v13212_v10 = vsel %vm2553_vm4, %v16992_v58, %v17001_v17 }
 0xd41   : > { %12765 = vmatprep.mubr.f32.mxu1 %v17128_v0  ;;  %v15677_v22 = vpack.c.bf16 %v13212_v10, %v13206_v34  ;;  %v17017_v62 = vunpack.i.h.bf16 %v17015_v8 }
 0xd44   : > { %15160 = vmatmul.mubr.msk.f32.vlgmr.msra.gmra.mrb[26].mxu1 %vm4402_vm11, %v15156_v27  ;;  %v17025_v36 = vpop.permute.xlu1 %17024 }
 0xd45   : > { %15654 = vmatpush1.bf16.msra.mxu1 %v15653_v39  ;;  %12771 = vmatprep.mubr.f32.mxu1 %v17128_v0 }
 0xd46   : > { %15656 = vmatprep.subr.bf16.mxu1 %v15655_v24  ;;  %v16997_v24 = vunpack.i.h.bf16 %v16995_v4 }
 0xd48   : > { %15161 = vmatmul.mubr.msk.f32.gmra.mrb[28].mxu1 %vm4402_vm11, %v15157_v31  ;;  %v13207_v13 = vsel %vm2553_vm4, %v16996_v12, %v16997_v24 }
 0xd49   : > { %12842 = vmatprep.mubr.f32.mxu1 %v17128_v0  ;;  %v15675_v30 = vpack.c.bf16 %v13213_v2, %v13207_v13 }
 0xd4c   : > { %15162 = vmatmul.mubr.msk.f32.vlgmr.msra.gmra.mrb[30].mxu1 %vm4402_vm11, %v15156_v27  ;;  %v13209_v27 = vsel %vm2553_vm4, %v16976_v11, %v16977_v49  ;;  %v17026_v49 = vunpack.i.l.bf16 %v17025_v36 }
 0xd4d   : > { %15658 = vmatpush1.bf16.msra.mxu1 %v15657_v15  ;;  %12848 = vmatprep.mubr.f32.mxu1 %v17128_v0  ;;  %v15667_v57 = vpack.c.bf16 %v13209_v27, %v13203_v37  ;;  %v17012_v15 = vunpack.i.h.bf16 %v17010_v16  ;;  %v17035_v27 = vpop.permute.xlu1 %17034 }
 0xd4e   : > { %15660 = vmatprep.subr.bf16.mxu1 %v15659_v54  ;;  %v17011_v54 = vunpack.i.l.bf16 %v17010_v16  ;;  %v17036_v48 = vunpack.i.l.bf16 %v17035_v27 }
 0xd4f   : > { %v13514_v19 = vsel %vm2929_vm6, %v17012_v15, %v17026_v49 }
 0xd50   : > { %15163 = vmatmul.mubr.msk.f32.gmra.mrb[32].mxu1 %vm4402_vm11, %v15157_v31  ;;  %v16986_v31 = vunpack.i.l.bf16 %v16985_v63  ;;  %v13513_v61 = vsel %vm2929_vm6, %v17011_v54, %v17012_v15 }
 0xd51   : > { %12992 = vmatprep.mubr.f32.mxu1 %v17128_v0  ;;  %v15679_v5 = vpack.c.bf16 %v13513_v61, %v13507_v60  ;;  %v17045_v4 = vpop.permute.xlu1 %17044 }
 0xd52   : > { %v13205_v3 = vsel %vm2553_vm4, %v16986_v31, %v16987_v52  ;;  %v13204_v47 = vsel %vm2553_vm4, %v16972_v14, %v16986_v31  ;;  %v15180_v31 = vld [vmem:[%s20975_s16 + $0x60] sm:$0xff] }
 0xd53   : > { %v15671_v39 = vpack.c.bf16 %v13211_v25, %v13205_v3  ;;  %v15673_v42 = vpack.c.bf16 %v13210_v21, %v13204_v47  ;;  %v17047_v3 = vunpack.i.h.bf16 %v17045_v4 }
 0xd54   : > { %15166 = vmatmul.mubr.msk.f32.vlgmr.msra.gmra.mrb[22].mxu1 %vm4402_vm11, %v15164_v32 }
 0xd55   : > { %15662 = vmatpush1.bf16.msra.mxu1 %v15661_v7  ;;  %12998 = vmatprep.mubr.f32.mxu1 %v17128_v0  ;;  %v17016_v7 = vunpack.i.l.bf16 %v17015_v8  ;;  %v17055_v2 = vpop.permute.xlu1 %17054 }
 0xd56   : > { %15664 = vmatprep.subr.bf16.mxu1 %v15663_v59  ;;  %v17027_v59 = vunpack.i.h.bf16 %v17025_v36 }
 0xd57   : > { %v13506_v9 = vsel %vm2929_vm6, %v17016_v7, %v17006_v28 }
 0xd58   : > { %15167 = vmatmul.mubr.msk.f32.gmra.mrb[24].mxu1 %vm4402_vm11, %v15165_v55  ;;  %v13515_v37 = vsel %vm2929_vm6, %v17026_v49, %v17027_v59  ;;  %v13516_v24 = vsel %vm2929_vm6, %v17027_v59, %v17036_v48 }
 0xd59   : > { %13069 = vmatprep.mubr.f32.mxu1 %v17128_v0  ;;  %v17065_v10 = vpop.permute.xlu1 %17064 }
 0xd5a   : > { %v17066_v59 = vunpack.i.l.bf16 %v17065_v10 }
 0xd5c   : > { %15168 = vmatmul.mubr.msk.f32.vlgmr.msra.gmra.mrb[26].mxu1 %vm4402_vm11, %v15164_v32 }
 0xd5d   : > { %15666 = vmatpush1.bf16.msra.mxu1 %v15665_v53  ;;  %13075 = vmatprep.mubr.f32.mxu1 %v17128_v0  ;;  %v17037_v53 = vunpack.i.h.bf16 %v17035_v27  ;;  %v20762_v7 = vpop.permute.xlu1 %17074 }
 0xd5e   : > { %15668 = vmatprep.subr.bf16.mxu1 %v15667_v57 }
 0xd5f   : > { %v13517_v50 = vsel %vm2929_vm6, %v17036_v48, %v17037_v53  ;;  %v15189_v53 = vld [vmem:[%s20975_s16 + $0x78] sm:$0xff]  ;;  %v17077_v48 = vunpack.i.h.bf16 %v20762_v7 }
 0xd60   : > { %15169 = vmatmul.mubr.msk.f32.gmra.mrb[28].mxu1 %vm4402_vm11, %v15165_v55 }
 0xd61   : > { %13146 = vmatprep.mubr.f32.mxu1 %v17128_v0 }
 0xd64   : > { %15170 = vmatmul.mubr.msk.f32.vlgmr.msra.gmra.mrb[30].mxu1 %vm4402_vm11, %v15164_v32  ;;  %v17020_v32 = vpop.permute.xlu0 %17019 }
 0xd65   : > { %15670 = vmatpush1.bf16.msra.mxu1 %v15669_v45  ;;  %13152 = vmatprep.mubr.f32.mxu1 %v17128_v0  ;;  %v17022_v11 = vunpack.i.h.bf16 %v17020_v32  ;;  %v17021_v14 = vunpack.i.l.bf16 %v17020_v32 }
 0xd66   : > { %15672 = vmatprep.subr.bf16.mxu1 %v15671_v39  ;;  %v17046_v39 = vunpack.i.l.bf16 %v17045_v4 }
 0xd67   : > { %v13509_v44 = vsel %vm2929_vm6, %v17021_v14, %v17022_v11  ;;  %v13508_v52 = vsel %vm2929_vm6, %v17007_v29, %v17021_v14 }
 0xd68   : > { %15171 = vmatmul.mubr.msk.f32.gmra.mrb[32].mxu1 %vm4402_vm11, %v15165_v55  ;;  %v13512_v55 = vsel %vm2929_vm6, %v17017_v62, %v17011_v54  ;;  %v17030_v46 = vpop.permute.xlu0 %17029  ;;  %v15683_v1 = vpack.c.bf16 %v13515_v37, %v13509_v44  ;;  %v15685_v25 = vpack.c.bf16 %v13514_v19, %v13508_v52  ;;  %v17057_v54 = vunpack.i.h.bf16 %v17055_v2  ;;  %v17085_v37 = vpop.permute.xlu1 %17084 }
 0xd69   : > { %13296 = vmatprep.mubr.f32.mxu1 %v17128_v0  ;;  %v15681_v63 = vpack.c.bf16 %v13512_v55, %v13506_v9  ;;  %v17032_v40 = vunpack.i.h.bf16 %v17030_v46  ;;  %v17031_v57 = vunpack.i.l.bf16 %v17030_v46  ;;  %v17087_v4 = vunpack.i.h.bf16 %v17085_v37 }
 0xd6a   : > { %v13814_v19 = vsel %vm3305_vm7, %v17057_v54, %v17066_v59 }
 0xd6b   : > { %v13511_v33 = vsel %vm2929_vm6, %v17031_v57, %v17032_v40  ;;  %v13510_v12 = vsel %vm2929_vm6, %v17022_v11, %v17031_v57  ;;  %v15188_v11 = vld [vmem:[%s20975_s16 + $0x70] sm:$0xff]  ;;  %v17076_v40 = vunpack.i.l.bf16 %v20762_v7 }
 0xd6c   : > { %15174 = vmatmul.mubr.msk.f32.vlgmr.msra.gmra.mrb[22].mxu1 %vm4402_vm11, %v15172_v6  ;;  %v20728_v58 = vpop.permute.xlu0 %17039  ;;  %v15687_v45 = vpack.c.bf16 %v13517_v50, %v13511_v33  ;;  %v15689_v16 = vpack.c.bf16 %v13516_v24, %v13510_v12  ;;  %v17095_v52 = vpop.permute.xlu1 %17094 }
 0xd6d   : > { %15674 = vmatpush1.bf16.msra.mxu1 %v15673_v42  ;;  %13302 = vmatprep.mubr.f32.mxu1 %v17128_v0  ;;  %v17042_v56 = vunpack.i.h.bf16 %v20728_v58  ;;  %v17041_v17 = vunpack.i.l.bf16 %v20728_v58  ;;  %v14115_v50 = vsel %vm3681_vm9, %v17076_v40, %v17077_v48 }
 0xd6e   : > { %15676 = vmatprep.subr.bf16.mxu1 %v15675_v30 }
 0xd6f   : > { %v13811_v21 = vsel %vm3305_vm7, %v17041_v17, %v17042_v56 }
 0xd70   : > { %15175 = vmatmul.mubr.msk.f32.gmra.mrb[24].mxu1 %vm4402_vm11, %v15173_v23  ;;  %v17050_v35 = vpop.permute.xlu0 %17049 }
 0xd71   : > { %13373 = vmatprep.mubr.f32.mxu1 %v17128_v0  ;;  %v17052_v42 = vunpack.i.h.bf16 %v17050_v35  ;;  %v17051_v13 = vunpack.i.l.bf16 %v17050_v35 }
 0xd73   : > { %v13816_v29 = vsel %vm3305_vm7, %v17052_v42, %v17046_v39  ;;  %v13810_v28 = vsel %vm3305_vm7, %v17051_v13, %v17041_v17 }
 0xd74   : > { %15176 = vmatmul.mubr.msk.f32.vlgmr.msra.gmra.mrb[26].mxu1 %vm4402_vm11, %v15172_v6  ;;  %v17060_v47 = vpop.permute.xlu0 %17059  ;;  %v15693_v36 = vpack.c.bf16 %v13816_v29, %v13810_v28 }
 0xd75   : > { %15678 = vmatpush1.bf16.msra.mxu1 %v15677_v22  ;;  %13379 = vmatprep.mubr.f32.mxu1 %v17128_v0  ;;  %v17062_v30 = vunpack.i.h.bf16 %v17060_v47  ;;  %v17061_v15 = vunpack.i.l.bf16 %v17060_v47 }
 0xd76   : > { %15680 = vmatprep.subr.bf16.mxu1 %v15679_v5  ;;  %v17067_v5 = vunpack.i.h.bf16 %v17065_v10 }
 0xd77   : > { %v13819_v61 = vsel %vm3305_vm7, %v17061_v15, %v17062_v30  ;;  %v13818_v49 = vsel %vm3305_vm7, %v17047_v3, %v17061_v15 }
 0xd78   : > { %15177 = vmatmul.mubr.msk.f32.gmra.mrb[28].mxu1 %vm4402_vm11, %v15173_v23  ;;  %v17070_v34 = vpop.permute.xlu0 %17069  ;;  %v13815_v44 = vsel %vm3305_vm7, %v17066_v59, %v17067_v5 }
 0xd79   : > { %13450 = vmatprep.mubr.f32.mxu1 %v17128_v0  ;;  %v17072_v60 = vunpack.i.h.bf16 %v17070_v34  ;;  %v17071_v62 = vunpack.i.l.bf16 %v17070_v34 }
 0xd7b   : > { %v13821_v14 = vsel %vm3305_vm7, %v17071_v62, %v17072_v60  ;;  %v13820_v57 = vsel %vm3305_vm7, %v17062_v30, %v17071_v62  ;;  %v14411_v62 = vld [vmem:[%s20979_s20] sm:$0x3f] }
 0xd7c   : > { %15178 = vmatmul.mubr.msk.f32.vlgmr.msra.gmra.mrb[30].mxu1 %vm4402_vm11, %v15172_v6  ;;  %v13817_v6 = vsel %vm3305_vm7, %v17046_v39, %v17047_v3  ;;  %v17080_v55 = vpop.permute.xlu0 %17079  ;;  %v15699_v27 = vpack.c.bf16 %v13821_v14, %v13815_v44  ;;  %v15701_v33 = vpack.c.bf16 %v13820_v57, %v13814_v19  ;;  %v17096_v3 = vunpack.i.l.bf16 %v17095_v52 }
 0xd7d   : > { %15682 = vmatpush1.bf16.msra.mxu1 %v15681_v63  ;;  %13456 = vmatprep.mubr.f32.mxu1 %v17128_v0  ;;  %v15691_v8 = vpack.c.bf16 %v13817_v6, %v13811_v21  ;;  %v17082_v63 = vunpack.i.h.bf16 %v17080_v55  ;;  %v17105_v21 = vpop.permute.xlu1 %17104  ;;  %v20832_v14 = vrot.slane %v14411_v62, %v18041_v43  ;;  %v20846_v43 = vrot.slane %v14411_v62, %v18053_v26 }
 0xd7e   : > { %15684 = vmatprep.subr.bf16.mxu1 %v15683_v1  ;;  %v17081_v1 = vunpack.i.l.bf16 %v17080_v55  ;;  %v17106_v42 = vunpack.i.l.bf16 %v17105_v21  ;;  %v20850_v57 = vrot.slane %v14411_v62, %v18070_v38  ;;  %v20853_v19 = vrot.slane %v14411_v62, %v18080_v51 }
 0xd7f   : > { %v14122_v30 = vsel %vm3681_vm9, %v17082_v63, %v17096_v3 }
 0xd80   : > { %15179 = vmatmul.mubr.msk.f32.gmra.mrb[32].mxu1 %vm4402_vm11, %v15173_v23  ;;  %v17056_v23 = vunpack.i.l.bf16 %v17055_v2  ;;  %v14121_v58 = vsel %vm3681_vm9, %v17081_v1, %v17082_v63 }
 0xd81   : > { %13600 = vmatprep.mubr.f32.mxu1 %v17128_v0  ;;  %v15703_v35 = vpack.c.bf16 %v14121_v58, %v14115_v50 }
 0xd82   : > { %v13813_v32 = vsel %vm3305_vm7, %v17056_v23, %v17057_v54  ;;  %v13812_v9 = vsel %vm3305_vm7, %v17042_v56, %v17056_v23  ;;  %v15196_v54 = vld [vmem:[%s20975_s16 + $0x80] sm:$0xff] }
 0xd83   : > { %v15695_v22 = vpack.c.bf16 %v13819_v61, %v13813_v32  ;;  %v15697_v46 = vpack.c.bf16 %v13818_v49, %v13812_v9  ;;  %v15197_v61 = vld [vmem:[%s20975_s16 + $0x88] sm:$0xff]  ;;  %v20827_v49 = vrot.slane %v14411_v62, %v18038_v18  ;;  %v20835_v9 = vrot.slane %v14411_v62, %v18047_v20 }
 0xd84   : > { %15182 = vmatmul.mubr.msk.f32.vlgmr.msra.gmra.mrb[22].mxu1 %vm4402_vm11, %v15180_v31 }
 0xd85   : > { %15686 = vmatpush1.bf16.msra.mxu1 %v15685_v25  ;;  %13606 = vmatprep.mubr.f32.mxu1 %v17128_v0  ;;  %v17086_v25 = vunpack.i.l.bf16 %v17085_v37 }
 0xd86   : > { %15688 = vmatprep.subr.bf16.mxu1 %v15687_v45  ;;  %v17097_v45 = vunpack.i.h.bf16 %v17095_v52 }
 0xd87   : > { %v14114_v17 = vsel %vm3681_vm9, %v17086_v25, %v17076_v40 }
 0xd88   : > { %15183 = vmatmul.mubr.msk.f32.gmra.mrb[24].mxu1 %vm4402_vm11, %v15181_v41  ;;  %v14123_v12 = vsel %vm3681_vm9, %v17096_v3, %v17097_v45  ;;  %v14124_v34 = vsel %vm3681_vm9, %v17097_v45, %v17106_v42 }
 0xd89   : > { %13677 = vmatprep.mubr.f32.mxu1 %v17128_v0 }
 0xd8c   : > { %15184 = vmatmul.mubr.msk.f32.vlgmr.msra.gmra.mrb[26].mxu1 %vm4402_vm11, %v15180_v31 }
 0xd8d   : > { %15690 = vmatpush1.bf16.msra.mxu1 %v15689_v16  ;;  %13683 = vmatprep.mubr.f32.mxu1 %v17128_v0  ;;  %v17107_v16 = vunpack.i.h.bf16 %v17105_v21 }
 0xd8e   : > { %15692 = vmatprep.subr.bf16.mxu1 %v15691_v8 }
 0xd8f   : > { %v14125_v29 = vsel %vm3681_vm9, %v17106_v42, %v17107_v16 }
 0xd90   : > { %15185 = vmatmul.mubr.msk.f32.gmra.mrb[28].mxu1 %vm4402_vm11, %v15181_v41 }
 0xd91   : > { %13754 = vmatprep.mubr.f32.mxu1 %v17128_v0 }
 0xd94   : > { %15186 = vmatmul.mubr.msk.f32.vlgmr.msra.gmra.mrb[30].mxu1 %vm4402_vm11, %v15180_v31  ;;  %v17090_v31 = vpop.permute.xlu0 %17089 }
 0xd95   : > { %15694 = vmatpush1.bf16.msra.mxu1 %v15693_v36  ;;  %13760 = vmatprep.mubr.f32.mxu1 %v17128_v0  ;;  %v17092_v39 = vunpack.i.h.bf16 %v17090_v31  ;;  %v17091_v56 = vunpack.i.l.bf16 %v17090_v31 }
 0xd96   : > { %15696 = vmatprep.subr.bf16.mxu1 %v15695_v22 }
 0xd97   : > { %v14117_v24 = vsel %vm3681_vm9, %v17091_v56, %v17092_v39  ;;  %v14116_v15 = vsel %vm3681_vm9, %v17077_v48, %v17091_v56 }
 0xd98   : > { %15187 = vmatmul.mubr.msk.f32.gmra.mrb[32].mxu1 %vm4402_vm11, %v15181_v41  ;;  %v14120_v41 = vsel %vm3681_vm9, %v17087_v4, %v17081_v1  ;;  %v17100_v6 = vpop.permute.xlu0 %17099  ;;  %v15707_v47 = vpack.c.bf16 %v14123_v12, %v14117_v24  ;;  %v15709_v28 = vpack.c.bf16 %v14122_v30, %v14116_v15 }
 0xd99   : > { %13904 = vmatprep.mubr.f32.mxu1 %v17128_v0  ;;  %v15705_v2 = vpack.c.bf16 %v14120_v41, %v14114_v17  ;;  %v17102_v13 = vunpack.i.h.bf16 %v17100_v6  ;;  %v17101_v8 = vunpack.i.l.bf16 %v17100_v6 }
 0xd9b   : > { %v14119_v23 = vsel %vm3681_vm9, %v17101_v8, %v17102_v13  ;;  %v14118_v36 = vsel %vm3681_vm9, %v17092_v39, %v17101_v8 }
 0xd9c   : > { %15190 = vmatmul.mubr.msk.f32.vlgmr.msra.gmra.mrb[22].mxu1 %vm4402_vm11, %v15188_v11  ;;  %v15711_v10 = vpack.c.bf16 %v14125_v29, %v14119_v23  ;;  %v15713_v32 = vpack.c.bf16 %v14124_v34, %v14118_v36  ;;  %v14392_v7 = vpop.permute.xlu0 %14391 }
 0xd9d   : > { %15698 = vmatpush1.bf16.msra.mxu1 %v15697_v46  ;;  %13910 = vmatprep.mubr.f32.mxu1 %v17128_v0 }
 0xd9e   : > { %15700 = vmatprep.subr.bf16.mxu1 %v15699_v27 }
 0xda0   : > { %15191 = vmatmul.mubr.msk.f32.gmra.mrb[24].mxu1 %vm4402_vm11, %v15189_v53 }
 0xda1   : > { %13981 = vmatprep.mubr.f32.mxu1 %v17128_v0 }
 0xda4   : > { %15192 = vmatmul.mubr.msk.f32.vlgmr.msra.gmra.mrb[26].mxu1 %vm4402_vm11, %v15188_v11 }
 0xda5   : > { %15702 = vmatpush1.bf16.msra.mxu1 %v15701_v33  ;;  %13987 = vmatprep.mubr.f32.mxu1 %v17128_v0  ;;  %v14397_v33 = vpop.permute.xlu1 %14396 }
 0xda6   : > { %15704 = vmatprep.subr.bf16.mxu1 %v15703_v35 }
 0xda8   : > { %15193 = vmatmul.mubr.msk.f32.gmra.mrb[28].mxu1 %vm4402_vm11, %v15189_v53 }
 0xda9   : > { %14058 = vmatprep.mubr.f32.mxu1 %v17128_v0 }
 0xdac   : > { %15194 = vmatmul.mubr.msk.f32.vlgmr.msra.gmra.mrb[30].mxu1 %vm4402_vm11, %v15188_v11 }
 0xdad   : > { %15706 = vmatpush1.bf16.msra.mxu1 %v15705_v2  ;;  %14064 = vmatprep.mubr.f32.mxu1 %v17128_v0 }
 0xdae   : > { %15708 = vmatprep.subr.bf16.mxu1 %v15707_v47 }
 0xdb0   : > { %15195 = vmatmul.mubr.msk.f32.gmra.mrb[32].mxu1 %vm4402_vm11, %v15189_v53 }
 0xdb1   : > { %14208 = vmatprep.mubr.f32.mxu1 %v17128_v0 }
 0xdb4   : > { %15198 = vmatmul.mubr.msk.f32.vlgmr.msra.gmra.mrb[22].mxu1 %vm4402_vm11, %v15196_v54 }
 0xdb5   : > { %15710 = vmatpush1.bf16.msra.mxu1 %v15709_v28  ;;  %14214 = vmatprep.mubr.f32.mxu1 %v17128_v0  ;;  %v14556_v28 = vld [vmem:[%s20977_s18] sm:$0xff] }
 0xdb6   : > { %15712 = vmatprep.subr.bf16.mxu1 %v15711_v10  ;;  %v14580_v10 = vld [vmem:[%s20978_s19] sm:$0xff] }
 0xdb8   : > { %15199 = vmatmul.mubr.msk.f32.gmra.mrb[24].mxu1 %vm4402_vm11, %v15197_v61 }
 0xdb9   : > { %14285 = vmatprep.mubr.f32.mxu1 %v17128_v0 }
 0xdbc   : > { %15200 = vmatmul.mubr.msk.f32.vlgmr.msra.gmra.mrb[26].mxu1 %vm4402_vm11, %v15196_v54 }
 0xdbd   : > { %15714 = vmatpush1.bf16.msra.mxu1 %v15713_v32  ;;  %14291 = vmatprep.mubr.f32.mxu1 %v17128_v0 }
 0xdc0   : > { %15201 = vmatmul.mubr.msk.f32.gmra.mrb[28].mxu1 %vm4402_vm11, %v15197_v61 }
 0xdc1   : > { %14362 = vmatprep.mubr.f32.mxu1 %v17128_v0 }
 0xdc4   : > { %15202 = vmatmul.mubr.msk.f32.vlgmr.msra.gmra.mrb[30].mxu1 %vm4402_vm11, %v15196_v54 }
 0xdc5   : > { %14368 = vmatprep.mubr.f32.mxu1 %v17128_v0 }
 0xdc8   : > { %15203 = vmatmul.mubr.msk.f32.gmra.mrb[32].mxu1 %vm4402_vm11, %v15197_v61 }
 0xe87   : > { %v14210_v22 = vpop.f32.mrb[22].mxu1 }
 0xe88   : > { %v14212_v60 = vpop.f32.mrb[23].mxu1  ;;  %v20824_v59 = vadd.f32 %v14392_v7, %v14210_v22 }
 0xe89   : > { %v20829_v11 = vadd.f32 %v14392_v7, %v14212_v60 }
 0xe8a   : > { %v14443_v46 = vmul.f32 %v20827_v49, %v20824_v59 }
 0xe8b   : > { %v14216_v5 = vpop.f32.mrb[24].mxu1  ;;  %v14444_v44 = vmul.f32 %v20832_v14, %v20829_v11 }
 0xe8c   : > { %v14218_v0 = vpop.f32.mrb[25].mxu1  ;;  %v14405_v4 = vadd.f32 %v14397_v33, %v14216_v5 }
 0xe8d   : > { %v14455_v20 = vadd.f32 %v14444_v44, %v14443_v46  ;;  %v14406_v3 = vadd.f32 %v14397_v33, %v14218_v0 }
 0xe8e   : > { %v14449_v51 = vmul.f32 %v20827_v49, %v14405_v4 }
 0xe8f   : > { %v14287_v55 = vpop.f32.mrb[26].mxu1  ;;  %v14450_v24 = vmul.f32 %v20832_v14, %v14406_v3 }
 0xe90   : > { %v20841_v37 = vadd.f32 %v14392_v7, %v14287_v55  ;;  %v14289_v18 = vpop.f32.mrb[27].mxu1 }
 0xe91   : > { %v14402_v63 = vadd.f32 %v14392_v7, %v14289_v18 }
 0xe92   : > { %v14445_v27 = vmul.f32 %v20835_v9, %v20841_v37 }
 0xe93   : > { %v14293_v1 = vpop.f32.mrb[28].mxu1  ;;  %v14446_v40 = vmul.f32 %v20846_v43, %v14402_v63 }
 0xe94   : > { %v14295_v53 = vpop.f32.mrb[29].mxu1  ;;  %v14456_v48 = vadd.f32 %v14455_v20, %v14445_v27  ;;  %v14407_v17 = vadd.f32 %v14397_v33, %v14293_v1 }
 0xe95   : > { %v14408_v12 = vadd.f32 %v14397_v33, %v14295_v53 }
 0xe96   : > { %v14457_v26 = vadd.f32 %v14456_v48, %v14446_v40  ;;  %v14451_v2 = vmul.f32 %v20835_v9, %v14407_v17 }
 0xe97   : > { %v14364_v58 = vpop.f32.mrb[30].mxu1  ;;  %v14452_v42 = vmul.f32 %v20846_v43, %v14408_v12 }
 0xe98   : > { %v14403_v52 = vadd.f32 %v14392_v7, %v14364_v58  ;;  %v14366_v31 = vpop.f32.mrb[31].mxu1 }
 0xe99   : > { %v14404_v50 = vadd.f32 %v14392_v7, %v14366_v31 }
 0xe9a   : > { %v14447_v25 = vmul.f32 %v20850_v57, %v14403_v52 }
 0xe9b   : > { %v14448_v35 = vmul.f32 %v20853_v19, %v14404_v50  ;;  %v14370_v45 = vpop.f32.mrb[32].mxu1 }
 0xe9c   : > { %v14458_v39 = vadd.f32 %v14457_v26, %v14447_v25  ;;  %v14372_v38 = vpop.f32.mrb[33].mxu1  ;;  %v14409_v16 = vadd.f32 %v14397_v33, %v14370_v45 }
 0xe9d   : > { %v14460_v56 = vsel %vm14459_vm13, %v14448_v35, 0.0  ;;  %v14410_v6 = vadd.f32 %v14397_v33, %v14372_v38 }
 0xe9e   : > { %v14461_v41 = vadd.f32 %v14460_v56, %v14458_v39  ;;  %v14453_v30 = vmul.f32 %v20850_v57, %v14409_v16 }
 0xe9f   : > { %v14454_v8 = vmul.f32 %v20853_v19, %v14410_v6 }
 0xea0   : > { %v14462_v21 = vadd.f32 %v14461_v41, %v14449_v51 }
 0xea1   : > { %v14467_v23 = vsel %vm14459_vm13, %v14454_v8, 0.0 }
 0xea2   : > { %v14463_v47 = vadd.f32 %v14462_v21, %v14450_v24 }
 0xea4   : > { %v14464_v13 = vadd.f32 %v14463_v47, %v14451_v2 }
 0xea6   : > { %v14465_v15 = vadd.f32 %v14464_v13, %v14452_v42 }
 0xea8   : > { %v14466_v54 = vadd.f32 %v14465_v15, %v14453_v30 }
 0xeaa   : > { %v14468_v29 = vadd.f32 %v14467_v23, %v14466_v54 }
 0xeac   : > { %14469 = vadd.xlane.f32.xlu0 %v14468_v29 }
 0xec2   : > { %14560 = vperm.xlu0 %16227, %v14556_v28  }
 0xec6   : > { %14584 = vperm.xlu0 %16227, %v14580_v10   ;;  %v14557_v10 = vld [vmem:[%s20977_s18 + $0x8] sm:$0xff] }
 0xf39   : > { %v14470_v61 = vpop.xlane.xlu0 %14469 }
 0xf3a   : > { %v14471_v34 = vrot.slane %v14470_v61, 4 }
 0xf3c   : > { %v14472_v36 = vadd.f32 %v14471_v34, %v14470_v61  ;;  %v14581_v61 = vld [vmem:[%s20978_s19 + $0x8] sm:$0xff] }
 0xf3e   : > { %v14473_v32 = vrot.slane %v14472_v36, 2 }
 0xf40   : > { %v14474_v22 = vadd.f32 %v14473_v32, %v14472_v36 }
 0xf42   : > { %v14475_v60 = vrot.slane %v14474_v22, 1 }
 0xf44   : > { %v14476_v62 = vadd.f32 %v14475_v60, %v14474_v22 }
 0xf46   : > { %16202 = vpush %v14476_v62 }
 0xf77   : > { %s16203_s7 = spop %16202 }
 0xf78   : > { %s14478_s28 = smul.f32 0.000108506945, %s16203_s7 }
 0xf7a   : > { %v14479_v7 = vstv %s14478_s28 }
 0xf7b   : > { %v20872_v5 = vsub.f32 %v20824_v59, %v14479_v7  ;;  %v20875_v0 = vsub.f32 %v20829_v11, %v14479_v7  ;;  %v20878_v55 = vsub.f32 %v20841_v37, %v14479_v7  ;;  %v20880_v46 = vsub.f32 %v14402_v63, %v14479_v7 }
 0xf7c   : > { %v20886_v27 = vsub.f32 %v14404_v50, %v14479_v7  ;;  %v20888_v1 = vsub.f32 %v14403_v52, %v14479_v7  ;;  %v14486_v53 = vsub.f32 %v14405_v4, %v14479_v7  ;;  %v14487_v52 = vsub.f32 %v14406_v3, %v14479_v7 }
 0xf7d   : > { %v14492_v44 = vmul.f32 %v20872_v5, %v20872_v5  ;;  %v14493_v18 = vmul.f32 %v20875_v0, %v20875_v0  ;;  %v14494_v59 = vmul.f32 %v20878_v55, %v20878_v55  ;;  %v14495_v63 = vmul.f32 %v20880_v46, %v20880_v46 }
 0xf7e   : > { %v14497_v20 = vmul.f32 %v20886_v27, %v20886_v27  ;;  %v14496_v48 = vmul.f32 %v20888_v1, %v20888_v1  ;;  %v14488_v26 = vsub.f32 %v14407_v17, %v14479_v7  ;;  %v14498_v25 = vmul.f32 %v14486_v53, %v14486_v53 }
 0xf7f   : > { %v14504_v11 = vmul.f32 %v14492_v44, %v20827_v49  ;;  %v14505_v37 = vmul.f32 %v14493_v18, %v20832_v14  ;;  %v14506_v40 = vmul.f32 %v14494_v59, %v20835_v9  ;;  %v14507_v31 = vmul.f32 %v14495_v63, %v20846_v43 }
 0xf80   : > { %v14509_v50 = vmul.f32 %v14497_v20, %v20853_v19  ;;  %v14508_v35 = vmul.f32 %v14496_v48, %v20850_v57  ;;  %v14489_v39 = vsub.f32 %v14408_v12, %v14479_v7  ;;  %v14499_v38 = vmul.f32 %v14487_v52, %v14487_v52 }
 0xf81   : > { %v14516_v58 = vadd.f32 %v14505_v37, %v14504_v11  ;;  %v14491_v56 = vsub.f32 %v14410_v6, %v14479_v7  ;;  %v14490_v41 = vsub.f32 %v14409_v16, %v14479_v7  ;;  %v14500_v24 = vmul.f32 %v14488_v26, %v14488_v26 }
 0xf82   : > { %v14520_v51 = vsel %vm14459_vm13, %v14509_v50, 0.0  ;;  %v14510_v3 = vmul.f32 %v14498_v25, %v20827_v49  ;;  %v14501_v2 = vmul.f32 %v14489_v39, %v14489_v39  ;;  %v14511_v47 = vmul.f32 %v14499_v38, %v20832_v14 }
 0xf83   : > { %v14517_v33 = vadd.f32 %v14516_v58, %v14506_v40  ;;  %v14503_v17 = vmul.f32 %v14491_v56, %v14491_v56  ;;  %v14502_v13 = vmul.f32 %v14490_v41, %v14490_v41  ;;  %v14512_v8 = vmul.f32 %v14500_v24, %v20835_v9 }
 0xf84   : > { %v14513_v12 = vmul.f32 %v14501_v2, %v20846_v43 }
 0xf85   : > { %v14518_v45 = vadd.f32 %v14517_v33, %v14507_v31  ;;  %v14515_v6 = vmul.f32 %v14503_v17, %v20853_v19  ;;  %v14514_v16 = vmul.f32 %v14502_v13, %v20850_v57 }
 0xf87   : > { %v14519_v4 = vadd.f32 %v14518_v45, %v14508_v35  ;;  %v14527_v29 = vsel %vm14459_vm13, %v14515_v6, 0.0  ;;  %v14561_v45 = vpop.permute.xlu0 %14560 }
 0xf89   : > { %v14521_v21 = vadd.f32 %v14520_v51, %v14519_v4 }
 0xf8b   : > { %v14522_v42 = vadd.f32 %v14521_v21, %v14510_v3 }
 0xf8d   : > { %v14523_v30 = vadd.f32 %v14522_v42, %v14511_v47 }
 0xf8f   : > { %v14524_v15 = vadd.f32 %v14523_v30, %v14512_v8 }
 0xf91   : > { %v14525_v54 = vadd.f32 %v14524_v15, %v14513_v12  ;;  %v14585_v15 = vpop.permute.xlu0 %14584 }
 0xf93   : > { %v14526_v23 = vadd.f32 %v14525_v54, %v14514_v16 }
 0xf95   : > { %v14528_v28 = vadd.f32 %v14527_v29, %v14526_v23 }
 0xf97   : > { %14529 = vadd.xlane.f32.xlu1 %v14528_v28 }
 0xfa8   : > { %14565 = vperm.xlu1 %16226, %v14557_v10  }
 0xfac   : > { %14589 = vperm.xlu1 %16226, %v14581_v61  }
0x1024   : > { %v14530_v34 = vpop.xlane.xlu1 %14529 }
0x1025   : > { %v14531_v36 = vrot.slane %v14530_v34, 4 }
0x1027   : > { %v14532_v32 = vadd.f32 %v14531_v36, %v14530_v34 }
0x1028   : > { %v14566_v59 = vpop.permute.xlu1 %14565 }
0x1029   : > { %v14533_v22 = vrot.slane %v14532_v32, 2 }
0x102b   : > { %v14534_v60 = vadd.f32 %v14533_v22, %v14532_v32 }
0x102c   : > { %v14590_v38 = vpop.permute.xlu1 %14589 }
0x102d   : > { %v14535_v62 = vrot.slane %v14534_v60, 1 }
0x102f   : > { %v14536_v7 = vadd.f32 %v14535_v62, %v14534_v60 }
0x1031   : > { %16204 = vpush %v14536_v7 }
0x1062   : > { %s16205_s27 = spop %16204 }
0x1063   : > { %s14538_s24 = smul.f32 0.000108506945, %s16205_s27  ;;  %s710_s27 = scalar_lea.vmem %s20982_s23, %s15208_s9 }
0x1065   : > { %s14539_s6 = sadd.f32 1e-05, %s14538_s24 }
0x1067   : > { %v14540_v44 = vstv %s14539_s6 }
0x1068   : > { %17118 = vrsqrt.f32 %v14540_v44 }
0x1072   : > { %v17119_v18 = vpop.eup %17118 }
0x1073   : > { %16206 = vpush %v17119_v18 }
0x10a4   : > { %s16207_s29 = spop %16206 }
0x10a5   : > { %v14543_v11 = vstv %s16207_s29 }
0x10a6   : > { %v14550_v37 = vmul.f32 %v14543_v11, %v14486_v53  ;;  %v14551_v63 = vmul.f32 %v14543_v11, %v14487_v52  ;;  %v14552_v20 = vmul.f32 %v14543_v11, %v14488_v26  ;;  %v14553_v48 = vmul.f32 %v14543_v11, %v14489_v39 }
0x10a7   : > { %v14554_v40 = vmul.f32 %v14543_v11, %v14490_v41  ;;  %v14555_v58 = vmul.f32 %v14543_v11, %v14491_v56  ;;  %v14544_v31 = vmul.f32 %v14543_v11, %v20872_v5  ;;  %v14545_v24 = vmul.f32 %v14543_v11, %v20875_v0 }
0x10a8   : > { %v14574_v33 = vmul.f32 %v14566_v59, %v14550_v37  ;;  %v14575_v50 = vmul.f32 %v14566_v59, %v14551_v63  ;;  %v14576_v25 = vmul.f32 %v14566_v59, %v14552_v20  ;;  %v14577_v35 = vmul.f32 %v14566_v59, %v14553_v48 }
0x10a9   : > { %v14578_v4 = vmul.f32 %v14566_v59, %v14554_v40  ;;  %v14579_v51 = vmul.f32 %v14566_v59, %v14555_v58  ;;  %v14546_v3 = vmul.f32 %v14543_v11, %v20878_v55  ;;  %v14547_v5 = vmul.f32 %v14543_v11, %v20880_v46 }
0x10aa   : > { %v14598_v53 = vadd.f32 %v14590_v38, %v14574_v33  ;;  %v14599_v52 = vadd.f32 %v14590_v38, %v14575_v50  ;;  %v14600_v26 = vadd.f32 %v14590_v38, %v14576_v25  ;;  %v14601_v39 = vadd.f32 %v14590_v38, %v14577_v35 }
0x10ab   : > { %v14602_v41 = vadd.f32 %v14590_v38, %v14578_v4  ;;  %v14603_v56 = vadd.f32 %v14590_v38, %v14579_v51  ;;  %v14548_v21 = vmul.f32 %v14543_v11, %v20888_v1  ;;  %v14549_v17 = vmul.f32 %v14543_v11, %v20886_v27 }
0x10ac   : > { %v14610_v2 = vmax.f32 %v14598_v53, 0.0  ;;  %v14611_v47 = vmax.f32 %v14599_v52, 0.0  ;;  %v14612_v42 = vmax.f32 %v14600_v26, 0.0  ;;  %v14568_v13 = vmul.f32 %v14561_v45, %v14544_v31  ;;  %v14649_v52 = vld [vmem:[%s20981_s22 + $0x8] sm:$0x3]  ;;  %v14648_v26 = vld [vmem:[%s20981_s22] sm:$0xff] }
0x10ad   : > { %v14569_v8 = vmul.f32 %v14561_v45, %v14545_v24  ;;  %v14613_v0 = vmax.f32 %v14601_v39, 0.0  ;;  %v14614_v30 = vmax.f32 %v14602_v41, 0.0  ;;  %v14615_v6 = vmax.f32 %v14603_v56, 0.0 }
0x10ae   : > { %v14622_v55 = vmul.f32 %v14610_v2, %v20827_v49  ;;  %v14623_v12 = vmul.f32 %v14611_v47, %v20832_v14  ;;  %v14624_v16 = vmul.f32 %v14612_v42, %v20835_v9  ;;  %v14570_v46 = vmul.f32 %v14561_v45, %v14546_v3 }
0x10af   : > { %v14571_v54 = vmul.f32 %v14561_v45, %v14547_v5  ;;  %v14572_v23 = vmul.f32 %v14561_v45, %v14548_v21  ;;  %v14573_v29 = vmul.f32 %v14561_v45, %v14549_v17  ;;  %v14592_v28 = vadd.f32 %v14585_v15, %v14568_v13 }
0x10b0   : > { %v14636_v1 = vadd.f32 %v14623_v12, %v14622_v55  ;;  %v14593_v10 = vadd.f32 %v14585_v15, %v14569_v8  ;;  %v14594_v27 = vadd.f32 %v14585_v15, %v14570_v46  ;;  %v14625_v34 = vmul.f32 %v14613_v0, %v20846_v43 }
0x10b1   : > { %v14595_v61 = vadd.f32 %v14585_v15, %v14571_v54  ;;  %v14597_v32 = vadd.f32 %v14585_v15, %v14573_v29  ;;  %v14604_v22 = vmax.f32 %v14592_v28, 0.0  ;;  %v14627_v60 = vmul.f32 %v14615_v6, %v20853_v19 }
0x10b2   : > { %v14637_v36 = vadd.f32 %v14636_v1, %v14624_v16  ;;  %v14596_v62 = vadd.f32 %v14585_v15, %v14572_v23  ;;  %v14605_v7 = vmax.f32 %v14593_v10, 0.0  ;;  %v14606_v44 = vmax.f32 %v14594_v27, 0.0 }
0x10b3   : > { %v14626_v18 = vmul.f32 %v14614_v30, %v20850_v57  ;;  %v14616_v11 = vmul.f32 %v14604_v22, %v20827_v49  ;;  %v14607_v37 = vmax.f32 %v14595_v61, 0.0  ;;  %v14609_v48 = vmax.f32 %v14597_v32, 0.0 }
0x10b4   : > { %v14638_v59 = vadd.f32 %v14637_v36, %v14625_v34  ;;  %v14617_v63 = vmul.f32 %v14605_v7, %v20832_v14  ;;  %v14640_v40 = vsel %vm14459_vm13, %v14627_v60, 0.0  ;;  %v14608_v58 = vmax.f32 %v14596_v62, 0.0 }
0x10b5   : > { %v14618_v31 = vmul.f32 %v14606_v44, %v20835_v9  ;;  %v14619_v25 = vmul.f32 %v14607_v37, %v20846_v43  ;;  %v14621_v45 = vmul.f32 %v14609_v48, %v20853_v19  ;;  %v14646_v9 = vld [vmem:[%s20980_s21] sm:$0xff] }
0x10b6   : > { %v14639_v20 = vadd.f32 %v14638_v59, %v14626_v18  ;;  %v14628_v33 = vadd.f32 %v14617_v63, %v14616_v11  ;;  %v14620_v49 = vmul.f32 %v14608_v58, %v20850_v57  ;;  %15316 = vmatprep.mubr.msk.f32.mxu0 %vm4402_vm11, %v14646_v9  ;;  %v14647_v57 = vld [vmem:[%s20980_s21 + $0x8] sm:$0x3] }
0x10b7   : > { %v14632_v4 = vsel %vm14459_vm13, %v14621_v45, 0.0 }
0x10b8   : > { %v14641_v50 = vadd.f32 %v14640_v40, %v14639_v20  ;;  %v14629_v35 = vadd.f32 %v14628_v33, %v14618_v31 }
0x10ba   : > { %14642 = vadd.xlane.f32.xlu1 %v14641_v50  ;;  %v14630_v38 = vadd.f32 %v14629_v35, %v14619_v25 }
0x10bc   : > { %v14631_v14 = vadd.f32 %v14630_v38, %v14620_v49 }
0x10be   : > { %v14633_v51 = vadd.f32 %v14632_v4, %v14631_v14 }
0x10c0   : > { %14634 = vadd.xlane.f32.xlu0 %v14633_v51 }
0x1147   : > { %v14643_v43 = vpop.xlane.xlu1 %14642 }
0x1148   : > { %v14645_v24 = vmul.f32 0.0017361111, %v14643_v43 }
0x114d   : > { %v14635_v3 = vpop.xlane.xlu0 %14634 }
0x114e   : > { %v14644_v53 = vmul.f32 0.0017361111, %v14635_v3 }
0x1150   : > { %v15715_v19 = vpack.c.bf16 %v14645_v24, %v14644_v53 }
0x1152   : > { %15716 = vmatprep.subr.bf16.mxu0 %v15715_v19 }
0x1153   : > { %15718 = vmatpush3.bf16.msra.mxu0 %v15715_v19 }
0x1156   : > { %15317 = vmatmul.mubr.msk.f32.vlgmr.msra.gmra.mrb[32].mxu0 %vm4402_vm11, %v14647_v57 }
0x1229   : > { %v15318_v39 = vpop.f32.mrb[32].mxu0 }
0x122a   : > { %v14728_v41 = vadd.f32 %v15318_v39, %v14649_v52  ;;  %v14722_v56 = vpop.f32.mrb[33].mxu0 }
0x122b   : > { %v14723_v5 = vadd.f32 %v14722_v56, %v14648_v26 }
0x122c   : > { %14734 = vst.msk [vmem:[%s710_s27 + $0x8] sm:$0x3] %vm14733_vm14, %v14728_v41 }
0x122d   : > { %14732 = vst.msk [vmem:[%s710_s27] sm:$0xff] %vm14731_vm15, %v14723_v5 }
0x122e PF: > { %s33_s4 = sadd.s32 1, %s17126_s4  }
0x122f   : > { %p30_p4 = scmp.ge.s32.totalorder %s33_s4, 4  }
0x1231   :  { %32 = sbr.rel (!%p30_p4) target bundleno = 11 (0xb), region = 174 }

</bundles_post_ra>
